<compile_context>
chip_gen: v6e
topology: v6e:2x2x1
jax: 0.10.0
libtpu: 0.0.40
codegen_flags: <defaults>
</compile_context>

<pallas_src>
import functools
import math

import jax
import jax.numpy as jnp
from jax import lax
from jax.experimental import pallas as pl
from jax.experimental.pallas import tpu as pltpu

_MIB = 1024 * 1024


# ----------------------------------------------------------------------------
# In-kernel helpers
# ----------------------------------------------------------------------------

def _mxu(a, b, trans_b=False):
    """MXU matmul with f32 accumulation.  Weights are pre-cast to bf16 on the
    host (no per-step weight-side cast); activations are cast here."""
    a16 = a.astype(jnp.bfloat16)
    b16 = b.astype(jnp.bfloat16)                      # no-op when already bf16
    contract_b = b.ndim - 1 if trans_b else 0
    dims = (((a.ndim - 1,), (contract_b,)), ((), ()))
    return lax.dot_general(a16, b16, dims, preferred_element_type=jnp.float32)


def _layer_norm(z, g, b, eps):
    mu = jnp.mean(z, axis=-1, keepdims=True)
    var = jnp.mean((z - mu) ** 2, axis=-1, keepdims=True)
    return (z - mu) * lax.rsqrt(var + eps) * g + b


# ----------------------------------------------------------------------------
# Wrapper-side helpers
# ----------------------------------------------------------------------------

def _pick_batch_tile(B, S):
    """Batch elements per grid step: Bt*S rows fill the MXU (128 rows v5e,
    256 rows v6e/v7x) and amortize the ~0.35us per-step overhead, while still
    keeping >=2 grid tiles when the batch allows it (v7x has 2 TensorCores)."""
    bt = max(1, min(B, max(1, 256 // max(S, 1))))
    if B // bt < 2 and bt > 1 and (bt // 2) * S >= 128:
        bt = bt // 2
    while B % bt:                                     # must divide the batch
        bt -= 1
    return bt


def _clamp_vmem(nbytes):
    """VMEM limit: never below the 32 MiB scoped default, never above 56 MiB
    so the same plan cannot OOM v7x's 64 MiB physical VMEM (v5e/v6e: 128)."""
    return int(min(56 * _MIB, max(32 * _MIB, nbytes)))


def _const_spec(shape, index_map):
    """BlockSpec for a block whose index never changes: single-buffer it so it
    is held once in VMEM (no pipelining is lost — it is never re-fetched)."""
    try:
        return pl.BlockSpec(shape, index_map, pipeline_mode=pl.Buffered(1))
    except (TypeError, ValueError):                   # older Pallas: default 2
        return pl.BlockSpec(shape, index_map)


def _stack_vmem_estimate(Bt, S, Din, E, FF, heads):
    bf, f32 = 2, 4
    layer_w = (E * 3 * E + E * E + E * FF + FF * E) * bf       # streamed bf16 weights
    layer_b = (3 * E + E + 4 * E + FF) * f32                   # biases + LN params
    consts = (Din * E + S * E) * bf + E * f32                  # ve_w, pe, ve_b
    blocks = Bt * S * Din * f32 + Bt * S * E * bf              # x-in, out blocks
    scratch = Bt * S * E * f32                                  # residual carry
    temps = (Bt * S * (3 * E + FF + 4 * E) * f32                # qkv / ffn temps
             + 2 * heads * S * S * f32)                         # per-seq scores
    return 2 * (layer_w + layer_b + blocks) + consts + scratch + temps


def _head_vmem_estimate(Bt, S, Sm, Sl, E, Lout):
    bf, f32 = 2, 4
    weights = ((3 * E * E + E * E + E * Lout + S * Sm + S * Sl) * bf
               + (2 * E + Lout) * f32)
    blocks = Bt * (S + Sm + Sl) * E * bf + Bt * Lout * f32
    temps = 4 * Bt * S * E * f32
    return 2 * blocks + weights + temps


# ----------------------------------------------------------------------------
# Fused transformer-stack kernel: ValueEncoder + PE + n_layers encoder layers.
# Grid = (batch tiles [parallel], layers [arbitrary]); per-layer weights are
# streamed; residual stream lives in an f32 VMEM scratch.
# ----------------------------------------------------------------------------

def _stack_kernel(x_ref, pe_ref, vew_ref, veb_ref,
                  wqkv_ref, bqkv_ref, wo_ref, bo_ref,
                  ln1g_ref, ln1b_ref, wff1_ref, bff1_ref,
                  wff2_ref, bff2_ref, ln2g_ref, ln2b_ref,
                  o_ref, h_ref, *, heads, eps):
    layer = pl.program_id(1)
    Bt, S, E = h_ref.shape
    dh = E // heads
    scale = 1.0 / math.sqrt(dh)

    # ---- first layer step of each batch tile: ValueEncoder + PositionalEnc ----
    @pl.when(layer == 0)
    def _():
        x2d = x_ref[...].reshape(Bt * S, x_ref.shape[-1])          # (Bt*S, Din)
        h0 = _mxu(x2d, vew_ref[...]) + veb_ref[...]                # (Bt*S, E) f32
        h_ref[...] = h0.reshape(Bt, S, E) + pe_ref[...]            # + PE (bf16->f32)

    h2d = h_ref[...].reshape(Bt * S, E)                            # f32 residual

    # ---- fused QKV projection over the whole batch tile (fills the MXU) ----
    qkv = _mxu(h2d, wqkv_ref[0]) + bqkv_ref[0]                     # (Bt*S, 3E) f32
    q2d = qkv[:, 0:E]
    k2d = qkv[:, E:2 * E]
    v2d = qkv[:, 2 * E:3 * E]

    # ---- multi-head attention: one relayout + batched-head einsums ----
    attn_parts = []
    for b in range(Bt):                                            # per-sequence
        sl = slice(b * S, (b + 1) * S)
        qh = pltpu.einshape("shd->hsd",
                            q2d[sl].reshape(S, heads, dh)).astype(jnp.bfloat16)
        kh = pltpu.einshape("shd->hsd",
                            k2d[sl].reshape(S, heads, dh)).astype(jnp.bfloat16)
        vh = pltpu.einshape("shd->hsd",
                            v2d[sl].reshape(S, heads, dh)).astype(jnp.bfloat16)
        s = jnp.einsum("hqd,hkd->hqk", qh, kh,
                       preferred_element_type=jnp.float32) * scale  # (H, S, S)
        m = jnp.max(s, axis=-1, keepdims=True)
        p = jnp.exp(s - m)
        p = p * pl.reciprocal(jnp.sum(p, axis=-1, keepdims=True), approx=True)
        ob = jnp.einsum("hqk,hkd->hqd", p.astype(jnp.bfloat16), vh,
                        preferred_element_type=jnp.float32)          # (H, S, dh)
        attn_parts.append(pltpu.einshape("hsd->shd", ob).reshape(S, E))
    attn = jnp.concatenate(attn_parts, axis=0)                       # (Bt*S, E)

    attn = _mxu(attn, wo_ref[0]) + bo_ref[0]                         # out proj
    h2d = _layer_norm(h2d + attn, ln1g_ref[0], ln1b_ref[0], eps)

    # ---- FFN (E -> 4E -> E), flattened across the batch tile ----
    ff = jnp.maximum(_mxu(h2d, wff1_ref[0]) + bff1_ref[0], 0.0)
    ff = _mxu(ff, wff2_ref[0]) + bff2_ref[0]
    h2d = _layer_norm(h2d + ff, ln2g_ref[0], ln2b_ref[0], eps)

    h_ref[...] = h2d.reshape(Bt, S, E)

    # ---- write the bf16 output block only once, after the last layer ----
    @pl.when(layer == pl.num_programs(1) - 1)
    def _():
        o_ref[...] = h2d.reshape(Bt, S, E).astype(o_ref.dtype)


def transformer_stack_pallas(xr, pe, ve_w, ve_b, stack, *, heads, eps=1e-5):
    """xr: (B, S, Din) f32 -> (B, S, E) bf16."""
    B, S, Din = xr.shape
    E = ve_w.shape[1]
    L = stack["wqkv"].shape[0]
    FF = stack["w_ff1"].shape[2]
    Bt = _pick_batch_tile(B, S)

    def perlayer(shape):
        return pl.BlockSpec(shape, lambda b, l: (l, 0, 0))          # streamed

    kernel = functools.partial(_stack_kernel, heads=heads, eps=eps)
    vmem_limit = _clamp_vmem(2 * _stack_vmem_estimate(Bt, S, Din, E, FF, heads))

    return pl.pallas_call(
        kernel,
        out_shape=jax.ShapeDtypeStruct((B, S, E), jnp.bfloat16),
        grid=(B // Bt, L),
        in_specs=[
            pl.BlockSpec((Bt, S, Din), lambda b, l: (b, 0, 0)),     # x
            _const_spec((S, E), lambda b, l: (0, 0)),               # pe (bf16)
            _const_spec((Din, E), lambda b, l: (0, 0)),             # value enc W
            _const_spec((1, E), lambda b, l: (0, 0)),               # value enc b
            perlayer((1, E, 3 * E)), perlayer((1, 1, 3 * E)),       # qkv
            perlayer((1, E, E)), perlayer((1, 1, E)),               # out proj
            perlayer((1, 1, E)), perlayer((1, 1, E)),               # ln1
            perlayer((1, E, FF)), perlayer((1, 1, FF)),             # ff1
            perlayer((1, FF, E)), perlayer((1, 1, E)),              # ff2
            perlayer((1, 1, E)), perlayer((1, 1, E)),               # ln2
        ],
        out_specs=pl.BlockSpec((Bt, S, E), lambda b, l: (b, 0, 0)),
        scratch_shapes=[pltpu.VMEM((Bt, S, E), jnp.float32)],       # residual
        compiler_params=pltpu.CompilerParams(
            dimension_semantics=("parallel", "arbitrary"),
            vmem_limit_bytes=vmem_limit),
    )(xr, pe, ve_w, ve_b[None, :],
      stack["wqkv"], stack["bqkv"], stack["wo"], stack["bo"],
      stack["ln1_g"], stack["ln1_b"],
      stack["w_ff1"], stack["b_ff1"], stack["w_ff2"], stack["b_ff2"],
      stack["ln2_g"], stack["ln2_b"])


# ----------------------------------------------------------------------------
# Fused head kernel: interpolate + concat + fusion + linear1 + ReLU + mean +
# linear2.  Consumes bf16 stream outputs; the (B, S, 3E) concat never exists.
# ----------------------------------------------------------------------------

def _head_kernel(xh_ref, xm_ref, xl_ref, im_ref, il_ref,
                 wf_ref, bf_ref, w1_ref, b1_ref, w2_ref, b2_ref, o_ref):
    Bt, S, E = xh_ref.shape
    Lout = o_ref.shape[-1]

    # linear interpolation of mid/low streams as (S, S_src) matmuls
    xm2d = jnp.concatenate([_mxu(im_ref[...], xm_ref[b]) for b in range(Bt)], axis=0)
    xl2d = jnp.concatenate([_mxu(il_ref[...], xl_ref[b]) for b in range(Bt)], axis=0)
    xh2d = xh_ref[...].reshape(Bt * S, E)                          # bf16

    # fusion_layer on cat([xh, xm, xl]) as three E-wide partial matmuls
    fused = (_mxu(xh2d, wf_ref[0:E, :])
             + _mxu(xm2d, wf_ref[E:2 * E, :])
             + _mxu(xl2d, wf_ref[2 * E:3 * E, :])
             + bf_ref[...])                                        # (Bt*S, E)

    h1 = jnp.maximum(_mxu(fused, w1_ref[...]) + b1_ref[...], 0.0)  # linear1+ReLU
    ctx = jnp.mean(h1.reshape(Bt, S, E), axis=1)                   # mean over seq
    out = _mxu(ctx, w2_ref[...]) + b2_ref[...]                     # linear2
    o_ref[...] = out.reshape(Bt, 1, Lout).astype(o_ref.dtype)


def head_pallas(xh, xm, xl, im, il, wf, bf_, w1, b1, w2, b2):
    B, S, E = xh.shape
    Sm, Sl = xm.shape[1], xl.shape[1]
    Lout = w2.shape[1]
    Bt = _pick_batch_tile(B, S)
    vmem_limit = _clamp_vmem(2 * _head_vmem_estimate(Bt, S, Sm, Sl, E, Lout))

    out = pl.pallas_call(
        _head_kernel,
        out_shape=jax.ShapeDtypeStruct((B, 1, Lout), jnp.float32),
        grid=(B // Bt,),
        in_specs=[
            pl.BlockSpec((Bt, S, E), lambda b: (b, 0, 0)),
            pl.BlockSpec((Bt, Sm, E), lambda b: (b, 0, 0)),
            pl.BlockSpec((Bt, Sl, E), lambda b: (b, 0, 0)),
            _const_spec((S, Sm), lambda b: (0, 0)),
            _const_spec((S, Sl), lambda b: (0, 0)),
            _const_spec((3 * E, E), lambda b: (0, 0)),
            _const_spec((1, E), lambda b: (0, 0)),
            _const_spec((E, E), lambda b: (0, 0)),
            _const_spec((1, E), lambda b: (0, 0)),
            _const_spec((E, Lout), lambda b: (0, 0)),
            _const_spec((1, Lout), lambda b: (0, 0)),
        ],
        out_specs=pl.BlockSpec((Bt, 1, Lout), lambda b: (b, 0, 0)),
        compiler_params=pltpu.CompilerParams(
            dimension_semantics=("parallel",),
            vmem_limit_bytes=vmem_limit),
    )(xh, xm, xl, im, il, wf, bf_[None, :], w1, b1[None, :], w2, b2[None, :])
    return out.reshape(B, Lout)


# ----------------------------------------------------------------------------
# Host-side constants (constant-folded under jit)
# ----------------------------------------------------------------------------

def sinusoidal_pe(seq_len, d_model):
    pos = jnp.arange(seq_len, dtype=jnp.float32)[:, None]
    div = jnp.exp(jnp.arange(0, d_model, 2, dtype=jnp.float32)
                  * (-math.log(10000.0) / d_model))
    pe = jnp.zeros((seq_len, d_model), jnp.float32)
    pe = pe.at[:, 0::2].set(jnp.sin(pos * div))
    pe = pe.at[:, 1::2].set(jnp.cos(pos * div))
    return pe


def interpolation_matrix(src_len, dst_len):
    """Matrix form of F.interpolate(mode='linear', align_corners=False)."""
    if src_len == dst_len:
        return jnp.eye(dst_len, dtype=jnp.float32)
    coords = (jnp.arange(dst_len, dtype=jnp.float32) + 0.5) * (src_len / dst_len) - 0.5
    coords = jnp.clip(coords, 0.0, src_len - 1)
    lo = jnp.floor(coords).astype(jnp.int32)
    hi = jnp.minimum(lo + 1, src_len - 1)
    w = coords - lo.astype(jnp.float32)
    m_lo = jax.nn.one_hot(lo, src_len, dtype=jnp.float32) * (1.0 - w)[:, None]
    m_hi = jax.nn.one_hot(hi, src_len, dtype=jnp.float32) * w[:, None]
    return m_lo + m_hi


# ----------------------------------------------------------------------------
# Forward pass
# ----------------------------------------------------------------------------

def mtst_forward(params, x, high_res, mid_res, low_res, *, heads):
    x_high = x[:, ::high_res, :]
    x_mid = x[:, ::mid_res, :]
    x_low = x[:, ::low_res, :]
    E = params["ve_w"].shape[1]

    def process(xr, stack):
        pe = sinusoidal_pe(xr.shape[1], E).astype(jnp.bfloat16)
        return transformer_stack_pallas(xr, pe, params["ve_w"], params["ve_b"],
                                        stack, heads=heads)

    xh = process(x_high, params["t_high"])                         # (B, S, E)  bf16
    xm = process(x_mid, params["t_mid"])                           # (B, Sm, E) bf16
    xl = process(x_low, params["t_low"])                           # (B, Sl, E) bf16

    S = xh.shape[1]
    im = interpolation_matrix(xm.shape[1], S).astype(jnp.bfloat16)
    il = interpolation_matrix(xl.shape[1], S).astype(jnp.bfloat16)

    return head_pallas(xh, xm, xl, im, il,
                       params["wf"], params["bf"], params["w1"], params["b1"],
                       params["w2"], params["b2"])                 # (B, output_len)


# ----------------------------------------------------------------------------
# Deterministic parameter construction (stacked, fused-QKV, bf16 weights)
# ----------------------------------------------------------------------------

def _init_linear(key, fan_in, fan_out):
    kw, kb = jax.random.split(key)
    w = jax.random.normal(kw, (fan_in, fan_out), jnp.float32) / math.sqrt(fan_in)
    b = 0.01 * jax.random.normal(kb, (fan_out,), jnp.float32)
    return w, b


def _init_stack(key, embed_dim, n_layers, ff_dim):
    wqkv, bqkv, wo, bo = [], [], [], []
    wff1, bff1, wff2, bff2 = [], [], [], []
    ln1g, ln1b, ln2g, ln2b = [], [], [], []
    for lk in jax.random.split(key, n_layers):
        k = jax.random.split(lk, 6)
        wq, bq = _init_linear(k[0], embed_dim, embed_dim)
        wk, bk = _init_linear(k[1], embed_dim, embed_dim)
        wv, bv = _init_linear(k[2], embed_dim, embed_dim)
        wo_l, bo_l = _init_linear(k[3], embed_dim, embed_dim)
        w1, b1 = _init_linear(k[4], embed_dim, ff_dim)
        w2, b2 = _init_linear(k[5], ff_dim, embed_dim)
        wqkv.append(jnp.concatenate([wq, wk, wv], axis=1))
        bqkv.append(jnp.concatenate([bq, bk, bv])[None, :])
        wo.append(wo_l); bo.append(bo_l[None, :])
        wff1.append(w1); bff1.append(b1[None, :])
        wff2.append(w2); bff2.append(b2[None, :])
        ln1g.append(jnp.ones((1, embed_dim), jnp.float32))
        ln1b.append(jnp.zeros((1, embed_dim), jnp.float32))
        ln2g.append(jnp.ones((1, embed_dim), jnp.float32))
        ln2b.append(jnp.zeros((1, embed_dim), jnp.float32))
    st = lambda xs: jnp.stack(xs, axis=0)
    bf16 = lambda a: a.astype(jnp.bfloat16)
    return dict(wqkv=bf16(st(wqkv)), bqkv=st(bqkv),
                wo=bf16(st(wo)), bo=st(bo),
                ln1_g=st(ln1g), ln1_b=st(ln1b),
                w_ff1=bf16(st(wff1)), b_ff1=st(bff1),
                w_ff2=bf16(st(wff2)), b_ff2=st(bff2),
                ln2_g=st(ln2g), ln2_b=st(ln2b))


def init_params(key, input_dim, embed_dim, heads, n_layers, output_len):
    assert embed_dim % heads == 0
    ff_dim = 4 * embed_dim
    k = jax.random.split(key, 8)
    ve_w, ve_b = _init_linear(k[0], input_dim, embed_dim)
    wf, bf_ = _init_linear(k[1], embed_dim * 3, embed_dim)
    w1, b1 = _init_linear(k[2], embed_dim, embed_dim)
    w2, b2 = _init_linear(k[3], embed_dim, output_len)
    bf16 = lambda a: a.astype(jnp.bfloat16)
    return dict(
        ve_w=bf16(ve_w), ve_b=ve_b,
        t_high=_init_stack(k[4], embed_dim, n_layers, ff_dim),
        t_mid=_init_stack(k[5], embed_dim, n_layers, ff_dim),
        t_low=_init_stack(k[6], embed_dim, n_layers, ff_dim),
        wf=bf16(wf), bf=bf_, w1=bf16(w1), b1=b1, w2=bf16(w2), b2=b2,
    )


# ----------------------------------------------------------------------------
# Main
# ----------------------------------------------------------------------------

if __name__ == "__main__":
    B, S, input_dim = 2, 16, 4
    embed_dim, heads, n_layers, output_len = 32, 4, 2, 8
    high_res, mid_res, low_res = 1, 2, 4

    key = jax.random.PRNGKey(0)
    kx, kp = jax.random.split(key)
    x = jax.random.normal(kx, (B, S, input_dim), jnp.float32)
    params = init_params(kp, input_dim, embed_dim, heads, n_layers, output_len)

    fwd = jax.jit(lambda p, xx: mtst_forward(p, xx, high_res, mid_res, low_res,
                                             heads=heads))
    forecast = jax.block_until_ready(fwd(params, x))

    assert forecast.shape == (B, output_len), forecast.shape
    assert jnp.all(jnp.isfinite(forecast))
    print("KERNEL_OK")
</pallas_src>

<mosaic_0001>
module attributes {stable_mosaic.version = 11 : i64} {
  func.func @_stack_kernel(%arg0: i32, %arg1: i32, %arg2: memref<2x8x4xf32, #tpu.memory_space<vmem>>, %arg3: memref<8x32xbf16, #tpu.memory_space<vmem>>, %arg4: memref<4x32xbf16, #tpu.memory_space<vmem>>, %arg5: memref<1x32xf32, #tpu.memory_space<vmem>>, %arg6: memref<1x32x96xbf16, #tpu.memory_space<vmem>>, %arg7: memref<1x1x96xf32, #tpu.memory_space<vmem>>, %arg8: memref<1x32x32xbf16, #tpu.memory_space<vmem>>, %arg9: memref<1x1x32xf32, #tpu.memory_space<vmem>>, %arg10: memref<1x1x32xf32, #tpu.memory_space<vmem>>, %arg11: memref<1x1x32xf32, #tpu.memory_space<vmem>>, %arg12: memref<1x32x128xbf16, #tpu.memory_space<vmem>>, %arg13: memref<1x1x128xf32, #tpu.memory_space<vmem>>, %arg14: memref<1x128x32xbf16, #tpu.memory_space<vmem>>, %arg15: memref<1x1x32xf32, #tpu.memory_space<vmem>>, %arg16: memref<1x1x32xf32, #tpu.memory_space<vmem>>, %arg17: memref<1x1x32xf32, #tpu.memory_space<vmem>>, %arg18: memref<2x8x32xbf16, #tpu.memory_space<vmem>>, %arg19: memref<2x8x32xf32, #tpu.memory_space<vmem>>) attributes {dimension_semantics = [#tpu.dimension_semantics<parallel>, #tpu.dimension_semantics<arbitrary>], iteration_bounds = array<i64: 1, 2>, scalar_prefetch = 0 : i64, scratch_operands = 1 : i64, tpu.core_type = #tpu.core_type<tc>, window_params = [{transform_indices = @transform_0, window_bounds = array<i64: 2, 8, 4>}, {pipeline_mode = #tpu.pipeline_mode<synchronous>, transform_indices = @transform_1, window_bounds = array<i64: 8, 32>}, {pipeline_mode = #tpu.pipeline_mode<synchronous>, transform_indices = @transform_2, window_bounds = array<i64: 4, 32>}, {pipeline_mode = #tpu.pipeline_mode<synchronous>, transform_indices = @transform_3, window_bounds = array<i64: 1, 32>}, {transform_indices = @transform_4, window_bounds = array<i64: 1, 32, 96>}, {transform_indices = @transform_5, window_bounds = array<i64: 1, 1, 96>}, {transform_indices = @transform_6, window_bounds = array<i64: 1, 32, 32>}, {transform_indices = @transform_7, window_bounds = array<i64: 1, 1, 32>}, {transform_indices = @transform_8, window_bounds = array<i64: 1, 1, 32>}, {transform_indices = @transform_9, window_bounds = array<i64: 1, 1, 32>}, {transform_indices = @transform_10, window_bounds = array<i64: 1, 32, 128>}, {transform_indices = @transform_11, window_bounds = array<i64: 1, 1, 128>}, {transform_indices = @transform_12, window_bounds = array<i64: 1, 128, 32>}, {transform_indices = @transform_13, window_bounds = array<i64: 1, 1, 32>}, {transform_indices = @transform_14, window_bounds = array<i64: 1, 1, 32>}, {transform_indices = @transform_15, window_bounds = array<i64: 1, 1, 32>}, {transform_indices = @transform_16, window_bounds = array<i64: 2, 8, 32>}]} {
    %c0_i32 = arith.constant 0 : i32
    %0 = arith.cmpi eq, %arg1, %c0_i32 : i32
    %1 = arith.extui %0 : i1 to i32
    %c0_i32_0 = arith.constant 0 : i32
    %2 = arith.cmpi ne, %1, %c0_i32_0 : i32
    scf.if %2 {
      %c0_67 = arith.constant 0 : index
      %c0_68 = arith.constant 0 : index
      %c0_69 = arith.constant 0 : index
      %160 = vector.load %arg2[%c0_67, %c0_68, %c0_69] : memref<2x8x4xf32, #tpu.memory_space<vmem>>, vector<2x8x4xf32>
      %161 = vector.shape_cast %160 : vector<2x8x4xf32> to vector<16x4xf32>
      %c0_70 = arith.constant 0 : index
      %c0_71 = arith.constant 0 : index
      %162 = vector.load %arg4[%c0_70, %c0_71] : memref<4x32xbf16, #tpu.memory_space<vmem>>, vector<4x32xbf16>
      %163 = arith.truncf %161 : vector<16x4xf32> to vector<16x4xbf16>
      %cst_72 = arith.constant dense<0.000000e+00> : vector<16x32xf32>
      %164 = tpu.matmul %163, %162, %cst_72 {dimension_numbers = #tpu.dot_dimension_numbers<[1], [0], [0], [1], [0, 0, 1, 1], [], []>} : vector<16x4xbf16>, vector<4x32xbf16>, vector<16x32xf32> -> vector<16x32xf32>
      %c0_73 = arith.constant 0 : index
      %c0_74 = arith.constant 0 : index
      %165 = vector.load %arg5[%c0_73, %c0_74] : memref<1x32xf32, #tpu.memory_space<vmem>>, vector<1x32xf32>
      %166 = vector.broadcast %165 : vector<1x32xf32> to vector<16x32xf32>
      %167 = arith.addf %164, %166 : vector<16x32xf32>
      %168 = vector.shape_cast %167 : vector<16x32xf32> to vector<2x8x32xf32>
      %c0_75 = arith.constant 0 : index
      %c0_76 = arith.constant 0 : index
      %169 = vector.load %arg3[%c0_75, %c0_76] : memref<8x32xbf16, #tpu.memory_space<vmem>>, vector<8x32xbf16>
      %170 = arith.extf %169 : vector<8x32xbf16> to vector<8x32xf32>
      %171 = vector.shape_cast %170 : vector<8x32xf32> to vector<1x8x32xf32>
      %172 = vector.broadcast %171 : vector<1x8x32xf32> to vector<2x8x32xf32>
      %173 = arith.addf %168, %172 : vector<2x8x32xf32>
      %c0_77 = arith.constant 0 : index
      %c0_78 = arith.constant 0 : index
      %c0_79 = arith.constant 0 : index
      %174 = vector.load %arg19[%c0_77, %c0_78, %c0_79] : memref<2x8x32xf32, #tpu.memory_space<vmem>>, vector<2x8x32xf32>
      tpu.vector_store %arg19[%c0_77, %c0_78, %c0_79], %173 {strides = array<i32>} : memref<2x8x32xf32, #tpu.memory_space<vmem>>, vector<2x8x32xf32>,
    } else {
    }
    %c0 = arith.constant 0 : index
    %c0_1 = arith.constant 0 : index
    %c0_2 = arith.constant 0 : index
    %3 = vector.load %arg19[%c0, %c0_1, %c0_2] : memref<2x8x32xf32, #tpu.memory_space<vmem>>, vector<2x8x32xf32>
    %4 = vector.shape_cast %3 : vector<2x8x32xf32> to vector<16x32xf32>
    %c0_3 = arith.constant 0 : index
    %c0_4 = arith.constant 0 : index
    %c0_5 = arith.constant 0 : index
    %5 = vector.load %arg6[%c0_3, %c0_4, %c0_5] : memref<1x32x96xbf16, #tpu.memory_space<vmem>>, vector<1x32x96xbf16>
    %6 = vector.shape_cast %5 : vector<1x32x96xbf16> to vector<32x96xbf16>
    %7 = arith.truncf %4 : vector<16x32xf32> to vector<16x32xbf16>
    %cst = arith.constant dense<0.000000e+00> : vector<16x96xf32>
    %8 = tpu.matmul %7, %6, %cst {dimension_numbers = #tpu.dot_dimension_numbers<[1], [0], [0], [1], [0, 0, 1, 1], [], []>} : vector<16x32xbf16>, vector<32x96xbf16>, vector<16x96xf32> -> vector<16x96xf32>
    %c0_6 = arith.constant 0 : index
    %c0_7 = arith.constant 0 : index
    %c0_8 = arith.constant 0 : index
    %9 = vector.load %arg7[%c0_6, %c0_7, %c0_8] : memref<1x1x96xf32, #tpu.memory_space<vmem>>, vector<1x1x96xf32>
    %10 = vector.shape_cast %9 : vector<1x1x96xf32> to vector<1x96xf32>
    %11 = vector.broadcast %10 : vector<1x96xf32> to vector<16x96xf32>
    %12 = arith.addf %8, %11 : vector<16x96xf32>
    %13 = vector.extract_strided_slice %12 {offsets = [0, 0], sizes = [16, 32], strides = [1, 1]} : vector<16x96xf32> to vector<16x32xf32>
    %14 = vector.extract_strided_slice %12 {offsets = [0, 32], sizes = [16, 32], strides = [1, 1]} : vector<16x96xf32> to vector<16x32xf32>
    %15 = vector.extract_strided_slice %12 {offsets = [0, 64], sizes = [16, 32], strides = [1, 1]} : vector<16x96xf32> to vector<16x32xf32>
    %16 = vector.extract_strided_slice %13 {offsets = [0, 0], sizes = [8, 32], strides = [1, 1]} : vector<16x32xf32> to vector<8x32xf32>
    %17 = vector.shape_cast %16 : vector<8x32xf32> to vector<8x4x8xf32>
    %18 = tpu.transpose %17, [1, 0, 2] : vector<8x4x8xf32> -> vector<4x8x8xf32>
    %19 = arith.truncf %18 : vector<4x8x8xf32> to vector<4x8x8xbf16>
    %20 = vector.extract_strided_slice %14 {offsets = [0, 0], sizes = [8, 32], strides = [1, 1]} : vector<16x32xf32> to vector<8x32xf32>
    %21 = vector.shape_cast %20 : vector<8x32xf32> to vector<8x4x8xf32>
    %22 = tpu.transpose %21, [1, 0, 2] : vector<8x4x8xf32> -> vector<4x8x8xf32>
    %23 = arith.truncf %22 : vector<4x8x8xf32> to vector<4x8x8xbf16>
    %24 = vector.extract_strided_slice %15 {offsets = [0, 0], sizes = [8, 32], strides = [1, 1]} : vector<16x32xf32> to vector<8x32xf32>
    %25 = vector.shape_cast %24 : vector<8x32xf32> to vector<8x4x8xf32>
    %26 = tpu.transpose %25, [1, 0, 2] : vector<8x4x8xf32> -> vector<4x8x8xf32>
    %27 = arith.truncf %26 : vector<4x8x8xf32> to vector<4x8x8xbf16>
    "tpu.trace_start"() <{level = 10 : i32, message = "hqd,hkd->hqk"}> : () -> ()
    %cst_9 = arith.constant dense<0.000000e+00> : vector<4x8x8xf32>
    %28 = tpu.matmul %19, %23, %cst_9 {dimension_numbers = #tpu.dot_dimension_numbers<[2], [2], [1], [1], [0, 0, 0, 1, 1, 1], [0], [0]>} : vector<4x8x8xbf16>, vector<4x8x8xbf16>, vector<4x8x8xf32> -> vector<4x8x8xf32>
    "tpu.trace_stop"() : () -> ()
    %cst_10 = arith.constant 0.353553385 : f32
    %29 = vector.broadcast %cst_10 : f32 to vector<4x8x8xf32>
    %30 = arith.mulf %28, %29 : vector<4x8x8xf32>
    %cst_11 = arith.constant dense<0xFF800000> : vector<4x8xf32>
    %31 = vector.multi_reduction <maximumf>, %30, %cst_11 [2] : vector<4x8x8xf32> to vector<4x8xf32>
    %32 = vector.shape_cast %31 : vector<4x8xf32> to vector<4x8x1xf32>
    %33 = vector.broadcast %32 : vector<4x8x1xf32> to vector<4x8x8xf32>
    %34 = arith.subf %30, %33 : vector<4x8x8xf32>
    %35 = math.exp %34 : vector<4x8x8xf32>
    %cst_12 = arith.constant dense<0.000000e+00> : vector<4x8xf32>
    %36 = vector.multi_reduction <add>, %35, %cst_12 [2] : vector<4x8x8xf32> to vector<4x8xf32>
    %37 = vector.shape_cast %36 : vector<4x8xf32> to vector<4x8x1xf32>
    %38 = tpu.reciprocal %37 {approx = true} : vector<4x8x1xf32> -> vector<4x8x1xf32>
    %39 = vector.broadcast %38 : vector<4x8x1xf32> to vector<4x8x8xf32>
    %40 = arith.mulf %35, %39 : vector<4x8x8xf32>
    %41 = arith.truncf %40 : vector<4x8x8xf32> to vector<4x8x8xbf16>
    "tpu.trace_start"() <{level = 10 : i32, message = "hqk,hkd->hqd"}> : () -> ()
    %cst_13 = arith.constant dense<0.000000e+00> : vector<4x8x8xf32>
    %42 = tpu.matmul %41, %27, %cst_13 {dimension_numbers = #tpu.dot_dimension_numbers<[2], [1], [1], [2], [0, 0, 0, 1, 1, 2], [0], [0]>} : vector<4x8x8xbf16>, vector<4x8x8xbf16>, vector<4x8x8xf32> -> vector<4x8x8xf32>
    "tpu.trace_stop"() : () -> ()
    %43 = tpu.transpose %42, [1, 0, 2] : vector<4x8x8xf32> -> vector<8x4x8xf32>
    %44 = vector.shape_cast %43 : vector<8x4x8xf32> to vector<8x32xf32>
    %45 = vector.extract_strided_slice %13 {offsets = [8, 0], sizes = [8, 32], strides = [1, 1]} : vector<16x32xf32> to vector<8x32xf32>
    %46 = vector.shape_cast %45 : vector<8x32xf32> to vector<8x4x8xf32>
    %47 = tpu.transpose %46, [1, 0, 2] : vector<8x4x8xf32> -> vector<4x8x8xf32>
    %48 = arith.truncf %47 : vector<4x8x8xf32> to vector<4x8x8xbf16>
    %49 = vector.extract_strided_slice %14 {offsets = [8, 0], sizes = [8, 32], strides = [1, 1]} : vector<16x32xf32> to vector<8x32xf32>
    %50 = vector.shape_cast %49 : vector<8x32xf32> to vector<8x4x8xf32>
    %51 = tpu.transpose %50, [1, 0, 2] : vector<8x4x8xf32> -> vector<4x8x8xf32>
    %52 = arith.truncf %51 : vector<4x8x8xf32> to vector<4x8x8xbf16>
    %53 = vector.extract_strided_slice %15 {offsets = [8, 0], sizes = [8, 32], strides = [1, 1]} : vector<16x32xf32> to vector<8x32xf32>
    %54 = vector.shape_cast %53 : vector<8x32xf32> to vector<8x4x8xf32>
    %55 = tpu.transpose %54, [1, 0, 2] : vector<8x4x8xf32> -> vector<4x8x8xf32>
    %56 = arith.truncf %55 : vector<4x8x8xf32> to vector<4x8x8xbf16>
    "tpu.trace_start"() <{level = 10 : i32, message = "hqd,hkd->hqk"}> : () -> ()
    %cst_14 = arith.constant dense<0.000000e+00> : vector<4x8x8xf32>
    %57 = tpu.matmul %48, %52, %cst_14 {dimension_numbers = #tpu.dot_dimension_numbers<[2], [2], [1], [1], [0, 0, 0, 1, 1, 1], [0], [0]>} : vector<4x8x8xbf16>, vector<4x8x8xbf16>, vector<4x8x8xf32> -> vector<4x8x8xf32>
    "tpu.trace_stop"() : () -> ()
    %cst_15 = arith.constant 0.353553385 : f32
    %58 = vector.broadcast %cst_15 : f32 to vector<4x8x8xf32>
    %59 = arith.mulf %57, %58 : vector<4x8x8xf32>
    %cst_16 = arith.constant dense<0xFF800000> : vector<4x8xf32>
    %60 = vector.multi_reduction <maximumf>, %59, %cst_16 [2] : vector<4x8x8xf32> to vector<4x8xf32>
    %61 = vector.shape_cast %60 : vector<4x8xf32> to vector<4x8x1xf32>
    %62 = vector.broadcast %61 : vector<4x8x1xf32> to vector<4x8x8xf32>
    %63 = arith.subf %59, %62 : vector<4x8x8xf32>
    %64 = math.exp %63 : vector<4x8x8xf32>
    %cst_17 = arith.constant dense<0.000000e+00> : vector<4x8xf32>
    %65 = vector.multi_reduction <add>, %64, %cst_17 [2] : vector<4x8x8xf32> to vector<4x8xf32>
    %66 = vector.shape_cast %65 : vector<4x8xf32> to vector<4x8x1xf32>
    %67 = tpu.reciprocal %66 {approx = true} : vector<4x8x1xf32> -> vector<4x8x1xf32>
    %68 = vector.broadcast %67 : vector<4x8x1xf32> to vector<4x8x8xf32>
    %69 = arith.mulf %64, %68 : vector<4x8x8xf32>
    %70 = arith.truncf %69 : vector<4x8x8xf32> to vector<4x8x8xbf16>
    "tpu.trace_start"() <{level = 10 : i32, message = "hqk,hkd->hqd"}> : () -> ()
    %cst_18 = arith.constant dense<0.000000e+00> : vector<4x8x8xf32>
    %71 = tpu.matmul %70, %56, %cst_18 {dimension_numbers = #tpu.dot_dimension_numbers<[2], [1], [1], [2], [0, 0, 0, 1, 1, 2], [0], [0]>} : vector<4x8x8xbf16>, vector<4x8x8xbf16>, vector<4x8x8xf32> -> vector<4x8x8xf32>
    "tpu.trace_stop"() : () -> ()
    %72 = tpu.transpose %71, [1, 0, 2] : vector<4x8x8xf32> -> vector<8x4x8xf32>
    %73 = vector.shape_cast %72 : vector<8x4x8xf32> to vector<8x32xf32>
    %74 = tpu.concatenate %44, %73 in 0 : vector<8x32xf32>, vector<8x32xf32> -> vector<16x32xf32>
    %c0_19 = arith.constant 0 : index
    %c0_20 = arith.constant 0 : index
    %c0_21 = arith.constant 0 : index
    %75 = vector.load %arg8[%c0_19, %c0_20, %c0_21] : memref<1x32x32xbf16, #tpu.memory_space<vmem>>, vector<1x32x32xbf16>
    %76 = vector.shape_cast %75 : vector<1x32x32xbf16> to vector<32x32xbf16>
    %77 = arith.truncf %74 : vector<16x32xf32> to vector<16x32xbf16>
    %cst_22 = arith.constant dense<0.000000e+00> : vector<16x32xf32>
    %78 = tpu.matmul %77, %76, %cst_22 {dimension_numbers = #tpu.dot_dimension_numbers<[1], [0], [0], [1], [0, 0, 1, 1], [], []>} : vector<16x32xbf16>, vector<32x32xbf16>, vector<16x32xf32> -> vector<16x32xf32>
    %c0_23 = arith.constant 0 : index
    %c0_24 = arith.constant 0 : index
    %c0_25 = arith.constant 0 : index
    %79 = vector.load %arg9[%c0_23, %c0_24, %c0_25] : memref<1x1x32xf32, #tpu.memory_space<vmem>>, vector<1x1x32xf32>
    %80 = vector.shape_cast %79 : vector<1x1x32xf32> to vector<1x32xf32>
    %81 = vector.broadcast %80 : vector<1x32xf32> to vector<16x32xf32>
    %82 = arith.addf %78, %81 : vector<16x32xf32>
    %83 = arith.addf %4, %82 : vector<16x32xf32>
    %c0_26 = arith.constant 0 : index
    %c0_27 = arith.constant 0 : index
    %c0_28 = arith.constant 0 : index
    %84 = vector.load %arg10[%c0_26, %c0_27, %c0_28] : memref<1x1x32xf32, #tpu.memory_space<vmem>>, vector<1x1x32xf32>
    %85 = vector.shape_cast %84 : vector<1x1x32xf32> to vector<1x32xf32>
    %c0_29 = arith.constant 0 : index
    %c0_30 = arith.constant 0 : index
    %c0_31 = arith.constant 0 : index
    %86 = vector.load %arg11[%c0_29, %c0_30, %c0_31] : memref<1x1x32xf32, #tpu.memory_space<vmem>>, vector<1x1x32xf32>
    %87 = vector.shape_cast %86 : vector<1x1x32xf32> to vector<1x32xf32>
    %cst_32 = arith.constant dense<0.000000e+00> : vector<16xf32>
    %88 = vector.multi_reduction <add>, %83, %cst_32 [1] : vector<16x32xf32> to vector<16xf32>
    %89 = vector.shape_cast %88 : vector<16xf32> to vector<16x1xf32>
    %cst_33 = arith.constant 3.200000e+01 : f32
    %90 = vector.broadcast %cst_33 : f32 to vector<16x1xf32>
    %91 = arith.divf %89, %90 : vector<16x1xf32>
    %92 = vector.broadcast %91 : vector<16x1xf32> to vector<16x32xf32>
    %93 = arith.subf %83, %92 : vector<16x32xf32>
    %94 = arith.mulf %93, %93 : vector<16x32xf32>
    %cst_34 = arith.constant dense<0.000000e+00> : vector<16xf32>
    %95 = vector.multi_reduction <add>, %94, %cst_34 [1] : vector<16x32xf32> to vector<16xf32>
    %96 = vector.shape_cast %95 : vector<16xf32> to vector<16x1xf32>
    %cst_35 = arith.constant 3.200000e+01 : f32
    %97 = vector.broadcast %cst_35 : f32 to vector<16x1xf32>
    %98 = arith.divf %96, %97 : vector<16x1xf32>
    %99 = vector.broadcast %91 : vector<16x1xf32> to vector<16x32xf32>
    %100 = arith.subf %83, %99 : vector<16x32xf32>
    %cst_36 = arith.constant 9.99999974E-6 : f32
    %101 = vector.broadcast %cst_36 : f32 to vector<16x1xf32>
    %102 = arith.addf %98, %101 : vector<16x1xf32>
    %103 = math.rsqrt %102 : vector<16x1xf32>
    %104 = vector.broadcast %103 : vector<16x1xf32> to vector<16x32xf32>
    %105 = arith.mulf %100, %104 : vector<16x32xf32>
    %106 = vector.broadcast %85 : vector<1x32xf32> to vector<16x32xf32>
    %107 = arith.mulf %105, %106 : vector<16x32xf32>
    %108 = vector.broadcast %87 : vector<1x32xf32> to vector<16x32xf32>
    %109 = arith.addf %107, %108 : vector<16x32xf32>
    %c0_37 = arith.constant 0 : index
    %c0_38 = arith.constant 0 : index
    %c0_39 = arith.constant 0 : index
    %110 = vector.load %arg12[%c0_37, %c0_38, %c0_39] : memref<1x32x128xbf16, #tpu.memory_space<vmem>>, vector<1x32x128xbf16>
    %111 = vector.shape_cast %110 : vector<1x32x128xbf16> to vector<32x128xbf16>
    %112 = arith.truncf %109 : vector<16x32xf32> to vector<16x32xbf16>
    %cst_40 = arith.constant dense<0.000000e+00> : vector<16x128xf32>
    %113 = tpu.matmul %112, %111, %cst_40 {dimension_numbers = #tpu.dot_dimension_numbers<[1], [0], [0], [1], [0, 0, 1, 1], [], []>} : vector<16x32xbf16>, vector<32x128xbf16>, vector<16x128xf32> -> vector<16x128xf32>
    %c0_41 = arith.constant 0 : index
    %c0_42 = arith.constant 0 : index
    %c0_43 = arith.constant 0 : index
    %114 = vector.load %arg13[%c0_41, %c0_42, %c0_43] : memref<1x1x128xf32, #tpu.memory_space<vmem>>, vector<1x1x128xf32>
    %115 = vector.shape_cast %114 : vector<1x1x128xf32> to vector<1x128xf32>
    %116 = vector.broadcast %115 : vector<1x128xf32> to vector<16x128xf32>
    %117 = arith.addf %113, %116 : vector<16x128xf32>
    %cst_44 = arith.constant 0.000000e+00 : f32
    %118 = vector.broadcast %cst_44 : f32 to vector<16x128xf32>
    %119 = arith.maximumf %117, %118 : vector<16x128xf32>
    %c0_45 = arith.constant 0 : index
    %c0_46 = arith.constant 0 : index
    %c0_47 = arith.constant 0 : index
    %120 = vector.load %arg14[%c0_45, %c0_46, %c0_47] : memref<1x128x32xbf16, #tpu.memory_space<vmem>>, vector<1x128x32xbf16>
    %121 = vector.shape_cast %120 : vector<1x128x32xbf16> to vector<128x32xbf16>
    %122 = arith.truncf %119 : vector<16x128xf32> to vector<16x128xbf16>
    %cst_48 = arith.constant dense<0.000000e+00> : vector<16x32xf32>
    %123 = tpu.matmul %122, %121, %cst_48 {dimension_numbers = #tpu.dot_dimension_numbers<[1], [0], [0], [1], [0, 0, 1, 1], [], []>} : vector<16x128xbf16>, vector<128x32xbf16>, vector<16x32xf32> -> vector<16x32xf32>
    %c0_49 = arith.constant 0 : index
    %c0_50 = arith.constant 0 : index
    %c0_51 = arith.constant 0 : index
    %124 = vector.load %arg15[%c0_49, %c0_50, %c0_51] : memref<1x1x32xf32, #tpu.memory_space<vmem>>, vector<1x1x32xf32>
    %125 = vector.shape_cast %124 : vector<1x1x32xf32> to vector<1x32xf32>
    %126 = vector.broadcast %125 : vector<1x32xf32> to vector<16x32xf32>
    %127 = arith.addf %123, %126 : vector<16x32xf32>
    %128 = arith.addf %109, %127 : vector<16x32xf32>
    %c0_52 = arith.constant 0 : index
    %c0_53 = arith.constant 0 : index
    %c0_54 = arith.constant 0 : index
    %129 = vector.load %arg16[%c0_52, %c0_53, %c0_54] : memref<1x1x32xf32, #tpu.memory_space<vmem>>, vector<1x1x32xf32>
    %130 = vector.shape_cast %129 : vector<1x1x32xf32> to vector<1x32xf32>
    %c0_55 = arith.constant 0 : index
    %c0_56 = arith.constant 0 : index
    %c0_57 = arith.constant 0 : index
    %131 = vector.load %arg17[%c0_55, %c0_56, %c0_57] : memref<1x1x32xf32, #tpu.memory_space<vmem>>, vector<1x1x32xf32>
    %132 = vector.shape_cast %131 : vector<1x1x32xf32> to vector<1x32xf32>
    %cst_58 = arith.constant dense<0.000000e+00> : vector<16xf32>
    %133 = vector.multi_reduction <add>, %128, %cst_58 [1] : vector<16x32xf32> to vector<16xf32>
    %134 = vector.shape_cast %133 : vector<16xf32> to vector<16x1xf32>
    %cst_59 = arith.constant 3.200000e+01 : f32
    %135 = vector.broadcast %cst_59 : f32 to vector<16x1xf32>
    %136 = arith.divf %134, %135 : vector<16x1xf32>
    %137 = vector.broadcast %136 : vector<16x1xf32> to vector<16x32xf32>
    %138 = arith.subf %128, %137 : vector<16x32xf32>
    %139 = arith.mulf %138, %138 : vector<16x32xf32>
    %cst_60 = arith.constant dense<0.000000e+00> : vector<16xf32>
    %140 = vector.multi_reduction <add>, %139, %cst_60 [1] : vector<16x32xf32> to vector<16xf32>
    %141 = vector.shape_cast %140 : vector<16xf32> to vector<16x1xf32>
    %cst_61 = arith.constant 3.200000e+01 : f32
    %142 = vector.broadcast %cst_61 : f32 to vector<16x1xf32>
    %143 = arith.divf %141, %142 : vector<16x1xf32>
    %144 = vector.broadcast %136 : vector<16x1xf32> to vector<16x32xf32>
    %145 = arith.subf %128, %144 : vector<16x32xf32>
    %cst_62 = arith.constant 9.99999974E-6 : f32
    %146 = vector.broadcast %cst_62 : f32 to vector<16x1xf32>
    %147 = arith.addf %143, %146 : vector<16x1xf32>
    %148 = math.rsqrt %147 : vector<16x1xf32>
    %149 = vector.broadcast %148 : vector<16x1xf32> to vector<16x32xf32>
    %150 = arith.mulf %145, %149 : vector<16x32xf32>
    %151 = vector.broadcast %130 : vector<1x32xf32> to vector<16x32xf32>
    %152 = arith.mulf %150, %151 : vector<16x32xf32>
    %153 = vector.broadcast %132 : vector<1x32xf32> to vector<16x32xf32>
    %154 = arith.addf %152, %153 : vector<16x32xf32>
    %155 = vector.shape_cast %154 : vector<16x32xf32> to vector<2x8x32xf32>
    %c0_63 = arith.constant 0 : index
    %c0_64 = arith.constant 0 : index
    %c0_65 = arith.constant 0 : index
    %156 = vector.load %arg19[%c0_63, %c0_64, %c0_65] : memref<2x8x32xf32, #tpu.memory_space<vmem>>, vector<2x8x32xf32>
    tpu.vector_store %arg19[%c0_63, %c0_64, %c0_65], %155 {strides = array<i32>} : memref<2x8x32xf32, #tpu.memory_space<vmem>>, vector<2x8x32xf32>,
    %c1_i32 = arith.constant 1 : i32
    %157 = arith.cmpi eq, %arg1, %c1_i32 : i32
    %158 = arith.extui %157 : i1 to i32
    %c0_i32_66 = arith.constant 0 : i32
    %159 = arith.cmpi ne, %158, %c0_i32_66 : i32
    scf.if %159 {
      %160 = vector.shape_cast %154 : vector<16x32xf32> to vector<2x8x32xf32>
      %161 = arith.truncf %160 : vector<2x8x32xf32> to vector<2x8x32xbf16>
      %c0_67 = arith.constant 0 : index
      %c0_68 = arith.constant 0 : index
      %c0_69 = arith.constant 0 : index
      %162 = vector.load %arg18[%c0_67, %c0_68, %c0_69] : memref<2x8x32xbf16, #tpu.memory_space<vmem>>, vector<2x8x32xbf16>
      tpu.vector_store %arg18[%c0_67, %c0_68, %c0_69], %161 {strides = array<i32>} : memref<2x8x32xbf16, #tpu.memory_space<vmem>>, vector<2x8x32xbf16>,
    } else {
    }
    return
  }
  func.func @transform_0(%arg0: i32, %arg1: i32) -> (i32, i32, i32) {
    %c0_i32 = arith.constant 0 : i32
    %c0_i32_0 = arith.constant 0 : i32
    %c0_i32_1 = arith.constant 0 : i32
    return %arg0, %c0_i32, %c0_i32_0 : i32, i32, i32
  }
  func.func @transform_1(%arg0: i32, %arg1: i32) -> (i32, i32) {
    %c0_i32 = arith.constant 0 : i32
    %c0_i32_0 = arith.constant 0 : i32
    %c0_i32_1 = arith.constant 0 : i32
    return %c0_i32, %c0_i32_0 : i32, i32
  }
  func.func @transform_2(%arg0: i32, %arg1: i32) -> (i32, i32) {
    %c0_i32 = arith.constant 0 : i32
    %c0_i32_0 = arith.constant 0 : i32
    %c0_i32_1 = arith.constant 0 : i32
    return %c0_i32, %c0_i32_0 : i32, i32
  }
  func.func @transform_3(%arg0: i32, %arg1: i32) -> (i32, i32) {
    %c0_i32 = arith.constant 0 : i32
    %c0_i32_0 = arith.constant 0 : i32
    %c0_i32_1 = arith.constant 0 : i32
    return %c0_i32, %c0_i32_0 : i32, i32
  }
  func.func @transform_4(%arg0: i32, %arg1: i32) -> (i32, i32, i32) {
    %c0_i32 = arith.constant 0 : i32
    %c0_i32_0 = arith.constant 0 : i32
    %c0_i32_1 = arith.constant 0 : i32
    return %arg1, %c0_i32, %c0_i32_0 : i32, i32, i32
  }
  func.func @transform_5(%arg0: i32, %arg1: i32) -> (i32, i32, i32) {
    %c0_i32 = arith.constant 0 : i32
    %c0_i32_0 = arith.constant 0 : i32
    %c0_i32_1 = arith.constant 0 : i32
    return %arg1, %c0_i32, %c0_i32_0 : i32, i32, i32
  }
  func.func @transform_6(%arg0: i32, %arg1: i32) -> (i32, i32, i32) {
    %c0_i32 = arith.constant 0 : i32
    %c0_i32_0 = arith.constant 0 : i32
    %c0_i32_1 = arith.constant 0 : i32
    return %arg1, %c0_i32, %c0_i32_0 : i32, i32, i32
  }
  func.func @transform_7(%arg0: i32, %arg1: i32) -> (i32, i32, i32) {
    %c0_i32 = arith.constant 0 : i32
    %c0_i32_0 = arith.constant 0 : i32
    %c0_i32_1 = arith.constant 0 : i32
    return %arg1, %c0_i32, %c0_i32_0 : i32, i32, i32
  }
  func.func @transform_8(%arg0: i32, %arg1: i32) -> (i32, i32, i32) {
    %c0_i32 = arith.constant 0 : i32
    %c0_i32_0 = arith.constant 0 : i32
    %c0_i32_1 = arith.constant 0 : i32
    return %arg1, %c0_i32, %c0_i32_0 : i32, i32, i32
  }
  func.func @transform_9(%arg0: i32, %arg1: i32) -> (i32, i32, i32) {
    %c0_i32 = arith.constant 0 : i32
    %c0_i32_0 = arith.constant 0 : i32
    %c0_i32_1 = arith.constant 0 : i32
    return %arg1, %c0_i32, %c0_i32_0 : i32, i32, i32
  }
  func.func @transform_10(%arg0: i32, %arg1: i32) -> (i32, i32, i32) {
    %c0_i32 = arith.constant 0 : i32
    %c0_i32_0 = arith.constant 0 : i32
    %c0_i32_1 = arith.constant 0 : i32
    return %arg1, %c0_i32, %c0_i32_0 : i32, i32, i32
  }
  func.func @transform_11(%arg0: i32, %arg1: i32) -> (i32, i32, i32) {
    %c0_i32 = arith.constant 0 : i32
    %c0_i32_0 = arith.constant 0 : i32
    %c0_i32_1 = arith.constant 0 : i32
    return %arg1, %c0_i32, %c0_i32_0 : i32, i32, i32
  }
  func.func @transform_12(%arg0: i32, %arg1: i32) -> (i32, i32, i32) {
    %c0_i32 = arith.constant 0 : i32
    %c0_i32_0 = arith.constant 0 : i32
    %c0_i32_1 = arith.constant 0 : i32
    return %arg1, %c0_i32, %c0_i32_0 : i32, i32, i32
  }
  func.func @transform_13(%arg0: i32, %arg1: i32) -> (i32, i32, i32) {
    %c0_i32 = arith.constant 0 : i32
    %c0_i32_0 = arith.constant 0 : i32
    %c0_i32_1 = arith.constant 0 : i32
    return %arg1, %c0_i32, %c0_i32_0 : i32, i32, i32
  }
  func.func @transform_14(%arg0: i32, %arg1: i32) -> (i32, i32, i32) {
    %c0_i32 = arith.constant 0 : i32
    %c0_i32_0 = arith.constant 0 : i32
    %c0_i32_1 = arith.constant 0 : i32
    return %arg1, %c0_i32, %c0_i32_0 : i32, i32, i32
  }
  func.func @transform_15(%arg0: i32, %arg1: i32) -> (i32, i32, i32) {
    %c0_i32 = arith.constant 0 : i32
    %c0_i32_0 = arith.constant 0 : i32
    %c0_i32_1 = arith.constant 0 : i32
    return %arg1, %c0_i32, %c0_i32_0 : i32, i32, i32
  }
  func.func @transform_16(%arg0: i32, %arg1: i32) -> (i32, i32, i32) {
    %c0_i32 = arith.constant 0 : i32
    %c0_i32_0 = arith.constant 0 : i32
    %c0_i32_1 = arith.constant 0 : i32
    return %arg0, %c0_i32, %c0_i32_0 : i32, i32, i32
  }
}

module attributes {stable_mosaic.version = 11 : i64} {
  func.func @_stack_kernel(%arg0: i32, %arg1: i32, %arg2: memref<2x16x4xf32, #tpu.memory_space<vmem>>, %arg3: memref<16x32xbf16, #tpu.memory_space<vmem>>, %arg4: memref<4x32xbf16, #tpu.memory_space<vmem>>, %arg5: memref<1x32xf32, #tpu.memory_space<vmem>>, %arg6: memref<1x32x96xbf16, #tpu.memory_space<vmem>>, %arg7: memref<1x1x96xf32, #tpu.memory_space<vmem>>, %arg8: memref<1x32x32xbf16, #tpu.memory_space<vmem>>, %arg9: memref<1x1x32xf32, #tpu.memory_space<vmem>>, %arg10: memref<1x1x32xf32, #tpu.memory_space<vmem>>, %arg11: memref<1x1x32xf32, #tpu.memory_space<vmem>>, %arg12: memref<1x32x128xbf16, #tpu.memory_space<vmem>>, %arg13: memref<1x1x128xf32, #tpu.memory_space<vmem>>, %arg14: memref<1x128x32xbf16, #tpu.memory_space<vmem>>, %arg15: memref<1x1x32xf32, #tpu.memory_space<vmem>>, %arg16: memref<1x1x32xf32, #tpu.memory_space<vmem>>, %arg17: memref<1x1x32xf32, #tpu.memory_space<vmem>>, %arg18: memref<2x16x32xbf16, #tpu.memory_space<vmem>>, %arg19: memref<2x16x32xf32, #tpu.memory_space<vmem>>) attributes {dimension_semantics = [#tpu.dimension_semantics<parallel>, #tpu.dimension_semantics<arbitrary>], iteration_bounds = array<i64: 1, 2>, scalar_prefetch = 0 : i64, scratch_operands = 1 : i64, tpu.core_type = #tpu.core_type<tc>, window_params = [{transform_indices = @transform_0, window_bounds = array<i64: 2, 16, 4>}, {pipeline_mode = #tpu.pipeline_mode<synchronous>, transform_indices = @transform_1, window_bounds = array<i64: 16, 32>}, {pipeline_mode = #tpu.pipeline_mode<synchronous>, transform_indices = @transform_2, window_bounds = array<i64: 4, 32>}, {pipeline_mode = #tpu.pipeline_mode<synchronous>, transform_indices = @transform_3, window_bounds = array<i64: 1, 32>}, {transform_indices = @transform_4, window_bounds = array<i64: 1, 32, 96>}, {transform_indices = @transform_5, window_bounds = array<i64: 1, 1, 96>}, {transform_indices = @transform_6, window_bounds = array<i64: 1, 32, 32>}, {transform_indices = @transform_7, window_bounds = array<i64: 1, 1, 32>}, {transform_indices = @transform_8, window_bounds = array<i64: 1, 1, 32>}, {transform_indices = @transform_9, window_bounds = array<i64: 1, 1, 32>}, {transform_indices = @transform_10, window_bounds = array<i64: 1, 32, 128>}, {transform_indices = @transform_11, window_bounds = array<i64: 1, 1, 128>}, {transform_indices = @transform_12, window_bounds = array<i64: 1, 128, 32>}, {transform_indices = @transform_13, window_bounds = array<i64: 1, 1, 32>}, {transform_indices = @transform_14, window_bounds = array<i64: 1, 1, 32>}, {transform_indices = @transform_15, window_bounds = array<i64: 1, 1, 32>}, {transform_indices = @transform_16, window_bounds = array<i64: 2, 16, 32>}]} {
    %c0_i32 = arith.constant 0 : i32
    %0 = arith.cmpi eq, %arg1, %c0_i32 : i32
    %1 = arith.extui %0 : i1 to i32
    %c0_i32_0 = arith.constant 0 : i32
    %2 = arith.cmpi ne, %1, %c0_i32_0 : i32
    scf.if %2 {
      %c0_67 = arith.constant 0 : index
      %c0_68 = arith.constant 0 : index
      %c0_69 = arith.constant 0 : index
      %160 = vector.load %arg2[%c0_67, %c0_68, %c0_69] : memref<2x16x4xf32, #tpu.memory_space<vmem>>, vector<2x16x4xf32>
      %161 = vector.shape_cast %160 : vector<2x16x4xf32> to vector<32x4xf32>
      %c0_70 = arith.constant 0 : index
      %c0_71 = arith.constant 0 : index
      %162 = vector.load %arg4[%c0_70, %c0_71] : memref<4x32xbf16, #tpu.memory_space<vmem>>, vector<4x32xbf16>
      %163 = arith.truncf %161 : vector<32x4xf32> to vector<32x4xbf16>
      %cst_72 = arith.constant dense<0.000000e+00> : vector<32x32xf32>
      %164 = tpu.matmul %163, %162, %cst_72 {dimension_numbers = #tpu.dot_dimension_numbers<[1], [0], [0], [1], [0, 0, 1, 1], [], []>} : vector<32x4xbf16>, vector<4x32xbf16>, vector<32x32xf32> -> vector<32x32xf32>
      %c0_73 = arith.constant 0 : index
      %c0_74 = arith.constant 0 : index
      %165 = vector.load %arg5[%c0_73, %c0_74] : memref<1x32xf32, #tpu.memory_space<vmem>>, vector<1x32xf32>
      %166 = vector.broadcast %165 : vector<1x32xf32> to vector<32x32xf32>
      %167 = arith.addf %164, %166 : vector<32x32xf32>
      %168 = vector.shape_cast %167 : vector<32x32xf32> to vector<2x16x32xf32>
      %c0_75 = arith.constant 0 : index
      %c0_76 = arith.constant 0 : index
      %169 = vector.load %arg3[%c0_75, %c0_76] : memref<16x32xbf16, #tpu.memory_space<vmem>>, vector<16x32xbf16>
      %170 = arith.extf %169 : vector<16x32xbf16> to vector<16x32xf32>
      %171 = vector.shape_cast %170 : vector<16x32xf32> to vector<1x16x32xf32>
      %172 = vector.broadcast %171 : vector<1x16x32xf32> to vector<2x16x32xf32>
      %173 = arith.addf %168, %172 : vector<2x16x32xf32>
      %c0_77 = arith.constant 0 : index
      %c0_78 = arith.constant 0 : index
      %c0_79 = arith.constant 0 : index
      %174 = vector.load %arg19[%c0_77, %c0_78, %c0_79] : memref<2x16x32xf32, #tpu.memory_space<vmem>>, vector<2x16x32xf32>
      tpu.vector_store %arg19[%c0_77, %c0_78, %c0_79], %173 {strides = array<i32>} : memref<2x16x32xf32, #tpu.memory_space<vmem>>, vector<2x16x32xf32>,
    } else {
    }
    %c0 = arith.constant 0 : index
    %c0_1 = arith.constant 0 : index
    %c0_2 = arith.constant 0 : index
    %3 = vector.load %arg19[%c0, %c0_1, %c0_2] : memref<2x16x32xf32, #tpu.memory_space<vmem>>, vector<2x16x32xf32>
    %4 = vector.shape_cast %3 : vector<2x16x32xf32> to vector<32x32xf32>
    %c0_3 = arith.constant 0 : index
    %c0_4 = arith.constant 0 : index
    %c0_5 = arith.constant 0 : index
    %5 = vector.load %arg6[%c0_3, %c0_4, %c0_5] : memref<1x32x96xbf16, #tpu.memory_space<vmem>>, vector<1x32x96xbf16>
    %6 = vector.shape_cast %5 : vector<1x32x96xbf16> to vector<32x96xbf16>
    %7 = arith.truncf %4 : vector<32x32xf32> to vector<32x32xbf16>
    %cst = arith.constant dense<0.000000e+00> : vector<32x96xf32>
    %8 = tpu.matmul %7, %6, %cst {dimension_numbers = #tpu.dot_dimension_numbers<[1], [0], [0], [1], [0, 0, 1, 1], [], []>} : vector<32x32xbf16>, vector<32x96xbf16>, vector<32x96xf32> -> vector<32x96xf32>
    %c0_6 = arith.constant 0 : index
    %c0_7 = arith.constant 0 : index
    %c0_8 = arith.constant 0 : index
    %9 = vector.load %arg7[%c0_6, %c0_7, %c0_8] : memref<1x1x96xf32, #tpu.memory_space<vmem>>, vector<1x1x96xf32>
    %10 = vector.shape_cast %9 : vector<1x1x96xf32> to vector<1x96xf32>
    %11 = vector.broadcast %10 : vector<1x96xf32> to vector<32x96xf32>
    %12 = arith.addf %8, %11 : vector<32x96xf32>
    %13 = vector.extract_strided_slice %12 {offsets = [0, 0], sizes = [32, 32], strides = [1, 1]} : vector<32x96xf32> to vector<32x32xf32>
    %14 = vector.extract_strided_slice %12 {offsets = [0, 32], sizes = [32, 32], strides = [1, 1]} : vector<32x96xf32> to vector<32x32xf32>
    %15 = vector.extract_strided_slice %12 {offsets = [0, 64], sizes = [32, 32], strides = [1, 1]} : vector<32x96xf32> to vector<32x32xf32>
    %16 = vector.extract_strided_slice %13 {offsets = [0, 0], sizes = [16, 32], strides = [1, 1]} : vector<32x32xf32> to vector<16x32xf32>
    %17 = vector.shape_cast %16 : vector<16x32xf32> to vector<16x4x8xf32>
    %18 = tpu.transpose %17, [1, 0, 2] : vector<16x4x8xf32> -> vector<4x16x8xf32>
    %19 = arith.truncf %18 : vector<4x16x8xf32> to vector<4x16x8xbf16>
    %20 = vector.extract_strided_slice %14 {offsets = [0, 0], sizes = [16, 32], strides = [1, 1]} : vector<32x32xf32> to vector<16x32xf32>
    %21 = vector.shape_cast %20 : vector<16x32xf32> to vector<16x4x8xf32>
    %22 = tpu.transpose %21, [1, 0, 2] : vector<16x4x8xf32> -> vector<4x16x8xf32>
    %23 = arith.truncf %22 : vector<4x16x8xf32> to vector<4x16x8xbf16>
    %24 = vector.extract_strided_slice %15 {offsets = [0, 0], sizes = [16, 32], strides = [1, 1]} : vector<32x32xf32> to vector<16x32xf32>
    %25 = vector.shape_cast %24 : vector<16x32xf32> to vector<16x4x8xf32>
    %26 = tpu.transpose %25, [1, 0, 2] : vector<16x4x8xf32> -> vector<4x16x8xf32>
    %27 = arith.truncf %26 : vector<4x16x8xf32> to vector<4x16x8xbf16>
    "tpu.trace_start"() <{level = 10 : i32, message = "hqd,hkd->hqk"}> : () -> ()
    %cst_9 = arith.constant dense<0.000000e+00> : vector<4x16x16xf32>
    %28 = tpu.matmul %19, %23, %cst_9 {dimension_numbers = #tpu.dot_dimension_numbers<[2], [2], [1], [1], [0, 0, 0, 1, 1, 1], [0], [0]>} : vector<4x16x8xbf16>, vector<4x16x8xbf16>, vector<4x16x16xf32> -> vector<4x16x16xf32>
    "tpu.trace_stop"() : () -> ()
    %cst_10 = arith.constant 0.353553385 : f32
    %29 = vector.broadcast %cst_10 : f32 to vector<4x16x16xf32>
    %30 = arith.mulf %28, %29 : vector<4x16x16xf32>
    %cst_11 = arith.constant dense<0xFF800000> : vector<4x16xf32>
    %31 = vector.multi_reduction <maximumf>, %30, %cst_11 [2] : vector<4x16x16xf32> to vector<4x16xf32>
    %32 = vector.shape_cast %31 : vector<4x16xf32> to vector<4x16x1xf32>
    %33 = vector.broadcast %32 : vector<4x16x1xf32> to vector<4x16x16xf32>
    %34 = arith.subf %30, %33 : vector<4x16x16xf32>
    %35 = math.exp %34 : vector<4x16x16xf32>
    %cst_12 = arith.constant dense<0.000000e+00> : vector<4x16xf32>
    %36 = vector.multi_reduction <add>, %35, %cst_12 [2] : vector<4x16x16xf32> to vector<4x16xf32>
    %37 = vector.shape_cast %36 : vector<4x16xf32> to vector<4x16x1xf32>
    %38 = tpu.reciprocal %37 {approx = true} : vector<4x16x1xf32> -> vector<4x16x1xf32>
    %39 = vector.broadcast %38 : vector<4x16x1xf32> to vector<4x16x16xf32>
    %40 = arith.mulf %35, %39 : vector<4x16x16xf32>
    %41 = arith.truncf %40 : vector<4x16x16xf32> to vector<4x16x16xbf16>
    "tpu.trace_start"() <{level = 10 : i32, message = "hqk,hkd->hqd"}> : () -> ()
    %cst_13 = arith.constant dense<0.000000e+00> : vector<4x16x8xf32>
    %42 = tpu.matmul %41, %27, %cst_13 {dimension_numbers = #tpu.dot_dimension_numbers<[2], [1], [1], [2], [0, 0, 0, 1, 1, 2], [0], [0]>} : vector<4x16x16xbf16>, vector<4x16x8xbf16>, vector<4x16x8xf32> -> vector<4x16x8xf32>
    "tpu.trace_stop"() : () -> ()
    %43 = tpu.transpose %42, [1, 0, 2] : vector<4x16x8xf32> -> vector<16x4x8xf32>
    %44 = vector.shape_cast %43 : vector<16x4x8xf32> to vector<16x32xf32>
    %45 = vector.extract_strided_slice %13 {offsets = [16, 0], sizes = [16, 32], strides = [1, 1]} : vector<32x32xf32> to vector<16x32xf32>
    %46 = vector.shape_cast %45 : vector<16x32xf32> to vector<16x4x8xf32>
    %47 = tpu.transpose %46, [1, 0, 2] : vector<16x4x8xf32> -> vector<4x16x8xf32>
    %48 = arith.truncf %47 : vector<4x16x8xf32> to vector<4x16x8xbf16>
    %49 = vector.extract_strided_slice %14 {offsets = [16, 0], sizes = [16, 32], strides = [1, 1]} : vector<32x32xf32> to vector<16x32xf32>
    %50 = vector.shape_cast %49 : vector<16x32xf32> to vector<16x4x8xf32>
    %51 = tpu.transpose %50, [1, 0, 2] : vector<16x4x8xf32> -> vector<4x16x8xf32>
    %52 = arith.truncf %51 : vector<4x16x8xf32> to vector<4x16x8xbf16>
    %53 = vector.extract_strided_slice %15 {offsets = [16, 0], sizes = [16, 32], strides = [1, 1]} : vector<32x32xf32> to vector<16x32xf32>
    %54 = vector.shape_cast %53 : vector<16x32xf32> to vector<16x4x8xf32>
    %55 = tpu.transpose %54, [1, 0, 2] : vector<16x4x8xf32> -> vector<4x16x8xf32>
    %56 = arith.truncf %55 : vector<4x16x8xf32> to vector<4x16x8xbf16>
    "tpu.trace_start"() <{level = 10 : i32, message = "hqd,hkd->hqk"}> : () -> ()
    %cst_14 = arith.constant dense<0.000000e+00> : vector<4x16x16xf32>
    %57 = tpu.matmul %48, %52, %cst_14 {dimension_numbers = #tpu.dot_dimension_numbers<[2], [2], [1], [1], [0, 0, 0, 1, 1, 1], [0], [0]>} : vector<4x16x8xbf16>, vector<4x16x8xbf16>, vector<4x16x16xf32> -> vector<4x16x16xf32>
    "tpu.trace_stop"() : () -> ()
    %cst_15 = arith.constant 0.353553385 : f32
    %58 = vector.broadcast %cst_15 : f32 to vector<4x16x16xf32>
    %59 = arith.mulf %57, %58 : vector<4x16x16xf32>
    %cst_16 = arith.constant dense<0xFF800000> : vector<4x16xf32>
    %60 = vector.multi_reduction <maximumf>, %59, %cst_16 [2] : vector<4x16x16xf32> to vector<4x16xf32>
    %61 = vector.shape_cast %60 : vector<4x16xf32> to vector<4x16x1xf32>
    %62 = vector.broadcast %61 : vector<4x16x1xf32> to vector<4x16x16xf32>
    %63 = arith.subf %59, %62 : vector<4x16x16xf32>
    %64 = math.exp %63 : vector<4x16x16xf32>
    %cst_17 = arith.constant dense<0.000000e+00> : vector<4x16xf32>
    %65 = vector.multi_reduction <add>, %64, %cst_17 [2] : vector<4x16x16xf32> to vector<4x16xf32>
    %66 = vector.shape_cast %65 : vector<4x16xf32> to vector<4x16x1xf32>
    %67 = tpu.reciprocal %66 {approx = true} : vector<4x16x1xf32> -> vector<4x16x1xf32>
    %68 = vector.broadcast %67 : vector<4x16x1xf32> to vector<4x16x16xf32>
    %69 = arith.mulf %64, %68 : vector<4x16x16xf32>
    %70 = arith.truncf %69 : vector<4x16x16xf32> to vector<4x16x16xbf16>
    "tpu.trace_start"() <{level = 10 : i32, message = "hqk,hkd->hqd"}> : () -> ()
    %cst_18 = arith.constant dense<0.000000e+00> : vector<4x16x8xf32>
    %71 = tpu.matmul %70, %56, %cst_18 {dimension_numbers = #tpu.dot_dimension_numbers<[2], [1], [1], [2], [0, 0, 0, 1, 1, 2], [0], [0]>} : vector<4x16x16xbf16>, vector<4x16x8xbf16>, vector<4x16x8xf32> -> vector<4x16x8xf32>
    "tpu.trace_stop"() : () -> ()
    %72 = tpu.transpose %71, [1, 0, 2] : vector<4x16x8xf32> -> vector<16x4x8xf32>
    %73 = vector.shape_cast %72 : vector<16x4x8xf32> to vector<16x32xf32>
    %74 = tpu.concatenate %44, %73 in 0 : vector<16x32xf32>, vector<16x32xf32> -> vector<32x32xf32>
    %c0_19 = arith.constant 0 : index
    %c0_20 = arith.constant 0 : index
    %c0_21 = arith.constant 0 : index
    %75 = vector.load %arg8[%c0_19, %c0_20, %c0_21] : memref<1x32x32xbf16, #tpu.memory_space<vmem>>, vector<1x32x32xbf16>
    %76 = vector.shape_cast %75 : vector<1x32x32xbf16> to vector<32x32xbf16>
    %77 = arith.truncf %74 : vector<32x32xf32> to vector<32x32xbf16>
    %cst_22 = arith.constant dense<0.000000e+00> : vector<32x32xf32>
    %78 = tpu.matmul %77, %76, %cst_22 {dimension_numbers = #tpu.dot_dimension_numbers<[1], [0], [0], [1], [0, 0, 1, 1], [], []>} : vector<32x32xbf16>, vector<32x32xbf16>, vector<32x32xf32> -> vector<32x32xf32>
    %c0_23 = arith.constant 0 : index
    %c0_24 = arith.constant 0 : index
    %c0_25 = arith.constant 0 : index
    %79 = vector.load %arg9[%c0_23, %c0_24, %c0_25] : memref<1x1x32xf32, #tpu.memory_space<vmem>>, vector<1x1x32xf32>
    %80 = vector.shape_cast %79 : vector<1x1x32xf32> to vector<1x32xf32>
    %81 = vector.broadcast %80 : vector<1x32xf32> to vector<32x32xf32>
    %82 = arith.addf %78, %81 : vector<32x32xf32>
    %83 = arith.addf %4, %82 : vector<32x32xf32>
    %c0_26 = arith.constant 0 : index
    %c0_27 = arith.constant 0 : index
    %c0_28 = arith.constant 0 : index
    %84 = vector.load %arg10[%c0_26, %c0_27, %c0_28] : memref<1x1x32xf32, #tpu.memory_space<vmem>>, vector<1x1x32xf32>
    %85 = vector.shape_cast %84 : vector<1x1x32xf32> to vector<1x32xf32>
    %c0_29 = arith.constant 0 : index
    %c0_30 = arith.constant 0 : index
    %c0_31 = arith.constant 0 : index
    %86 = vector.load %arg11[%c0_29, %c0_30, %c0_31] : memref<1x1x32xf32, #tpu.memory_space<vmem>>, vector<1x1x32xf32>
    %87 = vector.shape_cast %86 : vector<1x1x32xf32> to vector<1x32xf32>
    %cst_32 = arith.constant dense<0.000000e+00> : vector<32xf32>
    %88 = vector.multi_reduction <add>, %83, %cst_32 [1] : vector<32x32xf32> to vector<32xf32>
    %89 = vector.shape_cast %88 : vector<32xf32> to vector<32x1xf32>
    %cst_33 = arith.constant 3.200000e+01 : f32
    %90 = vector.broadcast %cst_33 : f32 to vector<32x1xf32>
    %91 = arith.divf %89, %90 : vector<32x1xf32>
    %92 = vector.broadcast %91 : vector<32x1xf32> to vector<32x32xf32>
    %93 = arith.subf %83, %92 : vector<32x32xf32>
    %94 = arith.mulf %93, %93 : vector<32x32xf32>
    %cst_34 = arith.constant dense<0.000000e+00> : vector<32xf32>
    %95 = vector.multi_reduction <add>, %94, %cst_34 [1] : vector<32x32xf32> to vector<32xf32>
    %96 = vector.shape_cast %95 : vector<32xf32> to vector<32x1xf32>
    %cst_35 = arith.constant 3.200000e+01 : f32
    %97 = vector.broadcast %cst_35 : f32 to vector<32x1xf32>
    %98 = arith.divf %96, %97 : vector<32x1xf32>
    %99 = vector.broadcast %91 : vector<32x1xf32> to vector<32x32xf32>
    %100 = arith.subf %83, %99 : vector<32x32xf32>
    %cst_36 = arith.constant 9.99999974E-6 : f32
    %101 = vector.broadcast %cst_36 : f32 to vector<32x1xf32>
    %102 = arith.addf %98, %101 : vector<32x1xf32>
    %103 = math.rsqrt %102 : vector<32x1xf32>
    %104 = vector.broadcast %103 : vector<32x1xf32> to vector<32x32xf32>
    %105 = arith.mulf %100, %104 : vector<32x32xf32>
    %106 = vector.broadcast %85 : vector<1x32xf32> to vector<32x32xf32>
    %107 = arith.mulf %105, %106 : vector<32x32xf32>
    %108 = vector.broadcast %87 : vector<1x32xf32> to vector<32x32xf32>
    %109 = arith.addf %107, %108 : vector<32x32xf32>
    %c0_37 = arith.constant 0 : index
    %c0_38 = arith.constant 0 : index
    %c0_39 = arith.constant 0 : index
    %110 = vector.load %arg12[%c0_37, %c0_38, %c0_39] : memref<1x32x128xbf16, #tpu.memory_space<vmem>>, vector<1x32x128xbf16>
    %111 = vector.shape_cast %110 : vector<1x32x128xbf16> to vector<32x128xbf16>
    %112 = arith.truncf %109 : vector<32x32xf32> to vector<32x32xbf16>
    %cst_40 = arith.constant dense<0.000000e+00> : vector<32x128xf32>
    %113 = tpu.matmul %112, %111, %cst_40 {dimension_numbers = #tpu.dot_dimension_numbers<[1], [0], [0], [1], [0, 0, 1, 1], [], []>} : vector<32x32xbf16>, vector<32x128xbf16>, vector<32x128xf32> -> vector<32x128xf32>
    %c0_41 = arith.constant 0 : index
    %c0_42 = arith.constant 0 : index
    %c0_43 = arith.constant 0 : index
    %114 = vector.load %arg13[%c0_41, %c0_42, %c0_43] : memref<1x1x128xf32, #tpu.memory_space<vmem>>, vector<1x1x128xf32>
    %115 = vector.shape_cast %114 : vector<1x1x128xf32> to vector<1x128xf32>
    %116 = vector.broadcast %115 : vector<1x128xf32> to vector<32x128xf32>
    %117 = arith.addf %113, %116 : vector<32x128xf32>
    %cst_44 = arith.constant 0.000000e+00 : f32
    %118 = vector.broadcast %cst_44 : f32 to vector<32x128xf32>
    %119 = arith.maximumf %117, %118 : vector<32x128xf32>
    %c0_45 = arith.constant 0 : index
    %c0_46 = arith.constant 0 : index
    %c0_47 = arith.constant 0 : index
    %120 = vector.load %arg14[%c0_45, %c0_46, %c0_47] : memref<1x128x32xbf16, #tpu.memory_space<vmem>>, vector<1x128x32xbf16>
    %121 = vector.shape_cast %120 : vector<1x128x32xbf16> to vector<128x32xbf16>
    %122 = arith.truncf %119 : vector<32x128xf32> to vector<32x128xbf16>
    %cst_48 = arith.constant dense<0.000000e+00> : vector<32x32xf32>
    %123 = tpu.matmul %122, %121, %cst_48 {dimension_numbers = #tpu.dot_dimension_numbers<[1], [0], [0], [1], [0, 0, 1, 1], [], []>} : vector<32x128xbf16>, vector<128x32xbf16>, vector<32x32xf32> -> vector<32x32xf32>
    %c0_49 = arith.constant 0 : index
    %c0_50 = arith.constant 0 : index
    %c0_51 = arith.constant 0 : index
    %124 = vector.load %arg15[%c0_49, %c0_50, %c0_51] : memref<1x1x32xf32, #tpu.memory_space<vmem>>, vector<1x1x32xf32>
    %125 = vector.shape_cast %124 : vector<1x1x32xf32> to vector<1x32xf32>
    %126 = vector.broadcast %125 : vector<1x32xf32> to vector<32x32xf32>
    %127 = arith.addf %123, %126 : vector<32x32xf32>
    %128 = arith.addf %109, %127 : vector<32x32xf32>
    %c0_52 = arith.constant 0 : index
    %c0_53 = arith.constant 0 : index
    %c0_54 = arith.constant 0 : index
    %129 = vector.load %arg16[%c0_52, %c0_53, %c0_54] : memref<1x1x32xf32, #tpu.memory_space<vmem>>, vector<1x1x32xf32>
    %130 = vector.shape_cast %129 : vector<1x1x32xf32> to vector<1x32xf32>
    %c0_55 = arith.constant 0 : index
    %c0_56 = arith.constant 0 : index
    %c0_57 = arith.constant 0 : index
    %131 = vector.load %arg17[%c0_55, %c0_56, %c0_57] : memref<1x1x32xf32, #tpu.memory_space<vmem>>, vector<1x1x32xf32>
    %132 = vector.shape_cast %131 : vector<1x1x32xf32> to vector<1x32xf32>
    %cst_58 = arith.constant dense<0.000000e+00> : vector<32xf32>
    %133 = vector.multi_reduction <add>, %128, %cst_58 [1] : vector<32x32xf32> to vector<32xf32>
    %134 = vector.shape_cast %133 : vector<32xf32> to vector<32x1xf32>
    %cst_59 = arith.constant 3.200000e+01 : f32
    %135 = vector.broadcast %cst_59 : f32 to vector<32x1xf32>
    %136 = arith.divf %134, %135 : vector<32x1xf32>
    %137 = vector.broadcast %136 : vector<32x1xf32> to vector<32x32xf32>
    %138 = arith.subf %128, %137 : vector<32x32xf32>
    %139 = arith.mulf %138, %138 : vector<32x32xf32>
    %cst_60 = arith.constant dense<0.000000e+00> : vector<32xf32>
    %140 = vector.multi_reduction <add>, %139, %cst_60 [1] : vector<32x32xf32> to vector<32xf32>
    %141 = vector.shape_cast %140 : vector<32xf32> to vector<32x1xf32>
    %cst_61 = arith.constant 3.200000e+01 : f32
    %142 = vector.broadcast %cst_61 : f32 to vector<32x1xf32>
    %143 = arith.divf %141, %142 : vector<32x1xf32>
    %144 = vector.broadcast %136 : vector<32x1xf32> to vector<32x32xf32>
    %145 = arith.subf %128, %144 : vector<32x32xf32>
    %cst_62 = arith.constant 9.99999974E-6 : f32
    %146 = vector.broadcast %cst_62 : f32 to vector<32x1xf32>
    %147 = arith.addf %143, %146 : vector<32x1xf32>
    %148 = math.rsqrt %147 : vector<32x1xf32>
    %149 = vector.broadcast %148 : vector<32x1xf32> to vector<32x32xf32>
    %150 = arith.mulf %145, %149 : vector<32x32xf32>
    %151 = vector.broadcast %130 : vector<1x32xf32> to vector<32x32xf32>
    %152 = arith.mulf %150, %151 : vector<32x32xf32>
    %153 = vector.broadcast %132 : vector<1x32xf32> to vector<32x32xf32>
    %154 = arith.addf %152, %153 : vector<32x32xf32>
    %155 = vector.shape_cast %154 : vector<32x32xf32> to vector<2x16x32xf32>
    %c0_63 = arith.constant 0 : index
    %c0_64 = arith.constant 0 : index
    %c0_65 = arith.constant 0 : index
    %156 = vector.load %arg19[%c0_63, %c0_64, %c0_65] : memref<2x16x32xf32, #tpu.memory_space<vmem>>, vector<2x16x32xf32>
    tpu.vector_store %arg19[%c0_63, %c0_64, %c0_65], %155 {strides = array<i32>} : memref<2x16x32xf32, #tpu.memory_space<vmem>>, vector<2x16x32xf32>,
    %c1_i32 = arith.constant 1 : i32
    %157 = arith.cmpi eq, %arg1, %c1_i32 : i32
    %158 = arith.extui %157 : i1 to i32
    %c0_i32_66 = arith.constant 0 : i32
    %159 = arith.cmpi ne, %158, %c0_i32_66 : i32
    scf.if %159 {
      %160 = vector.shape_cast %154 : vector<32x32xf32> to vector<2x16x32xf32>
      %161 = arith.truncf %160 : vector<2x16x32xf32> to vector<2x16x32xbf16>
      %c0_67 = arith.constant 0 : index
      %c0_68 = arith.constant 0 : index
      %c0_69 = arith.constant 0 : index
      %162 = vector.load %arg18[%c0_67, %c0_68, %c0_69] : memref<2x16x32xbf16, #tpu.memory_space<vmem>>, vector<2x16x32xbf16>
      tpu.vector_store %arg18[%c0_67, %c0_68, %c0_69], %161 {strides = array<i32>} : memref<2x16x32xbf16, #tpu.memory_space<vmem>>, vector<2x16x32xbf16>,
    } else {
    }
    return
  }
  func.func @transform_0(%arg0: i32, %arg1: i32) -> (i32, i32, i32) {
    %c0_i32 = arith.constant 0 : i32
    %c0_i32_0 = arith.constant 0 : i32
    %c0_i32_1 = arith.constant 0 : i32
    return %arg0, %c0_i32, %c0_i32_0 : i32, i32, i32
  }
  func.func @transform_1(%arg0: i32, %arg1: i32) -> (i32, i32) {
    %c0_i32 = arith.constant 0 : i32
    %c0_i32_0 = arith.constant 0 : i32
    %c0_i32_1 = arith.constant 0 : i32
    return %c0_i32, %c0_i32_0 : i32, i32
  }
  func.func @transform_2(%arg0: i32, %arg1: i32) -> (i32, i32) {
    %c0_i32 = arith.constant 0 : i32
    %c0_i32_0 = arith.constant 0 : i32
    %c0_i32_1 = arith.constant 0 : i32
    return %c0_i32, %c0_i32_0 : i32, i32
  }
  func.func @transform_3(%arg0: i32, %arg1: i32) -> (i32, i32) {
    %c0_i32 = arith.constant 0 : i32
    %c0_i32_0 = arith.constant 0 : i32
    %c0_i32_1 = arith.constant 0 : i32
    return %c0_i32, %c0_i32_0 : i32, i32
  }
  func.func @transform_4(%arg0: i32, %arg1: i32) -> (i32, i32, i32) {
    %c0_i32 = arith.constant 0 : i32
    %c0_i32_0 = arith.constant 0 : i32
    %c0_i32_1 = arith.constant 0 : i32
    return %arg1, %c0_i32, %c0_i32_0 : i32, i32, i32
  }
  func.func @transform_5(%arg0: i32, %arg1: i32) -> (i32, i32, i32) {
    %c0_i32 = arith.constant 0 : i32
    %c0_i32_0 = arith.constant 0 : i32
    %c0_i32_1 = arith.constant 0 : i32
    return %arg1, %c0_i32, %c0_i32_0 : i32, i32, i32
  }
  func.func @transform_6(%arg0: i32, %arg1: i32) -> (i32, i32, i32) {
    %c0_i32 = arith.constant 0 : i32
    %c0_i32_0 = arith.constant 0 : i32
    %c0_i32_1 = arith.constant 0 : i32
    return %arg1, %c0_i32, %c0_i32_0 : i32, i32, i32
  }
  func.func @transform_7(%arg0: i32, %arg1: i32) -> (i32, i32, i32) {
    %c0_i32 = arith.constant 0 : i32
    %c0_i32_0 = arith.constant 0 : i32
    %c0_i32_1 = arith.constant 0 : i32
    return %arg1, %c0_i32, %c0_i32_0 : i32, i32, i32
  }
  func.func @transform_8(%arg0: i32, %arg1: i32) -> (i32, i32, i32) {
    %c0_i32 = arith.constant 0 : i32
    %c0_i32_0 = arith.constant 0 : i32
    %c0_i32_1 = arith.constant 0 : i32
    return %arg1, %c0_i32, %c0_i32_0 : i32, i32, i32
  }
  func.func @transform_9(%arg0: i32, %arg1: i32) -> (i32, i32, i32) {
    %c0_i32 = arith.constant 0 : i32
    %c0_i32_0 = arith.constant 0 : i32
    %c0_i32_1 = arith.constant 0 : i32
    return %arg1, %c0_i32, %c0_i32_0 : i32, i32, i32
  }
  func.func @transform_10(%arg0: i32, %arg1: i32) -> (i32, i32, i32) {
    %c0_i32 = arith.constant 0 : i32
    %c0_i32_0 = arith.constant 0 : i32
    %c0_i32_1 = arith.constant 0 : i32
    return %arg1, %c0_i32, %c0_i32_0 : i32, i32, i32
  }
  func.func @transform_11(%arg0: i32, %arg1: i32) -> (i32, i32, i32) {
    %c0_i32 = arith.constant 0 : i32
    %c0_i32_0 = arith.constant 0 : i32
    %c0_i32_1 = arith.constant 0 : i32
    return %arg1, %c0_i32, %c0_i32_0 : i32, i32, i32
  }
  func.func @transform_12(%arg0: i32, %arg1: i32) -> (i32, i32, i32) {
    %c0_i32 = arith.constant 0 : i32
    %c0_i32_0 = arith.constant 0 : i32
    %c0_i32_1 = arith.constant 0 : i32
    return %arg1, %c0_i32, %c0_i32_0 : i32, i32, i32
  }
  func.func @transform_13(%arg0: i32, %arg1: i32) -> (i32, i32, i32) {
    %c0_i32 = arith.constant 0 : i32
    %c0_i32_0 = arith.constant 0 : i32
    %c0_i32_1 = arith.constant 0 : i32
    return %arg1, %c0_i32, %c0_i32_0 : i32, i32, i32
  }
  func.func @transform_14(%arg0: i32, %arg1: i32) -> (i32, i32, i32) {
    %c0_i32 = arith.constant 0 : i32
    %c0_i32_0 = arith.constant 0 : i32
    %c0_i32_1 = arith.constant 0 : i32
    return %arg1, %c0_i32, %c0_i32_0 : i32, i32, i32
  }
  func.func @transform_15(%arg0: i32, %arg1: i32) -> (i32, i32, i32) {
    %c0_i32 = arith.constant 0 : i32
    %c0_i32_0 = arith.constant 0 : i32
    %c0_i32_1 = arith.constant 0 : i32
    return %arg1, %c0_i32, %c0_i32_0 : i32, i32, i32
  }
  func.func @transform_16(%arg0: i32, %arg1: i32) -> (i32, i32, i32) {
    %c0_i32 = arith.constant 0 : i32
    %c0_i32_0 = arith.constant 0 : i32
    %c0_i32_1 = arith.constant 0 : i32
    return %arg0, %c0_i32, %c0_i32_0 : i32, i32, i32
  }
}

module attributes {stable_mosaic.version = 11 : i64} {
  func.func @_stack_kernel(%arg0: i32, %arg1: i32, %arg2: memref<2x4x4xf32, #tpu.memory_space<vmem>>, %arg3: memref<4x32xbf16, #tpu.memory_space<vmem>>, %arg4: memref<4x32xbf16, #tpu.memory_space<vmem>>, %arg5: memref<1x32xf32, #tpu.memory_space<vmem>>, %arg6: memref<1x32x96xbf16, #tpu.memory_space<vmem>>, %arg7: memref<1x1x96xf32, #tpu.memory_space<vmem>>, %arg8: memref<1x32x32xbf16, #tpu.memory_space<vmem>>, %arg9: memref<1x1x32xf32, #tpu.memory_space<vmem>>, %arg10: memref<1x1x32xf32, #tpu.memory_space<vmem>>, %arg11: memref<1x1x32xf32, #tpu.memory_space<vmem>>, %arg12: memref<1x32x128xbf16, #tpu.memory_space<vmem>>, %arg13: memref<1x1x128xf32, #tpu.memory_space<vmem>>, %arg14: memref<1x128x32xbf16, #tpu.memory_space<vmem>>, %arg15: memref<1x1x32xf32, #tpu.memory_space<vmem>>, %arg16: memref<1x1x32xf32, #tpu.memory_space<vmem>>, %arg17: memref<1x1x32xf32, #tpu.memory_space<vmem>>, %arg18: memref<2x4x32xbf16, #tpu.memory_space<vmem>>, %arg19: memref<2x4x32xf32, #tpu.memory_space<vmem>>) attributes {dimension_semantics = [#tpu.dimension_semantics<parallel>, #tpu.dimension_semantics<arbitrary>], iteration_bounds = array<i64: 1, 2>, scalar_prefetch = 0 : i64, scratch_operands = 1 : i64, tpu.core_type = #tpu.core_type<tc>, window_params = [{transform_indices = @transform_0, window_bounds = array<i64: 2, 4, 4>}, {pipeline_mode = #tpu.pipeline_mode<synchronous>, transform_indices = @transform_1, window_bounds = array<i64: 4, 32>}, {pipeline_mode = #tpu.pipeline_mode<synchronous>, transform_indices = @transform_2, window_bounds = array<i64: 4, 32>}, {pipeline_mode = #tpu.pipeline_mode<synchronous>, transform_indices = @transform_3, window_bounds = array<i64: 1, 32>}, {transform_indices = @transform_4, window_bounds = array<i64: 1, 32, 96>}, {transform_indices = @transform_5, window_bounds = array<i64: 1, 1, 96>}, {transform_indices = @transform_6, window_bounds = array<i64: 1, 32, 32>}, {transform_indices = @transform_7, window_bounds = array<i64: 1, 1, 32>}, {transform_indices = @transform_8, window_bounds = array<i64: 1, 1, 32>}, {transform_indices = @transform_9, window_bounds = array<i64: 1, 1, 32>}, {transform_indices = @transform_10, window_bounds = array<i64: 1, 32, 128>}, {transform_indices = @transform_11, window_bounds = array<i64: 1, 1, 128>}, {transform_indices = @transform_12, window_bounds = array<i64: 1, 128, 32>}, {transform_indices = @transform_13, window_bounds = array<i64: 1, 1, 32>}, {transform_indices = @transform_14, window_bounds = array<i64: 1, 1, 32>}, {transform_indices = @transform_15, window_bounds = array<i64: 1, 1, 32>}, {transform_indices = @transform_16, window_bounds = array<i64: 2, 4, 32>}]} {
    %c0_i32 = arith.constant 0 : i32
    %0 = arith.cmpi eq, %arg1, %c0_i32 : i32
    %1 = arith.extui %0 : i1 to i32
    %c0_i32_0 = arith.constant 0 : i32
    %2 = arith.cmpi ne, %1, %c0_i32_0 : i32
    scf.if %2 {
      %c0_67 = arith.constant 0 : index
      %c0_68 = arith.constant 0 : index
      %c0_69 = arith.constant 0 : index
      %160 = vector.load %arg2[%c0_67, %c0_68, %c0_69] : memref<2x4x4xf32, #tpu.memory_space<vmem>>, vector<2x4x4xf32>
      %161 = vector.shape_cast %160 : vector<2x4x4xf32> to vector<8x4xf32>
      %c0_70 = arith.constant 0 : index
      %c0_71 = arith.constant 0 : index
      %162 = vector.load %arg4[%c0_70, %c0_71] : memref<4x32xbf16, #tpu.memory_space<vmem>>, vector<4x32xbf16>
      %163 = arith.truncf %161 : vector<8x4xf32> to vector<8x4xbf16>
      %cst_72 = arith.constant dense<0.000000e+00> : vector<8x32xf32>
      %164 = tpu.matmul %163, %162, %cst_72 {dimension_numbers = #tpu.dot_dimension_numbers<[1], [0], [0], [1], [0, 0, 1, 1], [], []>} : vector<8x4xbf16>, vector<4x32xbf16>, vector<8x32xf32> -> vector<8x32xf32>
      %c0_73 = arith.constant 0 : index
      %c0_74 = arith.constant 0 : index
      %165 = vector.load %arg5[%c0_73, %c0_74] : memref<1x32xf32, #tpu.memory_space<vmem>>, vector<1x32xf32>
      %166 = vector.broadcast %165 : vector<1x32xf32> to vector<8x32xf32>
      %167 = arith.addf %164, %166 : vector<8x32xf32>
      %168 = vector.shape_cast %167 : vector<8x32xf32> to vector<2x4x32xf32>
      %c0_75 = arith.constant 0 : index
      %c0_76 = arith.constant 0 : index
      %169 = vector.load %arg3[%c0_75, %c0_76] : memref<4x32xbf16, #tpu.memory_space<vmem>>, vector<4x32xbf16>
      %170 = arith.extf %169 : vector<4x32xbf16> to vector<4x32xf32>
      %171 = vector.shape_cast %170 : vector<4x32xf32> to vector<1x4x32xf32>
      %172 = vector.broadcast %171 : vector<1x4x32xf32> to vector<2x4x32xf32>
      %173 = arith.addf %168, %172 : vector<2x4x32xf32>
      %c0_77 = arith.constant 0 : index
      %c0_78 = arith.constant 0 : index
      %c0_79 = arith.constant 0 : index
      %174 = vector.load %arg19[%c0_77, %c0_78, %c0_79] : memref<2x4x32xf32, #tpu.memory_space<vmem>>, vector<2x4x32xf32>
      tpu.vector_store %arg19[%c0_77, %c0_78, %c0_79], %173 {strides = array<i32>} : memref<2x4x32xf32, #tpu.memory_space<vmem>>, vector<2x4x32xf32>,
    } else {
    }
    %c0 = arith.constant 0 : index
    %c0_1 = arith.constant 0 : index
    %c0_2 = arith.constant 0 : index
    %3 = vector.load %arg19[%c0, %c0_1, %c0_2] : memref<2x4x32xf32, #tpu.memory_space<vmem>>, vector<2x4x32xf32>
    %4 = vector.shape_cast %3 : vector<2x4x32xf32> to vector<8x32xf32>
    %c0_3 = arith.constant 0 : index
    %c0_4 = arith.constant 0 : index
    %c0_5 = arith.constant 0 : index
    %5 = vector.load %arg6[%c0_3, %c0_4, %c0_5] : memref<1x32x96xbf16, #tpu.memory_space<vmem>>, vector<1x32x96xbf16>
    %6 = vector.shape_cast %5 : vector<1x32x96xbf16> to vector<32x96xbf16>
    %7 = arith.truncf %4 : vector<8x32xf32> to vector<8x32xbf16>
    %cst = arith.constant dense<0.000000e+00> : vector<8x96xf32>
    %8 = tpu.matmul %7, %6, %cst {dimension_numbers = #tpu.dot_dimension_numbers<[1], [0], [0], [1], [0, 0, 1, 1], [], []>} : vector<8x32xbf16>, vector<32x96xbf16>, vector<8x96xf32> -> vector<8x96xf32>
    %c0_6 = arith.constant 0 : index
    %c0_7 = arith.constant 0 : index
    %c0_8 = arith.constant 0 : index
    %9 = vector.load %arg7[%c0_6, %c0_7, %c0_8] : memref<1x1x96xf32, #tpu.memory_space<vmem>>, vector<1x1x96xf32>
    %10 = vector.shape_cast %9 : vector<1x1x96xf32> to vector<1x96xf32>
    %11 = vector.broadcast %10 : vector<1x96xf32> to vector<8x96xf32>
    %12 = arith.addf %8, %11 : vector<8x96xf32>
    %13 = vector.extract_strided_slice %12 {offsets = [0, 0], sizes = [8, 32], strides = [1, 1]} : vector<8x96xf32> to vector<8x32xf32>
    %14 = vector.extract_strided_slice %12 {offsets = [0, 32], sizes = [8, 32], strides = [1, 1]} : vector<8x96xf32> to vector<8x32xf32>
    %15 = vector.extract_strided_slice %12 {offsets = [0, 64], sizes = [8, 32], strides = [1, 1]} : vector<8x96xf32> to vector<8x32xf32>
    %16 = vector.extract_strided_slice %13 {offsets = [0, 0], sizes = [4, 32], strides = [1, 1]} : vector<8x32xf32> to vector<4x32xf32>
    %17 = vector.shape_cast %16 : vector<4x32xf32> to vector<4x4x8xf32>
    %18 = tpu.transpose %17, [1, 0, 2] : vector<4x4x8xf32> -> vector<4x4x8xf32>
    %19 = arith.truncf %18 : vector<4x4x8xf32> to vector<4x4x8xbf16>
    %20 = vector.extract_strided_slice %14 {offsets = [0, 0], sizes = [4, 32], strides = [1, 1]} : vector<8x32xf32> to vector<4x32xf32>
    %21 = vector.shape_cast %20 : vector<4x32xf32> to vector<4x4x8xf32>
    %22 = tpu.transpose %21, [1, 0, 2] : vector<4x4x8xf32> -> vector<4x4x8xf32>
    %23 = arith.truncf %22 : vector<4x4x8xf32> to vector<4x4x8xbf16>
    %24 = vector.extract_strided_slice %15 {offsets = [0, 0], sizes = [4, 32], strides = [1, 1]} : vector<8x32xf32> to vector<4x32xf32>
    %25 = vector.shape_cast %24 : vector<4x32xf32> to vector<4x4x8xf32>
    %26 = tpu.transpose %25, [1, 0, 2] : vector<4x4x8xf32> -> vector<4x4x8xf32>
    %27 = arith.truncf %26 : vector<4x4x8xf32> to vector<4x4x8xbf16>
    "tpu.trace_start"() <{level = 10 : i32, message = "hqd,hkd->hqk"}> : () -> ()
    %cst_9 = arith.constant dense<0.000000e+00> : vector<4x4x4xf32>
    %28 = tpu.matmul %19, %23, %cst_9 {dimension_numbers = #tpu.dot_dimension_numbers<[2], [2], [1], [1], [0, 0, 0, 1, 1, 1], [0], [0]>} : vector<4x4x8xbf16>, vector<4x4x8xbf16>, vector<4x4x4xf32> -> vector<4x4x4xf32>
    "tpu.trace_stop"() : () -> ()
    %cst_10 = arith.constant 0.353553385 : f32
    %29 = vector.broadcast %cst_10 : f32 to vector<4x4x4xf32>
    %30 = arith.mulf %28, %29 : vector<4x4x4xf32>
    %cst_11 = arith.constant dense<0xFF800000> : vector<4x4xf32>
    %31 = vector.multi_reduction <maximumf>, %30, %cst_11 [2] : vector<4x4x4xf32> to vector<4x4xf32>
    %32 = vector.shape_cast %31 : vector<4x4xf32> to vector<4x4x1xf32>
    %33 = vector.broadcast %32 : vector<4x4x1xf32> to vector<4x4x4xf32>
    %34 = arith.subf %30, %33 : vector<4x4x4xf32>
    %35 = math.exp %34 : vector<4x4x4xf32>
    %cst_12 = arith.constant dense<0.000000e+00> : vector<4x4xf32>
    %36 = vector.multi_reduction <add>, %35, %cst_12 [2] : vector<4x4x4xf32> to vector<4x4xf32>
    %37 = vector.shape_cast %36 : vector<4x4xf32> to vector<4x4x1xf32>
    %38 = tpu.reciprocal %37 {approx = true} : vector<4x4x1xf32> -> vector<4x4x1xf32>
    %39 = vector.broadcast %38 : vector<4x4x1xf32> to vector<4x4x4xf32>
    %40 = arith.mulf %35, %39 : vector<4x4x4xf32>
    %41 = arith.truncf %40 : vector<4x4x4xf32> to vector<4x4x4xbf16>
    "tpu.trace_start"() <{level = 10 : i32, message = "hqk,hkd->hqd"}> : () -> ()
    %cst_13 = arith.constant dense<0.000000e+00> : vector<4x4x8xf32>
    %42 = tpu.matmul %41, %27, %cst_13 {dimension_numbers = #tpu.dot_dimension_numbers<[2], [1], [1], [2], [0, 0, 0, 1, 1, 2], [0], [0]>} : vector<4x4x4xbf16>, vector<4x4x8xbf16>, vector<4x4x8xf32> -> vector<4x4x8xf32>
    "tpu.trace_stop"() : () -> ()
    %43 = tpu.transpose %42, [1, 0, 2] : vector<4x4x8xf32> -> vector<4x4x8xf32>
    %44 = vector.shape_cast %43 : vector<4x4x8xf32> to vector<4x32xf32>
    %45 = vector.extract_strided_slice %13 {offsets = [4, 0], sizes = [4, 32], strides = [1, 1]} : vector<8x32xf32> to vector<4x32xf32>
    %46 = vector.shape_cast %45 : vector<4x32xf32> to vector<4x4x8xf32>
    %47 = tpu.transpose %46, [1, 0, 2] : vector<4x4x8xf32> -> vector<4x4x8xf32>
    %48 = arith.truncf %47 : vector<4x4x8xf32> to vector<4x4x8xbf16>
    %49 = vector.extract_strided_slice %14 {offsets = [4, 0], sizes = [4, 32], strides = [1, 1]} : vector<8x32xf32> to vector<4x32xf32>
    %50 = vector.shape_cast %49 : vector<4x32xf32> to vector<4x4x8xf32>
    %51 = tpu.transpose %50, [1, 0, 2] : vector<4x4x8xf32> -> vector<4x4x8xf32>
    %52 = arith.truncf %51 : vector<4x4x8xf32> to vector<4x4x8xbf16>
    %53 = vector.extract_strided_slice %15 {offsets = [4, 0], sizes = [4, 32], strides = [1, 1]} : vector<8x32xf32> to vector<4x32xf32>
    %54 = vector.shape_cast %53 : vector<4x32xf32> to vector<4x4x8xf32>
    %55 = tpu.transpose %54, [1, 0, 2] : vector<4x4x8xf32> -> vector<4x4x8xf32>
    %56 = arith.truncf %55 : vector<4x4x8xf32> to vector<4x4x8xbf16>
    "tpu.trace_start"() <{level = 10 : i32, message = "hqd,hkd->hqk"}> : () -> ()
    %cst_14 = arith.constant dense<0.000000e+00> : vector<4x4x4xf32>
    %57 = tpu.matmul %48, %52, %cst_14 {dimension_numbers = #tpu.dot_dimension_numbers<[2], [2], [1], [1], [0, 0, 0, 1, 1, 1], [0], [0]>} : vector<4x4x8xbf16>, vector<4x4x8xbf16>, vector<4x4x4xf32> -> vector<4x4x4xf32>
    "tpu.trace_stop"() : () -> ()
    %cst_15 = arith.constant 0.353553385 : f32
    %58 = vector.broadcast %cst_15 : f32 to vector<4x4x4xf32>
    %59 = arith.mulf %57, %58 : vector<4x4x4xf32>
    %cst_16 = arith.constant dense<0xFF800000> : vector<4x4xf32>
    %60 = vector.multi_reduction <maximumf>, %59, %cst_16 [2] : vector<4x4x4xf32> to vector<4x4xf32>
    %61 = vector.shape_cast %60 : vector<4x4xf32> to vector<4x4x1xf32>
    %62 = vector.broadcast %61 : vector<4x4x1xf32> to vector<4x4x4xf32>
    %63 = arith.subf %59, %62 : vector<4x4x4xf32>
    %64 = math.exp %63 : vector<4x4x4xf32>
    %cst_17 = arith.constant dense<0.000000e+00> : vector<4x4xf32>
    %65 = vector.multi_reduction <add>, %64, %cst_17 [2] : vector<4x4x4xf32> to vector<4x4xf32>
    %66 = vector.shape_cast %65 : vector<4x4xf32> to vector<4x4x1xf32>
    %67 = tpu.reciprocal %66 {approx = true} : vector<4x4x1xf32> -> vector<4x4x1xf32>
    %68 = vector.broadcast %67 : vector<4x4x1xf32> to vector<4x4x4xf32>
    %69 = arith.mulf %64, %68 : vector<4x4x4xf32>
    %70 = arith.truncf %69 : vector<4x4x4xf32> to vector<4x4x4xbf16>
    "tpu.trace_start"() <{level = 10 : i32, message = "hqk,hkd->hqd"}> : () -> ()
    %cst_18 = arith.constant dense<0.000000e+00> : vector<4x4x8xf32>
    %71 = tpu.matmul %70, %56, %cst_18 {dimension_numbers = #tpu.dot_dimension_numbers<[2], [1], [1], [2], [0, 0, 0, 1, 1, 2], [0], [0]>} : vector<4x4x4xbf16>, vector<4x4x8xbf16>, vector<4x4x8xf32> -> vector<4x4x8xf32>
    "tpu.trace_stop"() : () -> ()
    %72 = tpu.transpose %71, [1, 0, 2] : vector<4x4x8xf32> -> vector<4x4x8xf32>
    %73 = vector.shape_cast %72 : vector<4x4x8xf32> to vector<4x32xf32>
    %74 = tpu.concatenate %44, %73 in 0 : vector<4x32xf32>, vector<4x32xf32> -> vector<8x32xf32>
    %c0_19 = arith.constant 0 : index
    %c0_20 = arith.constant 0 : index
    %c0_21 = arith.constant 0 : index
    %75 = vector.load %arg8[%c0_19, %c0_20, %c0_21] : memref<1x32x32xbf16, #tpu.memory_space<vmem>>, vector<1x32x32xbf16>
    %76 = vector.shape_cast %75 : vector<1x32x32xbf16> to vector<32x32xbf16>
    %77 = arith.truncf %74 : vector<8x32xf32> to vector<8x32xbf16>
    %cst_22 = arith.constant dense<0.000000e+00> : vector<8x32xf32>
    %78 = tpu.matmul %77, %76, %cst_22 {dimension_numbers = #tpu.dot_dimension_numbers<[1], [0], [0], [1], [0, 0, 1, 1], [], []>} : vector<8x32xbf16>, vector<32x32xbf16>, vector<8x32xf32> -> vector<8x32xf32>
    %c0_23 = arith.constant 0 : index
    %c0_24 = arith.constant 0 : index
    %c0_25 = arith.constant 0 : index
    %79 = vector.load %arg9[%c0_23, %c0_24, %c0_25] : memref<1x1x32xf32, #tpu.memory_space<vmem>>, vector<1x1x32xf32>
    %80 = vector.shape_cast %79 : vector<1x1x32xf32> to vector<1x32xf32>
    %81 = vector.broadcast %80 : vector<1x32xf32> to vector<8x32xf32>
    %82 = arith.addf %78, %81 : vector<8x32xf32>
    %83 = arith.addf %4, %82 : vector<8x32xf32>
    %c0_26 = arith.constant 0 : index
    %c0_27 = arith.constant 0 : index
    %c0_28 = arith.constant 0 : index
    %84 = vector.load %arg10[%c0_26, %c0_27, %c0_28] : memref<1x1x32xf32, #tpu.memory_space<vmem>>, vector<1x1x32xf32>
    %85 = vector.shape_cast %84 : vector<1x1x32xf32> to vector<1x32xf32>
    %c0_29 = arith.constant 0 : index
    %c0_30 = arith.constant 0 : index
    %c0_31 = arith.constant 0 : index
    %86 = vector.load %arg11[%c0_29, %c0_30, %c0_31] : memref<1x1x32xf32, #tpu.memory_space<vmem>>, vector<1x1x32xf32>
    %87 = vector.shape_cast %86 : vector<1x1x32xf32> to vector<1x32xf32>
    %cst_32 = arith.constant dense<0.000000e+00> : vector<8xf32>
    %88 = vector.multi_reduction <add>, %83, %cst_32 [1] : vector<8x32xf32> to vector<8xf32>
    %89 = vector.shape_cast %88 : vector<8xf32> to vector<8x1xf32>
    %cst_33 = arith.constant 3.200000e+01 : f32
    %90 = vector.broadcast %cst_33 : f32 to vector<8x1xf32>
    %91 = arith.divf %89, %90 : vector<8x1xf32>
    %92 = vector.broadcast %91 : vector<8x1xf32> to vector<8x32xf32>
    %93 = arith.subf %83, %92 : vector<8x32xf32>
    %94 = arith.mulf %93, %93 : vector<8x32xf32>
    %cst_34 = arith.constant dense<0.000000e+00> : vector<8xf32>
    %95 = vector.multi_reduction <add>, %94, %cst_34 [1] : vector<8x32xf32> to vector<8xf32>
    %96 = vector.shape_cast %95 : vector<8xf32> to vector<8x1xf32>
    %cst_35 = arith.constant 3.200000e+01 : f32
    %97 = vector.broadcast %cst_35 : f32 to vector<8x1xf32>
    %98 = arith.divf %96, %97 : vector<8x1xf32>
    %99 = vector.broadcast %91 : vector<8x1xf32> to vector<8x32xf32>
    %100 = arith.subf %83, %99 : vector<8x32xf32>
    %cst_36 = arith.constant 9.99999974E-6 : f32
    %101 = vector.broadcast %cst_36 : f32 to vector<8x1xf32>
    %102 = arith.addf %98, %101 : vector<8x1xf32>
    %103 = math.rsqrt %102 : vector<8x1xf32>
    %104 = vector.broadcast %103 : vector<8x1xf32> to vector<8x32xf32>
    %105 = arith.mulf %100, %104 : vector<8x32xf32>
    %106 = vector.broadcast %85 : vector<1x32xf32> to vector<8x32xf32>
    %107 = arith.mulf %105, %106 : vector<8x32xf32>
    %108 = vector.broadcast %87 : vector<1x32xf32> to vector<8x32xf32>
    %109 = arith.addf %107, %108 : vector<8x32xf32>
    %c0_37 = arith.constant 0 : index
    %c0_38 = arith.constant 0 : index
    %c0_39 = arith.constant 0 : index
    %110 = vector.load %arg12[%c0_37, %c0_38, %c0_39] : memref<1x32x128xbf16, #tpu.memory_space<vmem>>, vector<1x32x128xbf16>
    %111 = vector.shape_cast %110 : vector<1x32x128xbf16> to vector<32x128xbf16>
    %112 = arith.truncf %109 : vector<8x32xf32> to vector<8x32xbf16>
    %cst_40 = arith.constant dense<0.000000e+00> : vector<8x128xf32>
    %113 = tpu.matmul %112, %111, %cst_40 {dimension_numbers = #tpu.dot_dimension_numbers<[1], [0], [0], [1], [0, 0, 1, 1], [], []>} : vector<8x32xbf16>, vector<32x128xbf16>, vector<8x128xf32> -> vector<8x128xf32>
    %c0_41 = arith.constant 0 : index
    %c0_42 = arith.constant 0 : index
    %c0_43 = arith.constant 0 : index
    %114 = vector.load %arg13[%c0_41, %c0_42, %c0_43] : memref<1x1x128xf32, #tpu.memory_space<vmem>>, vector<1x1x128xf32>
    %115 = vector.shape_cast %114 : vector<1x1x128xf32> to vector<1x128xf32>
    %116 = vector.broadcast %115 : vector<1x128xf32> to vector<8x128xf32>
    %117 = arith.addf %113, %116 : vector<8x128xf32>
    %cst_44 = arith.constant 0.000000e+00 : f32
    %118 = vector.broadcast %cst_44 : f32 to vector<8x128xf32>
    %119 = arith.maximumf %117, %118 : vector<8x128xf32>
    %c0_45 = arith.constant 0 : index
    %c0_46 = arith.constant 0 : index
    %c0_47 = arith.constant 0 : index
    %120 = vector.load %arg14[%c0_45, %c0_46, %c0_47] : memref<1x128x32xbf16, #tpu.memory_space<vmem>>, vector<1x128x32xbf16>
    %121 = vector.shape_cast %120 : vector<1x128x32xbf16> to vector<128x32xbf16>
    %122 = arith.truncf %119 : vector<8x128xf32> to vector<8x128xbf16>
    %cst_48 = arith.constant dense<0.000000e+00> : vector<8x32xf32>
    %123 = tpu.matmul %122, %121, %cst_48 {dimension_numbers = #tpu.dot_dimension_numbers<[1], [0], [0], [1], [0, 0, 1, 1], [], []>} : vector<8x128xbf16>, vector<128x32xbf16>, vector<8x32xf32> -> vector<8x32xf32>
    %c0_49 = arith.constant 0 : index
    %c0_50 = arith.constant 0 : index
    %c0_51 = arith.constant 0 : index
    %124 = vector.load %arg15[%c0_49, %c0_50, %c0_51] : memref<1x1x32xf32, #tpu.memory_space<vmem>>, vector<1x1x32xf32>
    %125 = vector.shape_cast %124 : vector<1x1x32xf32> to vector<1x32xf32>
    %126 = vector.broadcast %125 : vector<1x32xf32> to vector<8x32xf32>
    %127 = arith.addf %123, %126 : vector<8x32xf32>
    %128 = arith.addf %109, %127 : vector<8x32xf32>
    %c0_52 = arith.constant 0 : index
    %c0_53 = arith.constant 0 : index
    %c0_54 = arith.constant 0 : index
    %129 = vector.load %arg16[%c0_52, %c0_53, %c0_54] : memref<1x1x32xf32, #tpu.memory_space<vmem>>, vector<1x1x32xf32>
    %130 = vector.shape_cast %129 : vector<1x1x32xf32> to vector<1x32xf32>
    %c0_55 = arith.constant 0 : index
    %c0_56 = arith.constant 0 : index
    %c0_57 = arith.constant 0 : index
    %131 = vector.load %arg17[%c0_55, %c0_56, %c0_57] : memref<1x1x32xf32, #tpu.memory_space<vmem>>, vector<1x1x32xf32>
    %132 = vector.shape_cast %131 : vector<1x1x32xf32> to vector<1x32xf32>
    %cst_58 = arith.constant dense<0.000000e+00> : vector<8xf32>
    %133 = vector.multi_reduction <add>, %128, %cst_58 [1] : vector<8x32xf32> to vector<8xf32>
    %134 = vector.shape_cast %133 : vector<8xf32> to vector<8x1xf32>
    %cst_59 = arith.constant 3.200000e+01 : f32
    %135 = vector.broadcast %cst_59 : f32 to vector<8x1xf32>
    %136 = arith.divf %134, %135 : vector<8x1xf32>
    %137 = vector.broadcast %136 : vector<8x1xf32> to vector<8x32xf32>
    %138 = arith.subf %128, %137 : vector<8x32xf32>
    %139 = arith.mulf %138, %138 : vector<8x32xf32>
    %cst_60 = arith.constant dense<0.000000e+00> : vector<8xf32>
    %140 = vector.multi_reduction <add>, %139, %cst_60 [1] : vector<8x32xf32> to vector<8xf32>
    %141 = vector.shape_cast %140 : vector<8xf32> to vector<8x1xf32>
    %cst_61 = arith.constant 3.200000e+01 : f32
    %142 = vector.broadcast %cst_61 : f32 to vector<8x1xf32>
    %143 = arith.divf %141, %142 : vector<8x1xf32>
    %144 = vector.broadcast %136 : vector<8x1xf32> to vector<8x32xf32>
    %145 = arith.subf %128, %144 : vector<8x32xf32>
    %cst_62 = arith.constant 9.99999974E-6 : f32
    %146 = vector.broadcast %cst_62 : f32 to vector<8x1xf32>
    %147 = arith.addf %143, %146 : vector<8x1xf32>
    %148 = math.rsqrt %147 : vector<8x1xf32>
    %149 = vector.broadcast %148 : vector<8x1xf32> to vector<8x32xf32>
    %150 = arith.mulf %145, %149 : vector<8x32xf32>
    %151 = vector.broadcast %130 : vector<1x32xf32> to vector<8x32xf32>
    %152 = arith.mulf %150, %151 : vector<8x32xf32>
    %153 = vector.broadcast %132 : vector<1x32xf32> to vector<8x32xf32>
    %154 = arith.addf %152, %153 : vector<8x32xf32>
    %155 = vector.shape_cast %154 : vector<8x32xf32> to vector<2x4x32xf32>
    %c0_63 = arith.constant 0 : index
    %c0_64 = arith.constant 0 : index
    %c0_65 = arith.constant 0 : index
    %156 = vector.load %arg19[%c0_63, %c0_64, %c0_65] : memref<2x4x32xf32, #tpu.memory_space<vmem>>, vector<2x4x32xf32>
    tpu.vector_store %arg19[%c0_63, %c0_64, %c0_65], %155 {strides = array<i32>} : memref<2x4x32xf32, #tpu.memory_space<vmem>>, vector<2x4x32xf32>,
    %c1_i32 = arith.constant 1 : i32
    %157 = arith.cmpi eq, %arg1, %c1_i32 : i32
    %158 = arith.extui %157 : i1 to i32
    %c0_i32_66 = arith.constant 0 : i32
    %159 = arith.cmpi ne, %158, %c0_i32_66 : i32
    scf.if %159 {
      %160 = vector.shape_cast %154 : vector<8x32xf32> to vector<2x4x32xf32>
      %161 = arith.truncf %160 : vector<2x4x32xf32> to vector<2x4x32xbf16>
      %c0_67 = arith.constant 0 : index
      %c0_68 = arith.constant 0 : index
      %c0_69 = arith.constant 0 : index
      %162 = vector.load %arg18[%c0_67, %c0_68, %c0_69] : memref<2x4x32xbf16, #tpu.memory_space<vmem>>, vector<2x4x32xbf16>
      tpu.vector_store %arg18[%c0_67, %c0_68, %c0_69], %161 {strides = array<i32>} : memref<2x4x32xbf16, #tpu.memory_space<vmem>>, vector<2x4x32xbf16>,
    } else {
    }
    return
  }
  func.func @transform_0(%arg0: i32, %arg1: i32) -> (i32, i32, i32) {
    %c0_i32 = arith.constant 0 : i32
    %c0_i32_0 = arith.constant 0 : i32
    %c0_i32_1 = arith.constant 0 : i32
    return %arg0, %c0_i32, %c0_i32_0 : i32, i32, i32
  }
  func.func @transform_1(%arg0: i32, %arg1: i32) -> (i32, i32) {
    %c0_i32 = arith.constant 0 : i32
    %c0_i32_0 = arith.constant 0 : i32
    %c0_i32_1 = arith.constant 0 : i32
    return %c0_i32, %c0_i32_0 : i32, i32
  }
  func.func @transform_2(%arg0: i32, %arg1: i32) -> (i32, i32) {
    %c0_i32 = arith.constant 0 : i32
    %c0_i32_0 = arith.constant 0 : i32
    %c0_i32_1 = arith.constant 0 : i32
    return %c0_i32, %c0_i32_0 : i32, i32
  }
  func.func @transform_3(%arg0: i32, %arg1: i32) -> (i32, i32) {
    %c0_i32 = arith.constant 0 : i32
    %c0_i32_0 = arith.constant 0 : i32
    %c0_i32_1 = arith.constant 0 : i32
    return %c0_i32, %c0_i32_0 : i32, i32
  }
  func.func @transform_4(%arg0: i32, %arg1: i32) -> (i32, i32, i32) {
    %c0_i32 = arith.constant 0 : i32
    %c0_i32_0 = arith.constant 0 : i32
    %c0_i32_1 = arith.constant 0 : i32
    return %arg1, %c0_i32, %c0_i32_0 : i32, i32, i32
  }
  func.func @transform_5(%arg0: i32, %arg1: i32) -> (i32, i32, i32) {
    %c0_i32 = arith.constant 0 : i32
    %c0_i32_0 = arith.constant 0 : i32
    %c0_i32_1 = arith.constant 0 : i32
    return %arg1, %c0_i32, %c0_i32_0 : i32, i32, i32
  }
  func.func @transform_6(%arg0: i32, %arg1: i32) -> (i32, i32, i32) {
    %c0_i32 = arith.constant 0 : i32
    %c0_i32_0 = arith.constant 0 : i32
    %c0_i32_1 = arith.constant 0 : i32
    return %arg1, %c0_i32, %c0_i32_0 : i32, i32, i32
  }
  func.func @transform_7(%arg0: i32, %arg1: i32) -> (i32, i32, i32) {
    %c0_i32 = arith.constant 0 : i32
    %c0_i32_0 = arith.constant 0 : i32
    %c0_i32_1 = arith.constant 0 : i32
    return %arg1, %c0_i32, %c0_i32_0 : i32, i32, i32
  }
  func.func @transform_8(%arg0: i32, %arg1: i32) -> (i32, i32, i32) {
    %c0_i32 = arith.constant 0 : i32
    %c0_i32_0 = arith.constant 0 : i32
    %c0_i32_1 = arith.constant 0 : i32
    return %arg1, %c0_i32, %c0_i32_0 : i32, i32, i32
  }
  func.func @transform_9(%arg0: i32, %arg1: i32) -> (i32, i32, i32) {
    %c0_i32 = arith.constant 0 : i32
    %c0_i32_0 = arith.constant 0 : i32
    %c0_i32_1 = arith.constant 0 : i32
    return %arg1, %c0_i32, %c0_i32_0 : i32, i32, i32
  }
  func.func @transform_10(%arg0: i32, %arg1: i32) -> (i32, i32, i32) {
    %c0_i32 = arith.constant 0 : i32
    %c0_i32_0 = arith.constant 0 : i32
    %c0_i32_1 = arith.constant 0 : i32
    return %arg1, %c0_i32, %c0_i32_0 : i32, i32, i32
  }
  func.func @transform_11(%arg0: i32, %arg1: i32) -> (i32, i32, i32) {
    %c0_i32 = arith.constant 0 : i32
    %c0_i32_0 = arith.constant 0 : i32
    %c0_i32_1 = arith.constant 0 : i32
    return %arg1, %c0_i32, %c0_i32_0 : i32, i32, i32
  }
  func.func @transform_12(%arg0: i32, %arg1: i32) -> (i32, i32, i32) {
    %c0_i32 = arith.constant 0 : i32
    %c0_i32_0 = arith.constant 0 : i32
    %c0_i32_1 = arith.constant 0 : i32
    return %arg1, %c0_i32, %c0_i32_0 : i32, i32, i32
  }
  func.func @transform_13(%arg0: i32, %arg1: i32) -> (i32, i32, i32) {
    %c0_i32 = arith.constant 0 : i32
    %c0_i32_0 = arith.constant 0 : i32
    %c0_i32_1 = arith.constant 0 : i32
    return %arg1, %c0_i32, %c0_i32_0 : i32, i32, i32
  }
  func.func @transform_14(%arg0: i32, %arg1: i32) -> (i32, i32, i32) {
    %c0_i32 = arith.constant 0 : i32
    %c0_i32_0 = arith.constant 0 : i32
    %c0_i32_1 = arith.constant 0 : i32
    return %arg1, %c0_i32, %c0_i32_0 : i32, i32, i32
  }
  func.func @transform_15(%arg0: i32, %arg1: i32) -> (i32, i32, i32) {
    %c0_i32 = arith.constant 0 : i32
    %c0_i32_0 = arith.constant 0 : i32
    %c0_i32_1 = arith.constant 0 : i32
    return %arg1, %c0_i32, %c0_i32_0 : i32, i32, i32
  }
  func.func @transform_16(%arg0: i32, %arg1: i32) -> (i32, i32, i32) {
    %c0_i32 = arith.constant 0 : i32
    %c0_i32_0 = arith.constant 0 : i32
    %c0_i32_1 = arith.constant 0 : i32
    return %arg0, %c0_i32, %c0_i32_0 : i32, i32, i32
  }
}

module attributes {stable_mosaic.version = 11 : i64} {
  func.func @_head_kernel(%arg0: i32, %arg1: memref<2x16x32xbf16, #tpu.memory_space<vmem>>, %arg2: memref<2x8x32xbf16, #tpu.memory_space<vmem>>, %arg3: memref<2x4x32xbf16, #tpu.memory_space<vmem>>, %arg4: memref<16x8xbf16, #tpu.memory_space<vmem>>, %arg5: memref<16x4xbf16, #tpu.memory_space<vmem>>, %arg6: memref<96x32xbf16, #tpu.memory_space<vmem>>, %arg7: memref<1x32xf32, #tpu.memory_space<vmem>>, %arg8: memref<32x32xbf16, #tpu.memory_space<vmem>>, %arg9: memref<1x32xf32, #tpu.memory_space<vmem>>, %arg10: memref<32x8xbf16, #tpu.memory_space<vmem>>, %arg11: memref<1x8xf32, #tpu.memory_space<vmem>>, %arg12: memref<2x1x8xf32, #tpu.memory_space<vmem>>) attributes {dimension_semantics = [#tpu.dimension_semantics<parallel>], iteration_bounds = array<i64: 1>, scalar_prefetch = 0 : i64, scratch_operands = 0 : i64, tpu.core_type = #tpu.core_type<tc>, window_params = [{transform_indices = @transform_0, window_bounds = array<i64: 2, 16, 32>}, {transform_indices = @transform_1, window_bounds = array<i64: 2, 8, 32>}, {transform_indices = @transform_2, window_bounds = array<i64: 2, 4, 32>}, {pipeline_mode = #tpu.pipeline_mode<synchronous>, transform_indices = @transform_3, window_bounds = array<i64: 16, 8>}, {pipeline_mode = #tpu.pipeline_mode<synchronous>, transform_indices = @transform_4, window_bounds = array<i64: 16, 4>}, {pipeline_mode = #tpu.pipeline_mode<synchronous>, transform_indices = @transform_5, window_bounds = array<i64: 96, 32>}, {pipeline_mode = #tpu.pipeline_mode<synchronous>, transform_indices = @transform_6, window_bounds = array<i64: 1, 32>}, {pipeline_mode = #tpu.pipeline_mode<synchronous>, transform_indices = @transform_7, window_bounds = array<i64: 32, 32>}, {pipeline_mode = #tpu.pipeline_mode<synchronous>, transform_indices = @transform_8, window_bounds = array<i64: 1, 32>}, {pipeline_mode = #tpu.pipeline_mode<synchronous>, transform_indices = @transform_9, window_bounds = array<i64: 32, 8>}, {pipeline_mode = #tpu.pipeline_mode<synchronous>, transform_indices = @transform_10, window_bounds = array<i64: 1, 8>}, {transform_indices = @transform_11, window_bounds = array<i64: 2, 1, 8>}]} {
    %c0 = arith.constant 0 : index
    %c0_0 = arith.constant 0 : index
    %0 = vector.load %arg4[%c0, %c0_0] : memref<16x8xbf16, #tpu.memory_space<vmem>>, vector<16x8xbf16>
    %c0_1 = arith.constant 0 : index
    %c0_2 = arith.constant 0 : index
    %c0_3 = arith.constant 0 : index
    %1 = vector.load %arg2[%c0_1, %c0_2, %c0_3] : memref<2x8x32xbf16, #tpu.memory_space<vmem>>, vector<1x8x32xbf16>
    %2 = vector.shape_cast %1 : vector<1x8x32xbf16> to vector<8x32xbf16>
    %cst = arith.constant dense<0.000000e+00> : vector<16x32xf32>
    %3 = tpu.matmul %0, %2, %cst {dimension_numbers = #tpu.dot_dimension_numbers<[1], [0], [0], [1], [0, 0, 1, 1], [], []>} : vector<16x8xbf16>, vector<8x32xbf16>, vector<16x32xf32> -> vector<16x32xf32>
    %c0_4 = arith.constant 0 : index
    %c0_5 = arith.constant 0 : index
    %4 = vector.load %arg4[%c0_4, %c0_5] : memref<16x8xbf16, #tpu.memory_space<vmem>>, vector<16x8xbf16>
    %c1 = arith.constant 1 : index
    %c0_6 = arith.constant 0 : index
    %c0_7 = arith.constant 0 : index
    %5 = vector.load %arg2[%c1, %c0_6, %c0_7] : memref<2x8x32xbf16, #tpu.memory_space<vmem>>, vector<1x8x32xbf16>
    %6 = vector.shape_cast %5 : vector<1x8x32xbf16> to vector<8x32xbf16>
    %cst_8 = arith.constant dense<0.000000e+00> : vector<16x32xf32>
    %7 = tpu.matmul %4, %6, %cst_8 {dimension_numbers = #tpu.dot_dimension_numbers<[1], [0], [0], [1], [0, 0, 1, 1], [], []>} : vector<16x8xbf16>, vector<8x32xbf16>, vector<16x32xf32> -> vector<16x32xf32>
    %8 = tpu.concatenate %3, %7 in 0 : vector<16x32xf32>, vector<16x32xf32> -> vector<32x32xf32>
    %c0_9 = arith.constant 0 : index
    %c0_10 = arith.constant 0 : index
    %9 = vector.load %arg5[%c0_9, %c0_10] : memref<16x4xbf16, #tpu.memory_space<vmem>>, vector<16x4xbf16>
    %c0_11 = arith.constant 0 : index
    %c0_12 = arith.constant 0 : index
    %c0_13 = arith.constant 0 : index
    %10 = vector.load %arg3[%c0_11, %c0_12, %c0_13] : memref<2x4x32xbf16, #tpu.memory_space<vmem>>, vector<1x4x32xbf16>
    %11 = vector.shape_cast %10 : vector<1x4x32xbf16> to vector<4x32xbf16>
    %cst_14 = arith.constant dense<0.000000e+00> : vector<16x32xf32>
    %12 = tpu.matmul %9, %11, %cst_14 {dimension_numbers = #tpu.dot_dimension_numbers<[1], [0], [0], [1], [0, 0, 1, 1], [], []>} : vector<16x4xbf16>, vector<4x32xbf16>, vector<16x32xf32> -> vector<16x32xf32>
    %c0_15 = arith.constant 0 : index
    %c0_16 = arith.constant 0 : index
    %13 = vector.load %arg5[%c0_15, %c0_16] : memref<16x4xbf16, #tpu.memory_space<vmem>>, vector<16x4xbf16>
    %c1_17 = arith.constant 1 : index
    %c0_18 = arith.constant 0 : index
    %c0_19 = arith.constant 0 : index
    %14 = vector.load %arg3[%c1_17, %c0_18, %c0_19] : memref<2x4x32xbf16, #tpu.memory_space<vmem>>, vector<1x4x32xbf16>
    %15 = vector.shape_cast %14 : vector<1x4x32xbf16> to vector<4x32xbf16>
    %cst_20 = arith.constant dense<0.000000e+00> : vector<16x32xf32>
    %16 = tpu.matmul %13, %15, %cst_20 {dimension_numbers = #tpu.dot_dimension_numbers<[1], [0], [0], [1], [0, 0, 1, 1], [], []>} : vector<16x4xbf16>, vector<4x32xbf16>, vector<16x32xf32> -> vector<16x32xf32>
    %17 = tpu.concatenate %12, %16 in 0 : vector<16x32xf32>, vector<16x32xf32> -> vector<32x32xf32>
    %c0_21 = arith.constant 0 : index
    %c0_22 = arith.constant 0 : index
    %c0_23 = arith.constant 0 : index
    %18 = vector.load %arg1[%c0_21, %c0_22, %c0_23] : memref<2x16x32xbf16, #tpu.memory_space<vmem>>, vector<2x16x32xbf16>
    %19 = vector.shape_cast %18 : vector<2x16x32xbf16> to vector<32x32xbf16>
    %c0_24 = arith.constant 0 : index
    %c0_25 = arith.constant 0 : index
    %20 = vector.load %arg6[%c0_24, %c0_25] : memref<96x32xbf16, #tpu.memory_space<vmem>>, vector<32x32xbf16>
    %cst_26 = arith.constant dense<0.000000e+00> : vector<32x32xf32>
    %21 = tpu.matmul %19, %20, %cst_26 {dimension_numbers = #tpu.dot_dimension_numbers<[1], [0], [0], [1], [0, 0, 1, 1], [], []>} : vector<32x32xbf16>, vector<32x32xbf16>, vector<32x32xf32> -> vector<32x32xf32>
    %c32 = arith.constant 32 : index
    %c0_27 = arith.constant 0 : index
    %22 = vector.load %arg6[%c32, %c0_27] : memref<96x32xbf16, #tpu.memory_space<vmem>>, vector<32x32xbf16>
    %23 = arith.truncf %8 : vector<32x32xf32> to vector<32x32xbf16>
    %cst_28 = arith.constant dense<0.000000e+00> : vector<32x32xf32>
    %24 = tpu.matmul %23, %22, %cst_28 {dimension_numbers = #tpu.dot_dimension_numbers<[1], [0], [0], [1], [0, 0, 1, 1], [], []>} : vector<32x32xbf16>, vector<32x32xbf16>, vector<32x32xf32> -> vector<32x32xf32>
    %25 = arith.addf %21, %24 : vector<32x32xf32>
    %c64 = arith.constant 64 : index
    %c0_29 = arith.constant 0 : index
    %26 = vector.load %arg6[%c64, %c0_29] : memref<96x32xbf16, #tpu.memory_space<vmem>>, vector<32x32xbf16>
    %27 = arith.truncf %17 : vector<32x32xf32> to vector<32x32xbf16>
    %cst_30 = arith.constant dense<0.000000e+00> : vector<32x32xf32>
    %28 = tpu.matmul %27, %26, %cst_30 {dimension_numbers = #tpu.dot_dimension_numbers<[1], [0], [0], [1], [0, 0, 1, 1], [], []>} : vector<32x32xbf16>, vector<32x32xbf16>, vector<32x32xf32> -> vector<32x32xf32>
    %29 = arith.addf %25, %28 : vector<32x32xf32>
    %c0_31 = arith.constant 0 : index
    %c0_32 = arith.constant 0 : index
    %30 = vector.load %arg7[%c0_31, %c0_32] : memref<1x32xf32, #tpu.memory_space<vmem>>, vector<1x32xf32>
    %31 = vector.broadcast %30 : vector<1x32xf32> to vector<32x32xf32>
    %32 = arith.addf %29, %31 : vector<32x32xf32>
    %c0_33 = arith.constant 0 : index
    %c0_34 = arith.constant 0 : index
    %33 = vector.load %arg8[%c0_33, %c0_34] : memref<32x32xbf16, #tpu.memory_space<vmem>>, vector<32x32xbf16>
    %34 = arith.truncf %32 : vector<32x32xf32> to vector<32x32xbf16>
    %cst_35 = arith.constant dense<0.000000e+00> : vector<32x32xf32>
    %35 = tpu.matmul %34, %33, %cst_35 {dimension_numbers = #tpu.dot_dimension_numbers<[1], [0], [0], [1], [0, 0, 1, 1], [], []>} : vector<32x32xbf16>, vector<32x32xbf16>, vector<32x32xf32> -> vector<32x32xf32>
    %c0_36 = arith.constant 0 : index
    %c0_37 = arith.constant 0 : index
    %36 = vector.load %arg9[%c0_36, %c0_37] : memref<1x32xf32, #tpu.memory_space<vmem>>, vector<1x32xf32>
    %37 = vector.broadcast %36 : vector<1x32xf32> to vector<32x32xf32>
    %38 = arith.addf %35, %37 : vector<32x32xf32>
    %cst_38 = arith.constant 0.000000e+00 : f32
    %39 = vector.broadcast %cst_38 : f32 to vector<32x32xf32>
    %40 = arith.maximumf %38, %39 : vector<32x32xf32>
    %41 = vector.shape_cast %40 : vector<32x32xf32> to vector<2x16x32xf32>
    %cst_39 = arith.constant dense<0.000000e+00> : vector<2x32xf32>
    %42 = vector.multi_reduction <add>, %41, %cst_39 [1] : vector<2x16x32xf32> to vector<2x32xf32>
    %cst_40 = arith.constant 1.600000e+01 : f32
    %43 = vector.broadcast %cst_40 : f32 to vector<2x32xf32>
    %44 = arith.divf %42, %43 : vector<2x32xf32>
    %c0_41 = arith.constant 0 : index
    %c0_42 = arith.constant 0 : index
    %45 = vector.load %arg10[%c0_41, %c0_42] : memref<32x8xbf16, #tpu.memory_space<vmem>>, vector<32x8xbf16>
    %46 = arith.truncf %44 : vector<2x32xf32> to vector<2x32xbf16>
    %cst_43 = arith.constant dense<0.000000e+00> : vector<2x8xf32>
    %47 = tpu.matmul %46, %45, %cst_43 {dimension_numbers = #tpu.dot_dimension_numbers<[1], [0], [0], [1], [0, 0, 1, 1], [], []>} : vector<2x32xbf16>, vector<32x8xbf16>, vector<2x8xf32> -> vector<2x8xf32>
    %c0_44 = arith.constant 0 : index
    %c0_45 = arith.constant 0 : index
    %48 = vector.load %arg11[%c0_44, %c0_45] : memref<1x8xf32, #tpu.memory_space<vmem>>, vector<1x8xf32>
    %49 = vector.broadcast %48 : vector<1x8xf32> to vector<2x8xf32>
    %50 = arith.addf %47, %49 : vector<2x8xf32>
    %51 = vector.shape_cast %50 : vector<2x8xf32> to vector<2x1x8xf32>
    %c0_46 = arith.constant 0 : index
    %c0_47 = arith.constant 0 : index
    %c0_48 = arith.constant 0 : index
    %52 = vector.load %arg12[%c0_46, %c0_47, %c0_48] : memref<2x1x8xf32, #tpu.memory_space<vmem>>, vector<2x1x8xf32>
    tpu.vector_store %arg12[%c0_46, %c0_47, %c0_48], %51 {strides = array<i32>} : memref<2x1x8xf32, #tpu.memory_space<vmem>>, vector<2x1x8xf32>,
    return
  }
  func.func @transform_0(%arg0: i32) -> (i32, i32, i32) {
    %c0_i32 = arith.constant 0 : i32
    %c0_i32_0 = arith.constant 0 : i32
    %c0_i32_1 = arith.constant 0 : i32
    return %arg0, %c0_i32, %c0_i32_0 : i32, i32, i32
  }
  func.func @transform_1(%arg0: i32) -> (i32, i32, i32) {
    %c0_i32 = arith.constant 0 : i32
    %c0_i32_0 = arith.constant 0 : i32
    %c0_i32_1 = arith.constant 0 : i32
    return %arg0, %c0_i32, %c0_i32_0 : i32, i32, i32
  }
  func.func @transform_2(%arg0: i32) -> (i32, i32, i32) {
    %c0_i32 = arith.constant 0 : i32
    %c0_i32_0 = arith.constant 0 : i32
    %c0_i32_1 = arith.constant 0 : i32
    return %arg0, %c0_i32, %c0_i32_0 : i32, i32, i32
  }
  func.func @transform_3(%arg0: i32) -> (i32, i32) {
    %c0_i32 = arith.constant 0 : i32
    %c0_i32_0 = arith.constant 0 : i32
    %c0_i32_1 = arith.constant 0 : i32
    return %c0_i32, %c0_i32_0 : i32, i32
  }
  func.func @transform_4(%arg0: i32) -> (i32, i32) {
    %c0_i32 = arith.constant 0 : i32
    %c0_i32_0 = arith.constant 0 : i32
    %c0_i32_1 = arith.constant 0 : i32
    return %c0_i32, %c0_i32_0 : i32, i32
  }
  func.func @transform_5(%arg0: i32) -> (i32, i32) {
    %c0_i32 = arith.constant 0 : i32
    %c0_i32_0 = arith.constant 0 : i32
    %c0_i32_1 = arith.constant 0 : i32
    return %c0_i32, %c0_i32_0 : i32, i32
  }
  func.func @transform_6(%arg0: i32) -> (i32, i32) {
    %c0_i32 = arith.constant 0 : i32
    %c0_i32_0 = arith.constant 0 : i32
    %c0_i32_1 = arith.constant 0 : i32
    return %c0_i32, %c0_i32_0 : i32, i32
  }
  func.func @transform_7(%arg0: i32) -> (i32, i32) {
    %c0_i32 = arith.constant 0 : i32
    %c0_i32_0 = arith.constant 0 : i32
    %c0_i32_1 = arith.constant 0 : i32
    return %c0_i32, %c0_i32_0 : i32, i32
  }
  func.func @transform_8(%arg0: i32) -> (i32, i32) {
    %c0_i32 = arith.constant 0 : i32
    %c0_i32_0 = arith.constant 0 : i32
    %c0_i32_1 = arith.constant 0 : i32
    return %c0_i32, %c0_i32_0 : i32, i32
  }
  func.func @transform_9(%arg0: i32) -> (i32, i32) {
    %c0_i32 = arith.constant 0 : i32
    %c0_i32_0 = arith.constant 0 : i32
    %c0_i32_1 = arith.constant 0 : i32
    return %c0_i32, %c0_i32_0 : i32, i32
  }
  func.func @transform_10(%arg0: i32) -> (i32, i32) {
    %c0_i32 = arith.constant 0 : i32
    %c0_i32_0 = arith.constant 0 : i32
    %c0_i32_1 = arith.constant 0 : i32
    return %c0_i32, %c0_i32_0 : i32, i32
  }
  func.func @transform_11(%arg0: i32) -> (i32, i32, i32) {
    %c0_i32 = arith.constant 0 : i32
    %c0_i32_0 = arith.constant 0 : i32
    %c0_i32_1 = arith.constant 0 : i32
    return %arg0, %c0_i32, %c0_i32_0 : i32, i32, i32
  }
}

</mosaic_0001>

<bundles_post_ra>
// kernel: _lambda_.5
= control target key start
LH: loop header
LB: loop body
LE: loop exit
PB: predicated region body
PF: predicated region fallthrough
CT: control target
= control target key end

     0   :  { %s3978_s21 = smov 0   ;;  %s3980_s22 = smov 0   ;;  %s4543_s0 = inlined_call_operand.vmem [shape: f32[2,8,4], index: 0, kind: input, shape index: {}]   ;;  %s4544_s1 = inlined_call_operand.vmem [shape: bf16[8,32], index: 1, kind: input, shape index: {}]   ;;  %s4545_s2 = inlined_call_operand.vmem [shape: bf16[4,32], index: 2, kind: input, shape index: {}]   ;;  %s4546_s3 = inlined_call_operand.vmem [shape: f32[1,32], index: 3, kind: input, shape index: {}]   ;;  %s4547_s4 = inlined_call_operand.vmem [shape: bf16[2,32,96], index: 4, kind: input, shape index: {}]   ;;  %s4548_s5 = inlined_call_operand.vmem [shape: f32[2,1,96], index: 5, kind: input, shape index: {}]   ;;  %s4549_s6 = inlined_call_operand.vmem [shape: bf16[2,32,32], index: 6, kind: input, shape index: {}]   ;;  %s4550_s7 = inlined_call_operand.vmem [shape: f32[2,1,32], index: 7, kind: input, shape index: {}]   ;;  %s4551_s8 = inlined_call_operand.vmem [shape: f32[2,1,32], index: 8, kind: input, shape index: {}]   ;;  %s4552_s9 = inlined_call_operand.vmem [shape: f32[2,1,32], index: 9, kind: input, shape index: {}]   ;;  %s4553_s10 = inlined_call_operand.vmem [shape: bf16[2,32,128], index: 10, kind: input, shape index: {}]   ;;  %s4554_s11 = inlined_call_operand.vmem [shape: f32[2,1,128], index: 11, kind: input, shape index: {}]   ;;  %s4555_s12 = inlined_call_operand.vmem [shape: bf16[2,128,32], index: 12, kind: input, shape index: {}]   ;;  %s4556_s13 = inlined_call_operand.vmem [shape: f32[2,1,32], index: 13, kind: input, shape index: {}]   ;;  %s4557_s14 = inlined_call_operand.vmem [shape: f32[2,1,32], index: 14, kind: input, shape index: {}]   ;;  %s4558_s15 = inlined_call_operand.vmem [shape: f32[2,1,32], index: 15, kind: input, shape index: {}]   ;;  %s4559_s16 = inlined_call_operand.vmem [shape: bf16[2,8,32], index: 16, kind: output, shape index: {}]  }
   0x1   :  { %4565 = sst [smem:[#allocation7_spill]] %s4543_s0  ;;  %s3982_s23 = smov 0  }
   0x2   :  { %4566 = sst [smem:[#allocation8_spill]] %s4544_s1 }
   0x3   :  { %4567 = sst [smem:[#allocation9_spill]] %s4546_s3 }
   0x4   :  { %4568 = sst [smem:[#allocation10_spill]] %s4547_s4 }
   0x5   :  { %4569 = sst [smem:[#allocation11_spill]] %s4549_s6 }
   0x6   :  { %4570 = sst [smem:[#allocation12_spill]] %s4559_s16 }
   0x7 LB: > { %4571 = sst [smem:[#allocation3_spill]] %s3873_s22  ;;  %s35_s24 = sadd.s32 1, %s3873_s22  ;;  %s3877_s23 = sphi %s3982_s23, %s26_s23   ;;  %s3873_s22 = sphi %s3980_s22, %s4588_s22   ;;  %s3869_s21 = sphi %s3978_s21, %s4587_s21  }
   0x8   : > { %4572 = sst [smem:[#allocation4_spill]] %s3877_s23  ;;  %p3470_p0 = scmp.ge.s32.totalorder %s3877_s23, 1 }
   0x9   : > { %p36_p1 = scmp.ge.s32.totalorder %s35_s24, 2  ;;  %p579_p2 = scmp.lt.s32.totalorder %s3877_s23, 3 }
   0xb   : > { %s4590_s24 = smov (%p36_p1, %s35_s24), 0  ;;  %p580_p3 = pnand %p3470_p0, %p579_p2 }
   0xc   : > { %4573 = sst [smem:[#allocation5_spill]] %s4590_s24 }
   0xd   : > { %583 = sbr.rel (%p580_p3) target bundleno = 3416 (0xd58), region = 84 }
  0x12   : > { %p679_p4 = scmp.lt.s32.totalorder %s3869_s21, 1  ;;  %s4574_s4 = sld [smem:[#allocation10_spill]] }
  0x13   : > { %s4575_s6 = sld [smem:[#allocation11_spill]]  ;;  %p3479_p5 = scmp.ne.s32.totalorder %s3869_s21, 0 }
  0x14   : > { %s4000_s25 = scalar_select %p679_p4, %s3869_s21, 1 }
  0x15   : > { %s4577_s24 = sld [smem:[#allocation7_spill]] (!%p3479_p5) }
  0x16   : > { %s3544_s26 = sshll.u32 %s4000_s25, 4  ;;  %s716_s27 = scalar_lea.vmem %s4556_s13, %s4000_s25 }
  0x17   : > { %s719_s30 = scalar_lea.vmem %s4557_s14, %s4000_s25  ;;  %s722_s1 = scalar_lea.vmem %s4558_s15, %s4000_s25 }
  0x18   : > { %s4010_s17 = scalar_lea.vmem %s4574_s4, %s3544_s26  ;;  %s4032_s4 = scalar_lea.vmem %s4553_s10, %s3544_s26 }
  0x19   : > { %s4015_s20 = scalar_lea.vmem %s4575_s6, %s3544_s26  ;;  %s708_s6 = scalar_lea.vmem %s4554_s11, %s4000_s25 }
  0x1a   : > { %4576 = sst [smem:[#allocation6_spill]] %s4015_s20  ;;  %s3547_s20 = sshll.u32 %s4000_s25, 6 }
  0x1b   : > { %s4042_s23 = scalar_lea.vmem %s4555_s12, %s3547_s20  ;;  %733 = sbr.rel (%p3479_p5) target bundleno = 239 (0xef), region = 88 }
  0x1c   : > { %s4578_s26 = sld [smem:[#allocation8_spill]] (!%p3479_p5) }
  0x1d   : > { %s4579_s19 = sld [smem:[#allocation9_spill]] (!%p3479_p5) }
  0x20   : > { %v736_v0 = vld [vmem:[%s4545_s2] sm:$0x3]  ;;  %vm749_vm0 = vcmask 1041408   ;;  %v3879_v2 = vmov 0.0   ;;  %vm3880_vm1 = vmmov 0   ;;  %v735_v4 = vld [vmem:[%s4577_s24 + $0x8] sm:$0xff] }
  0x21   : > { %v734_v1 = vld [vmem:[%s4577_s24] sm:$0xff]  ;;  %3600 = vmatprep.subr.bf16.mxu0 %v3879_v2  ;;  %v751_v3 = vsel %vm749_vm0, %v736_v0, 0  ;;  %3602 = vmatprep.mubr.msk.bf16.mxu0 %vm3880_vm1, %v3879_v2  ;;  %vm745_vm2 = vcmask 31744   ;;  %vm798_vm3 = vcmask 261120  }
  0x22   : > { %3601 = vmatpush3.bf16.msra.mxu0 %v751_v3  ;;  %v737_v5 = vpack.c.bf16 %v735_v4, %v734_v1  ;;  %v794_v6 = vld [vmem:[%s4578_s26] sm:$0xf] }
  0x23   : > { %v3480_v7 = vld [vmem:[%s4579_s19] ss:$0 sm:$0xff]  ;;  %v795_v8 = vunpack.c.l.bf16 %v794_v6 }
  0x25   : > { %3603 = vmatmul.mubr.msk.bf16.vlgmr.msra.gmra.mxu0 %vm745_vm2, %v737_v5 }
  0xe5   : > { %v787_v9 = vpop.f32.mrf.mxu0 }
  0xe6   : > { %v788_v10 = vadd.f32 %v3480_v7, %v787_v9 }
  0xe7   : > { %v3604_v11 = vpop.f32.mrf.mxu0 }
  0xe8   : > { %v796_v12 = vadd.f32 %v795_v8, %v788_v10 }
  0xe9   : > { %v790_v13 = vpop.f32.mrf.mxu0 }
  0xea   : > { %799 = vst.msk [vmem:[#allocation2] sm:$0xff] %vm798_vm3, %v796_v12  ;;  %v791_v14 = vadd.f32 %v3480_v7, %v790_v13 }
  0xeb   : > { %v3605_v15 = vpop.f32.mrf.mxu0 }
  0xec   : > { %v797_v16 = vadd.f32 %v795_v8, %v791_v14 }
  0xee   : > { %800 = vst.msk [vmem:[#allocation2 + $0x8] sm:$0xff] %vm798_vm3, %v797_v16 }
  0xef PF: > { %v3799_v17 = vld [vmem:[%s4010_s17 + $0x8] sm:$0xff]   ;;  %v3881_v18 = vmov 0.0   ;;  %v3800_v19 = vld [vmem:[%s4010_s17] sm:$0xff]   ;;  %vm3882_vm4 = vmmov 0   ;;  %vm827_vm5 = vcmask 261120   ;;  %s4580_s22 = scalar_lea.vmem %s4548_s5, %s4000_s25  ;;  %s3883_s29 = smov 104   ;;  %v887_v35 = vlaneseq }
  0xf0   : > { %3606 = vmatprep.subr.bf16.mxu0 %v3881_v18  ;;  %3626 = vmatprep.subr.bf16.mxu1 %v3881_v18  ;;  %v3482_v23 = vld [vmem:[%s4580_s22] ss:$0 sm:$0xff]  ;;  %s3884_s3 = smov 120   ;;  %s3885_s16 = smov 96   ;;  %v3887_v33 = vmov 1983009808  }
  0xf1   : > { %3607 = vmatpush3.bf16.msra.mxu0 %v3799_v17  ;;  %3610 = vmatprep.mubr.msk.bf16.mxu0 %vm3882_vm4, %v3881_v18  ;;  %v801_v20 = vld [vmem:[#allocation2] sm:$0xff]  ;;  %s3886_s28 = smov 112   ;;  %v885_v34 = vunpack.c.l.s4 %v3887_v33  ;;  %v888_v37 = vshrl.u32 %v887_v35, 7  ;;  %v3888_v38 = vmov 1934713408   ;;  %vm1326_vm6 = vcmask 64512  }
  0xf2   : > { %3608 = vmatprep.subr.bf16.mxu0 %v3881_v18  ;;  %3628 = vmatprep.mubr.msk.bf16.mxu1 %vm3882_vm4, %v3881_v18  ;;  %v917_v39 = vunpack.c.l.s4 %v3888_v38  ;;  %s3889_s26 = smov 64   ;;  %vm1566_vm7 = vcmask 1043456   ;;  %s4581_s0 = sld [smem:[#allocation6_spill]]  ;;  %vm1897_vm8 = vcmask 130048   ;;  %vm1899_vm9 = vcmask 195584  }
  0xf3   : > { %v886_v36 = vunpack.c.0.s8 %v885_v34  ;;  %s3890_s18 = smov 16   ;;  %s3891_s19 = smov 8  }
  0xf4   : > { %v918_v45 = vunpack.c.0.s8 %v917_v39  ;;  %s3892_s17 = smov 24   ;;  %p3539_p6 = scmp.ne.s32.totalorder %s3869_s21, 1 }
  0xf5   : > { %v802_v21 = vld [vmem:[#allocation2 + $0x8] sm:$0xff]  ;;  %3609 = vmatpush3.bf16.msra.mxu0 %v3800_v19  ;;  %v4118_v42 = vsub.s32 %v886_v36, %v888_v37 }
  0xf6   : > { %v807_v22 = vpack.c.bf16 %v802_v21, %v801_v20  ;;  %3614 = vmatprep.subr.bf16.mxu0 %v3881_v18  ;;  %v4128_v52 = vsub.s32 %v918_v45, %v888_v37 }
  0xf8   : > { %3611 = vmatmul.mubr.msk.bf16.vlgmr.msra.gmra.mxu0 %vm827_vm5, %v807_v22 }
  0xf9   : > { %3616 = vmatprep.mubr.msk.bf16.mxu0 %vm3882_vm4, %v3881_v18 }
 0x1b8   : > { %v865_v24 = vpop.f32.mrf.mxu0 }
 0x1b9   : > { %v4090_v25 = vadd.f32 %v3482_v23, %v865_v24 }
 0x1ba   : > { %v3612_v26 = vpop.f32.mrf.mxu0 }
 0x1bb   : > { %879 = vrot.lane.b32.xlu1 %v4090_v25, %s3883_s29  ;;  %873 = vrot.lane.b32.xlu0 %v4090_v25, %s3884_s3 }
 0x1bc   : > { %v868_v27 = vpop.f32.mrf.mxu0 }
 0x1bd   : > { %v4096_v28 = vadd.f32 %v3482_v23, %v868_v27 }
 0x1be   : > { %v3613_v29 = vpop.f32.mrf.mxu0 }
 0x1bf   : > { %1022 = vrot.lane.b32.xlu1 %v4090_v25, %s3885_s16  ;;  %876 = vrot.lane.b32.xlu0 %v4090_v25, %s3886_s28 }
 0x22d   : > { %v4102_v30 = vpop.permute.xlu0 %873  ;;  %v4106_v31 = vpop.permute.xlu1 %879 }
 0x22e   : > { %1024 = vrot.lane.b32.xlu0 %v4102_v30, %s3885_s16  ;;  %v898_v43 = vcombine.low %v4102_v30, %v4106_v31  ;;  %v899_v44 = vcombine.high %v4102_v30, %v4106_v31 }
 0x230   : > { %v906_v48 = vrot.slane %v898_v43, %v4118_v42  ;;  %v913_v49 = vrot.slane %v899_v44, %v4118_v42 }
 0x231   : > { %v4108_v32 = vpop.permute.xlu0 %876  ;;  %v1023_v50 = vpop.permute.xlu1 %1022 }
 0x232   : > { %1028 = vrot.lane.b32.xlu0 %v4106_v31, %s3885_s16  ;;  %1026 = vrot.lane.b32.xlu1 %v4108_v32, %s3885_s16  ;;  %v882_v40 = vcombine.low %v4090_v25, %v4108_v32  ;;  %v883_v41 = vcombine.high %v4090_v25, %v4108_v32 }
 0x234   : > { %v890_v46 = vrot.slane %v882_v40, %v4118_v42  ;;  %v897_v47 = vrot.slane %v883_v41, %v4118_v42 }
 0x236   : > { %v914_v53 = vcombine.low %v890_v46, %v906_v48  ;;  %v915_v54 = vcombine.high %v890_v46, %v906_v48  ;;  %v930_v55 = vcombine.low %v897_v47, %v913_v49  ;;  %v931_v56 = vcombine.high %v897_v47, %v913_v49 }
 0x238   : > { %v922_v63 = vrot.slane %v914_v53, %v4128_v52  ;;  %v929_v0 = vrot.slane %v915_v54, %v4128_v52  ;;  %v938_v1 = vrot.slane %v930_v55, %v4128_v52  ;;  %v945_v2 = vrot.slane %v931_v56, %v4128_v52 }
 0x23a   : > { %v950_v11 = vcombine.low %v922_v63, %v929_v0  ;;  %v3486_v12 = vcombine.high %v922_v63, %v929_v0  ;;  %v966_v13 = vcombine.low %v938_v1, %v945_v2  ;;  %v3487_v14 = vcombine.high %v938_v1, %v945_v2 }
 0x23c   : > { %v957_v24 = vrot.slane %v950_v11, %v4118_v42  ;;  %v965_v26 = vrot.slane %v3486_v12, %v4118_v42  ;;  %v973_v27 = vrot.slane %v966_v13, %v4118_v42  ;;  %v981_v29 = vrot.slane %v3487_v14, %v4118_v42 }
 0x23e   : > { %v982_v41 = vcombine.low %v957_v24, %v965_v26  ;;  %v998_v43 = vcombine.low %v973_v27, %v981_v29  ;;  %v983_v44 = vcombine.high %v957_v24, %v965_v26  ;;  %v999_v45 = vcombine.high %v973_v27, %v981_v29 }
 0x240   : > { %v990_v53 = vrot.slane %v982_v41, %v4128_v52  ;;  %v1006_v54 = vrot.slane %v998_v43, %v4128_v52 }
 0x2a0   : > { %v1025_v51 = vpop.permute.xlu0 %1024 }
 0x2a4   : > { %v1027_v57 = vpop.permute.xlu1 %1026  ;;  %v1029_v58 = vpop.permute.xlu0 %1028 }
 0x2a5   : > { %v1034_v59 = vcombine.low %v1023_v50, %v1027_v57  ;;  %v1035_v60 = vcombine.high %v1023_v50, %v1027_v57  ;;  %v1050_v61 = vcombine.low %v1025_v51, %v1029_v58  ;;  %v1051_v62 = vcombine.high %v1025_v51, %v1029_v58 }
 0x2a6   : > { %v997_v57 = vrot.slane %v983_v44, %v4128_v52  ;;  %v1013_v58 = vrot.slane %v999_v45, %v4128_v52 }
 0x2a7   : > { %v1042_v3 = vrot.slane %v1034_v59, %v4118_v42  ;;  %v1049_v4 = vrot.slane %v1035_v60, %v4118_v42  ;;  %v1058_v5 = vrot.slane %v1050_v61, %v4118_v42  ;;  %v1065_v6 = vrot.slane %v1051_v62, %v4118_v42 }
 0x2a8   : > { %v1014_v62 = vcombine.low %v990_v53, %v1006_v54  ;;  %v1016_v63 = vcombine.low %v997_v57, %v1013_v58 }
 0x2a9   : > { %v1066_v7 = vcombine.low %v1042_v3, %v1058_v5  ;;  %v1067_v8 = vcombine.high %v1042_v3, %v1058_v5  ;;  %v1082_v9 = vcombine.low %v1049_v4, %v1065_v6  ;;  %v1083_v10 = vcombine.high %v1049_v4, %v1065_v6 }
 0x2aa   : > { %v1018_v1 = vpack.c.bf16 %v1014_v62, %v1014_v62  ;;  %v1020_v2 = vpack.c.bf16 %v1016_v63, %v1016_v63  ;;  %v1015_v5 = vcombine.high %v990_v53, %v1006_v54 }
 0x2ab   : > { %v1074_v15 = vrot.slane %v1066_v7, %v4128_v52  ;;  %v1081_v16 = vrot.slane %v1067_v8, %v4128_v52  ;;  %v1090_v17 = vrot.slane %v1082_v9, %v4128_v52  ;;  %v1097_v19 = vrot.slane %v1083_v10, %v4128_v52 }
 0x2ac   : > { %v1019_v7 = vpack.c.bf16 %v1015_v5, %v1015_v5  ;;  %v1017_v9 = vcombine.high %v997_v57, %v1013_v58 }
 0x2ad   : > { %v1102_v20 = vcombine.low %v1074_v15, %v1081_v16  ;;  %v3488_v21 = vcombine.high %v1074_v15, %v1081_v16  ;;  %v1118_v22 = vcombine.low %v1090_v17, %v1097_v19  ;;  %v3489_v23 = vcombine.high %v1090_v17, %v1097_v19 }
 0x2ae   : > { %v1021_v10 = vpack.c.bf16 %v1017_v9, %v1017_v9 }
 0x2af   : > { %v1109_v33 = vrot.slane %v1102_v20, %v4118_v42  ;;  %v1117_v34 = vrot.slane %v3488_v21, %v4118_v42  ;;  %v1125_v35 = vrot.slane %v1118_v22, %v4118_v42  ;;  %v1133_v36 = vrot.slane %v3489_v23, %v4118_v42 }
 0x2b1   : > { %v1134_v37 = vcombine.low %v1109_v33, %v1117_v34  ;;  %v1150_v38 = vcombine.low %v1125_v35, %v1133_v36  ;;  %v1135_v39 = vcombine.high %v1109_v33, %v1117_v34  ;;  %v1151_v40 = vcombine.high %v1125_v35, %v1133_v36 }
 0x2b3   : > { %v1142_v46 = vrot.slane %v1134_v37, %v4128_v52  ;;  %v1158_v47 = vrot.slane %v1150_v38, %v4128_v52  ;;  %v1149_v48 = vrot.slane %v1135_v39, %v4128_v52  ;;  %v1165_v49 = vrot.slane %v1151_v40, %v4128_v52 }
 0x2b5   : > { %v1166_v50 = vcombine.low %v1142_v46, %v1158_v47  ;;  %v1168_v51 = vcombine.low %v1149_v48, %v1165_v49  ;;  %v1167_v61 = vcombine.high %v1142_v46, %v1158_v47  ;;  %v1169_v4 = vcombine.high %v1149_v48, %v1165_v49 }
 0x2b7   : > { %v1170_v55 = vpack.c.bf16 %v1166_v50, %v1166_v50  ;;  %v1172_v56 = vpack.c.bf16 %v1168_v51, %v1168_v51  ;;  %v1171_v0 = vpack.c.bf16 %v1167_v61, %v1167_v61  ;;  %v1173_v6 = vpack.c.bf16 %v1169_v4, %v1169_v4 }
 0x2b9   : > { %v1331_v59 = vsel %vm1326_vm6, %v1170_v55, 0  ;;  %v1423_v60 = vsel %vm1326_vm6, %v1172_v56, 0  ;;  %v1377_v3 = vsel %vm1326_vm6, %v1171_v0, 0  ;;  %v1469_v8 = vsel %vm1326_vm6, %v1173_v6, 0 }
 0x2ba   : > { %3615 = vmatpush3.bf16.xpose.msra.mxu0 %v1331_v59  ;;  %3627 = vmatpush3.bf16.xpose.msra.mxu1 %v1423_v60 }
 0x2bb   : > { %3620 = vmatprep.subr.bf16.mxu0 %v3881_v18  ;;  %3638 = vmatprep.subr.bf16.mxu1 %v3881_v18 }
 0x2c1   : > { %3617 = vmatmul.mubr.msk.bf16.vlgmr.msra.gmra.mxu0 %vm1326_vm6, %v1018_v1  ;;  %3629 = vmatmul.mubr.msk.bf16.vlgmr.msra.gmra.mxu1 %vm1326_vm6, %v1020_v2 }
 0x2c2   : > { %3621 = vmatpush3.bf16.xpose.msra.mxu0 %v1377_v3  ;;  %3622 = vmatprep.mubr.msk.bf16.mxu0 %vm3882_vm4, %v3881_v18 }
 0x2c3   : > { %3632 = vmatprep.subr.bf16.mxu0 %v3881_v18  ;;  %3640 = vmatprep.mubr.msk.bf16.mxu1 %vm3882_vm4, %v3881_v18 }
 0x2c9   : > { %3623 = vmatmul.mubr.msk.bf16.vlgmr.msra.gmra.mxu0 %vm1326_vm6, %v1019_v7 }
 0x2ca   : > { %3633 = vmatpush3.bf16.xpose.msra.mxu0 %v1469_v8  ;;  %3634 = vmatprep.mubr.msk.bf16.mxu0 %vm3882_vm4, %v3881_v18 }
 0x2cb   : > { %3644 = vmatprep.subr.bf16.mxu0 %v3881_v18 }
 0x2d1   : > { %3635 = vmatmul.mubr.msk.bf16.vlgmr.msra.gmra.mxu0 %vm1326_vm6, %v1021_v10 }
 0x2d2   : > { %3646 = vmatprep.mubr.msk.bf16.mxu0 %vm3882_vm4, %v3881_v18 }
 0x381   : > { %v1367_v11 = vpop.f32.mrf.mxu0  ;;  %v1459_v12 = vpop.f32.mrf.mxu1 }
 0x382   : > { %v1511_v13 = vmul.f32 0.35355338, %v1367_v11  ;;  %v1513_v26 = vmul.f32 0.35355338, %v1459_v12 }
 0x383   : > { %v3618_v14 = vpop.f32.mrf.mxu0  ;;  %v3630_v15 = vpop.f32.mrf.mxu1 }
 0x384   : > { %v1515_v16 = vsel %vm1326_vm6, %v1511_v13, -inf  ;;  %v1521_v34 = vsel %vm1326_vm6, %v1513_v26, -inf }
 0x385   : > { %v1462_v17 = vpop.f32.mrf.mxu1  ;;  %1516 = vmax.xlane.f32.xlu1 %v1515_v16  ;;  %v1370_v19 = vpop.f32.mrf.mxu0 }
 0x387   : > { %v3619_v20 = vpop.f32.mrf.mxu0  ;;  %v3631_v21 = vpop.f32.mrf.mxu1 }
 0x389   : > { %v1413_v22 = vpop.f32.mrf.mxu0 }
 0x38a   : > { %v1512_v23 = vmul.f32 0.35355338, %v1413_v22 }
 0x38b   : > { %v3624_v24 = vpop.f32.mrf.mxu0 }
 0x38c   : > { %v1518_v27 = vsel %vm1326_vm6, %v1512_v23, -inf }
 0x38d   : > { %1519 = vmax.xlane.f32.xlu0 %v1518_v27  ;;  %v1416_v29 = vpop.f32.mrf.mxu0 }
 0x38f   : > { %v3625_v33 = vpop.f32.mrf.mxu0 }
 0x391   : > { %1522 = vmax.xlane.f32.xlu0 %v1521_v34  ;;  %v1505_v35 = vpop.f32.mrf.mxu0 }
 0x392   : > { %v1514_v39 = vmul.f32 0.35355338, %v1505_v35 }
 0x393   : > { %v3636_v36 = vpop.f32.mrf.mxu0 }
 0x394   : > { %v1524_v40 = vsel %vm1326_vm6, %v1514_v39, -inf }
 0x395   : > { %v1508_v37 = vpop.f32.mrf.mxu0 }
 0x396   : > { %1905 = vrot.lane.b32.xlu1 %v4096_v28, %s3886_s28 }
 0x397   : > { %v3637_v38 = vpop.f32.mrf.mxu0 }
 0x39a   : > { %1908 = vrot.lane.b32.xlu1 %v4096_v28, %s3883_s29  ;;  %s4582_s29 = scalar_lea.vmem %s4550_s7, %s4000_s25 }
 0x3a7   : > { %1902 = vrot.lane.b32.xlu0 %v4096_v28, %s3884_s3 }
 0x3ab   : > { %1174 = vrot.lane.b32.xlu0 %v4090_v25, %s3889_s26 }
 0x3af   : > { %1178 = vrot.lane.b32.xlu0 %v4108_v32, %s3889_s26 }
 0x3b3   : > { %2051 = vrot.lane.b32.xlu0 %v4096_v28, %s3885_s16 }
 0x3be   : > { %1525 = vmax.xlane.f32.xlu1 %v1524_v40 }
 0x3cf   : > { %1176 = vrot.lane.b32.xlu1 %v4102_v30, %s3889_s26 }
 0x3d3   : > { %1180 = vrot.lane.b32.xlu1 %v4106_v31, %s3889_s26 }
 0x40e   : > { %v1517_v41 = vpop.xlane.xlu1 %1516 }
 0x40f   : > { %v1527_v43 = vsub.f32 %v1511_v13, %v1517_v41 }
 0x411   : > { %v1531_v44 = vmul.f32 1.442695, %v1527_v43 }
 0x412   : > { %v4210_v53 = vpop.permute.xlu1 %1905 }
 0x413   : > { %3813 = vpow2.f32 %v1531_v44 }
 0x416   : > { %v1520_v25 = vpop.xlane.xlu0 %1519  ;;  %v4216_v56 = vpop.permute.xlu1 %1908 }
 0x417   : > { %v1528_v31 = vsub.f32 %v1512_v23, %v1520_v25 }
 0x419   : > { %v1533_v51 = vmul.f32 1.442695, %v1528_v31 }
 0x41a   : > { %v1523_v45 = vpop.xlane.xlu0 %1522 }
 0x41b   : > { %v1529_v32 = vsub.f32 %v1513_v26, %v1523_v45 }
 0x41d   : > { %v1535_v46 = vmul.f32 1.442695, %v1529_v32 }
 0x41e   : > { %v4198_v47 = vpop.permute.xlu0 %1902 }
 0x41f   : > { %3815 = vpow2.f32 %v1535_v46  ;;  %2053 = vrot.lane.b32.xlu1 %v4198_v47, %s3885_s16 }
 0x420   : > { %v4202_v48 = vpop.eup %3813  ;;  %3817 = vpow2.f32 %v1533_v51 }
 0x421   : > { %v1539_v30 = vsel %vm1326_vm6, %v4202_v48, 0.0 }
 0x422   : > { %1540 = vadd.xlane.f32.xlu0 %v1539_v30  ;;  %v1175_v57 = vpop.permute.xlu0 %1174 }
 0x426   : > { %v1179_v61 = vpop.permute.xlu0 %1178 }
 0x427   : > { %v1186_v63 = vcombine.low %v1175_v57, %v1179_v61  ;;  %v1187_v0 = vcombine.high %v1175_v57, %v1179_v61 }
 0x429   : > { %v1194_v4 = vrot.slane %v1186_v63, %v4118_v42  ;;  %v1201_v5 = vrot.slane %v1187_v0, %v4118_v42 }
 0x42a   : > { %v2052_v30 = vpop.permute.xlu0 %2051 }
 0x42c   : > { %v4206_v49 = vpop.eup %3815 }
 0x42d   : > { %v1545_v50 = vsel %vm1326_vm6, %v4206_v49, 0.0  ;;  %v4212_v54 = vpop.eup %3817 }
 0x42e   : > { %1546 = vadd.xlane.f32.xlu0 %v1545_v50  ;;  %v1542_v55 = vsel %vm1326_vm6, %v4212_v54, 0.0 }
 0x443   : > { %1543 = vadd.xlane.f32.xlu1 %v1542_v55 }
 0x444   : > { %2055 = vrot.lane.b32.xlu0 %v4210_v53, %s3885_s16 }
 0x447   : > { %v1526_v58 = vpop.xlane.xlu1 %1525 }
 0x448   : > { %v1530_v59 = vsub.f32 %v1514_v39, %v1526_v58 }
 0x44a   : > { %v1537_v60 = vmul.f32 1.442695, %v1530_v59 }
 0x44b   : > { %v1177_v62 = vpop.permute.xlu1 %1176 }
 0x44c   : > { %3819 = vpow2.f32 %v1537_v60 }
 0x44f   : > { %v1181_v1 = vpop.permute.xlu1 %1180 }
 0x450   : > { %v1202_v2 = vcombine.low %v1177_v62, %v1181_v1  ;;  %v1203_v3 = vcombine.high %v1177_v62, %v1181_v1 }
 0x452   : > { %v1210_v6 = vrot.slane %v1202_v2, %v4118_v42  ;;  %v1217_v7 = vrot.slane %v1203_v3, %v4118_v42 }
 0x454   : > { %v1218_v8 = vcombine.low %v1194_v4, %v1210_v6  ;;  %v1219_v9 = vcombine.high %v1194_v4, %v1210_v6  ;;  %v1234_v10 = vcombine.low %v1201_v5, %v1217_v7  ;;  %v1235_v11 = vcombine.high %v1201_v5, %v1217_v7 }
 0x455   : > { %v1927_v4 = vcombine.low %v4198_v47, %v4216_v56  ;;  %v1911_v6 = vcombine.low %v4096_v28, %v4210_v53 }
 0x456   : > { %v1226_v12 = vrot.slane %v1218_v8, %v4128_v52  ;;  %v1233_v13 = vrot.slane %v1219_v9, %v4128_v52  ;;  %v1242_v14 = vrot.slane %v1234_v10, %v4128_v52  ;;  %v1249_v15 = vrot.slane %v1235_v11, %v4128_v52 }
 0x457   : > { %v1935_v7 = vrot.slane %v1927_v4, %v4118_v42  ;;  %v1919_v9 = vrot.slane %v1911_v6, %v4118_v42 }
 0x458   : > { %v1254_v16 = vcombine.low %v1226_v12, %v1233_v13  ;;  %v3490_v17 = vcombine.high %v1226_v12, %v1233_v13  ;;  %v1270_v19 = vcombine.low %v1242_v14, %v1249_v15  ;;  %v3491_v20 = vcombine.high %v1242_v14, %v1249_v15 }
 0x459   : > { %v4228_v21 = vpop.eup %3819  ;;  %v1943_v13 = vcombine.low %v1919_v9, %v1935_v7  ;;  %v1944_v14 = vcombine.high %v1919_v9, %v1935_v7 }
 0x45a   : > { %v1261_v22 = vrot.slane %v1254_v16, %v4118_v42  ;;  %v1269_v23 = vrot.slane %v3490_v17, %v4118_v42  ;;  %v1277_v24 = vrot.slane %v1270_v19, %v4118_v42  ;;  %v1285_v26 = vrot.slane %v3491_v20, %v4118_v42 }
 0x45b   : > { %v1548_v27 = vsel %vm1326_vm6, %v4228_v21, 0.0 }
 0x45c   : > { %1549 = vadd.xlane.f32.xlu1 %v1548_v27  ;;  %v1286_v29 = vcombine.low %v1261_v22, %v1269_v23  ;;  %v1302_v33 = vcombine.low %v1277_v24, %v1285_v26  ;;  %v1287_v34 = vcombine.high %v1261_v22, %v1269_v23  ;;  %v1303_v35 = vcombine.high %v1277_v24, %v1285_v26 }
 0x45d   : > { %v1951_v24 = vrot.slane %v1943_v13, %v4128_v52  ;;  %v1958_v26 = vrot.slane %v1944_v14, %v4128_v52 }
 0x45e   : > { %v1294_v36 = vrot.slane %v1286_v29, %v4128_v52  ;;  %v1310_v37 = vrot.slane %v1302_v33, %v4128_v52  ;;  %v1301_v38 = vrot.slane %v1287_v34, %v4128_v52  ;;  %v1317_v39 = vrot.slane %v1303_v35, %v4128_v52 }
 0x460   : > { %v1318_v40 = vcombine.low %v1294_v36, %v1310_v37  ;;  %v1319_v41 = vcombine.high %v1294_v36, %v1310_v37  ;;  %v1320_v43 = vcombine.low %v1301_v38, %v1317_v39  ;;  %v1321_v44 = vcombine.high %v1301_v38, %v1317_v39 }
 0x462   : > { %v1322_v25 = vpack.c.bf16 %v1318_v40, %v1318_v40  ;;  %v1323_v45 = vpack.c.bf16 %v1319_v41, %v1319_v41  ;;  %v1324_v57 = vpack.c.bf16 %v1320_v43, %v1320_v43  ;;  %v1325_v2 = vpack.c.bf16 %v1321_v44, %v1321_v44 }
 0x463   : > { %v1979_v41 = vcombine.low %v1951_v24, %v1958_v26  ;;  %v3502_v43 = vcombine.high %v1951_v24, %v1958_v26 }
 0x464   : > { %v1568_v32 = vsel %vm1566_vm7, %v1322_v25, 0  ;;  %v1614_v46 = vsel %vm1566_vm7, %v1323_v45, 0  ;;  %v1660_v59 = vsel %vm1566_vm7, %v1324_v57, 0  ;;  %v1706_v5 = vsel %vm1566_vm7, %v1325_v2, 0 }
 0x465   : > { %3639 = vmatpush3.bf16.msra.mxu1 %v1568_v32  ;;  %3645 = vmatpush3.bf16.msra.mxu0 %v1614_v46 }
 0x466   : > { %3650 = vmatprep.subr.bf16.mxu1 %v3881_v18  ;;  %3656 = vmatprep.subr.bf16.mxu0 %v3881_v18 }
 0x46d   : > { %2057 = vrot.lane.b32.xlu1 %v4216_v56, %s3885_s16  ;;  %s4583_s16 = scalar_lea.vmem %s4551_s8, %s4000_s25 }
 0x491   : > { %v2054_v62 = vpop.permute.xlu1 %2053 }
 0x4ab   : > { %v1541_v31 = vpop.xlane.xlu0 %1540 }
 0x4ac   : > { %3821 = vrcp.f32 %v1541_v31 }
 0x4b7   : > { %v1547_v50 = vpop.xlane.xlu0 %1546 }
 0x4b8   : > { %3823 = vrcp.f32 %v1547_v50 }
 0x4b9   : > { %v3822_v51 = vpop.eup %3821 }
 0x4ba   : > { %v1555_v55 = vmul.f32 %v3822_v51, %v4202_v48 }
 0x4bb   : > { %v2056_v11 = vpop.permute.xlu0 %2055 }
 0x4bc   : > { %v1559_v58 = vpack.c.bf16 %v1555_v55, %v1555_v55  ;;  %v2063_v17 = vcombine.low %v2052_v30, %v2056_v11  ;;  %v2064_v19 = vcombine.high %v2052_v30, %v2056_v11 }
 0x4be   : > { %3641 = vmatmul.mubr.msk.bf16.vlgmr.msra.gmra.mxu1 %vm1326_vm6, %v1559_v58  ;;  %v2071_v33 = vrot.slane %v2063_v17, %v4118_v42  ;;  %v2078_v34 = vrot.slane %v2064_v19, %v4118_v42  ;;  %v1986_v58 = vrot.slane %v1979_v41, %v4118_v42 }
 0x4bf   : > { %3651 = vmatpush3.bf16.msra.mxu1 %v1660_v59  ;;  %3652 = vmatprep.mubr.msk.bf16.mxu1 %vm3882_vm4, %v3881_v18  ;;  %v1994_v59 = vrot.slane %v3502_v43, %v4118_v42 }
 0x4c0   : > { %3662 = vmatprep.subr.bf16.mxu1 %v3881_v18 }
 0x4c1   : > { %v2011_v7 = vcombine.low %v1986_v58, %v1994_v59 }
 0x4c3   : > { %v2019_v14 = vrot.slane %v2011_v7, %v4128_v52 }
 0x4c5   : > { %v3824_v60 = vpop.eup %3823 }
 0x4c6   : > { %v1557_v61 = vmul.f32 %v3824_v60, %v4206_v49  ;;  %v1928_v49 = vcombine.high %v4198_v47, %v4216_v56 }
 0x4c8   : > { %v1561_v63 = vpack.c.bf16 %v1557_v61, %v1557_v61  ;;  %v1942_v8 = vrot.slane %v1928_v49, %v4118_v42 }
 0x4ca   : > { %3653 = vmatmul.mubr.msk.bf16.vlgmr.msra.gmra.mxu1 %vm1326_vm6, %v1561_v63 }
 0x4cb   : > { %3664 = vmatprep.mubr.msk.bf16.mxu1 %vm3882_vm4, %v3881_v18 }
 0x4cc   : > { %v1544_v48 = vpop.xlane.xlu1 %1543 }
 0x4cd   : > { %3825 = vrcp.f32 %v1544_v48 }
 0x4da   : > { %v3826_v0 = vpop.eup %3825 }
 0x4db   : > { %v1556_v1 = vmul.f32 %v3826_v0, %v4212_v54  ;;  %v1912_v54 = vcombine.high %v4096_v28, %v4210_v53 }
 0x4dd   : > { %v1560_v3 = vpack.c.bf16 %v1556_v1, %v1556_v1  ;;  %v1926_v10 = vrot.slane %v1912_v54, %v4118_v42 }
 0x4df   : > { %3647 = vmatmul.mubr.msk.bf16.vlgmr.msra.gmra.mxu0 %vm1326_vm6, %v1560_v3  ;;  %v1959_v15 = vcombine.low %v1926_v10, %v1942_v8  ;;  %v1960_v16 = vcombine.high %v1926_v10, %v1942_v8 }
 0x4e0   : > { %3657 = vmatpush3.bf16.msra.mxu0 %v1706_v5  ;;  %3658 = vmatprep.mubr.msk.bf16.mxu0 %vm3882_vm4, %v3881_v18 }
 0x4e1   : > { %3668 = vmatprep.subr.bf16.mxu0 %v3881_v18  ;;  %v1967_v27 = vrot.slane %v1959_v15, %v4128_v52  ;;  %v1974_v29 = vrot.slane %v1960_v16, %v4128_v52 }
 0x4e3   : > { %v1995_v44 = vcombine.low %v1967_v27, %v1974_v29  ;;  %v3503_v25 = vcombine.high %v1967_v27, %v1974_v29 }
 0x4e5   : > { %v1550_v12 = vpop.xlane.xlu1 %1549  ;;  %v2002_v60 = vrot.slane %v1995_v44, %v4118_v42  ;;  %v2010_v61 = vrot.slane %v3503_v25, %v4118_v42 }
 0x4e6   : > { %3827 = vrcp.f32 %v1550_v12 }
 0x4e7   : > { %v2027_v8 = vcombine.low %v2002_v60, %v2010_v61  ;;  %v2028_v26 = vcombine.high %v2002_v60, %v2010_v61 }
 0x4e9   : > { %v2058_v20 = vpop.permute.xlu1 %2057  ;;  %v2035_v15 = vrot.slane %v2027_v8, %v4128_v52 }
 0x4ea   : > { %v2079_v22 = vcombine.low %v2054_v62, %v2058_v20  ;;  %v2080_v23 = vcombine.high %v2054_v62, %v2058_v20 }
 0x4eb   : > { %v2044_v24 = vcombine.high %v2019_v14, %v2035_v15 }
 0x4ec   : > { %v2087_v35 = vrot.slane %v2079_v22, %v4118_v42  ;;  %v2094_v36 = vrot.slane %v2080_v23, %v4118_v42  ;;  %v2012_v22 = vcombine.high %v1986_v58, %v1994_v59  ;;  %v2043_v23 = vcombine.low %v2019_v14, %v2035_v15 }
 0x4ee   : > { %v2095_v37 = vcombine.low %v2071_v33, %v2087_v35  ;;  %v2096_v38 = vcombine.high %v2071_v33, %v2087_v35  ;;  %v2111_v39 = vcombine.low %v2078_v34, %v2094_v36  ;;  %v2112_v40 = vcombine.high %v2078_v34, %v2094_v36 }
 0x4ef   : > { %v2047_v33 = vpack.c.bf16 %v2043_v23, %v2043_v23  ;;  %v2048_v34 = vpack.c.bf16 %v2044_v24, %v2044_v24  ;;  %v2026_v35 = vrot.slane %v2012_v22, %v4128_v52  ;;  %v2042_v36 = vrot.slane %v2028_v26, %v4128_v52 }
 0x4f0   : > { %v2103_v45 = vrot.slane %v2095_v37, %v4128_v52  ;;  %v2110_v32 = vrot.slane %v2096_v38, %v4128_v52  ;;  %v2119_v46 = vrot.slane %v2111_v39, %v4128_v52  ;;  %v2126_v30 = vrot.slane %v2112_v40, %v4128_v52 }
 0x4f1   : > { %v2045_v39 = vcombine.low %v2026_v35, %v2042_v36  ;;  %v2046_v40 = vcombine.high %v2026_v35, %v2042_v36 }
 0x4f2   : > { %v2131_v31 = vcombine.low %v2103_v45, %v2110_v32  ;;  %v3504_v50 = vcombine.high %v2103_v45, %v2110_v32  ;;  %v2147_v51 = vcombine.low %v2119_v46, %v2126_v30  ;;  %v3505_v55 = vcombine.high %v2119_v46, %v2126_v30 }
 0x4f3   : > { %v3828_v57 = vpop.eup %3827  ;;  %v2049_v41 = vpack.c.bf16 %v2045_v39, %v2045_v39  ;;  %v2050_v43 = vpack.c.bf16 %v2046_v40, %v2046_v40 }
 0x4f4   : > { %v2138_v62 = vrot.slane %v2131_v31, %v4118_v42  ;;  %v2146_v63 = vrot.slane %v3504_v50, %v4118_v42  ;;  %v2154_v48 = vrot.slane %v2147_v51, %v4118_v42  ;;  %v2162_v0 = vrot.slane %v3505_v55, %v4118_v42 }
 0x4f5   : > { %v1558_v1 = vmul.f32 %v3828_v57, %v4228_v21 }
 0x4f6   : > { %v2163_v2 = vcombine.low %v2138_v62, %v2146_v63  ;;  %v2179_v3 = vcombine.low %v2154_v48, %v2162_v0  ;;  %v2164_v4 = vcombine.high %v2138_v62, %v2146_v63  ;;  %v2180_v49 = vcombine.high %v2154_v48, %v2162_v0 }
 0x4f7   : > { %v1562_v5 = vpack.c.bf16 %v1558_v1, %v1558_v1 }
 0x4f8   : > { %v2171_v6 = vrot.slane %v2163_v2, %v4128_v52  ;;  %v2187_v54 = vrot.slane %v2179_v3, %v4128_v52  ;;  %v2178_v21 = vrot.slane %v2164_v4, %v4128_v52  ;;  %v2194_v11 = vrot.slane %v2180_v49, %v4128_v52 }
 0x4f9   : > { %3659 = vmatmul.mubr.msk.bf16.vlgmr.msra.gmra.mxu0 %vm1326_vm6, %v1562_v5 }
 0x4fa   : > { %v2195_v9 = vcombine.low %v2171_v6, %v2187_v54  ;;  %v2196_v10 = vcombine.high %v2171_v6, %v2187_v54  ;;  %3670 = vmatprep.mubr.msk.bf16.mxu0 %vm3882_vm4, %v3881_v18  ;;  %v2197_v19 = vcombine.low %v2178_v21, %v2194_v11  ;;  %v2198_v20 = vcombine.high %v2178_v21, %v2194_v11 }
 0x4fc   : > { %v2199_v12 = vpack.c.bf16 %v2195_v9, %v2195_v9  ;;  %v2200_v13 = vpack.c.bf16 %v2196_v10, %v2196_v10  ;;  %v2201_v27 = vpack.c.bf16 %v2197_v19, %v2197_v19  ;;  %v2202_v29 = vpack.c.bf16 %v2198_v20, %v2198_v20 }
 0x4fe   : > { %v2359_v16 = vsel %vm1326_vm6, %v2199_v12, 0  ;;  %v2405_v17 = vsel %vm1326_vm6, %v2200_v13, 0  ;;  %v2451_v37 = vsel %vm1326_vm6, %v2201_v27, 0  ;;  %v2497_v38 = vsel %vm1326_vm6, %v2202_v29, 0 }
 0x4ff   : > { %3663 = vmatpush3.bf16.xpose.msra.mxu1 %v2359_v16  ;;  %3669 = vmatpush3.bf16.xpose.msra.mxu0 %v2405_v17 }
 0x500   : > { %3674 = vmatprep.subr.bf16.mxu1 %v3881_v18  ;;  %3680 = vmatprep.subr.bf16.mxu0 %v3881_v18 }
 0x506   : > { %3665 = vmatmul.mubr.msk.bf16.vlgmr.msra.gmra.mxu1 %vm1326_vm6, %v2047_v33  ;;  %3671 = vmatmul.mubr.msk.bf16.vlgmr.msra.gmra.mxu0 %vm1326_vm6, %v2048_v34 }
 0x507   : > { %3675 = vmatpush3.bf16.xpose.msra.mxu1 %v2451_v37  ;;  %3681 = vmatpush3.bf16.xpose.msra.mxu0 %v2497_v38 }
 0x508   : > { %3676 = vmatprep.mubr.msk.bf16.mxu1 %vm3882_vm4, %v3881_v18  ;;  %3682 = vmatprep.mubr.msk.bf16.mxu0 %vm3882_vm4, %v3881_v18 }
 0x509   : > { %3686 = vmatprep.subr.bf16.mxu1 %v3881_v18  ;;  %3692 = vmatprep.subr.bf16.mxu0 %v3881_v18 }
 0x50e   : > { %3677 = vmatmul.mubr.msk.bf16.vlgmr.msra.gmra.mxu1 %vm1326_vm6, %v2049_v41  ;;  %3683 = vmatmul.mubr.msk.bf16.vlgmr.msra.gmra.mxu0 %vm1326_vm6, %v2050_v43 }
 0x50f   : > { %3688 = vmatprep.mubr.msk.bf16.mxu1 %vm3882_vm4, %v3881_v18  ;;  %3694 = vmatprep.mubr.msk.bf16.mxu0 %vm3882_vm4, %v3881_v18 }
 0x57e   : > { %v1604_v44 = vpop.f32.mrf.mxu1 }
 0x580   : > { %v3642_v25 = vpop.f32.mrf.mxu1 }
 0x582   : > { %v1607_v45 = vpop.f32.mrf.mxu1 }
 0x584   : > { %v3643_v32 = vpop.f32.mrf.mxu1 }
 0x58a   : > { %v1696_v46 = vpop.f32.mrf.mxu1 }
 0x58b   : > { %v1748_v30 = vcombine.low %v1604_v44, %v1696_v46  ;;  %v1749_v31 = vcombine.high %v1604_v44, %v1696_v46 }
 0x58c   : > { %v3654_v50 = vpop.f32.mrf.mxu1 }
 0x58d   : > { %v1756_v0 = vrot.slane %v1748_v30, %v4118_v42  ;;  %v1763_v1 = vrot.slane %v1749_v31, %v4118_v42 }
 0x58e   : > { %v1699_v51 = vpop.f32.mrf.mxu1 }
 0x590   : > { %v3655_v55 = vpop.f32.mrf.mxu1 }
 0x59f   : > { %v1650_v57 = vpop.f32.mrf.mxu0 }
 0x5a1   : > { %v3648_v58 = vpop.f32.mrf.mxu0 }
 0x5a3   : > { %v1653_v59 = vpop.f32.mrf.mxu0 }
 0x5a5   : > { %v3649_v60 = vpop.f32.mrf.mxu0 }
 0x5b9   : > { %v1742_v61 = vpop.f32.mrf.mxu0 }
 0x5ba   : > { %v1764_v62 = vcombine.low %v1650_v57, %v1742_v61  ;;  %v1765_v63 = vcombine.high %v1650_v57, %v1742_v61 }
 0x5bb   : > { %v3660_v48 = vpop.f32.mrf.mxu0 }
 0x5bc   : > { %v1772_v2 = vrot.slane %v1764_v62, %v4118_v42  ;;  %v1779_v3 = vrot.slane %v1765_v63, %v4118_v42 }
 0x5bd   : > { %v1745_v4 = vpop.f32.mrf.mxu0 }
 0x5be   : > { %v1780_v49 = vcombine.low %v1756_v0, %v1772_v2  ;;  %v1781_v5 = vcombine.high %v1756_v0, %v1772_v2  ;;  %v1796_v6 = vcombine.low %v1763_v1, %v1779_v3  ;;  %v1797_v54 = vcombine.high %v1763_v1, %v1779_v3 }
 0x5bf   : > { %v3661_v7 = vpop.f32.mrf.mxu0 }
 0x5c0   : > { %v1788_v8 = vrot.slane %v1780_v49, %v4128_v52  ;;  %v1795_v9 = vrot.slane %v1781_v5, %v4128_v52  ;;  %v1804_v10 = vrot.slane %v1796_v6, %v4128_v52  ;;  %v1811_v21 = vrot.slane %v1797_v54, %v4128_v52 }
 0x5c2   : > { %v1816_v11 = vcombine.low %v1788_v8, %v1795_v9  ;;  %v3500_v12 = vcombine.high %v1788_v8, %v1795_v9  ;;  %v1832_v13 = vcombine.low %v1804_v10, %v1811_v21  ;;  %v3501_v14 = vcombine.high %v1804_v10, %v1811_v21 }
 0x5c4   : > { %v1823_v15 = vrot.slane %v1816_v11, %v4118_v42  ;;  %v1831_v16 = vrot.slane %v3500_v12, %v4118_v42  ;;  %v1839_v17 = vrot.slane %v1832_v13, %v4118_v42  ;;  %v1847_v19 = vrot.slane %v3501_v14, %v4118_v42 }
 0x5c6   : > { %v2395_v20 = vpop.f32.mrf.mxu1  ;;  %v2441_v22 = vpop.f32.mrf.mxu0  ;;  %v1849_v23 = vcombine.high %v1823_v15, %v1831_v16  ;;  %v1865_v24 = vcombine.high %v1839_v17, %v1847_v19  ;;  %v1848_v26 = vcombine.low %v1823_v15, %v1831_v16  ;;  %v1864_v27 = vcombine.low %v1839_v17, %v1847_v19 }
 0x5c7   : > { %v2539_v29 = vmul.f32 0.35355338, %v2395_v20  ;;  %v2540_v33 = vmul.f32 0.35355338, %v2441_v22 }
 0x5c8   : > { %v3666_v34 = vpop.f32.mrf.mxu1  ;;  %v3672_v35 = vpop.f32.mrf.mxu0  ;;  %v4339_v36 = vrot.slane %v1849_v23, %v4128_v52  ;;  %v4342_v37 = vrot.slane %v1865_v24, %v4128_v52  ;;  %v4345_v38 = vrot.slane %v1848_v26, %v4128_v52  ;;  %v4348_v39 = vrot.slane %v1864_v27, %v4128_v52 }
 0x5c9   : > { %v2543_v40 = vsel %vm1326_vm6, %v2539_v29, -inf  ;;  %v2546_v41 = vsel %vm1326_vm6, %v2540_v33, -inf }
 0x5ca   : > { %2544 = vmax.xlane.f32.xlu0 %v2543_v40  ;;  %v2398_v43 = vpop.f32.mrf.mxu1  ;;  %2547 = vmax.xlane.f32.xlu1 %v2546_v41  ;;  %v2444_v44 = vpop.f32.mrf.mxu0  ;;  %v1882_v25 = vcombine.low %v4339_v36, %v4342_v37  ;;  %v1880_v45 = vcombine.low %v4345_v38, %v4348_v39  ;;  %v1881_v32 = vcombine.high %v4345_v38, %v4348_v39  ;;  %v3518_v38 = vld [vmem:[%s4582_s29] ss:$0 sm:$0xff] }
 0x5cb   : > { %v1883_v46 = vcombine.high %v4339_v36, %v4342_v37 }
 0x5cc   : > { %v3667_v30 = vpop.f32.mrf.mxu1  ;;  %v3673_v31 = vpop.f32.mrf.mxu0 }
 0x5ce   : > { %v2487_v50 = vpop.f32.mrf.mxu1  ;;  %v2533_v51 = vpop.f32.mrf.mxu0 }
 0x5cf   : > { %v2541_v55 = vmul.f32 0.35355338, %v2487_v50  ;;  %v2542_v59 = vmul.f32 0.35355338, %v2533_v51 }
 0x5d0   : > { %v3678_v57 = vpop.f32.mrf.mxu1  ;;  %v3684_v58 = vpop.f32.mrf.mxu0 }
 0x5d1   : > { %v2549_v60 = vsel %vm1326_vm6, %v2541_v55, -inf  ;;  %v2552_v0 = vsel %vm1326_vm6, %v2542_v59, -inf }
 0x5d2   : > { %2550 = vmax.xlane.f32.xlu0 %v2549_v60  ;;  %v2490_v61 = vpop.f32.mrf.mxu1  ;;  %v2536_v62 = vpop.f32.mrf.mxu0 }
 0x5d4   : > { %v3679_v63 = vpop.f32.mrf.mxu1  ;;  %v3685_v48 = vpop.f32.mrf.mxu0 }
 0x5d6   : > { %2553 = vmax.xlane.f32.xlu0 %v2552_v0 }
 0x5db   : > { %2203 = vrot.lane.b32.xlu1 %v4096_v28, %s3889_s26 }
 0x653   : > { %v2545_v1 = vpop.xlane.xlu0 %2544  ;;  %v2548_v2 = vpop.xlane.xlu1 %2547 }
 0x654   : > { %v2555_v3 = vsub.f32 %v2539_v29, %v2545_v1  ;;  %v2556_v4 = vsub.f32 %v2540_v33, %v2548_v2 }
 0x656   : > { %v2559_v49 = vmul.f32 1.442695, %v2555_v3  ;;  %v2561_v5 = vmul.f32 1.442695, %v2556_v4 }
 0x658   : > { %3829 = vpow2.f32 %v2559_v49 }
 0x659   : > { %3831 = vpow2.f32 %v2561_v5 }
 0x65b   : > { %v2551_v28 = vpop.xlane.xlu0 %2550 }
 0x65c   : > { %v2557_v9 = vsub.f32 %v2541_v55, %v2551_v28 }
 0x65e   : > { %v2563_v11 = vmul.f32 1.442695, %v2557_v9 }
 0x65f   : > { %v2554_v10 = vpop.xlane.xlu0 %2553 }
 0x660   : > { %v2558_v21 = vsub.f32 %v2542_v59, %v2554_v10  ;;  %3833 = vpow2.f32 %v2563_v11 }
 0x662   : > { %v2565_v12 = vmul.f32 1.442695, %v2558_v21 }
 0x664   : > { %3835 = vpow2.f32 %v2565_v12 }
 0x665   : > { %v4364_v6 = vpop.eup %3829 }
 0x666   : > { %v4366_v54 = vpop.eup %3831  ;;  %v2567_v7 = vsel %vm1326_vm6, %v4364_v6, 0.0 }
 0x667   : > { %2568 = vadd.xlane.f32.xlu1 %v2567_v7  ;;  %v2570_v8 = vsel %vm1326_vm6, %v4366_v54, 0.0 }
 0x668   : > { %2571 = vadd.xlane.f32.xlu0 %v2570_v8 }
 0x66d   : > { %v4378_v13 = vpop.eup %3833 }
 0x671   : > { %v4380_v14 = vpop.eup %3835 }
 0x678   : > { %2207 = vrot.lane.b32.xlu1 %v4210_v53, %s3889_s26  ;;  %v2573_v53 = vsel %vm1326_vm6, %v4378_v13, 0.0 }
 0x67c   : > { %2209 = vrot.lane.b32.xlu1 %v4216_v56, %s3889_s26  ;;  %v2576_v56 = vsel %vm1326_vm6, %v4380_v14, 0.0 }
 0x67e   : > { %2205 = vrot.lane.b32.xlu0 %v4198_v47, %s3889_s26  ;;  %v2204_v47 = vpop.permute.xlu1 %2203 }
 0x69d   : > { %2574 = vadd.xlane.f32.xlu0 %v2573_v53 }
 0x6a0   : > { %2577 = vadd.xlane.f32.xlu1 %v2576_v56 }
 0x6f0   : > { %v2569_v15 = vpop.xlane.xlu1 %2568 }
 0x6f1   : > { %v2572_v16 = vpop.xlane.xlu0 %2571  ;;  %3837 = vrcp.f32 %v2569_v15 }
 0x6f2   : > { %3839 = vrcp.f32 %v2572_v16 }
 0x6f4   : > { %v2208_v17 = vpop.permute.xlu1 %2207 }
 0x6f5   : > { %v2215_v19 = vcombine.low %v2204_v47, %v2208_v17  ;;  %v2216_v20 = vcombine.high %v2204_v47, %v2208_v17  ;;  %v2206_v22 = vpop.permute.xlu0 %2205 }
 0x6f7   : > { %v2223_v27 = vrot.slane %v2215_v19, %v4118_v42  ;;  %v2230_v29 = vrot.slane %v2216_v20, %v4118_v42 }
 0x6f8   : > { %v2210_v23 = vpop.permute.xlu1 %2209 }
 0x6f9   : > { %v2231_v24 = vcombine.low %v2206_v22, %v2210_v23  ;;  %v2232_v26 = vcombine.high %v2206_v22, %v2210_v23 }
 0x6fb   : > { %v2239_v33 = vrot.slane %v2231_v24, %v4118_v42  ;;  %v2246_v34 = vrot.slane %v2232_v26, %v4118_v42 }
 0x6fd   : > { %v2247_v35 = vcombine.low %v2223_v27, %v2239_v33  ;;  %v2248_v40 = vcombine.high %v2223_v27, %v2239_v33  ;;  %v2263_v41 = vcombine.low %v2230_v29, %v2246_v34  ;;  %v2264_v43 = vcombine.high %v2230_v29, %v2246_v34 }
 0x6fe   : > { %v3838_v2 = vpop.eup %3837 }
 0x6ff   : > { %v2255_v44 = vrot.slane %v2247_v35, %v4128_v52  ;;  %v2262_v30 = vrot.slane %v2248_v40, %v4128_v52  ;;  %v2271_v31 = vrot.slane %v2263_v41, %v4128_v52  ;;  %v2278_v50 = vrot.slane %v2264_v43, %v4128_v52  ;;  %v3840_v3 = vpop.eup %3839 }
 0x700   : > { %v2583_v12 = vmul.f32 %v3838_v2, %v4364_v6  ;;  %v2584_v53 = vmul.f32 %v3840_v3, %v4366_v54 }
 0x701   : > { %v2283_v51 = vcombine.low %v2255_v44, %v2262_v30  ;;  %v3506_v55 = vcombine.high %v2255_v44, %v2262_v30  ;;  %v2299_v57 = vcombine.low %v2271_v31, %v2278_v50  ;;  %v3507_v58 = vcombine.high %v2271_v31, %v2278_v50 }
 0x702   : > { %v2587_v17 = vpack.c.bf16 %v2583_v12, %v2583_v12  ;;  %v2588_v19 = vpack.c.bf16 %v2584_v53, %v2584_v53  ;;  %v3801_v53 = vld [vmem:[%s4581_s0 + $0x8] sm:$0xff]  }
 0x703   : > { %v2290_v59 = vrot.slane %v2283_v51, %v4118_v42  ;;  %v2298_v60 = vrot.slane %v3506_v55, %v4118_v42  ;;  %v2306_v61 = vrot.slane %v2299_v57, %v4118_v42  ;;  %v2314_v62 = vrot.slane %v3507_v58, %v4118_v42 }
 0x705   : > { %v2315_v63 = vcombine.low %v2290_v59, %v2298_v60  ;;  %v2331_v48 = vcombine.low %v2306_v61, %v2314_v62  ;;  %v2316_v0 = vcombine.high %v2290_v59, %v2298_v60  ;;  %v2332_v1 = vcombine.high %v2306_v61, %v2314_v62 }
 0x707   : > { %v2323_v4 = vrot.slane %v2315_v63, %v4128_v52  ;;  %v2339_v49 = vrot.slane %v2331_v48, %v4128_v52  ;;  %v2330_v5 = vrot.slane %v2316_v0, %v4128_v52  ;;  %v2346_v7 = vrot.slane %v2332_v1, %v4128_v52 }
 0x709   : > { %v2347_v8 = vcombine.low %v2323_v4, %v2339_v49  ;;  %v2348_v28 = vcombine.high %v2323_v4, %v2339_v49  ;;  %v2349_v9 = vcombine.low %v2330_v5, %v2346_v7  ;;  %v2350_v10 = vcombine.high %v2330_v5, %v2346_v7 }
 0x70b   : > { %v2351_v21 = vpack.c.bf16 %v2347_v8, %v2347_v8  ;;  %v2352_v11 = vpack.c.bf16 %v2348_v28, %v2348_v28  ;;  %v2353_v15 = vpack.c.bf16 %v2349_v9, %v2349_v9  ;;  %v2354_v16 = vpack.c.bf16 %v2350_v10, %v2350_v10 }
 0x70d   : > { %v2595_v56 = vsel %vm1566_vm7, %v2351_v21, 0  ;;  %v2641_v47 = vsel %vm1566_vm7, %v2352_v11, 0  ;;  %v2687_v6 = vsel %vm1566_vm7, %v2353_v15, 0  ;;  %v2733_v54 = vsel %vm1566_vm7, %v2354_v16, 0 }
 0x70e   : > { %3687 = vmatpush3.bf16.msra.mxu1 %v2595_v56  ;;  %3693 = vmatpush3.bf16.msra.mxu0 %v2641_v47 }
 0x70f   : > { %3698 = vmatprep.subr.bf16.mxu1 %v3881_v18  ;;  %3704 = vmatprep.subr.bf16.mxu0 %v3881_v18 }
 0x711   : > { %3689 = vmatmul.mubr.msk.bf16.vlgmr.msra.gmra.mxu1 %vm1326_vm6, %v2587_v17  ;;  %3695 = vmatmul.mubr.msk.bf16.vlgmr.msra.gmra.mxu0 %vm1326_vm6, %v2588_v19 }
 0x712   : > { %3699 = vmatpush3.bf16.msra.mxu1 %v2687_v6  ;;  %3705 = vmatpush3.bf16.msra.mxu0 %v2733_v54 }
 0x713   : > { %3700 = vmatprep.mubr.msk.bf16.mxu1 %vm3882_vm4, %v3881_v18  ;;  %3706 = vmatprep.mubr.msk.bf16.mxu0 %vm3882_vm4, %v3881_v18 }
 0x714   : > { %3710 = vmatprep.subr.bf16.mxu1 %v3881_v18  ;;  %3718 = vmatprep.subr.bf16.mxu0 %v3881_v18 }
 0x726   : > { %v2575_v20 = vpop.xlane.xlu0 %2574 }
 0x727   : > { %3841 = vrcp.f32 %v2575_v20  ;;  %v3802_v20 = vld [vmem:[%s4581_s0] sm:$0xff]   ;;  %s4584_s0 = scalar_lea.vmem %s4552_s9, %s4000_s25  ;;  %s4585_s25 = sld [smem:[#allocation12_spill]] (!%p3539_p6) }
 0x729   : > { %v2578_v22 = vpop.xlane.xlu1 %2577 }
 0x72a   : > { %3843 = vrcp.f32 %v2578_v22 }
 0x734   : > { %v3842_v23 = vpop.eup %3841 }
 0x735   : > { %v2585_v24 = vmul.f32 %v3842_v23, %v4378_v13 }
 0x737   : > { %v3844_v26 = vpop.eup %3843  ;;  %v2589_v27 = vpack.c.bf16 %v2585_v24, %v2585_v24 }
 0x738   : > { %v2586_v29 = vmul.f32 %v3844_v26, %v4380_v14 }
 0x739   : > { %3701 = vmatmul.mubr.msk.bf16.vlgmr.msra.gmra.mxu1 %vm1326_vm6, %v2589_v27 }
 0x73a   : > { %v2590_v33 = vpack.c.bf16 %v2586_v29, %v2586_v29  ;;  %3714 = vmatprep.mubr.msk.bf16.mxu1 %vm3882_vm4, %v3881_v18  ;;  %3711 = vmatpush3.bf16.msra.mxu1 %v3801_v53  ;;  %v3806_v53 = vld [vmem:[%s4042_s23 + $0x30] sm:$0xff]  }
 0x73b   : > { %3712 = vmatprep.subr.bf16.mxu1 %v3881_v18 }
 0x73c   : > { %3707 = vmatmul.mubr.msk.bf16.vlgmr.msra.gmra.mxu0 %vm1326_vm6, %v2590_v33 }
 0x73d   : > { %3722 = vmatprep.mubr.msk.bf16.mxu0 %vm3882_vm4, %v3881_v18 }
 0x73e   : > { %3713 = vmatpush3.bf16.msra.mxu1 %v3802_v20 }
 0x73f   : > { %3726 = vmatprep.subr.bf16.mxu1 %v3881_v18 }
 0x7d1   : > { %v2631_v34 = vpop.f32.mrf.mxu1  ;;  %v2677_v35 = vpop.f32.mrf.mxu0 }
 0x7d3   : > { %v3690_v40 = vpop.f32.mrf.mxu1  ;;  %v3696_v41 = vpop.f32.mrf.mxu0 }
 0x7d5   : > { %v2634_v13 = vpop.f32.mrf.mxu1  ;;  %v2680_v43 = vpop.f32.mrf.mxu0 }
 0x7d7   : > { %v3691_v44 = vpop.f32.mrf.mxu1  ;;  %v3697_v30 = vpop.f32.mrf.mxu0 }
 0x7f9   : > { %v2723_v14 = vpop.f32.mrf.mxu1 }
 0x7fa   : > { %v2775_v31 = vcombine.low %v2631_v34, %v2723_v14  ;;  %v2776_v50 = vcombine.high %v2631_v34, %v2723_v14 }
 0x7fb   : > { %v3702_v51 = vpop.f32.mrf.mxu1 }
 0x7fc   : > { %v2769_v55 = vpop.f32.mrf.mxu0  ;;  %v2783_v61 = vrot.slane %v2775_v31, %v4118_v42  ;;  %v2790_v62 = vrot.slane %v2776_v50, %v4118_v42 }
 0x7fd   : > { %v2726_v57 = vpop.f32.mrf.mxu1  ;;  %v2791_v58 = vcombine.low %v2677_v35, %v2769_v55  ;;  %v2792_v59 = vcombine.high %v2677_v35, %v2769_v55 }
 0x7fe   : > { %v3708_v60 = vpop.f32.mrf.mxu0 }
 0x7ff   : > { %v2799_v63 = vrot.slane %v2791_v58, %v4118_v42  ;;  %v2806_v48 = vrot.slane %v2792_v59, %v4118_v42  ;;  %v3703_v0 = vpop.f32.mrf.mxu1  ;;  %v3853_v58 = vld [vmem:[#allocation2] sm:$0xff] }
 0x800   : > { %v2772_v1 = vpop.f32.mrf.mxu0 }
 0x801   : > { %v2807_v2 = vcombine.low %v2783_v61, %v2799_v63  ;;  %v2808_v3 = vcombine.high %v2783_v61, %v2799_v63  ;;  %v2823_v4 = vcombine.low %v2790_v62, %v2806_v48  ;;  %v2824_v49 = vcombine.high %v2790_v62, %v2806_v48  ;;  %v3854_v48 = vld [vmem:[#allocation2 + $0x8] sm:$0xff] }
 0x802   : > { %v3709_v5 = vpop.f32.mrf.mxu0 }
 0x803   : > { %v2815_v7 = vrot.slane %v2807_v2, %v4128_v52  ;;  %v2822_v8 = vrot.slane %v2808_v3, %v4128_v52  ;;  %v2831_v28 = vrot.slane %v2823_v4, %v4128_v52  ;;  %v2838_v9 = vrot.slane %v2824_v49, %v4128_v52 }
 0x805   : > { %v2843_v10 = vcombine.low %v2815_v7, %v2822_v8  ;;  %v3516_v21 = vcombine.high %v2815_v7, %v2822_v8  ;;  %v2859_v11 = vcombine.low %v2831_v28, %v2838_v9  ;;  %v3517_v12 = vcombine.high %v2831_v28, %v2838_v9 }
 0x807   : > { %v2850_v56 = vrot.slane %v2843_v10, %v4118_v42  ;;  %v2858_v47 = vrot.slane %v3516_v21, %v4118_v42  ;;  %v2866_v15 = vrot.slane %v2859_v11, %v4118_v42  ;;  %v2874_v16 = vrot.slane %v3517_v12, %v4118_v42  ;;  %v3803_v21 = vld [vmem:[%s4032_s4 + $0x8] sm:$0xff]   ;;  %v3804_v11 = vld [vmem:[%s4032_s4] sm:$0xff]   ;;  %v3805_v12 = vld [vmem:[%s4042_s23 + $0x38] sm:$0xff]  }
 0x808   : > { %3719 = vmatpush3.bf16.msra.mxu0 %v3803_v21 }
 0x809   : > { %v2876_v17 = vcombine.high %v2850_v56, %v2858_v47  ;;  %v2892_v19 = vcombine.high %v2866_v15, %v2874_v16  ;;  %v2875_v6 = vcombine.low %v2850_v56, %v2858_v47  ;;  %v2891_v54 = vcombine.low %v2866_v15, %v2874_v16  ;;  %3720 = vmatprep.subr.bf16.mxu0 %v3881_v18  ;;  %v3807_v56 = vld [vmem:[%s4042_s23 + $0x28] sm:$0xff]   ;;  %v3808_v47 = vld [vmem:[%s4042_s23 + $0x20] sm:$0xff]   ;;  %v3809_v15 = vld [vmem:[%s4042_s23 + $0x18] sm:$0xff]  }
 0x80b   : > { %v2890_v22 = vrot.slane %v2876_v17, %v4128_v52  ;;  %v2906_v23 = vrot.slane %v2892_v19, %v4128_v52  ;;  %v2883_v24 = vrot.slane %v2875_v6, %v4128_v52  ;;  %v2899_v26 = vrot.slane %v2891_v54, %v4128_v52 }
 0x80c   : > { %3721 = vmatpush3.bf16.msra.mxu0 %v3804_v11  ;;  %v3537_v11 = vld [vmem:[%s719_s30] ss:$0 sm:$0xff] }
 0x80d   : > { %v2909_v27 = vcombine.low %v2890_v22, %v2906_v23  ;;  %v2908_v29 = vcombine.high %v2883_v24, %v2899_v26  ;;  %v2907_v42 = vcombine.low %v2883_v24, %v2899_v26  ;;  %v2910_v35 = vcombine.high %v2890_v22, %v2906_v23  ;;  %v3522_v24 = vld [vmem:[%s4583_s16] ss:$0 sm:$0xff] }
 0x80f   : > { %v3789_v33 = vpack.i.bf16 %v2909_v27, %v1882_v25  ;;  %v3784_v34 = vpack.i.bf16 %v2908_v29, %v1881_v32  ;;  %v3794_v52 = vpack.i.bf16 %v2910_v35, %v1883_v46 }
 0x811   : > { %3790 = vrot.lane.b32.xlu1 %v3789_v33, %s3890_s18  ;;  %3785 = vrot.lane.b32.xlu0 %v3784_v34, %s3891_s19 }
 0x815   : > { %3795 = vrot.lane.b32.xlu0 %v3794_v52, %s3892_s17 }
 0x883   : > { %v3791_v40 = vpop.permute.xlu1 %3790  ;;  %v3786_v41 = vpop.permute.xlu0 %3785 }
 0x884   : > { %v3788_v13 = vunpack.i.h.bf16 %v3786_v41  ;;  %v3787_v43 = vunpack.i.l.bf16 %v3786_v41  ;;  %v3793_v25 = vunpack.i.h.bf16 %v3791_v40  ;;  %v3792_v44 = vunpack.i.l.bf16 %v3791_v40  ;;  %v3810_v40 = vld [vmem:[%s4042_s23 + $0x10] sm:$0xff]   ;;  %v3811_v41 = vld [vmem:[%s4042_s23 + $0x8] sm:$0xff]  }
 0x886   : > { %v1896_v32 = vsel %vm1326_vm6, %v1880_v45, %v3787_v43  ;;  %v2923_v30 = vsel %vm1326_vm6, %v2907_v42, %v3788_v13  ;;  %v3523_v42 = vld [vmem:[%s4584_s0] ss:$0 sm:$0xff] }
 0x887   : > { %v3796_v36 = vpop.permute.xlu0 %3795  ;;  %v1898_v14 = vsel %vm1897_vm8, %v1896_v32, %v3792_v44  ;;  %v2924_v31 = vsel %vm1897_vm8, %v2923_v30, %v3793_v25  ;;  %v3812_v13 = vld [vmem:[%s4042_s23] sm:$0xff]  }
 0x888   : > { %v3798_v37 = vunpack.i.h.bf16 %v3796_v36  ;;  %v3797_v46 = vunpack.i.l.bf16 %v3796_v36  ;;  %v3524_v43 = vld [vmem:[%s708_s6] ss:$0 sm:$0xff] }
 0x88a   : > { %v1900_v50 = vsel %vm1899_vm9, %v1898_v14, %v3797_v46  ;;  %v2925_v51 = vsel %vm1899_vm9, %v2924_v31, %v3798_v37 }
 0x88b   : > { %v2930_v55 = vpack.c.bf16 %v2925_v51, %v1900_v50 }
 0x88d   : > { %3715 = vmatmul.mubr.msk.bf16.vlgmr.msra.gmra.mxu1 %vm827_vm5, %v2930_v55 }
 0x88e   : > { %3742 = vmatprep.mubr.msk.bf16.mxu1 %vm3882_vm4, %v3881_v18  ;;  %3727 = vmatpush3.bf16.msra.mxu1 %v3805_v12 }
 0x88f   : > { %3728 = vmatprep.subr.bf16.mxu1 %v3881_v18 }
 0x892   : > { %3729 = vmatpush3.bf16.msra.mxu1 %v3806_v53  ;;  %v3538_v53 = vld [vmem:[%s722_s1] ss:$0 sm:$0xff] }
 0x893   : > { %3730 = vmatprep.subr.bf16.mxu1 %v3881_v18 }
 0x896   : > { %3731 = vmatpush3.bf16.msra.mxu1 %v3807_v56 }
 0x897   : > { %3732 = vmatprep.subr.bf16.mxu1 %v3881_v18 }
 0x89a   : > { %3733 = vmatpush3.bf16.msra.mxu1 %v3808_v47 }
 0x89b   : > { %3734 = vmatprep.subr.bf16.mxu1 %v3881_v18 }
 0x89e   : > { %3735 = vmatpush3.bf16.msra.mxu1 %v3809_v15 }
 0x89f   : > { %3736 = vmatprep.subr.bf16.mxu1 %v3881_v18 }
 0x8a2   : > { %3737 = vmatpush3.bf16.msra.mxu1 %v3810_v40 }
 0x8a3   : > { %3738 = vmatprep.subr.bf16.mxu1 %v3881_v18 }
 0x8a6   : > { %3739 = vmatpush3.bf16.msra.mxu1 %v3811_v41 }
 0x8a7   : > { %3740 = vmatprep.subr.bf16.mxu1 %v3881_v18  ;;  %v3528_v18 = vld [vmem:[%s716_s27] ss:$0 sm:$0xff] }
 0x8aa   : > { %3741 = vmatpush3.bf16.msra.mxu1 %v3812_v13 }
 0x94d   : > { %v2987_v39 = vpop.f32.mrf.mxu1 }
 0x94e   : > { %v2988_v45 = vadd.f32 %v3518_v38, %v2987_v39 }
 0x94f   : > { %v3716_v57 = vpop.f32.mrf.mxu1 }
 0x950   : > { %v2994_v59 = vadd.f32 %v3853_v58, %v2988_v45 }
 0x951   : > { %v2990_v60 = vpop.f32.mrf.mxu1 }
 0x952   : > { %v2991_v61 = vadd.f32 %v3518_v38, %v2990_v60  ;;  %v2998_v62 = vsel %vm827_vm5, %v2994_v59, 0.0 }
 0x953   : > { %2999 = vadd.xlane.f32.xlu1 %v2998_v62  ;;  %v3717_v63 = vpop.f32.mrf.mxu1 }
 0x954   : > { %v2995_v0 = vadd.f32 %v3854_v48, %v2991_v61 }
 0x956   : > { %v3001_v1 = vsel %vm827_vm5, %v2995_v0, 0.0 }
 0x957   : > { %3002 = vadd.xlane.f32.xlu0 %v3001_v1 }
 0x9dc   : > { %v3000_v2 = vpop.xlane.xlu1 %2999 }
 0x9dd   : > { %v3005_v3 = vmul.f32 0.03125, %v3000_v2 }
 0x9df   : > { %v3007_v4 = vsub.f32 %v2994_v59, %v3005_v3 }
 0x9e0   : > { %v3003_v49 = vpop.xlane.xlu0 %3002 }
 0x9e1   : > { %v3006_v5 = vmul.f32 0.03125, %v3003_v49  ;;  %v3009_v7 = vmul.f32 %v3007_v4, %v3007_v4 }
 0x9e3   : > { %v3008_v8 = vsub.f32 %v2995_v0, %v3006_v5  ;;  %v3011_v28 = vsel %vm827_vm5, %v3009_v7, 0.0 }
 0x9e4   : > { %3012 = vadd.xlane.f32.xlu0 %v3011_v28 }
 0x9e5   : > { %v3010_v9 = vmul.f32 %v3008_v8, %v3008_v8 }
 0x9e7   : > { %v3014_v10 = vsel %vm827_vm5, %v3010_v9, 0.0 }
 0x9e8   : > { %3015 = vadd.xlane.f32.xlu1 %v3014_v10 }
 0xa6d   : > { %v3013_v16 = vpop.xlane.xlu0 %3012 }
 0xa6e   : > { %v3017_v17 = vmul.f32 0.03125, %v3013_v16 }
 0xa70   : > { %v3019_v19 = vadd.f32 1e-05, %v3017_v17 }
 0xa71   : > { %v3016_v6 = vpop.xlane.xlu1 %3015 }
 0xa72   : > { %3845 = vrsqrt.f32 %v3019_v19  ;;  %v3018_v54 = vmul.f32 0.03125, %v3016_v6 }
 0xa74   : > { %v3020_v20 = vadd.f32 1e-05, %v3018_v54 }
 0xa76   : > { %3847 = vrsqrt.f32 %v3020_v20 }
 0xa7f   : > { %v3846_v22 = vpop.eup %3845 }
 0xa80   : > { %v3023_v23 = vmul.f32 %v3846_v22, %v3007_v4 }
 0xa82   : > { %v3031_v29 = vmul.f32 %v3522_v24, %v3023_v23 }
 0xa83   : > { %v3848_v26 = vpop.eup %3847 }
 0xa84   : > { %v3024_v27 = vmul.f32 %v3848_v26, %v3008_v8  ;;  %v3039_v34 = vadd.f32 %v3523_v42, %v3031_v29 }
 0xa86   : > { %v3032_v33 = vmul.f32 %v3522_v24, %v3024_v27 }
 0xa88   : > { %v3040_v35 = vadd.f32 %v3523_v42, %v3032_v33 }
 0xa8a   : > { %v3045_v52 = vpack.c.bf16 %v3040_v35, %v3039_v34 }
 0xa8c   : > { %3723 = vmatmul.mubr.msk.bf16.vlgmr.msra.gmra.mxu0 %vm827_vm5, %v3045_v52 }
 0xb4c   : > { %v3102_v25 = vpop.f32.mrf.mxu0 }
 0xb4d   : > { %v3103_v32 = vadd.f32 %v3524_v43, %v3102_v25 }
 0xb4e   : > { %v3724_v44 = vpop.f32.mrf.mxu0 }
 0xb4f   : > { %v3109_v46 = vmax.f32 %v3103_v32, 0.0 }
 0xb50   : > { %v3105_v30 = vpop.f32.mrf.mxu0 }
 0xb51   : > { %v3106_v36 = vadd.f32 %v3524_v43, %v3105_v30 }
 0xb52   : > { %v3725_v37 = vpop.f32.mrf.mxu0 }
 0xb53   : > { %v3110_v14 = vmax.f32 %v3106_v36, 0.0 }
 0xb55   : > { %v3127_v31 = vpack.c.bf16 %v3110_v14, %v3109_v46 }
 0xb57   : > { %3743 = vmatmul.mubr.bf16.vlgmr.msra.gmra.mxu1 %v3127_v31 }
 0xc17   : > { %v3217_v50 = vpop.f32.mrf.mxu1 }
 0xc18   : > { %v3218_v51 = vadd.f32 %v3528_v18, %v3217_v50 }
 0xc19   : > { %v3744_v55 = vpop.f32.mrf.mxu1 }
 0xc1a   : > { %v3224_v38 = vadd.f32 %v3218_v51, %v3039_v34 }
 0xc1b   : > { %v3220_v39 = vpop.f32.mrf.mxu1 }
 0xc1c   : > { %v3221_v45 = vadd.f32 %v3528_v18, %v3220_v39  ;;  %v3228_v57 = vsel %vm827_vm5, %v3224_v38, 0.0 }
 0xc1d   : > { %3229 = vadd.xlane.f32.xlu0 %v3228_v57  ;;  %v3745_v58 = vpop.f32.mrf.mxu1 }
 0xc1e   : > { %v3225_v59 = vadd.f32 %v3221_v45, %v3040_v35 }
 0xc20   : > { %v3231_v60 = vsel %vm827_vm5, %v3225_v59, 0.0 }
 0xc21   : > { %3232 = vadd.xlane.f32.xlu1 %v3231_v60 }
 0xca6   : > { %v3230_v61 = vpop.xlane.xlu0 %3229 }
 0xca7   : > { %v3234_v62 = vmul.f32 0.03125, %v3230_v61 }
 0xca9   : > { %v3236_v63 = vsub.f32 %v3224_v38, %v3234_v62 }
 0xcaa   : > { %v3233_v48 = vpop.xlane.xlu1 %3232 }
 0xcab   : > { %v3235_v0 = vmul.f32 0.03125, %v3233_v48  ;;  %v3238_v1 = vmul.f32 %v3236_v63, %v3236_v63 }
 0xcad   : > { %v3237_v2 = vsub.f32 %v3225_v59, %v3235_v0  ;;  %v3240_v3 = vsel %vm827_vm5, %v3238_v1, 0.0 }
 0xcae   : > { %3241 = vadd.xlane.f32.xlu0 %v3240_v3 }
 0xcaf   : > { %v3239_v4 = vmul.f32 %v3237_v2, %v3237_v2 }
 0xcb1   : > { %v3243_v49 = vsel %vm827_vm5, %v3239_v4, 0.0 }
 0xcb2   : > { %3244 = vadd.xlane.f32.xlu1 %v3243_v49 }
 0xd37   : > { %v3242_v5 = vpop.xlane.xlu0 %3241 }
 0xd38   : > { %v3246_v7 = vmul.f32 0.03125, %v3242_v5 }
 0xd3a   : > { %v3248_v8 = vadd.f32 1e-05, %v3246_v7 }
 0xd3b   : > { %v3245_v28 = vpop.xlane.xlu1 %3244 }
 0xd3c   : > { %3849 = vrsqrt.f32 %v3248_v8  ;;  %v3247_v9 = vmul.f32 0.03125, %v3245_v28 }
 0xd3e   : > { %v3249_v10 = vadd.f32 1e-05, %v3247_v9 }
 0xd40   : > { %3851 = vrsqrt.f32 %v3249_v10 }
 0xd49   : > { %v3850_v21 = vpop.eup %3849 }
 0xd4a   : > { %v3252_v12 = vmul.f32 %v3850_v21, %v3236_v63 }
 0xd4c   : > { %v3260_v56 = vmul.f32 %v3537_v11, %v3252_v12 }
 0xd4d   : > { %v3852_v47 = vpop.eup %3851 }
 0xd4e   : > { %v3268_v15 = vadd.f32 %v3538_v53, %v3260_v56  ;;  %v3253_v16 = vmul.f32 %v3852_v47, %v3237_v2 }
 0xd50   : > { %3270 = vst.msk [vmem:[#allocation2] sm:$0xff] %vm827_vm5, %v3268_v15  ;;  %v3261_v17 = vmul.f32 %v3537_v11, %v3253_v16  ;;  %3275 = sbr.rel (%p3539_p6) target bundleno = 3416 (0xd58), region = 92 }
 0xd52   : > { %v3269_v19 = vadd.f32 %v3538_v53, %v3261_v17 }
 0xd54   : > { %3271 = vst.msk [vmem:[#allocation2 + $0x8] sm:$0xff] %vm827_vm5, %v3269_v19 }
 0xd55   : > { %v3276_v6 = vpack.c.bf16 %v3268_v15, %v3268_v15  ;;  %vm3278_vm10 = vcmask 257024   ;;  %v3277_v54 = vpack.c.bf16 %v3269_v19, %v3269_v19 }
 0xd57   : > { %3279 = vst.msk [vmem:[%s4585_s25] sm:$0xf] %vm3278_vm10, %v3276_v6  ;;  %3280 = vst.msk [vmem:[%s4585_s25 + $0x4] sm:$0xf] %vm3278_vm10, %v3277_v54 }
 0xd58 PF: > { %s4586_s3 = sld [smem:[#allocation4_spill]] }
 0xd59   : > { %s4587_s21 = sld [smem:[#allocation3_spill]] }
 0xd5a   : > { %s4588_s22 = sld [smem:[#allocation5_spill]] }
 0xd5e   : > { %s26_s23 = sadd.s32 1, %s4586_s3  }
 0xd5f   : > { %p23_p7 = scmp.ge.s32.totalorder %s26_s23, 4  }
 0xd61   :  { %25 = sbr.rel (!%p23_p7) target bundleno = 7 (0x7), region = 158 }

// kernel: _lambda_.4
= control target key start
LH: loop header
LB: loop body
LE: loop exit
PB: predicated region body
PF: predicated region fallthrough
CT: control target
= control target key end

     0   :  { %s5500_s21 = smov 0   ;;  %s5502_s22 = smov 0   ;;  %s6446_s0 = inlined_call_operand.vmem [shape: f32[2,16,4], index: 0, kind: input, shape index: {}]   ;;  %s6447_s1 = inlined_call_operand.vmem [shape: bf16[16,32], index: 1, kind: input, shape index: {}]   ;;  %s6448_s2 = inlined_call_operand.vmem [shape: bf16[4,32], index: 2, kind: input, shape index: {}]   ;;  %s6449_s3 = inlined_call_operand.vmem [shape: f32[1,32], index: 3, kind: input, shape index: {}]   ;;  %s6450_s4 = inlined_call_operand.vmem [shape: bf16[2,32,96], index: 4, kind: input, shape index: {}]   ;;  %s6451_s5 = inlined_call_operand.vmem [shape: f32[2,1,96], index: 5, kind: input, shape index: {}]   ;;  %s6452_s6 = inlined_call_operand.vmem [shape: bf16[2,32,32], index: 6, kind: input, shape index: {}]   ;;  %s6453_s7 = inlined_call_operand.vmem [shape: f32[2,1,32], index: 7, kind: input, shape index: {}]   ;;  %s6454_s8 = inlined_call_operand.vmem [shape: f32[2,1,32], index: 8, kind: input, shape index: {}]   ;;  %s6455_s9 = inlined_call_operand.vmem [shape: f32[2,1,32], index: 9, kind: input, shape index: {}]   ;;  %s6456_s10 = inlined_call_operand.vmem [shape: bf16[2,32,128], index: 10, kind: input, shape index: {}]   ;;  %s6457_s11 = inlined_call_operand.vmem [shape: f32[2,1,128], index: 11, kind: input, shape index: {}]   ;;  %s6458_s12 = inlined_call_operand.vmem [shape: bf16[2,128,32], index: 12, kind: input, shape index: {}]   ;;  %s6459_s13 = inlined_call_operand.vmem [shape: f32[2,1,32], index: 13, kind: input, shape index: {}]   ;;  %s6460_s14 = inlined_call_operand.vmem [shape: f32[2,1,32], index: 14, kind: input, shape index: {}]   ;;  %s6461_s15 = inlined_call_operand.vmem [shape: f32[2,1,32], index: 15, kind: input, shape index: {}]   ;;  %s6462_s16 = inlined_call_operand.vmem [shape: bf16[2,16,32], index: 16, kind: output, shape index: {}]  }
   0x1   :  { %6468 = sst [smem:[#allocation7_spill]] %s6446_s0  ;;  %s5504_s23 = smov 0  }
   0x2   :  { %6469 = sst [smem:[#allocation8_spill]] %s6447_s1 }
   0x3   :  { %6470 = sst [smem:[#allocation9_spill]] %s6449_s3 }
   0x4   :  { %6471 = sst [smem:[#allocation10_spill]] %s6450_s4 }
   0x5   :  { %6472 = sst [smem:[#allocation11_spill]] %s6452_s6 }
   0x6   :  { %6473 = sst [smem:[#allocation12_spill]] %s6462_s16 }
   0x7 LB: > { %6474 = sst [smem:[#allocation3_spill]] %s5397_s22  ;;  %s35_s24 = sadd.s32 1, %s5397_s22  ;;  %s5401_s23 = sphi %s5504_s23, %s26_s23   ;;  %s5397_s22 = sphi %s5502_s22, %s6491_s22   ;;  %s5393_s21 = sphi %s5500_s21, %s6490_s21  }
   0x8   : > { %6475 = sst [smem:[#allocation4_spill]] %s5401_s23  ;;  %p4901_p0 = scmp.ge.s32.totalorder %s5401_s23, 1 }
   0x9   : > { %p36_p1 = scmp.ge.s32.totalorder %s35_s24, 2  ;;  %p580_p2 = scmp.lt.s32.totalorder %s5401_s23, 3 }
   0xb   : > { %s6493_s24 = smov (%p36_p1, %s35_s24), 0  ;;  %p581_p3 = pnand %p4901_p0, %p580_p2 }
   0xc   : > { %6476 = sst [smem:[#allocation5_spill]] %s6493_s24 }
   0xd   : > { %584 = sbr.rel (%p581_p3) target bundleno = 3462 (0xd86), region = 84 }
  0x12   : > { %p683_p4 = scmp.lt.s32.totalorder %s5393_s21, 1  ;;  %s6477_s4 = sld [smem:[#allocation10_spill]] }
  0x13   : > { %s6478_s6 = sld [smem:[#allocation11_spill]]  ;;  %p4910_p5 = scmp.ne.s32.totalorder %s5393_s21, 0 }
  0x14   : > { %s5522_s25 = scalar_select %p683_p4, %s5393_s21, 1 }
  0x15   : > { %s6480_s24 = sld [smem:[#allocation7_spill]] (!%p4910_p5) }
  0x16   : > { %s4999_s26 = sshll.u32 %s5522_s25, 4  ;;  %s720_s27 = scalar_lea.vmem %s6459_s13, %s5522_s25 }
  0x17   : > { %s723_s30 = scalar_lea.vmem %s6460_s14, %s5522_s25  ;;  %s726_s1 = scalar_lea.vmem %s6461_s15, %s5522_s25 }
  0x18   : > { %s5532_s17 = scalar_lea.vmem %s6477_s4, %s4999_s26  ;;  %s5554_s4 = scalar_lea.vmem %s6456_s10, %s4999_s26 }
  0x19   : > { %s5537_s20 = scalar_lea.vmem %s6478_s6, %s4999_s26  ;;  %s712_s6 = scalar_lea.vmem %s6457_s11, %s5522_s25 }
  0x1a   : > { %6479 = sst [smem:[#allocation6_spill]] %s5537_s20  ;;  %s5002_s20 = sshll.u32 %s5522_s25, 6 }
  0x1b   : > { %s5564_s23 = scalar_lea.vmem %s6458_s12, %s5002_s20  ;;  %738 = sbr.rel (%p4910_p5) target bundleno = 241 (0xf1), region = 88 }
  0x1c   : > { %s6481_s20 = sld [smem:[#allocation8_spill]] (!%p4910_p5) }
  0x1d   : > { %s6482_s16 = sld [smem:[#allocation9_spill]] (!%p4910_p5) }
  0x20   : > { %v743_v0 = vld [vmem:[%s6448_s2] sm:$0x3]  ;;  %vm760_vm0 = vcmask 1041408   ;;  %v740_v2 = vld [vmem:[%s6480_s24 + $0x8] sm:$0xff]  ;;  %vm753_vm1 = vcmask 31744   ;;  %v741_v5 = vld [vmem:[%s6480_s24 + $0x10] sm:$0xff] }
  0x21   : > { %v739_v1 = vld [vmem:[%s6480_s24] sm:$0xff]  ;;  %5214 = vmatprep.subr.msk.bf16.mxu0 %vm760_vm0, %v743_v0  ;;  %v762_v3 = vsel %vm760_vm0, %v743_v0, 0  ;;  %v742_v6 = vld [vmem:[%s6480_s24 + $0x18] sm:$0xff]  ;;  %vm821_vm2 = vcmask 261120  }
  0x22   : > { %v744_v4 = vpack.c.bf16 %v740_v2, %v739_v1  ;;  %5069 = vmatpush3.bf16.msra.mxu0 %v762_v3  ;;  %v745_v7 = vpack.c.bf16 %v742_v6, %v741_v5  ;;  %v5008_v8 = vld [vmem:[%s6481_s20] sm:$0xff]  }
  0x23   : > { %v4911_v9 = vld [vmem:[%s6482_s16] ss:$0 sm:$0xff]  ;;  %v5009_v10 = vunpack.c.l.bf16 %v5008_v8  ;;  %v5010_v16 = vunpack.c.h.bf16 %v5008_v8 }
  0x24   : > { %5070 = vmatprep.mubr.msk.bf16.mxu0 %vm753_vm1, %v744_v4 }
  0x25   : > { %5071 = vmatmul.mubr.msk.bf16.vlgmr.msra.gmra.mxu0 %vm753_vm1, %v745_v7 }
  0xe5   : > { %v5072_v11 = vpop.f32.mrf.mxu0 }
  0xe6   : > { %v807_v12 = vadd.f32 %v5072_v11, %v4911_v9 }
  0xe7   : > { %v798_v13 = vpop.f32.mrf.mxu0 }
  0xe8   : > { %v819_v14 = vadd.f32 %v5009_v10, %v807_v12  ;;  %v799_v15 = vadd.f32 %v4911_v9, %v798_v13 }
  0xe9   : > { %v5073_v17 = vpop.f32.mrf.mxu0 }
  0xea   : > { %824 = vst.msk [vmem:[#allocation2 + $0x10] sm:$0xff] %vm821_vm2, %v819_v14  ;;  %v817_v18 = vadd.f32 %v5009_v10, %v799_v15  ;;  %v810_v19 = vadd.f32 %v5073_v17, %v4911_v9 }
  0xeb   : > { %v801_v20 = vpop.f32.mrf.mxu0 }
  0xec   : > { %822 = vst.msk [vmem:[#allocation2] sm:$0xff] %vm821_vm2, %v817_v18  ;;  %v820_v21 = vadd.f32 %v5010_v16, %v810_v19  ;;  %v802_v22 = vadd.f32 %v4911_v9, %v801_v20 }
  0xee   : > { %825 = vst.msk [vmem:[#allocation2 + $0x18] sm:$0xff] %vm821_vm2, %v820_v21  ;;  %v818_v23 = vadd.f32 %v5010_v16, %v802_v22 }
  0xf0   : > { %823 = vst.msk [vmem:[#allocation2 + $0x8] sm:$0xff] %vm821_vm2, %v818_v23 }
  0xf1 PF: > { %v5281_v24 = vld [vmem:[%s5532_s17 + $0x8] sm:$0xff]   ;;  %v5282_v25 = vld [vmem:[%s5532_s17] sm:$0xff]   ;;  %vm855_vm3 = vcmask 261120   ;;  %v828_v28 = vld [vmem:[#allocation2 + $0x10] sm:$0xff]  ;;  %s6483_s26 = scalar_lea.vmem %s6451_s5, %s5522_s25  ;;  %s5403_s17 = smov 112   ;;  %v936_v43 = vlaneseq  ;;  %vm5411_vm4 = vmmov 0  }
  0xf2   : > { %5074 = vmatprep.subr.bf16.mxu0 %v5281_v24  ;;  %v4914_v32 = vld [vmem:[%s6483_s26] ss:$0 sm:$0xff]  ;;  %s5404_s0 = smov 120   ;;  %s5405_s18 = smov 104   ;;  %v5407_v41 = vmov 1983009808  }
  0xf3   : > { %v826_v26 = vld [vmem:[#allocation2] sm:$0xff]  ;;  %5075 = vmatpush3.bf16.msra.mxu0 %v5281_v24  ;;  %s5406_s19 = smov 96   ;;  %v934_v42 = vunpack.c.l.s4 %v5407_v41  ;;  %v5408_v46 = vmov 1934713408   ;;  %v937_v49 = vshrl.u32 %v936_v43, 7  ;;  %s5409_s20 = smov 64  }
  0xf4   : > { %5076 = vmatprep.subr.bf16.mxu0 %v5282_v25  ;;  %v966_v47 = vunpack.c.l.s4 %v5408_v46  ;;  %vm1807_vm5 = vcmask 64512   ;;  %vm2004_vm6 = vcmask 130048   ;;  %s5412_s22 = smov 16   ;;  %s5413_s3 = smov 8   ;;  %vm2573_vm7 = vcmask 195584  }
  0xf5   : > { %v829_v30 = vld [vmem:[#allocation2 + $0x18] sm:$0xff]  ;;  %v935_v48 = vunpack.c.0.s8 %v934_v42  ;;  %s5414_s16 = smov 24   ;;  %s6484_s29 = sld [smem:[#allocation6_spill]] }
  0xf6   : > { %v835_v31 = vpack.c.bf16 %v829_v30, %v828_v28  ;;  %v967_v54 = vunpack.c.0.s8 %v966_v47  ;;  %p4990_p6 = scmp.ne.s32.totalorder %s5393_s21, 1 }
  0xf7   : > { %v827_v27 = vld [vmem:[#allocation2 + $0x8] sm:$0xff]  ;;  %5077 = vmatpush3.bf16.msra.mxu0 %v5282_v25  ;;  %v5651_v55 = vsub.s32 %v935_v48, %v937_v49 }
  0xf8   : > { %v834_v29 = vpack.c.bf16 %v827_v27, %v826_v26  ;;  %v5673_v2 = vsub.s32 %v967_v54, %v937_v49 }
  0xfa   : > { %5078 = vmatprep.mubr.msk.bf16.mxu0 %vm855_vm3, %v834_v29 }
  0xfb   : > { %5079 = vmatmul.mubr.msk.bf16.vlgmr.msra.gmra.mxu0 %vm855_vm3, %v835_v31 }
 0x1bb   : > { %v5080_v33 = vpop.f32.mrf.mxu0 }
 0x1bc   : > { %v5609_v34 = vadd.f32 %v5080_v33, %v4914_v32 }
 0x1bd   : > { %v896_v35 = vpop.f32.mrf.mxu0 }
 0x1be   : > { %v5611_v36 = vadd.f32 %v4914_v32, %v896_v35 }
 0x1bf   : > { %v5081_v37 = vpop.f32.mrf.mxu0 }
 0x1c0   : > { %v5613_v38 = vadd.f32 %v5081_v37, %v4914_v32  ;;  %919 = vrot.lane.b32.xlu1 %v5611_v36, %s5403_s17  ;;  %913 = vrot.lane.b32.xlu0 %v5611_v36, %s5404_s0 }
 0x1c1   : > { %v899_v39 = vpop.f32.mrf.mxu0 }
 0x1c2   : > { %v5619_v40 = vadd.f32 %v4914_v32, %v899_v39 }
 0x1c4   : > { %921 = vrot.lane.b32.xlu1 %v5619_v40, %s5403_s17  ;;  %915 = vrot.lane.b32.xlu0 %v5619_v40, %s5404_s0 }
 0x1c8   : > { %927 = vrot.lane.b32.xlu1 %v5619_v40, %s5405_s18  ;;  %925 = vrot.lane.b32.xlu0 %v5611_v36, %s5405_s18 }
 0x1cc   : > { %1209 = vrot.lane.b32.xlu1 %v5619_v40, %s5406_s19  ;;  %1207 = vrot.lane.b32.xlu0 %v5611_v36, %s5406_s19 }
 0x232   : > { %v5633_v44 = vpop.permute.xlu1 %919  ;;  %v5635_v45 = vpop.permute.xlu0 %913 }
 0x233   : > { %1211 = vrot.lane.b32.xlu0 %v5635_v45, %s5406_s19  ;;  %v931_v56 = vcombine.low %v5611_v36, %v5633_v44  ;;  %v932_v57 = vcombine.high %v5611_v36, %v5633_v44 }
 0x235   : > { %v939_v7 = vrot.slane %v931_v56, %v5651_v55  ;;  %v946_v8 = vrot.slane %v932_v57, %v5651_v55 }
 0x236   : > { %v5639_v50 = vpop.permute.xlu1 %921  ;;  %v5641_v51 = vpop.permute.xlu0 %915 }
 0x237   : > { %1215 = vrot.lane.b32.xlu0 %v5633_v44, %s5406_s19  ;;  %1213 = vrot.lane.b32.xlu1 %v5641_v51, %s5406_s19  ;;  %v999_v52 = vcombine.low %v5619_v40, %v5639_v50  ;;  %v1000_v53 = vcombine.high %v5619_v40, %v5639_v50 }
 0x239   : > { %v1007_v0 = vrot.slane %v999_v52, %v5651_v55  ;;  %v1014_v1 = vrot.slane %v1000_v53, %v5651_v55 }
 0x23a   : > { %v5657_v58 = vpop.permute.xlu1 %927  ;;  %v5659_v59 = vpop.permute.xlu0 %925 }
 0x23b   : > { %v1015_v60 = vcombine.low %v5641_v51, %v5657_v58  ;;  %v1016_v61 = vcombine.high %v5641_v51, %v5657_v58  ;;  %v947_v62 = vcombine.low %v5635_v45, %v5659_v59  ;;  %v948_v63 = vcombine.high %v5635_v45, %v5659_v59  ;;  %1217 = vrot.lane.b32.xlu1 %v5639_v50, %s5406_s19 }
 0x23c   : > { %1219 = vrot.lane.b32.xlu0 %v5659_v59, %s5406_s19 }
 0x23d   : > { %v1023_v3 = vrot.slane %v1015_v60, %v5651_v55  ;;  %v1030_v4 = vrot.slane %v1016_v61, %v5651_v55  ;;  %v955_v5 = vrot.slane %v947_v62, %v5651_v55  ;;  %v962_v6 = vrot.slane %v948_v63, %v5651_v55 }
 0x23f   : > { %v1031_v9 = vcombine.low %v1007_v0, %v1023_v3  ;;  %v1032_v10 = vcombine.high %v1007_v0, %v1023_v3  ;;  %v1047_v11 = vcombine.low %v1014_v1, %v1030_v4  ;;  %v1048_v12 = vcombine.high %v1014_v1, %v1030_v4  ;;  %1221 = vrot.lane.b32.xlu1 %v5657_v58, %s5406_s19 }
 0x240   : > { %v963_v13 = vcombine.low %v939_v7, %v955_v5  ;;  %v964_v14 = vcombine.high %v939_v7, %v955_v5  ;;  %v979_v15 = vcombine.low %v946_v8, %v962_v6  ;;  %v980_v16 = vcombine.high %v946_v8, %v962_v6  ;;  %2580 = vrot.lane.b32.xlu0 %v5613_v38, %s5404_s0 }
 0x241   : > { %v1039_v17 = vrot.slane %v1031_v9, %v5673_v2  ;;  %v1046_v18 = vrot.slane %v1032_v10, %v5673_v2  ;;  %v1055_v19 = vrot.slane %v1047_v11, %v5673_v2  ;;  %v1062_v20 = vrot.slane %v1048_v12, %v5673_v2 }
 0x242   : > { %v971_v21 = vrot.slane %v963_v13, %v5673_v2  ;;  %v978_v22 = vrot.slane %v964_v14, %v5673_v2  ;;  %v987_v23 = vrot.slane %v979_v15, %v5673_v2  ;;  %v994_v24 = vrot.slane %v980_v16, %v5673_v2 }
 0x243   : > { %v1135_v25 = vcombine.low %v1039_v17, %v1046_v18  ;;  %v4921_v26 = vcombine.high %v1039_v17, %v1046_v18  ;;  %v1151_v27 = vcombine.low %v1055_v19, %v1062_v20  ;;  %v4922_v28 = vcombine.high %v1055_v19, %v1062_v20  ;;  %2578 = vrot.lane.b32.xlu1 %v5609_v34, %s5404_s0 }
 0x244   : > { %v1067_v29 = vcombine.low %v971_v21, %v978_v22  ;;  %v4919_v30 = vcombine.high %v971_v21, %v978_v22  ;;  %v1083_v31 = vcombine.low %v987_v23, %v994_v24  ;;  %v4920_v32 = vcombine.high %v987_v23, %v994_v24  ;;  %2590 = vrot.lane.b32.xlu0 %v5609_v34, %s5405_s18 }
 0x245   : > { %v1142_v33 = vrot.slane %v1135_v25, %v5651_v55  ;;  %v1150_v35 = vrot.slane %v4921_v26, %v5651_v55  ;;  %v1158_v37 = vrot.slane %v1151_v27, %v5651_v55  ;;  %v1166_v39 = vrot.slane %v4922_v28, %v5651_v55 }
 0x246   : > { %v1074_v41 = vrot.slane %v1067_v29, %v5651_v55  ;;  %v1082_v42 = vrot.slane %v4919_v30, %v5651_v55  ;;  %v1090_v43 = vrot.slane %v1083_v31, %v5651_v55  ;;  %v1098_v46 = vrot.slane %v4920_v32, %v5651_v55 }
 0x247   : > { %v1167_v47 = vcombine.low %v1142_v33, %v1150_v35  ;;  %v1183_v48 = vcombine.low %v1158_v37, %v1166_v39  ;;  %2584 = vrot.lane.b32.xlu1 %v5609_v34, %s5403_s17  ;;  %v1168_v49 = vcombine.high %v1142_v33, %v1150_v35  ;;  %v1184_v52 = vcombine.high %v1158_v37, %v1166_v39 }
 0x248   : > { %v1099_v53 = vcombine.low %v1074_v41, %v1082_v42  ;;  %v1115_v54 = vcombine.low %v1090_v43, %v1098_v46  ;;  %1509 = vrot.lane.b32.xlu0 %v5619_v40, %s5409_s20  ;;  %v1100_v56 = vcombine.high %v1074_v41, %v1082_v42  ;;  %v1116_v57 = vcombine.high %v1090_v43, %v1098_v46 }
 0x249   : > { %v1175_v60 = vrot.slane %v1167_v47, %v5673_v2  ;;  %v1191_v61 = vrot.slane %v1183_v48, %v5673_v2  ;;  %v1182_v62 = vrot.slane %v1168_v49, %v5673_v2  ;;  %v1198_v63 = vrot.slane %v1184_v52, %v5673_v2 }
 0x24a   : > { %v1107_v0 = vrot.slane %v1099_v53, %v5673_v2  ;;  %v1123_v1 = vrot.slane %v1115_v54, %v5673_v2  ;;  %v1114_v3 = vrot.slane %v1100_v56, %v5673_v2  ;;  %v5410_v40 = vmov 0.0  }
 0x24b   : > { %2586 = vrot.lane.b32.xlu1 %v5613_v38, %s5403_s17  ;;  %5082 = vmatprep.subr.bf16.mxu0 %v5410_v40  ;;  %v1199_v4 = vcombine.low %v1175_v60, %v1191_v61  ;;  %v1130_v5 = vrot.slane %v1116_v57, %v5673_v2  ;;  %v1201_v6 = vcombine.low %v1182_v62, %v1198_v63  ;;  %s6485_s17 = scalar_lea.vmem %s6453_s7, %s5522_s25 }
 0x24c   : > { %1515 = vrot.lane.b32.xlu0 %v5633_v44, %s5409_s20  ;;  %5094 = vmatprep.subr.bf16.mxu1 %v5410_v40  ;;  %v1131_v7 = vcombine.low %v1107_v0, %v1123_v1  ;;  %v1202_v8 = vcombine.high %v1182_v62, %v1198_v63  ;;  %v1132_v9 = vcombine.high %v1107_v0, %v1123_v1  ;;  %v1210_v44 = vpop.permute.xlu1 %1209 }
 0x24d   : > { %v1133_v10 = vcombine.low %v1114_v3, %v1130_v5  ;;  %v1134_v11 = vcombine.high %v1114_v3, %v1130_v5  ;;  %v1200_v12 = vcombine.high %v1175_v60, %v1191_v61  ;;  %5084 = vmatprep.mubr.msk.bf16.mxu0 %vm5411_vm4, %v5410_v40  ;;  %5096 = vmatprep.mubr.msk.bf16.mxu1 %vm5411_vm4, %v5410_v40 }
 0x24e   : > { %v5725_v13 = vpack.c.bf16 %v1199_v4, %v1131_v7 }
 0x24f   : > { %2592 = vrot.lane.b32.xlu1 %v5613_v38, %s5405_s18  ;;  %v5729_v14 = vpack.c.bf16 %v1201_v6, %v1133_v10  ;;  %v5731_v15 = vpack.c.bf16 %v1200_v12, %v1132_v9  ;;  %v5733_v16 = vpack.c.bf16 %v1202_v8, %v1134_v11  ;;  %s6486_s18 = scalar_lea.vmem %s6454_s8, %s5522_s25 }
 0x250   : > { %1519 = vrot.lane.b32.xlu0 %v5659_v59, %s5409_s20 }
 0x253   : > { %1507 = vrot.lane.b32.xlu1 %v5611_v36, %s5409_s20  ;;  %v1208_v36 = vpop.permute.xlu0 %1207 }
 0x257   : > { %1511 = vrot.lane.b32.xlu1 %v5635_v45, %s5409_s20 }
 0x25b   : > { %1513 = vrot.lane.b32.xlu1 %v5641_v51, %s5409_s20 }
 0x25f   : > { %1517 = vrot.lane.b32.xlu1 %v5639_v50, %s5409_s20 }
 0x263   : > { %1521 = vrot.lane.b32.xlu1 %v5657_v58, %s5409_s20 }
 0x2a5   : > { %v1212_v59 = vpop.permute.xlu0 %1211 }
 0x2a9   : > { %v1214_v45 = vpop.permute.xlu1 %1213  ;;  %v1216_v17 = vpop.permute.xlu0 %1215 }
 0x2aa   : > { %v1231_v18 = vcombine.low %v1208_v36, %v1216_v17  ;;  %v1232_v51 = vcombine.high %v1208_v36, %v1216_v17 }
 0x2ac   : > { %v1239_v25 = vrot.slane %v1231_v18, %v5651_v55  ;;  %v1246_v50 = vrot.slane %v1232_v51, %v5651_v55 }
 0x2ad   : > { %v1218_v19 = vpop.permute.xlu1 %1217 }
 0x2ae   : > { %v1220_v20 = vpop.permute.xlu0 %1219  ;;  %v1299_v23 = vcombine.low %v1210_v44, %v1218_v19  ;;  %v1300_v24 = vcombine.high %v1210_v44, %v1218_v19 }
 0x2af   : > { %v1247_v21 = vcombine.low %v1212_v59, %v1220_v20  ;;  %v1248_v22 = vcombine.high %v1212_v59, %v1220_v20 }
 0x2b0   : > { %v1307_v35 = vrot.slane %v1299_v23, %v5651_v55  ;;  %v1314_v37 = vrot.slane %v1300_v24, %v5651_v55 }
 0x2b1   : > { %v1255_v26 = vrot.slane %v1247_v21, %v5651_v55  ;;  %v1262_v58 = vrot.slane %v1248_v22, %v5651_v55  ;;  %v1222_v27 = vpop.permute.xlu1 %1221 }
 0x2b2   : > { %v1315_v28 = vcombine.low %v1214_v45, %v1222_v27  ;;  %v1316_v29 = vcombine.high %v1214_v45, %v1222_v27  ;;  %v5765_v56 = vpop.permute.xlu0 %2580 }
 0x2b3   : > { %v1263_v30 = vcombine.low %v1239_v25, %v1255_v26  ;;  %v1264_v31 = vcombine.high %v1239_v25, %v1255_v26  ;;  %v1279_v32 = vcombine.low %v1246_v50, %v1262_v58  ;;  %v1280_v33 = vcombine.high %v1246_v50, %v1262_v58 }
 0x2b4   : > { %v1323_v39 = vrot.slane %v1315_v28, %v5651_v55  ;;  %v1330_v41 = vrot.slane %v1316_v29, %v5651_v55 }
 0x2b5   : > { %v1271_v42 = vrot.slane %v1263_v30, %v5673_v2  ;;  %v1278_v43 = vrot.slane %v1264_v31, %v5673_v2  ;;  %v5761_v46 = vpop.permute.xlu1 %2578  ;;  %v1287_v53 = vrot.slane %v1279_v32, %v5673_v2  ;;  %v1294_v54 = vrot.slane %v1280_v33, %v5673_v2 }
 0x2b6   : > { %v1331_v47 = vcombine.low %v1307_v35, %v1323_v39  ;;  %v1332_v48 = vcombine.high %v1307_v35, %v1323_v39  ;;  %v1347_v49 = vcombine.low %v1314_v37, %v1330_v41  ;;  %v1348_v52 = vcombine.high %v1314_v37, %v1330_v41  ;;  %v5773_v9 = vpop.permute.xlu0 %2590 }
 0x2b7   : > { %v1367_v0 = vcombine.low %v1271_v42, %v1278_v43  ;;  %v4923_v1 = vcombine.high %v1271_v42, %v1278_v43  ;;  %v1383_v3 = vcombine.low %v1287_v53, %v1294_v54  ;;  %v4924_v4 = vcombine.high %v1287_v53, %v1294_v54 }
 0x2b8   : > { %v1339_v57 = vrot.slane %v1331_v47, %v5673_v2  ;;  %v1346_v60 = vrot.slane %v1332_v48, %v5673_v2  ;;  %v1355_v61 = vrot.slane %v1347_v49, %v5673_v2  ;;  %v1362_v62 = vrot.slane %v1348_v52, %v5673_v2 }
 0x2b9   : > { %v5771_v63 = vpop.permute.xlu1 %2584  ;;  %v1374_v11 = vrot.slane %v1367_v0, %v5651_v55  ;;  %v1382_v12 = vrot.slane %v4923_v1, %v5651_v55  ;;  %v1390_v36 = vrot.slane %v1383_v3, %v5651_v55  ;;  %v1398_v44 = vrot.slane %v4924_v4, %v5651_v55 }
 0x2ba   : > { %v1435_v5 = vcombine.low %v1339_v57, %v1346_v60  ;;  %v4925_v6 = vcombine.high %v1339_v57, %v1346_v60  ;;  %v1451_v7 = vcombine.low %v1355_v61, %v1362_v62  ;;  %v4926_v8 = vcombine.high %v1355_v61, %v1362_v62  ;;  %v5787_v19 = vpop.permute.xlu0 %1509 }
 0x2bb   : > { %v1399_v20 = vcombine.low %v1374_v11, %v1382_v12  ;;  %v1415_v21 = vcombine.low %v1390_v36, %v1398_v44  ;;  %v1400_v28 = vcombine.high %v1374_v11, %v1382_v12  ;;  %v1416_v35 = vcombine.high %v1390_v36, %v1398_v44 }
 0x2bc   : > { %v1442_v59 = vrot.slane %v1435_v5, %v5651_v55  ;;  %v1450_v45 = vrot.slane %v4925_v6, %v5651_v55  ;;  %v1458_v17 = vrot.slane %v1451_v7, %v5651_v55  ;;  %v1466_v18 = vrot.slane %v4926_v8, %v5651_v55 }
 0x2bd   : > { %v5775_v10 = vpop.permute.xlu1 %2586  ;;  %v1407_v25 = vrot.slane %v1399_v20, %v5673_v2  ;;  %v1423_v50 = vrot.slane %v1415_v21, %v5673_v2  ;;  %v1414_v32 = vrot.slane %v1400_v28, %v5673_v2  ;;  %v1430_v49 = vrot.slane %v1416_v35, %v5673_v2 }
 0x2be   : > { %v1467_v22 = vcombine.low %v1442_v59, %v1450_v45  ;;  %v1483_v24 = vcombine.low %v1458_v17, %v1466_v18  ;;  %v1516_v58 = vpop.permute.xlu0 %1515  ;;  %v1468_v37 = vcombine.high %v1442_v59, %v1450_v45  ;;  %v1484_v39 = vcombine.high %v1458_v17, %v1466_v18 }
 0x2bf   : > { %v1431_v30 = vcombine.low %v1407_v25, %v1423_v50  ;;  %v1433_v61 = vcombine.low %v1414_v32, %v1430_v49  ;;  %v1432_v0 = vcombine.high %v1407_v25, %v1423_v50  ;;  %v1434_v36 = vcombine.high %v1414_v32, %v1430_v49 }
 0x2c0   : > { %v1475_v26 = vrot.slane %v1467_v22, %v5673_v2  ;;  %v1491_v27 = vrot.slane %v1483_v24, %v5673_v2  ;;  %v1482_v52 = vrot.slane %v1468_v37, %v5673_v2  ;;  %v1498_v53 = vrot.slane %v1484_v39, %v5673_v2 }
 0x2c1   : > { %v5785_v51 = vpop.permute.xlu1 %2592 }
 0x2c2   : > { %v1499_v31 = vcombine.low %v1475_v26, %v1491_v27  ;;  %v1520_v47 = vpop.permute.xlu0 %1519  ;;  %v1500_v60 = vcombine.high %v1475_v26, %v1491_v27  ;;  %v1501_v62 = vcombine.low %v1482_v52, %v1498_v53  ;;  %v1502_v3 = vcombine.high %v1482_v52, %v1498_v53 }
 0x2c4   : > { %v1503_v33 = vpack.c.bf16 %v1499_v31, %v1431_v30  ;;  %v1505_v8 = vpack.c.bf16 %v1501_v62, %v1433_v61  ;;  %v1504_v11 = vpack.c.bf16 %v1500_v60, %v1432_v0  ;;  %v1506_v22 = vpack.c.bf16 %v1502_v3, %v1434_v36 }
 0x2c5   : > { %v1508_v23 = vpop.permute.xlu1 %1507 }
 0x2c6   : > { %v1531_v42 = vcombine.low %v1508_v23, %v1516_v58  ;;  %v1532_v43 = vcombine.high %v1508_v23, %v1516_v58  ;;  %v1812_v48 = vsel %vm1807_vm5, %v1503_v33, 0  ;;  %v1906_v18 = vsel %vm1807_vm5, %v1505_v8, 0 }
 0x2c7   : > { %5083 = vmatpush3.bf16.xpose.msra.mxu0 %v1812_v48  ;;  %5095 = vmatpush3.bf16.xpose.msra.mxu1 %v1906_v18  ;;  %v1859_v26 = vsel %vm1807_vm5, %v1504_v11, 0  ;;  %v1953_v49 = vsel %vm1807_vm5, %v1506_v22, 0 }
 0x2c8   : > { %5088 = vmatprep.subr.bf16.mxu0 %v5410_v40  ;;  %v1539_v4 = vrot.slane %v1531_v42, %v5651_v55  ;;  %v1546_v5 = vrot.slane %v1532_v43, %v5651_v55  ;;  %5106 = vmatprep.subr.bf16.mxu1 %v5410_v40 }
 0x2c9   : > { %v1512_v29 = vpop.permute.xlu1 %1511 }
 0x2ca   : > { %v1547_v54 = vcombine.low %v1512_v29, %v1520_v47  ;;  %v1548_v57 = vcombine.high %v1512_v29, %v1520_v47 }
 0x2cc   : > { %v1555_v6 = vrot.slane %v1547_v54, %v5651_v55  ;;  %v1562_v7 = vrot.slane %v1548_v57, %v5651_v55 }
 0x2cd   : > { %v1514_v41 = vpop.permute.xlu1 %1513 }
 0x2ce   : > { %v1563_v44 = vcombine.low %v1539_v4, %v1555_v6  ;;  %v1564_v59 = vcombine.high %v1539_v4, %v1555_v6  ;;  %v1579_v45 = vcombine.low %v1546_v5, %v1562_v7  ;;  %v1580_v17 = vcombine.high %v1546_v5, %v1562_v7  ;;  %5085 = vmatmul.mubr.msk.bf16.vlgmr.msra.gmra.mxu0 %vm1807_vm5, %v5725_v13 }
 0x2cf   : > { %5089 = vmatpush3.bf16.xpose.msra.mxu0 %v1859_v26  ;;  %5090 = vmatprep.mubr.msk.bf16.mxu0 %vm5411_vm4, %v5410_v40 }
 0x2d0   : > { %v1571_v23 = vrot.slane %v1563_v44, %v5673_v2  ;;  %v1578_v24 = vrot.slane %v1564_v59, %v5673_v2  ;;  %v1587_v25 = vrot.slane %v1579_v45, %v5673_v2  ;;  %v1594_v50 = vrot.slane %v1580_v17, %v5673_v2  ;;  %5100 = vmatprep.subr.bf16.mxu0 %v5410_v40 }
 0x2d1   : > { %v1518_v1 = vpop.permute.xlu1 %1517  ;;  %5097 = vmatmul.mubr.msk.bf16.vlgmr.msra.gmra.mxu1 %vm1807_vm5, %v5729_v14 }
 0x2d2   : > { %v1599_v12 = vcombine.low %v5787_v19, %v1518_v1  ;;  %v1600_v20 = vcombine.high %v5787_v19, %v1518_v1  ;;  %v1667_v28 = vcombine.low %v1571_v23, %v1578_v24  ;;  %v4927_v29 = vcombine.high %v1571_v23, %v1578_v24  ;;  %5108 = vmatprep.mubr.msk.bf16.mxu1 %vm5411_vm4, %v5410_v40 }
 0x2d3   : > { %v1683_v30 = vcombine.low %v1587_v25, %v1594_v50  ;;  %v4928_v31 = vcombine.high %v1587_v25, %v1594_v50 }
 0x2d4   : > { %v1607_v58 = vrot.slane %v1599_v12, %v5651_v55  ;;  %v1614_v32 = vrot.slane %v1600_v20, %v5651_v55  ;;  %v1674_v13 = vrot.slane %v1667_v28, %v5651_v55  ;;  %v1682_v37 = vrot.slane %v4927_v29, %v5651_v55 }
 0x2d5   : > { %v1522_v21 = vpop.permute.xlu1 %1521  ;;  %v1690_v39 = vrot.slane %v1683_v30, %v5651_v55 }
 0x2d6   : > { %v1615_v27 = vcombine.low %v1514_v41, %v1522_v21  ;;  %v1616_v19 = vcombine.high %v1514_v41, %v1522_v21  ;;  %v1698_v41 = vrot.slane %v4928_v31, %v5651_v55  ;;  %v1700_v52 = vcombine.high %v1674_v13, %v1682_v37  ;;  %5091 = vmatmul.mubr.msk.bf16.vlgmr.msra.gmra.mxu0 %vm1807_vm5, %v5731_v15 }
 0x2d7   : > { %v1699_v62 = vcombine.low %v1674_v13, %v1682_v37  ;;  %5101 = vmatpush3.bf16.xpose.msra.mxu0 %v1953_v49  ;;  %5102 = vmatprep.mubr.msk.bf16.mxu0 %vm5411_vm4, %v5410_v40 }
 0x2d8   : > { %v1623_v33 = vrot.slane %v1615_v27, %v5651_v55  ;;  %v1630_v35 = vrot.slane %v1616_v19, %v5651_v55  ;;  %v1716_v53 = vcombine.high %v1690_v39, %v1698_v41  ;;  %v1715_v0 = vcombine.low %v1690_v39, %v1698_v41  ;;  %5112 = vmatprep.subr.bf16.mxu0 %v5410_v40 }
 0x2d9   : > { %v1714_v1 = vrot.slane %v1700_v52, %v5673_v2  ;;  %v1707_v44 = vrot.slane %v1699_v62, %v5673_v2 }
 0x2da   : > { %v1631_v42 = vcombine.low %v1607_v58, %v1623_v33  ;;  %v1632_v43 = vcombine.high %v1607_v58, %v1623_v33  ;;  %v1647_v47 = vcombine.low %v1614_v32, %v1630_v35  ;;  %v1648_v48 = vcombine.high %v1614_v32, %v1630_v35 }
 0x2db   : > { %v1730_v3 = vrot.slane %v1716_v53, %v5673_v2  ;;  %v1723_v59 = vrot.slane %v1715_v0, %v5673_v2 }
 0x2dc   : > { %v1639_v54 = vrot.slane %v1631_v42, %v5673_v2  ;;  %v1646_v57 = vrot.slane %v1632_v43, %v5673_v2  ;;  %v1655_v60 = vrot.slane %v1647_v47, %v5673_v2  ;;  %v1662_v61 = vrot.slane %v1648_v48, %v5673_v2 }
 0x2dd   : > { %v1733_v7 = vcombine.low %v1714_v1, %v1730_v3  ;;  %v1734_v15 = vcombine.high %v1714_v1, %v1730_v3  ;;  %v1731_v25 = vcombine.low %v1707_v44, %v1723_v59  ;;  %v1732_v50 = vcombine.high %v1707_v44, %v1723_v59 }
 0x2de   : > { %v1735_v4 = vcombine.low %v1639_v54, %v1646_v57  ;;  %v4929_v5 = vcombine.high %v1639_v54, %v1646_v57  ;;  %v1751_v14 = vcombine.low %v1655_v60, %v1662_v61  ;;  %v4930_v6 = vcombine.high %v1655_v60, %v1662_v61  ;;  %5103 = vmatmul.mubr.msk.bf16.vlgmr.msra.gmra.mxu0 %vm1807_vm5, %v5733_v16 }
 0x2df   : > { %5114 = vmatprep.mubr.msk.bf16.mxu0 %vm5411_vm4, %v5410_v40 }
 0x2e0   : > { %v1742_v8 = vrot.slane %v1735_v4, %v5651_v55  ;;  %v1750_v11 = vrot.slane %v4929_v5, %v5651_v55  ;;  %v1758_v12 = vrot.slane %v1751_v14, %v5651_v55  ;;  %v1766_v36 = vrot.slane %v4930_v6, %v5651_v55 }
 0x2e2   : > { %v1767_v45 = vcombine.low %v1742_v8, %v1750_v11  ;;  %v1783_v17 = vcombine.low %v1758_v12, %v1766_v36  ;;  %v1768_v18 = vcombine.high %v1742_v8, %v1750_v11  ;;  %v1784_v20 = vcombine.high %v1758_v12, %v1766_v36 }
 0x2e4   : > { %v1775_v21 = vrot.slane %v1767_v45, %v5673_v2  ;;  %v1791_v22 = vrot.slane %v1783_v17, %v5673_v2  ;;  %v1782_v23 = vrot.slane %v1768_v18, %v5673_v2  ;;  %v1798_v24 = vrot.slane %v1784_v20, %v5673_v2 }
 0x2e6   : > { %v1799_v26 = vcombine.low %v1775_v21, %v1791_v22  ;;  %v1800_v58 = vcombine.high %v1775_v21, %v1791_v22  ;;  %v1801_v27 = vcombine.low %v1782_v23, %v1798_v24  ;;  %v1802_v19 = vcombine.high %v1782_v23, %v1798_v24 }
 0x2e8   : > { %v1803_v28 = vpack.c.bf16 %v1799_v26, %v1731_v25  ;;  %v1804_v29 = vpack.c.bf16 %v1800_v58, %v1732_v50  ;;  %v5855_v30 = vpack.c.bf16 %v1801_v27, %v1733_v7  ;;  %v5857_v31 = vpack.c.bf16 %v1802_v19, %v1734_v15 }
 0x2ea   : > { %5107 = vmatpush3.bf16.msra.mxu1 %v1803_v28  ;;  %5113 = vmatpush3.bf16.msra.mxu0 %v1804_v29 }
 0x2eb   : > { %5118 = vmatprep.subr.bf16.mxu1 %v5410_v40  ;;  %5124 = vmatprep.subr.bf16.mxu0 %v5410_v40 }
 0x38e   : > { %v1848_v16 = vpop.f32.mrf.mxu0 }
 0x38f   : > { %v1996_v32 = vmul.f32 0.35355338, %v1848_v16 }
 0x390   : > { %v5086_v33 = vpop.f32.mrf.mxu0 }
 0x391   : > { %v2005_v35 = vsel %vm2004_vm6, %v1996_v32, -inf  ;;  %v1942_v37 = vpop.f32.mrf.mxu1 }
 0x392   : > { %2006 = vmax.xlane.f32.xlu0 %v2005_v35  ;;  %v1851_v13 = vpop.f32.mrf.mxu0  ;;  %v2000_v41 = vmul.f32 0.35355338, %v1942_v37 }
 0x393   : > { %v1997_v42 = vmul.f32 0.35355338, %v1851_v13  ;;  %v5098_v43 = vpop.f32.mrf.mxu1 }
 0x394   : > { %v5087_v39 = vpop.f32.mrf.mxu0  ;;  %v2017_v48 = vsel %vm2004_vm6, %v2000_v41, -inf }
 0x395   : > { %2018 = vmax.xlane.f32.xlu1 %v2017_v48  ;;  %v1945_v49 = vpop.f32.mrf.mxu1  ;;  %v2008_v53 = vsel %vm2004_vm6, %v1997_v42, -inf }
 0x396   : > { %v1895_v47 = vpop.f32.mrf.mxu0  ;;  %v2001_v3 = vmul.f32 0.35355338, %v1945_v49 }
 0x397   : > { %v5099_v54 = vpop.f32.mrf.mxu1  ;;  %v1998_v4 = vmul.f32 0.35355338, %v1895_v47 }
 0x398   : > { %v5092_v52 = vpop.f32.mrf.mxu0  ;;  %v2020_v5 = vsel %vm2004_vm6, %v2001_v3, -inf }
 0x399   : > { %2009 = vmax.xlane.f32.xlu1 %v2008_v53  ;;  %v2011_v6 = vsel %vm2004_vm6, %v1998_v4, -inf }
 0x39a   : > { %v1898_v57 = vpop.f32.mrf.mxu0 }
 0x39b   : > { %v1999_v14 = vmul.f32 0.35355338, %v1898_v57 }
 0x39c   : > { %v5093_v60 = vpop.f32.mrf.mxu0 }
 0x39d   : > { %v2014_v11 = vsel %vm2004_vm6, %v1999_v14, -inf }
 0x39e   : > { %v1989_v61 = vpop.f32.mrf.mxu0 }
 0x39f   : > { %v2002_v7 = vmul.f32 0.35355338, %v1989_v61 }
 0x3a0   : > { %v5104_v62 = vpop.f32.mrf.mxu0 }
 0x3a1   : > { %v2023_v12 = vsel %vm2004_vm6, %v2002_v7, -inf }
 0x3a2   : > { %v1992_v0 = vpop.f32.mrf.mxu0 }
 0x3a3   : > { %v2003_v8 = vmul.f32 0.35355338, %v1992_v0 }
 0x3a4   : > { %v5105_v1 = vpop.f32.mrf.mxu0 }
 0x3a5   : > { %v2026_v36 = vsel %vm2004_vm6, %v2003_v8, -inf }
 0x3a8   : > { %2874 = vrot.lane.b32.xlu0 %v5613_v38, %s5406_s19 }
 0x3aa   : > { %2872 = vrot.lane.b32.xlu1 %v5609_v34, %s5406_s19 }
 0x3c7   : > { %2021 = vmax.xlane.f32.xlu0 %v2020_v5 }
 0x3cb   : > { %2012 = vmax.xlane.f32.xlu0 %v2011_v6 }
 0x3ce   : > { %2024 = vmax.xlane.f32.xlu1 %v2023_v12 }
 0x3cf   : > { %2015 = vmax.xlane.f32.xlu0 %v2014_v11 }
 0x3d3   : > { %2027 = vmax.xlane.f32.xlu0 %v2026_v36 }
 0x3df   : > { %2876 = vrot.lane.b32.xlu1 %v5761_v46, %s5406_s19 }
 0x3e3   : > { %2878 = vrot.lane.b32.xlu1 %v5765_v56, %s5406_s19 }
 0x3e7   : > { %2882 = vrot.lane.b32.xlu1 %v5775_v10, %s5406_s19 }
 0x3e9   : > { %2880 = vrot.lane.b32.xlu0 %v5771_v63, %s5406_s19 }
 0x41b   : > { %v2007_v44 = vpop.xlane.xlu0 %2006 }
 0x41c   : > { %v2029_v59 = vsub.f32 %v1996_v32, %v2007_v44 }
 0x41e   : > { %v2037_v15 = vmul.f32 1.442695, %v2029_v59  ;;  %v2019_v45 = vpop.xlane.xlu1 %2018 }
 0x41f   : > { %v2033_v17 = vsub.f32 %v2000_v41, %v2019_v45  ;;  %v5887_v27 = vpop.permute.xlu0 %2874 }
 0x420   : > { %5295 = vpow2.f32 %v2037_v15 }
 0x421   : > { %v2045_v18 = vmul.f32 1.442695, %v2033_v17 }
 0x422   : > { %v2010_v20 = vpop.xlane.xlu1 %2009 }
 0x423   : > { %5297 = vpow2.f32 %v2045_v18  ;;  %v2030_v21 = vsub.f32 %v1997_v42, %v2010_v20 }
 0x425   : > { %v2039_v22 = vmul.f32 1.442695, %v2030_v21  ;;  %v2596_v21 = vcombine.low %v5609_v34, %v5771_v63 }
 0x426   : > { %v5889_v33 = vpop.permute.xlu1 %2872 }
 0x427   : > { %5299 = vpow2.f32 %v2039_v22  ;;  %v2597_v22 = vcombine.high %v5609_v34, %v5771_v63 }
 0x42d   : > { %v5296_v23 = vpop.eup %5295 }
 0x42e   : > { %v2053_v24 = vsel %vm2004_vm6, %v5296_v23, 0.0 }
 0x42f   : > { %2054 = vadd.xlane.f32.xlu0 %v2053_v24  ;;  %v2612_v24 = vcombine.low %v5761_v46, %v5773_v9 }
 0x430   : > { %v5882_v25 = vpop.eup %5297 }
 0x431   : > { %v2065_v50 = vsel %vm2004_vm6, %v5882_v25, 0.0 }
 0x433   : > { %2066 = vadd.xlane.f32.xlu0 %v2065_v50  ;;  %v2604_v50 = vrot.slane %v2596_v21, %v5651_v55 }
 0x434   : > { %v5300_v26 = vpop.eup %5299 }
 0x435   : > { %v2056_v58 = vsel %vm2004_vm6, %v5300_v26, 0.0 }
 0x436   : > { %2057 = vadd.xlane.f32.xlu1 %v2056_v58 }
 0x450   : > { %v2022_v19 = vpop.xlane.xlu0 %2021 }
 0x451   : > { %v2034_v28 = vsub.f32 %v2001_v3, %v2022_v19  ;;  %v2620_v19 = vrot.slane %v2612_v24, %v5651_v55 }
 0x453   : > { %v2047_v29 = vmul.f32 1.442695, %v2034_v28 }
 0x454   : > { %v2013_v16 = vpop.xlane.xlu0 %2012 }
 0x455   : > { %5301 = vpow2.f32 %v2047_v29  ;;  %v2031_v32 = vsub.f32 %v1998_v4, %v2013_v16 }
 0x457   : > { %v2041_v35 = vmul.f32 1.442695, %v2031_v32  ;;  %v2025_v39 = vpop.xlane.xlu1 %2024  ;;  %v2664_v32 = vcombine.low %v5613_v38, %v5775_v10 }
 0x458   : > { %v2016_v13 = vpop.xlane.xlu0 %2015  ;;  %v2035_v41 = vsub.f32 %v2002_v7, %v2025_v39 }
 0x459   : > { %5303 = vpow2.f32 %v2041_v35  ;;  %v2032_v37 = vsub.f32 %v1999_v14, %v2016_v13  ;;  %v2665_v35 = vcombine.high %v5613_v38, %v5775_v10  ;;  %v2680_v13 = vcombine.low %v5765_v56, %v5785_v51 }
 0x45a   : > { %v2049_v47 = vmul.f32 1.442695, %v2035_v41 }
 0x45b   : > { %v2043_v42 = vmul.f32 1.442695, %v2032_v37  ;;  %v5891_v49 = vpop.permute.xlu1 %2876 }
 0x45c   : > { %v2028_v43 = vpop.xlane.xlu0 %2027 }
 0x45d   : > { %5305 = vpow2.f32 %v2043_v42  ;;  %v2036_v48 = vsub.f32 %v2003_v8, %v2028_v43  ;;  %v2628_v43 = vcombine.low %v2604_v50, %v2620_v19 }
 0x45e   : > { %5307 = vpow2.f32 %v2049_v47  ;;  %v2629_v47 = vcombine.high %v2604_v50, %v2620_v19 }
 0x45f   : > { %v2051_v52 = vmul.f32 1.442695, %v2036_v48  ;;  %v2879_v61 = vpop.permute.xlu1 %2878 }
 0x460   : > { %v5893_v53 = vpop.permute.xlu0 %2880 }
 0x461   : > { %v2896_v54 = vcombine.low %v5889_v33, %v5893_v53  ;;  %v2897_v57 = vcombine.high %v5889_v33, %v5893_v53  ;;  %5309 = vpow2.f32 %v2051_v52 }
 0x462   : > { %v5899_v60 = vpop.eup %5301 }
 0x463   : > { %v2068_v62 = vsel %vm2004_vm6, %v5899_v60, 0.0  ;;  %v2883_v1 = vpop.permute.xlu1 %2882 }
 0x464   : > { %2069 = vadd.xlane.f32.xlu1 %v2068_v62  ;;  %v2964_v3 = vcombine.low %v5887_v27, %v2883_v1  ;;  %v2965_v4 = vcombine.high %v5887_v27, %v2883_v1 }
 0x466   : > { %v5903_v0 = vpop.eup %5303  ;;  %v2972_v37 = vrot.slane %v2964_v3, %v5651_v55  ;;  %v2979_v39 = vrot.slane %v2965_v4, %v5651_v55  ;;  %v2688_v3 = vrot.slane %v2680_v13, %v5651_v55 }
 0x467   : > { %v2059_v5 = vsel %vm2004_vm6, %v5903_v0, 0.0 }
 0x468   : > { %2060 = vadd.xlane.f32.xlu0 %v2059_v5 }
 0x46a   : > { %v5909_v14 = vpop.eup %5305 }
 0x46b   : > { %v2062_v6 = vsel %vm2004_vm6, %v5909_v14, 0.0  ;;  %v5913_v7 = vpop.eup %5307 }
 0x46c   : > { %2063 = vadd.xlane.f32.xlu0 %v2062_v6  ;;  %v2071_v8 = vsel %vm2004_vm6, %v5913_v7, 0.0 }
 0x46e   : > { %v5917_v11 = vpop.eup %5309 }
 0x46f   : > { %v2074_v12 = vsel %vm2004_vm6, %v5917_v11, 0.0 }
 0x470   : > { %2072 = vadd.xlane.f32.xlu0 %v2071_v8  ;;  %v2681_v8 = vcombine.high %v5765_v56, %v5785_v51 }
 0x474   : > { %2075 = vadd.xlane.f32.xlu0 %v2074_v12 }
 0x475   : > { %2886 = vrot.lane.b32.xlu1 %v5785_v51, %s5406_s19 }
 0x48a   : > { %2884 = vrot.lane.b32.xlu0 %v5773_v9, %s5406_s19 }
 0x4b8   : > { %v2055_v36 = vpop.xlane.xlu0 %2054 }
 0x4b9   : > { %5311 = vrcp.f32 %v2055_v36 }
 0x4bc   : > { %v2067_v20 = vpop.xlane.xlu0 %2066 }
 0x4bf   : > { %v2058_v44 = vpop.xlane.xlu1 %2057 }
 0x4c0   : > { %5313 = vrcp.f32 %v2058_v44 }
 0x4c1   : > { %5315 = vrcp.f32 %v2067_v20 }
 0x4c6   : > { %v5312_v59 = vpop.eup %5311 }
 0x4c7   : > { %v2085_v45 = vmul.f32 %v5312_v59, %v5296_v23  ;;  %v5960_v59 = vrot.slane %v2628_v43, %v5673_v2 }
 0x4cd   : > { %v5314_v15 = vpop.eup %5313 }
 0x4ce   : > { %v2086_v17 = vmul.f32 %v5314_v15, %v5300_v26  ;;  %v2611_v26 = vrot.slane %v2597_v22, %v5651_v55  ;;  %v5963_v15 = vrot.slane %v2629_v47, %v5673_v2  ;;  %v5316_v20 = vpop.eup %5315 }
 0x4cf   : > { %v2089_v13 = vmul.f32 %v5316_v20, %v5882_v25  ;;  %v2904_v20 = vrot.slane %v2896_v54, %v5651_v55 }
 0x4d0   : > { %v2093_v18 = vpack.c.bf16 %v2086_v17, %v2085_v45  ;;  %v2672_v45 = vrot.slane %v2664_v32, %v5651_v55  ;;  %v2679_v17 = vrot.slane %v2665_v35, %v5651_v55 }
 0x4d2   : > { %5109 = vmatmul.mubr.msk.bf16.vlgmr.msra.gmra.mxu1 %vm2004_vm6, %v2093_v18  ;;  %v2697_v32 = vcombine.high %v2672_v45, %v2688_v3 }
 0x4d3   : > { %5119 = vmatpush3.bf16.msra.mxu1 %v5855_v30  ;;  %5120 = vmatprep.mubr.msk.bf16.mxu1 %vm5411_vm4, %v5410_v40  ;;  %v2613_v30 = vcombine.high %v5761_v46, %v5773_v9 }
 0x4d4   : > { %5130 = vmatprep.subr.bf16.mxu1 %v5410_v40 }
 0x4d5   : > { %v2627_v16 = vrot.slane %v2613_v30, %v5651_v55 }
 0x4d7   : > { %v2644_v48 = vcombine.low %v2611_v26, %v2627_v16  ;;  %v2645_v6 = vcombine.high %v2611_v26, %v2627_v16 }
 0x4d9   : > { %v5968_v50 = vrot.slane %v2644_v48, %v5673_v2  ;;  %v5971_v26 = vrot.slane %v2645_v6, %v5673_v2  ;;  %v2711_v6 = vrot.slane %v2697_v32, %v5673_v2 }
 0x4ed   : > { %v2070_v23 = vpop.xlane.xlu1 %2069 }
 0x4ee   : > { %5317 = vrcp.f32 %v2070_v23 }
 0x4f1   : > { %v2887_v58 = vpop.permute.xlu1 %2886  ;;  %v2061_v27 = vpop.xlane.xlu0 %2060 }
 0x4f2   : > { %v2980_v28 = vcombine.low %v2879_v61, %v2887_v58  ;;  %v2981_v29 = vcombine.high %v2879_v61, %v2887_v58  ;;  %5319 = vrcp.f32 %v2061_v27  ;;  %v2695_v58 = vrot.slane %v2681_v8, %v5651_v55 }
 0x4f3   : > { %v2696_v27 = vcombine.low %v2672_v45, %v2688_v3 }
 0x4f4   : > { %v2988_v41 = vrot.slane %v2980_v28, %v5651_v55  ;;  %v2995_v42 = vrot.slane %v2981_v29, %v5651_v55  ;;  %v2712_v43 = vcombine.low %v2679_v17, %v2695_v58  ;;  %v2713_v47 = vcombine.high %v2679_v17, %v2695_v58 }
 0x4f5   : > { %v2064_v52 = vpop.xlane.xlu0 %2063 }
 0x4f6   : > { %v2996_v61 = vcombine.low %v2972_v37, %v2988_v41  ;;  %v2997_v62 = vcombine.high %v2972_v37, %v2988_v41  ;;  %v3012_v1 = vcombine.low %v2979_v39, %v2995_v42  ;;  %v3013_v5 = vcombine.high %v2979_v39, %v2995_v42 }
 0x4f7   : > { %5321 = vrcp.f32 %v2064_v52  ;;  %v2727_v45 = vrot.slane %v2713_v47, %v5673_v2 }
 0x4f8   : > { %v3004_v4 = vrot.slane %v2996_v61, %v5673_v2  ;;  %v3011_v12 = vrot.slane %v2997_v62, %v5673_v2  ;;  %v3020_v36 = vrot.slane %v3012_v1, %v5673_v2  ;;  %v3027_v44 = vrot.slane %v3013_v5, %v5673_v2 }
 0x4f9   : > { %v2073_v18 = vpop.xlane.xlu0 %2072  ;;  %v2732_v61 = vcombine.low %v5960_v59, %v5963_v15  ;;  %v2704_v5 = vrot.slane %v2696_v27, %v5673_v2 }
 0x4fa   : > { %v3100_v21 = vcombine.low %v3004_v4, %v3011_v12  ;;  %v4949_v22 = vcombine.high %v3004_v4, %v3011_v12  ;;  %v3116_v23 = vcombine.low %v3020_v36, %v3027_v44  ;;  %v4950_v24 = vcombine.high %v3020_v36, %v3027_v44 }
 0x4fb   : > { %v5318_v30 = vpop.eup %5317  ;;  %5323 = vrcp.f32 %v2073_v18 }
 0x4fc   : > { %v3107_v19 = vrot.slane %v3100_v21, %v5651_v55  ;;  %v3115_v28 = vrot.slane %v4949_v22, %v5651_v55  ;;  %v3123_v29 = vrot.slane %v3116_v23, %v5651_v55  ;;  %v3131_v16 = vrot.slane %v4950_v24, %v5651_v55 }
 0x4fd   : > { %v2076_v35 = vpop.xlane.xlu0 %2075  ;;  %v2090_v37 = vmul.f32 %v5318_v30, %v5899_v60  ;;  %v4943_v60 = vcombine.high %v5960_v59, %v5963_v15  ;;  %v2720_v15 = vrot.slane %v2712_v43, %v5673_v2  ;;  %v2911_v21 = vrot.slane %v2897_v57, %v5651_v55 }
 0x4fe   : > { %5325 = vrcp.f32 %v2076_v35  ;;  %v3132_v39 = vcombine.low %v3107_v19, %v3115_v28  ;;  %v3148_v41 = vcombine.low %v3123_v29, %v3131_v16  ;;  %v3133_v42 = vcombine.high %v3107_v19, %v3115_v28 }
 0x4ff   : > { %v2095_v48 = vpack.c.bf16 %v2090_v37, %v2089_v13  ;;  %v3149_v52 = vcombine.high %v3123_v29, %v3131_v16  ;;  %v5320_v4 = vpop.eup %5319  ;;  %v2748_v24 = vcombine.low %v5968_v50, %v5971_v26  ;;  %v2800_v30 = vcombine.low %v2704_v5, %v2711_v6 }
 0x500   : > { %v5983_v62 = vrot.slane %v3132_v39, %v5673_v2  ;;  %v5986_v1 = vrot.slane %v3148_v41, %v5673_v2  ;;  %v5989_v25 = vrot.slane %v3133_v42, %v5673_v2  ;;  %v2087_v58 = vmul.f32 %v5320_v4, %v5903_v0 }
 0x501   : > { %5121 = vmatmul.mubr.msk.bf16.vlgmr.msra.gmra.mxu1 %vm2004_vm6, %v2095_v48  ;;  %v2885_v8 = vpop.permute.xlu0 %2884  ;;  %v5997_v3 = vrot.slane %v3149_v52, %v5673_v2  ;;  %v4945_v16 = vcombine.high %v2704_v5, %v2711_v6  ;;  %v2816_v32 = vcombine.low %v2720_v15, %v2727_v45  ;;  %v4946_v33 = vcombine.high %v2720_v15, %v2727_v45 }
 0x502   : > { %v2912_v12 = vcombine.low %v5891_v49, %v2885_v8  ;;  %v2913_v36 = vcombine.high %v5891_v49, %v2885_v8  ;;  %v3164_v44 = vcombine.low %v5983_v62, %v5986_v1  ;;  %v3165_v59 = vcombine.high %v5983_v62, %v5986_v1  ;;  %5132 = vmatprep.mubr.msk.bf16.mxu1 %vm5411_vm4, %v5410_v40 }
 0x503   : > { %v3166_v17 = vcombine.low %v5989_v25, %v5997_v3  ;;  %v3167_v18 = vcombine.high %v5989_v25, %v5997_v3  ;;  %v6032_v0 = vrot.slane %v2732_v61, %v5651_v55  ;;  %v4944_v39 = vcombine.high %v5968_v50, %v5971_v26 }
 0x504   : > { %v5322_v49 = vpop.eup %5321  ;;  %v2920_v22 = vrot.slane %v2912_v12, %v5651_v55  ;;  %v2927_v23 = vrot.slane %v2913_v36, %v5651_v55  ;;  %v6040_v41 = vrot.slane %v2800_v30, %v5651_v55  ;;  %v2815_v5 = vrot.slane %v4945_v16, %v5651_v55 }
 0x505   : > { %v2088_v27 = vmul.f32 %v5322_v49, %v5909_v14  ;;  %v6035_v14 = vrot.slane %v4943_v60, %v5651_v55  ;;  %v2823_v60 = vrot.slane %v2816_v32, %v5651_v55  ;;  %v2831_v6 = vrot.slane %v4946_v33, %v5651_v55 }
 0x506   : > { %v2928_v19 = vcombine.low %v2904_v20, %v2920_v22  ;;  %v2929_v28 = vcombine.high %v2904_v20, %v2920_v22  ;;  %v2944_v54 = vcombine.low %v2911_v21, %v2927_v23  ;;  %v2945_v29 = vcombine.high %v2911_v21, %v2927_v23 }
 0x507   : > { %v2094_v53 = vpack.c.bf16 %v2088_v27, %v2087_v58  ;;  %v2755_v4 = vrot.slane %v2748_v24, %v5651_v55  ;;  %v2763_v12 = vrot.slane %v4944_v39, %v5651_v55  ;;  %v2832_v22 = vcombine.low %v6040_v41, %v2815_v5 }
 0x508   : > { %v2936_v57 = vrot.slane %v2928_v19, %v5673_v2  ;;  %v2943_v35 = vrot.slane %v2929_v28, %v5673_v2  ;;  %v2952_v13 = vrot.slane %v2944_v54, %v5673_v2  ;;  %v2959_v37 = vrot.slane %v2945_v29, %v5673_v2  ;;  %v5324_v42 = vpop.eup %5323 }
 0x509   : > { %5115 = vmatmul.mubr.msk.bf16.vlgmr.msra.gmra.mxu0 %vm2004_vm6, %v2094_v53  ;;  %v2091_v36 = vmul.f32 %v5324_v42, %v5913_v7  ;;  %v2848_v23 = vcombine.low %v2823_v60, %v2831_v6  ;;  %v2764_v7 = vcombine.low %v6032_v0, %v6035_v14  ;;  %v2840_v32 = vrot.slane %v2832_v22, %v5673_v2 }
 0x50a   : > { %v3032_v43 = vcombine.low %v2936_v57, %v2943_v35  ;;  %v4947_v47 = vcombine.high %v2936_v57, %v2943_v35  ;;  %v3048_v48 = vcombine.low %v2952_v13, %v2959_v37  ;;  %v4948_v52 = vcombine.high %v2952_v13, %v2959_v37  ;;  %5125 = vmatpush3.bf16.msra.mxu0 %v5857_v31 }
 0x50b   : > { %v5326_v61 = vpop.eup %5325  ;;  %5126 = vmatprep.mubr.msk.bf16.mxu0 %vm5411_vm4, %v5410_v40  ;;  %5136 = vmatprep.subr.bf16.mxu0 %v5410_v40  ;;  %v2856_v33 = vrot.slane %v2848_v23, %v5673_v2  ;;  %v2772_v42 = vrot.slane %v2764_v7, %v5673_v2  ;;  %v2849_v62 = vcombine.high %v2823_v60, %v2831_v6 }
 0x50c   : > { %v3039_v50 = vrot.slane %v3032_v43, %v5651_v55  ;;  %v3047_v26 = vrot.slane %v4947_v47, %v5651_v55  ;;  %v3055_v8 = vrot.slane %v3048_v48, %v5651_v55  ;;  %v3063_v31 = vrot.slane %v4948_v52, %v5651_v55 }
 0x50d   : > { %v2092_v15 = vmul.f32 %v5326_v61, %v5917_v11  ;;  %v2780_v11 = vcombine.low %v2755_v4, %v2763_v12  ;;  %v2833_v43 = vcombine.high %v6040_v41, %v2815_v5  ;;  %v2864_v1 = vcombine.low %v2840_v32, %v2856_v33 }
 0x50e   : > { %v3064_v45 = vcombine.low %v3039_v50, %v3047_v26  ;;  %v3080_v49 = vcombine.low %v3055_v8, %v3063_v31  ;;  %v3065_v20 = vcombine.high %v3039_v50, %v3047_v26  ;;  %v3081_v21 = vcombine.high %v3055_v8, %v3063_v31 }
 0x50f   : > { %v2096_v30 = vpack.c.bf16 %v2092_v15, %v2091_v36  ;;  %v2765_v25 = vcombine.high %v6032_v0, %v6035_v14  ;;  %v2781_v3 = vcombine.high %v2755_v4, %v2763_v12  ;;  %v2847_v52 = vrot.slane %v2833_v43, %v5673_v2 }
 0x510   : > { %v3072_v58 = vrot.slane %v3064_v45, %v5673_v2  ;;  %v3088_v27 = vrot.slane %v3080_v49, %v5673_v2  ;;  %v3079_v24 = vrot.slane %v3065_v20, %v5673_v2  ;;  %v3095_v19 = vrot.slane %v3081_v21, %v5673_v2 }
 0x511   : > { %5127 = vmatmul.mubr.msk.bf16.vlgmr.msra.gmra.mxu0 %vm2004_vm6, %v2096_v30  ;;  %v2863_v41 = vrot.slane %v2849_v62, %v5673_v2  ;;  %v2779_v60 = vrot.slane %v2765_v25, %v5673_v2  ;;  %v2795_v0 = vrot.slane %v2781_v3, %v5673_v2 }
 0x512   : > { %v3096_v28 = vcombine.low %v3072_v58, %v3088_v27  ;;  %v3097_v54 = vcombine.high %v3072_v58, %v3088_v27  ;;  %5138 = vmatprep.mubr.msk.bf16.mxu0 %vm5411_vm4, %v5410_v40  ;;  %v3098_v29 = vcombine.low %v3079_v24, %v3095_v19  ;;  %v3099_v16 = vcombine.high %v3079_v24, %v3095_v19 }
 0x513   : > { %v2866_v14 = vcombine.low %v2847_v52, %v2863_v41  ;;  %v2867_v6 = vcombine.high %v2847_v52, %v2863_v41  ;;  %v2798_v50 = vcombine.low %v2779_v60, %v2795_v0  ;;  %v2799_v26 = vcombine.high %v2779_v60, %v2795_v0 }
 0x514   : > { %v3168_v53 = vpack.c.bf16 %v3164_v44, %v3096_v28  ;;  %v3169_v57 = vpack.c.bf16 %v3165_v59, %v3097_v54  ;;  %v3170_v35 = vpack.c.bf16 %v3166_v17, %v3098_v29  ;;  %v3171_v13 = vpack.c.bf16 %v3167_v18, %v3099_v16 }
 0x515   : > { %v2788_v44 = vrot.slane %v2780_v11, %v5673_v2  ;;  %v2865_v59 = vcombine.high %v2840_v32, %v2856_v33  ;;  %v2870_v8 = vpack.c.bf16 %v2866_v14, %v2798_v50  ;;  %v2871_v31 = vpack.c.bf16 %v2867_v6, %v2799_v26 }
 0x516   : > { %v3476_v37 = vsel %vm1807_vm5, %v3168_v53, 0  ;;  %v3523_v39 = vsel %vm1807_vm5, %v3169_v57, 0  ;;  %v3570_v61 = vsel %vm1807_vm5, %v3170_v35, 0  ;;  %v3617_v5 = vsel %vm1807_vm5, %v3171_v13, 0 }
 0x517   : > { %5131 = vmatpush3.bf16.xpose.msra.mxu1 %v3476_v37  ;;  %5137 = vmatpush3.bf16.xpose.msra.mxu0 %v3523_v39  ;;  %v2796_v17 = vcombine.low %v2772_v42, %v2788_v44  ;;  %v2797_v18 = vcombine.high %v2772_v42, %v2788_v44 }
 0x518   : > { %5142 = vmatprep.subr.bf16.mxu1 %v5410_v40  ;;  %5148 = vmatprep.subr.bf16.mxu0 %v5410_v40 }
 0x519   : > { %v2868_v47 = vpack.c.bf16 %v2864_v1, %v2796_v17  ;;  %v2869_v48 = vpack.c.bf16 %v2865_v59, %v2797_v18 }
 0x51e   : > { %5133 = vmatmul.mubr.msk.bf16.vlgmr.msra.gmra.mxu1 %vm1807_vm5, %v2868_v47  ;;  %5139 = vmatmul.mubr.msk.bf16.vlgmr.msra.gmra.mxu0 %vm1807_vm5, %v2869_v48 }
 0x51f   : > { %5143 = vmatpush3.bf16.xpose.msra.mxu1 %v3570_v61  ;;  %5149 = vmatpush3.bf16.xpose.msra.mxu0 %v3617_v5 }
 0x520   : > { %5144 = vmatprep.mubr.msk.bf16.mxu1 %vm5411_vm4, %v5410_v40  ;;  %5150 = vmatprep.mubr.msk.bf16.mxu0 %vm5411_vm4, %v5410_v40 }
 0x521   : > { %5154 = vmatprep.subr.bf16.mxu1 %v5410_v40  ;;  %5160 = vmatprep.subr.bf16.mxu0 %v5410_v40 }
 0x526   : > { %5145 = vmatmul.mubr.msk.bf16.vlgmr.msra.gmra.mxu1 %vm1807_vm5, %v2870_v8  ;;  %5151 = vmatmul.mubr.msk.bf16.vlgmr.msra.gmra.mxu0 %vm1807_vm5, %v2871_v31 }
 0x527   : > { %5156 = vmatprep.mubr.msk.bf16.mxu1 %vm5411_vm4, %v5410_v40  ;;  %5162 = vmatprep.mubr.msk.bf16.mxu0 %vm5411_vm4, %v5410_v40 }
 0x592   : > { %v2134_v4 = vpop.f32.mrf.mxu1 }
 0x594   : > { %v5110_v12 = vpop.f32.mrf.mxu1 }
 0x596   : > { %v2137_v36 = vpop.f32.mrf.mxu1 }
 0x598   : > { %v5111_v15 = vpop.f32.mrf.mxu1 }
 0x5c1   : > { %v2222_v45 = vpop.f32.mrf.mxu1 }
 0x5c2   : > { %v2273_v49 = vcombine.low %v2134_v4, %v2222_v45  ;;  %v2274_v20 = vcombine.high %v2134_v4, %v2222_v45 }
 0x5c3   : > { %v5122_v21 = vpop.f32.mrf.mxu1 }
 0x5c4   : > { %v2281_v16 = vrot.slane %v2273_v49, %v5651_v55  ;;  %v2288_v32 = vrot.slane %v2274_v20, %v5651_v55 }
 0x5c5   : > { %v2225_v22 = vpop.f32.mrf.mxu1 }
 0x5c6   : > { %v2341_v23 = vcombine.low %v2137_v36, %v2225_v22  ;;  %v2342_v30 = vcombine.high %v2137_v36, %v2225_v22 }
 0x5c7   : > { %v5123_v58 = vpop.f32.mrf.mxu1 }
 0x5c8   : > { %v2349_v3 = vrot.slane %v2341_v23, %v5651_v55  ;;  %v2356_v17 = vrot.slane %v2342_v30, %v5651_v55 }
 0x5c9   : > { %v2178_v27 = vpop.f32.mrf.mxu0 }
 0x5cb   : > { %v5116_v24 = vpop.f32.mrf.mxu0 }
 0x5cd   : > { %v2181_v19 = vpop.f32.mrf.mxu0 }
 0x5cf   : > { %v5117_v7 = vpop.f32.mrf.mxu0 }
 0x5d1   : > { %v2266_v11 = vpop.f32.mrf.mxu0 }
 0x5d2   : > { %v2289_v28 = vcombine.low %v2178_v27, %v2266_v11  ;;  %v2290_v54 = vcombine.high %v2178_v27, %v2266_v11 }
 0x5d3   : > { %v5128_v29 = vpop.f32.mrf.mxu0 }
 0x5d4   : > { %v2297_v33 = vrot.slane %v2289_v28, %v5651_v55  ;;  %v2304_v53 = vrot.slane %v2290_v54, %v5651_v55 }
 0x5d5   : > { %v2269_v57 = vpop.f32.mrf.mxu0 }
 0x5d6   : > { %v2305_v35 = vcombine.low %v2281_v16, %v2297_v33  ;;  %v2306_v13 = vcombine.high %v2281_v16, %v2297_v33  ;;  %v2321_v37 = vcombine.low %v2288_v32, %v2304_v53  ;;  %v2322_v39 = vcombine.high %v2288_v32, %v2304_v53 }
 0x5d7   : > { %v2357_v42 = vcombine.low %v2181_v19, %v2269_v57  ;;  %v2358_v44 = vcombine.high %v2181_v19, %v2269_v57  ;;  %v5129_v43 = vpop.f32.mrf.mxu0 }
 0x5d8   : > { %v2313_v62 = vrot.slane %v2305_v35, %v5673_v2  ;;  %v2320_v1 = vrot.slane %v2306_v13, %v5673_v2  ;;  %v2329_v59 = vrot.slane %v2321_v37, %v5673_v2  ;;  %v2336_v25 = vrot.slane %v2322_v39, %v5673_v2 }
 0x5d9   : > { %v2365_v18 = vrot.slane %v2357_v42, %v5651_v55  ;;  %v2372_v47 = vrot.slane %v2358_v44, %v5651_v55 }
 0x5da   : > { %v2409_v48 = vcombine.low %v2313_v62, %v2320_v1  ;;  %v4939_v52 = vcombine.high %v2313_v62, %v2320_v1  ;;  %v2425_v41 = vcombine.low %v2329_v59, %v2336_v25  ;;  %v4940_v61 = vcombine.high %v2329_v59, %v2336_v25 }
 0x5db   : > { %v2373_v5 = vcombine.low %v2349_v3, %v2365_v18  ;;  %v2374_v60 = vcombine.high %v2349_v3, %v2365_v18  ;;  %v2389_v0 = vcombine.low %v2356_v17, %v2372_v47  ;;  %v2390_v14 = vcombine.high %v2356_v17, %v2372_v47 }
 0x5dc   : > { %v2416_v6 = vrot.slane %v2409_v48, %v5651_v55  ;;  %v2424_v50 = vrot.slane %v4939_v52, %v5651_v55  ;;  %v2432_v26 = vrot.slane %v2425_v41, %v5651_v55  ;;  %v2440_v8 = vrot.slane %v4940_v61, %v5651_v55 }
 0x5dd   : > { %v2381_v31 = vrot.slane %v2373_v5, %v5673_v2  ;;  %v2388_v4 = vrot.slane %v2374_v60, %v5673_v2  ;;  %v2397_v12 = vrot.slane %v2389_v0, %v5673_v2  ;;  %v2404_v36 = vrot.slane %v2390_v14, %v5673_v2 }
 0x5de   : > { %v3512_v15 = vpop.f32.mrf.mxu1  ;;  %v3559_v45 = vpop.f32.mrf.mxu0  ;;  %v2442_v49 = vcombine.high %v2416_v6, %v2424_v50  ;;  %v2458_v20 = vcombine.high %v2432_v26, %v2440_v8  ;;  %v2441_v21 = vcombine.low %v2416_v6, %v2424_v50  ;;  %v2457_v22 = vcombine.low %v2432_v26, %v2440_v8 }
 0x5df   : > { %v2477_v23 = vcombine.low %v2381_v31, %v2388_v4  ;;  %v4941_v30 = vcombine.high %v2381_v31, %v2388_v4  ;;  %v2493_v58 = vcombine.low %v2397_v12, %v2404_v36  ;;  %v4942_v27 = vcombine.high %v2397_v12, %v2404_v36 }
 0x5e0   : > { %v6131_v24 = vmul.f32 0.35355338, %v3512_v15  ;;  %v6133_v19 = vmul.f32 0.35355338, %v3559_v45  ;;  %v5134_v7 = vpop.f32.mrf.mxu1  ;;  %v5140_v11 = vpop.f32.mrf.mxu0  ;;  %v2456_v28 = vrot.slane %v2442_v49, %v5673_v2  ;;  %v2472_v54 = vrot.slane %v2458_v20, %v5673_v2 }
 0x5e1   : > { %v2484_v29 = vrot.slane %v2477_v23, %v5651_v55  ;;  %v2492_v16 = vrot.slane %v4941_v30, %v5651_v55  ;;  %v2500_v32 = vrot.slane %v2493_v58, %v5651_v55  ;;  %v2508_v33 = vrot.slane %v4942_v27, %v5651_v55 }
 0x5e2   : > { %v3562_v53 = vpop.f32.mrf.mxu0  ;;  %v3668_v57 = vsel %vm2004_vm6, %v6131_v24, -inf  ;;  %v3515_v35 = vpop.f32.mrf.mxu1  ;;  %v2475_v13 = vcombine.low %v2456_v28, %v2472_v54  ;;  %v6144_v37 = vrot.slane %v2441_v21, %v5673_v2  ;;  %v3674_v42 = vsel %vm2004_vm6, %v6133_v19, -inf }
 0x5e3   : > { %3669 = vmax.xlane.f32.xlu0 %v3668_v57  ;;  %v6146_v39 = vmul.f32 0.35355338, %v3515_v35  ;;  %v2510_v44 = vcombine.high %v2484_v29, %v2492_v16  ;;  %v2526_v43 = vcombine.high %v2500_v32, %v2508_v33  ;;  %v6151_v59 = vrot.slane %v2457_v22, %v5673_v2 }
 0x5e4   : > { %v5135_v62 = vpop.f32.mrf.mxu1  ;;  %v5141_v1 = vpop.f32.mrf.mxu0  ;;  %v2509_v25 = vcombine.low %v2484_v29, %v2492_v16  ;;  %v2525_v3 = vcombine.low %v2500_v32, %v2508_v33  ;;  %v2476_v17 = vcombine.high %v2456_v28, %v2472_v54  ;;  %v6153_v18 = vmul.f32 0.35355338, %v3562_v53 }
 0x5e5   : > { %v3671_v47 = vsel %vm2004_vm6, %v6146_v39, -inf  ;;  %v2524_v48 = vrot.slane %v2510_v44, %v5673_v2  ;;  %v2540_v52 = vrot.slane %v2526_v43, %v5673_v2  ;;  %v2473_v5 = vcombine.low %v6144_v37, %v6151_v59 }
 0x5e6   : > { %v3653_v41 = vpop.f32.mrf.mxu0  ;;  %3672 = vmax.xlane.f32.xlu1 %v3671_v47  ;;  %v3606_v61 = vpop.f32.mrf.mxu1  ;;  %v2474_v60 = vcombine.high %v6144_v37, %v6151_v59  ;;  %v6164_v0 = vrot.slane %v2509_v25, %v5673_v2  ;;  %v6167_v14 = vrot.slane %v2525_v3, %v5673_v2  ;;  %v3677_v21 = vsel %vm2004_vm6, %v6153_v18, -inf }
 0x5e7   : > { %3675 = vmax.xlane.f32.xlu0 %v3674_v42  ;;  %v3664_v6 = vmul.f32 0.35355338, %v3606_v61  ;;  %v2543_v50 = vcombine.low %v2524_v48, %v2540_v52  ;;  %v2544_v26 = vcombine.high %v2524_v48, %v2540_v52  ;;  %v3666_v36 = vmul.f32 0.35355338, %v3653_v41 }
 0x5e8   : > { %v5146_v8 = vpop.f32.mrf.mxu1  ;;  %v5152_v31 = vpop.f32.mrf.mxu0  ;;  %v2542_v4 = vcombine.high %v6164_v0, %v6167_v14  ;;  %v2541_v12 = vcombine.low %v6164_v0, %v6167_v14 }
 0x5e9   : > { %v3680_v15 = vsel %vm2004_vm6, %v3664_v6, -inf  ;;  %v6174_v45 = vpack.i.bf16 %v2543_v50, %v2475_v13  ;;  %v6176_v49 = vpack.i.bf16 %v2544_v26, %v2476_v17  ;;  %v3686_v7 = vsel %vm2004_vm6, %v3666_v36, -inf }
 0x5ea   : > { %v3656_v20 = vpop.f32.mrf.mxu0  ;;  %3681 = vmax.xlane.f32.xlu1 %v3680_v15  ;;  %v3609_v22 = vpop.f32.mrf.mxu1  ;;  %v6180_v23 = vpack.i.bf16 %v2542_v4, %v2474_v60 }
 0x5eb   : > { %3678 = vmax.xlane.f32.xlu0 %v3677_v21  ;;  %v6182_v30 = vmul.f32 0.35355338, %v3609_v22  ;;  %v3667_v28 = vmul.f32 0.35355338, %v3656_v20 }
 0x5ec   : > { %v5147_v58 = vpop.f32.mrf.mxu1  ;;  %v5153_v27 = vpop.f32.mrf.mxu0 }
 0x5ed   : > { %v3683_v11 = vsel %vm2004_vm6, %v6182_v30, -inf  ;;  %v3689_v54 = vsel %vm2004_vm6, %v3667_v28, -inf }
 0x5ee   : > { %3687 = vmax.xlane.f32.xlu1 %v3686_v7 }
 0x5ef   : > { %3684 = vmax.xlane.f32.xlu0 %v3683_v11 }
 0x5f3   : > { %3690 = vmax.xlane.f32.xlu0 %v3689_v54 }
 0x5ff   : > { %3172 = vrot.lane.b32.xlu1 %v5609_v34, %s5409_s20 }
 0x603   : > { %3176 = vrot.lane.b32.xlu1 %v5761_v46, %s5409_s20 }
 0x607   : > { %3178 = vrot.lane.b32.xlu1 %v5765_v56, %s5409_s20 }
 0x609   : > { %3174 = vrot.lane.b32.xlu0 %v5613_v38, %s5409_s20 }
 0x60b   : > { %3182 = vrot.lane.b32.xlu1 %v5775_v10, %s5409_s20 }
 0x60d   : > { %3180 = vrot.lane.b32.xlu0 %v5771_v63, %s5409_s20 }
 0x611   : > { %3184 = vrot.lane.b32.xlu0 %v5773_v9, %s5409_s20 }
 0x66c   : > { %v3670_v29 = vpop.xlane.xlu0 %3669 }
 0x66d   : > { %v3692_v34 = vsub.f32 %v6131_v24, %v3670_v29 }
 0x66f   : > { %v3700_v16 = vmul.f32 1.442695, %v3692_v34  ;;  %v3673_v46 = vpop.xlane.xlu1 %3672 }
 0x670   : > { %v3676_v32 = vpop.xlane.xlu0 %3675  ;;  %v3693_v56 = vsub.f32 %v6146_v39, %v3673_v46 }
 0x671   : > { %5327 = vpow2.f32 %v3700_v16  ;;  %v3694_v38 = vsub.f32 %v6133_v19, %v3676_v32 }
 0x672   : > { %v3702_v33 = vmul.f32 1.442695, %v3693_v56 }
 0x673   : > { %v3704_v53 = vmul.f32 1.442695, %v3694_v38  ;;  %v3682_v10 = vpop.xlane.xlu1 %3681 }
 0x674   : > { %5329 = vpow2.f32 %v3702_v33  ;;  %v3679_v57 = vpop.xlane.xlu0 %3678  ;;  %v3696_v63 = vsub.f32 %v3664_v6, %v3682_v10 }
 0x675   : > { %5331 = vpow2.f32 %v3704_v53  ;;  %v3695_v9 = vsub.f32 %v6153_v18, %v3679_v57 }
 0x676   : > { %v3708_v35 = vmul.f32 1.442695, %v3696_v63 }
 0x677   : > { %v3706_v13 = vmul.f32 1.442695, %v3695_v9  ;;  %v3688_v24 = vpop.xlane.xlu1 %3687 }
 0x678   : > { %5333 = vpow2.f32 %v3708_v35  ;;  %v3698_v42 = vsub.f32 %v3666_v36, %v3688_v24  ;;  %v3685_v44 = vpop.xlane.xlu0 %3684 }
 0x679   : > { %5335 = vpow2.f32 %v3706_v13  ;;  %v3697_v8 = vsub.f32 %v6182_v30, %v3685_v44 }
 0x67a   : > { %v3712_v39 = vmul.f32 1.442695, %v3698_v42 }
 0x67b   : > { %v3710_v31 = vmul.f32 1.442695, %v3697_v8  ;;  %v3173_v15 = vpop.permute.xlu1 %3172 }
 0x67c   : > { %v3691_v43 = vpop.xlane.xlu0 %3690  ;;  %5337 = vpow2.f32 %v3712_v39 }
 0x67d   : > { %v3699_v62 = vsub.f32 %v3667_v28, %v3691_v43 }
 0x67e   : > { %v6206_v19 = vpop.eup %5327 }
 0x67f   : > { %v3714_v1 = vmul.f32 1.442695, %v3699_v62  ;;  %v3716_v25 = vsel %vm2004_vm6, %v6206_v19, 0.0  ;;  %v3177_v21 = vpop.permute.xlu1 %3176 }
 0x680   : > { %3717 = vadd.xlane.f32.xlu1 %v3716_v25 }
 0x681   : > { %v6210_v3 = vpop.eup %5329  ;;  %5339 = vpow2.f32 %v3714_v1 }
 0x682   : > { %v6212_v17 = vpop.eup %5331  ;;  %v3719_v18 = vsel %vm2004_vm6, %v6210_v3, 0.0  ;;  %5341 = vpow2.f32 %v3710_v31 }
 0x683   : > { %v3722_v47 = vsel %vm2004_vm6, %v6212_v17, 0.0  ;;  %3720 = vadd.xlane.f32.xlu0 %v3719_v18 }
 0x684   : > { %3723 = vadd.xlane.f32.xlu1 %v3722_v47 }
 0x685   : > { %v6218_v48 = vpop.eup %5333 }
 0x686   : > { %v3728_v52 = vsel %vm2004_vm6, %v6218_v48, 0.0  ;;  %v6222_v41 = vpop.eup %5335 }
 0x687   : > { %3729 = vadd.xlane.f32.xlu0 %v3728_v52  ;;  %v3725_v61 = vsel %vm2004_vm6, %v6222_v41, 0.0 }
 0x689   : > { %v6226_v60 = vpop.eup %5337 }
 0x68a   : > { %v3734_v6 = vsel %vm2004_vm6, %v6226_v60, 0.0 }
 0x68b   : > { %3726 = vadd.xlane.f32.xlu0 %v3725_v61 }
 0x68e   : > { %v6230_v50 = vpop.eup %5339 }
 0x68f   : > { %3735 = vadd.xlane.f32.xlu0 %v3734_v6  ;;  %v3737_v26 = vsel %vm2004_vm6, %v6230_v50, 0.0  ;;  %v6239_v4 = vpop.eup %5341 }
 0x690   : > { %v3731_v36 = vsel %vm2004_vm6, %v6239_v4, 0.0 }
 0x693   : > { %3738 = vadd.xlane.f32.xlu0 %v3737_v26 }
 0x695   : > { %3186 = vrot.lane.b32.xlu1 %v5785_v51, %s5409_s20  ;;  %v3175_v51 = vpop.permute.xlu0 %3174 }
 0x699   : > { %v3181_v20 = vpop.permute.xlu0 %3180 }
 0x69a   : > { %v3196_v27 = vcombine.low %v3173_v15, %v3181_v20  ;;  %v3197_v7 = vcombine.high %v3173_v15, %v3181_v20 }
 0x69c   : > { %v3211_v29 = vrot.slane %v3197_v7, %v5651_v55 }
 0x69d   : > { %v3185_v22 = vpop.permute.xlu0 %3184 }
 0x69e   : > { %v3212_v30 = vcombine.low %v3177_v21, %v3185_v22  ;;  %v3213_v58 = vcombine.high %v3177_v21, %v3185_v22 }
 0x6a0   : > { %v3220_v11 = vrot.slane %v3212_v30, %v5651_v55  ;;  %v3227_v54 = vrot.slane %v3213_v58, %v5651_v55 }
 0x6a2   : > { %v3244_v16 = vcombine.low %v3211_v29, %v3227_v54  ;;  %v3245_v46 = vcombine.high %v3211_v29, %v3227_v54 }
 0x6a4   : > { %v3252_v53 = vrot.slane %v3244_v16, %v5673_v2  ;;  %v3259_v10 = vrot.slane %v3245_v46, %v5673_v2 }
 0x6a6   : > { %v3348_v42 = vcombine.low %v3252_v53, %v3259_v10  ;;  %v4952_v44 = vcombine.high %v3252_v53, %v3259_v10 }
 0x6a8   : > { %v3355_v26 = vrot.slane %v3348_v42, %v5651_v55  ;;  %v3363_v8 = vrot.slane %v4952_v44, %v5651_v55 }
 0x6a9   : > { %5257 = vrot.lane.b32.xlu0 %v6174_v45, %s5412_s22  ;;  %v3179_v45 = vpop.permute.xlu1 %3178 }
 0x6ad   : > { %v3183_v28 = vpop.permute.xlu1 %3182 }
 0x6ae   : > { %v3264_v63 = vcombine.low %v3175_v51, %v3183_v28  ;;  %v3265_v9 = vcombine.high %v3175_v51, %v3183_v28 }
 0x6b0   : > { %v3272_v1 = vrot.slane %v3264_v63, %v5651_v55  ;;  %v3279_v25 = vrot.slane %v3265_v9, %v5651_v55 }
 0x6b9   : > { %3732 = vadd.xlane.f32.xlu1 %v3731_v36 }
 0x6ca   : > { %5252 = vrot.lane.b32.xlu1 %v6180_v23, %s5413_s3  ;;  %v3204_v23 = vrot.slane %v3196_v27, %v5651_v55  ;;  %v3380_v27 = vcombine.low %v3355_v26, %v3363_v8 }
 0x6cc   : > { %v3229_v34 = vcombine.high %v3204_v23, %v3220_v11 }
 0x6ce   : > { %5262 = vrot.lane.b32.xlu1 %v6176_v49, %s5414_s16  ;;  %v3228_v49 = vcombine.low %v3204_v23, %v3220_v11  ;;  %v3243_v38 = vrot.slane %v3229_v34, %v5673_v2 }
 0x6d0   : > { %v3236_v56 = vrot.slane %v3228_v49, %v5673_v2 }
 0x6d2   : > { %v3332_v35 = vcombine.low %v3236_v56, %v3243_v38  ;;  %v4951_v24 = vcombine.high %v3236_v56, %v3243_v38  ;;  %v3388_v56 = vrot.slane %v3380_v27, %v5673_v2  ;;  %v3381_v38 = vcombine.high %v3355_v26, %v3363_v8 }
 0x6d4   : > { %v3339_v18 = vrot.slane %v3332_v35, %v5651_v55  ;;  %v3347_v6 = vrot.slane %v4951_v24, %v5651_v55 }
 0x6d6   : > { %v3364_v58 = vcombine.low %v3339_v18, %v3347_v6  ;;  %v3365_v23 = vcombine.high %v3339_v18, %v3347_v6 }
 0x709   : > { %v3718_v32 = vpop.xlane.xlu1 %3717 }
 0x70c   : > { %v3721_v33 = vpop.xlane.xlu0 %3720 }
 0x70d   : > { %v3724_v57 = vpop.xlane.xlu1 %3723  ;;  %5343 = vrcp.f32 %v3721_v33 }
 0x70e   : > { %5345 = vrcp.f32 %v3724_v57 }
 0x70f   : > { %5347 = vrcp.f32 %v3718_v32  ;;  %v3372_v32 = vrot.slane %v3364_v58, %v5673_v2 }
 0x710   : > { %v6255_v13 = vpop.xlane.xlu0 %3729 }
 0x711   : > { %v3187_v39 = vpop.permute.xlu1 %3186 }
 0x712   : > { %v3280_v43 = vcombine.low %v3179_v45, %v3187_v39  ;;  %v3281_v62 = vcombine.high %v3179_v45, %v3187_v39 }
 0x714   : > { %v3288_v47 = vrot.slane %v3280_v43, %v5651_v55  ;;  %v3295_v52 = vrot.slane %v3281_v62, %v5651_v55  ;;  %v3727_v61 = vpop.xlane.xlu0 %3726  ;;  %v3379_v43 = vrot.slane %v3365_v23, %v5673_v2  ;;  %v3395_v62 = vrot.slane %v3381_v38, %v5673_v2 }
 0x715   : > { %5349 = vrcp.f32 %v3727_v61 }
 0x716   : > { %v3296_v31 = vcombine.low %v3272_v1, %v3288_v47  ;;  %v3297_v36 = vcombine.high %v3272_v1, %v3288_v47  ;;  %v3312_v51 = vcombine.low %v3279_v25, %v3295_v52  ;;  %v3313_v15 = vcombine.high %v3279_v25, %v3295_v52 }
 0x717   : > { %v3396_v25 = vcombine.low %v3372_v32, %v3388_v56  ;;  %v3397_v47 = vcombine.high %v3372_v32, %v3388_v56 }
 0x718   : > { %v3304_v20 = vrot.slane %v3296_v31, %v5673_v2  ;;  %v3311_v21 = vrot.slane %v3297_v36, %v5673_v2  ;;  %v3320_v22 = vrot.slane %v3312_v51, %v5673_v2  ;;  %v3327_v45 = vrot.slane %v3313_v15, %v5673_v2  ;;  %v3736_v30 = vpop.xlane.xlu0 %3735 }
 0x719   : > { %5351 = vrcp.f32 %v3736_v30 }
 0x71a   : > { %v3400_v7 = vcombine.low %v3304_v20, %v3311_v21  ;;  %v4953_v11 = vcombine.high %v3304_v20, %v3311_v21  ;;  %v3416_v28 = vcombine.low %v3320_v22, %v3327_v45  ;;  %v4954_v54 = vcombine.high %v3320_v22, %v3327_v45  ;;  %v5344_v63 = vpop.eup %5343 }
 0x71b   : > { %v5346_v9 = vpop.eup %5345  ;;  %v3749_v61 = vmul.f32 %v5344_v63, %v6210_v3  ;;  %v3398_v21 = vcombine.low %v3379_v43, %v3395_v62  ;;  %v3399_v22 = vcombine.high %v3379_v43, %v3395_v62 }
 0x71c   : > { %v3407_v29 = vrot.slane %v3400_v7, %v5651_v55  ;;  %v3415_v49 = vrot.slane %v4953_v11, %v5651_v55  ;;  %v3423_v34 = vrot.slane %v3416_v28, %v5651_v55  ;;  %v3431_v16 = vrot.slane %v4954_v54, %v5651_v55  ;;  %v3739_v46 = vpop.xlane.xlu0 %3738  ;;  %v5348_v39 = vpop.eup %5347 }
 0x71d   : > { %5353 = vrcp.f32 %v3739_v46  ;;  %v3750_v6 = vmul.f32 %v5346_v9, %v6212_v17  ;;  %v3748_v15 = vmul.f32 %v5348_v39, %v6206_v19 }
 0x71e   : > { %v3432_v33 = vcombine.low %v3407_v29, %v3415_v49  ;;  %v3448_v53 = vcombine.low %v3423_v34, %v3431_v16  ;;  %v3433_v10 = vcombine.high %v3407_v29, %v3415_v49  ;;  %v3449_v57 = vcombine.high %v3423_v34, %v3431_v16 }
 0x71f   : > { %v3756_v45 = vpack.c.bf16 %v3749_v61, %v3748_v15  ;;  %5355 = vrcp.f32 %v6255_v13 }
 0x720   : > { %v3440_v35 = vrot.slane %v3432_v33, %v5673_v2  ;;  %v3456_v24 = vrot.slane %v3448_v53, %v5673_v2  ;;  %v3447_v42 = vrot.slane %v3433_v10, %v5673_v2  ;;  %v3463_v44 = vrot.slane %v3449_v57, %v5673_v2  ;;  %v5258_v28 = vpop.permute.xlu0 %5257 }
 0x721   : > { %v5259_v29 = vunpack.i.l.bf16 %v5258_v28 }
 0x722   : > { %v5350_v1 = vpop.eup %5349  ;;  %v3464_v18 = vcombine.low %v3440_v35, %v3456_v24  ;;  %v3465_v52 = vcombine.high %v3440_v35, %v3456_v24  ;;  %v3466_v36 = vcombine.low %v3447_v42, %v3463_v44  ;;  %v3467_v51 = vcombine.high %v3447_v42, %v3463_v44 }
 0x723   : > { %v3751_v26 = vmul.f32 %v5350_v1, %v6222_v41 }
 0x724   : > { %v3468_v8 = vpack.c.bf16 %v3464_v18, %v3396_v25  ;;  %v3469_v31 = vpack.c.bf16 %v3465_v52, %v3397_v47  ;;  %v3470_v17 = vpack.c.bf16 %v3466_v36, %v3398_v21  ;;  %v3471_v30 = vpack.c.bf16 %v3467_v51, %v3399_v22 }
 0x725   : > { %v3757_v20 = vpack.c.bf16 %v3751_v26, %v3750_v6 }
 0x726   : > { %5155 = vmatpush3.bf16.msra.mxu1 %v3468_v8  ;;  %5161 = vmatpush3.bf16.msra.mxu0 %v3469_v31  ;;  %v5352_v3 = vpop.eup %5351 }
 0x727   : > { %5166 = vmatprep.subr.bf16.mxu1 %v5410_v40  ;;  %5172 = vmatprep.subr.bf16.mxu0 %v5410_v40  ;;  %v3754_v19 = vmul.f32 %v5352_v3, %v6226_v60 }
 0x729   : > { %5157 = vmatmul.mubr.msk.bf16.vlgmr.msra.gmra.mxu1 %vm2004_vm6, %v3756_v45  ;;  %5163 = vmatmul.mubr.msk.bf16.vlgmr.msra.gmra.mxu0 %vm2004_vm6, %v3757_v20 }
 0x72a   : > { %v5354_v41 = vpop.eup %5353  ;;  %5167 = vmatpush3.bf16.msra.mxu1 %v3470_v17  ;;  %5173 = vmatpush3.bf16.msra.mxu0 %v3471_v30 }
 0x72b   : > { %5174 = vmatprep.mubr.msk.bf16.mxu0 %vm5411_vm4, %v5410_v40  ;;  %v3755_v58 = vmul.f32 %v5354_v41, %v6230_v50  ;;  %5168 = vmatprep.mubr.msk.bf16.mxu1 %vm5411_vm4, %v5410_v40  ;;  %v5260_v50 = vunpack.i.h.bf16 %v5258_v28 }
 0x72c   : > { %v5356_v14 = vpop.eup %5355 }
 0x72d   : > { %v3759_v27 = vpack.c.bf16 %v3755_v58, %v3754_v19  ;;  %v3752_v37 = vmul.f32 %v5356_v14, %v6218_v48 }
 0x731   : > { %5175 = vmatmul.mubr.msk.bf16.vlgmr.msra.gmra.mxu0 %vm2004_vm6, %v3759_v27 }
 0x742   : > { %v3733_v7 = vpop.xlane.xlu1 %3732 }
 0x743   : > { %5357 = vrcp.f32 %v3733_v7 }
 0x746   : > { %v5253_v11 = vpop.permute.xlu1 %5252 }
 0x747   : > { %v5255_v54 = vunpack.i.h.bf16 %v5253_v11  ;;  %v5254_v23 = vunpack.i.l.bf16 %v5253_v11 }
 0x749   : > { %v2570_v60 = vsel %vm1807_vm5, %v2541_v12, %v5255_v54  ;;  %v2569_v40 = vsel %vm1807_vm5, %v2473_v5, %v5254_v23 }
 0x74a   : > { %v5263_v13 = vpop.permute.xlu1 %5262  ;;  %v2571_v16 = vsel %vm2004_vm6, %v2569_v40, %v5259_v29  ;;  %v2572_v46 = vsel %vm2004_vm6, %v2570_v60, %v5260_v50 }
 0x74b   : > { %v5265_v49 = vunpack.i.h.bf16 %v5263_v13  ;;  %v5264_v34 = vunpack.i.l.bf16 %v5263_v13 }
 0x74d   : > { %v2574_v32 = vsel %vm2573_vm7, %v2571_v16, %v5264_v34  ;;  %v2575_v0 = vsel %vm2573_vm7, %v2572_v46, %v5265_v49 }
 0x74e   : > { %v4242_v12 = vpack.c.bf16 %v2575_v0, %v2574_v32 }
 0x750   : > { %v5358_v56 = vpop.eup %5357 }
 0x751   : > { %v3753_v59 = vmul.f32 %v5358_v56, %v6239_v4 }
 0x753   : > { %v3758_v5 = vpack.c.bf16 %v3753_v59, %v3752_v37 }
 0x755   : > { %5169 = vmatmul.mubr.msk.bf16.vlgmr.msra.gmra.mxu1 %vm2004_vm6, %v3758_v5 }
 0x756   : > { %5182 = vmatprep.mubr.msk.bf16.mxu1 %vm855_vm3, %v4242_v12 }
 0x7e9   : > { %v3797_v38 = vpop.f32.mrf.mxu1  ;;  %v3841_v33 = vpop.f32.mrf.mxu0 }
 0x7eb   : > { %v5158_v53 = vpop.f32.mrf.mxu1  ;;  %v5164_v10 = vpop.f32.mrf.mxu0 }
 0x7ed   : > { %v3800_v57 = vpop.f32.mrf.mxu1  ;;  %v3844_v63 = vpop.f32.mrf.mxu0 }
 0x7ef   : > { %v5159_v9 = vpop.f32.mrf.mxu1  ;;  %v5165_v35 = vpop.f32.mrf.mxu0 }
 0x7f1   : > { %v3929_v24 = vpop.f32.mrf.mxu0 }
 0x7f2   : > { %v3952_v48 = vcombine.low %v3841_v33, %v3929_v24  ;;  %v3953_v43 = vcombine.high %v3841_v33, %v3929_v24 }
 0x7f3   : > { %v5176_v42 = vpop.f32.mrf.mxu0 }
 0x7f4   : > { %v3960_v18 = vrot.slane %v3952_v48, %v5651_v55  ;;  %v3967_v47 = vrot.slane %v3953_v43, %v5651_v55 }
 0x7f5   : > { %v3932_v44 = vpop.f32.mrf.mxu0 }
 0x7f6   : > { %v4020_v6 = vcombine.low %v3844_v63, %v3932_v44  ;;  %v4021_v26 = vcombine.high %v3844_v63, %v3932_v44 }
 0x7f7   : > { %v5177_v39 = vpop.f32.mrf.mxu0 }
 0x7f8   : > { %v4028_v41 = vrot.slane %v4020_v6, %v5651_v55  ;;  %v4035_v19 = vrot.slane %v4021_v26, %v5651_v55 }
 0x815   : > { %v3885_v4 = vpop.f32.mrf.mxu1 }
 0x816   : > { %v3936_v62 = vcombine.low %v3797_v38, %v3885_v4  ;;  %v3937_v1 = vcombine.high %v3797_v38, %v3885_v4 }
 0x817   : > { %v5170_v25 = vpop.f32.mrf.mxu1 }
 0x818   : > { %v3944_v52 = vrot.slane %v3936_v62, %v5651_v55  ;;  %v3951_v61 = vrot.slane %v3937_v1, %v5651_v55 }
 0x819   : > { %v3888_v8 = vpop.f32.mrf.mxu1 }
 0x81a   : > { %v3968_v31 = vcombine.low %v3944_v52, %v3960_v18  ;;  %v3969_v36 = vcombine.high %v3944_v52, %v3960_v18  ;;  %v3984_v51 = vcombine.low %v3951_v61, %v3967_v47  ;;  %v3985_v15 = vcombine.high %v3951_v61, %v3967_v47 }
 0x81b   : > { %v4004_v20 = vcombine.low %v3800_v57, %v3888_v8  ;;  %v4005_v21 = vcombine.high %v3800_v57, %v3888_v8  ;;  %v5171_v22 = vpop.f32.mrf.mxu1  ;;  %v5283_v57 = vld [vmem:[%s6484_s29 + $0x8] sm:$0xff]  }
 0x81c   : > { %v3976_v45 = vrot.slane %v3968_v31, %v5673_v2  ;;  %v3983_v3 = vrot.slane %v3969_v36, %v5673_v2  ;;  %v3992_v17 = vrot.slane %v3984_v51, %v5673_v2  ;;  %v3999_v30 = vrot.slane %v3985_v15, %v5673_v2  ;;  %5178 = vmatprep.subr.bf16.mxu1 %v5283_v57 }
 0x81d   : > { %v4012_v58 = vrot.slane %v4004_v20, %v5651_v55  ;;  %v4019_v27 = vrot.slane %v4005_v21, %v5651_v55  ;;  %5179 = vmatpush3.bf16.msra.mxu1 %v5283_v57 }
 0x81e   : > { %v4072_v7 = vcombine.low %v3976_v45, %v3983_v3  ;;  %v4963_v11 = vcombine.high %v3976_v45, %v3983_v3  ;;  %v4088_v28 = vcombine.low %v3992_v17, %v3999_v30  ;;  %v4964_v54 = vcombine.high %v3992_v17, %v3999_v30 }
 0x81f   : > { %v4036_v23 = vcombine.low %v4012_v58, %v4028_v41  ;;  %v4037_v60 = vcombine.high %v4012_v58, %v4028_v41  ;;  %v4052_v40 = vcombine.low %v4019_v27, %v4035_v19  ;;  %v4053_v50 = vcombine.high %v4019_v27, %v4035_v19 }
 0x820   : > { %v4079_v29 = vrot.slane %v4072_v7, %v5651_v55  ;;  %v4087_v13 = vrot.slane %v4963_v11, %v5651_v55  ;;  %v4095_v49 = vrot.slane %v4088_v28, %v5651_v55  ;;  %v4103_v34 = vrot.slane %v4964_v54, %v5651_v55 }
 0x821   : > { %v4044_v16 = vrot.slane %v4036_v23, %v5673_v2  ;;  %v4051_v46 = vrot.slane %v4037_v60, %v5673_v2  ;;  %v4060_v32 = vrot.slane %v4052_v40, %v5673_v2  ;;  %v4067_v0 = vrot.slane %v4053_v50, %v5673_v2  ;;  %v4967_v40 = vld [vmem:[%s6485_s17] ss:$0 sm:$0xff] }
 0x822   : > { %v4105_v14 = vcombine.high %v4079_v29, %v4087_v13  ;;  %v4121_v12 = vcombine.high %v4095_v49, %v4103_v34  ;;  %v4104_v56 = vcombine.low %v4079_v29, %v4087_v13  ;;  %v4120_v37 = vcombine.low %v4095_v49, %v4103_v34  ;;  %v5375_v34 = vld [vmem:[#allocation2] sm:$0xff] }
 0x823   : > { %v4140_v59 = vcombine.low %v4044_v16, %v4051_v46  ;;  %v4965_v5 = vcombine.high %v4044_v16, %v4051_v46  ;;  %v4156_v38 = vcombine.low %v4060_v32, %v4067_v0  ;;  %v4966_v33 = vcombine.high %v4060_v32, %v4067_v0 }
 0x824   : > { %v4112_v53 = vrot.slane %v4104_v56, %v5673_v2  ;;  %v4128_v10 = vrot.slane %v4120_v37, %v5673_v2  ;;  %v4119_v42 = vrot.slane %v4105_v14, %v5673_v2  ;;  %v4135_v44 = vrot.slane %v4121_v12, %v5673_v2  ;;  %v5376_v12 = vld [vmem:[#allocation2 + $0x10] sm:$0xff]  ;;  %v5377_v37 = vld [vmem:[#allocation2 + $0x8] sm:$0xff] }
 0x825   : > { %v4147_v63 = vrot.slane %v4140_v59, %v5651_v55  ;;  %v4155_v9 = vrot.slane %v4965_v5, %v5651_v55  ;;  %v4163_v35 = vrot.slane %v4156_v38, %v5651_v55  ;;  %v4171_v24 = vrot.slane %v4966_v33, %v5651_v55  ;;  %v5284_v55 = vld [vmem:[%s6484_s29] sm:$0xff]   ;;  %v5378_v33 = vld [vmem:[#allocation2 + $0x18] sm:$0xff] }
 0x826   : > { %v4136_v39 = vcombine.low %v4112_v53, %v4128_v10  ;;  %v4138_v52 = vcombine.low %v4119_v42, %v4135_v44  ;;  %v4137_v6 = vcombine.high %v4112_v53, %v4128_v10  ;;  %5180 = vmatprep.subr.bf16.mxu1 %v5284_v55  ;;  %v4139_v15 = vcombine.high %v4119_v42, %v4135_v44 }
 0x827   : > { %v4173_v48 = vcombine.high %v4147_v63, %v4155_v9  ;;  %v4189_v43 = vcombine.high %v4163_v35, %v4171_v24  ;;  %v4172_v4 = vcombine.low %v4147_v63, %v4155_v9  ;;  %v4188_v62 = vcombine.low %v4163_v35, %v4171_v24  ;;  %5181 = vmatpush3.bf16.msra.mxu1 %v5284_v55 }
 0x829   : > { %v4187_v1 = vrot.slane %v4173_v48, %v5673_v2  ;;  %v4203_v25 = vrot.slane %v4189_v43, %v5673_v2  ;;  %v4180_v18 = vrot.slane %v4172_v4, %v5673_v2  ;;  %v4196_v47 = vrot.slane %v4188_v62, %v5673_v2 }
 0x82b   : > { %v4206_v61 = vcombine.low %v4187_v1, %v4203_v25  ;;  %v4205_v26 = vcombine.high %v4180_v18, %v4196_v47  ;;  %v4204_v8 = vcombine.low %v4180_v18, %v4196_v47  ;;  %v4207_v51 = vcombine.high %v4187_v1, %v4203_v25 }
 0x82d   : > { %v5271_v31 = vpack.i.bf16 %v4206_v61, %v4138_v52  ;;  %v5266_v36 = vpack.i.bf16 %v4205_v26, %v4137_v6  ;;  %v5276_v20 = vpack.i.bf16 %v4207_v51, %v4139_v15  ;;  %v5285_v26 = vld [vmem:[%s5554_s4 + $0x8] sm:$0xff]   ;;  %v5290_v15 = vld [vmem:[%s5564_s23 + $0x20] sm:$0xff]  }
 0x82e   : > { %5186 = vmatprep.subr.bf16.mxu0 %v5285_v26  ;;  %v5289_v51 = vld [vmem:[%s5564_s23 + $0x28] sm:$0xff]  }
 0x82f   : > { %5272 = vrot.lane.b32.xlu0 %v5271_v31, %s5412_s22  ;;  %5267 = vrot.lane.b32.xlu1 %v5266_v36, %s5413_s3  ;;  %v5287_v31 = vld [vmem:[%s5564_s23 + $0x38] sm:$0xff]   ;;  %v5288_v36 = vld [vmem:[%s5564_s23 + $0x30] sm:$0xff]   ;;  %s6487_s22 = scalar_lea.vmem %s6455_s9, %s5522_s25 }
 0x830   : > { %5187 = vmatpush3.bf16.msra.mxu0 %v5285_v26  ;;  %5194 = vmatprep.subr.bf16.mxu1 %v5287_v31 }
 0x833   : > { %5277 = vrot.lane.b32.xlu1 %v5276_v20, %s5414_s16  ;;  %v5291_v20 = vld [vmem:[%s5564_s23 + $0x18] sm:$0xff]  }
 0x8a1   : > { %v5273_v2 = vpop.permute.xlu0 %5272  ;;  %v5268_v21 = vpop.permute.xlu1 %5267 }
 0x8a2   : > { %v5270_v22 = vunpack.i.h.bf16 %v5268_v21  ;;  %v5269_v45 = vunpack.i.l.bf16 %v5268_v21  ;;  %v5275_v3 = vunpack.i.h.bf16 %v5273_v2  ;;  %v5274_v17 = vunpack.i.l.bf16 %v5273_v2 }
 0x8a4   : > { %v4232_v30 = vsel %vm1807_vm5, %v4136_v39, %v5269_v45  ;;  %v4233_v41 = vsel %vm1807_vm5, %v4204_v8, %v5270_v22  ;;  %v5286_v8 = vld [vmem:[%s5554_s4] sm:$0xff]  }
 0x8a5   : > { %v5278_v19 = vpop.permute.xlu1 %5277  ;;  %v4234_v7 = vsel %vm2004_vm6, %v4232_v30, %v5274_v17  ;;  %v4235_v11 = vsel %vm2004_vm6, %v4233_v41, %v5275_v3  ;;  %5188 = vmatprep.subr.bf16.mxu0 %v5286_v8 }
 0x8a6   : > { %v5280_v58 = vunpack.i.h.bf16 %v5278_v19  ;;  %v5279_v27 = vunpack.i.l.bf16 %v5278_v19  ;;  %5189 = vmatpush3.bf16.msra.mxu0 %v5286_v8 }
 0x8a8   : > { %v4236_v28 = vsel %vm2573_vm7, %v4234_v7, %v5279_v27  ;;  %v4237_v54 = vsel %vm2573_vm7, %v4235_v11, %v5280_v58 }
 0x8a9   : > { %v4243_v23 = vpack.c.bf16 %v4237_v54, %v4236_v28  ;;  %v4972_v54 = vld [vmem:[%s6486_s18] ss:$0 sm:$0xff] }
 0x8ab   : > { %5183 = vmatmul.mubr.msk.bf16.vlgmr.msra.gmra.mxu1 %vm855_vm3, %v4243_v23 }
 0x8ac   : > { %5195 = vmatpush3.bf16.msra.mxu1 %v5287_v31 }
 0x8ad   : > { %5196 = vmatprep.subr.bf16.mxu1 %v5288_v36 }
 0x8b0   : > { %5197 = vmatpush3.bf16.msra.mxu1 %v5288_v36 }
 0x8b1   : > { %5198 = vmatprep.subr.bf16.mxu1 %v5289_v51 }
 0x8b4   : > { %5199 = vmatpush3.bf16.msra.mxu1 %v5289_v51 }
 0x8b5   : > { %5200 = vmatprep.subr.bf16.mxu1 %v5290_v15 }
 0x8b8   : > { %5201 = vmatpush3.bf16.msra.mxu1 %v5290_v15 }
 0x8b9   : > { %5202 = vmatprep.subr.bf16.mxu1 %v5291_v20 }
 0x8bc   : > { %5203 = vmatpush3.bf16.msra.mxu1 %v5291_v20 }
 0x96b   : > { %v5184_v60 = vpop.f32.mrf.mxu1 }
 0x96c   : > { %v4312_v29 = vadd.f32 %v5184_v60, %v4967_v40 }
 0x96d   : > { %v4303_v50 = vpop.f32.mrf.mxu1 }
 0x96e   : > { %v4304_v13 = vadd.f32 %v4967_v40, %v4303_v50  ;;  %v4320_v56 = vadd.f32 %v5376_v12, %v4312_v29 }
 0x96f   : > { %v5185_v49 = vpop.f32.mrf.mxu1 }
 0x970   : > { %v4318_v16 = vadd.f32 %v5375_v34, %v4304_v13  ;;  %v4315_v32 = vadd.f32 %v5185_v49, %v4967_v40  ;;  %v4330_v38 = vsel %vm855_vm3, %v4320_v56, 0.0  ;;  %v4973_v13 = vld [vmem:[%s6487_s22] ss:$0 sm:$0xff] }
 0x971   : > { %v4306_v46 = vpop.f32.mrf.mxu1 }
 0x972   : > { %v4307_v0 = vadd.f32 %v4967_v40, %v4306_v46  ;;  %v4324_v14 = vsel %vm855_vm3, %v4318_v16, 0.0  ;;  %v4321_v53 = vadd.f32 %v5378_v33, %v4315_v32  ;;  %v5294_v33 = vld [vmem:[%s5564_s23] sm:$0xff]  }
 0x973   : > { %4325 = vadd.xlane.f32.xlu0 %v4324_v14 }
 0x974   : > { %v4319_v59 = vadd.f32 %v5377_v37, %v4307_v0  ;;  %v4333_v10 = vsel %vm855_vm3, %v4321_v53, 0.0 }
 0x976   : > { %v4327_v5 = vsel %vm855_vm3, %v4319_v59, 0.0 }
 0x977   : > { %4328 = vadd.xlane.f32.xlu1 %v4327_v5  ;;  %4331 = vadd.xlane.f32.xlu0 %v4330_v38  ;;  %v5292_v5 = vld [vmem:[%s5564_s23 + $0x10] sm:$0xff]   ;;  %v5293_v38 = vld [vmem:[%s5564_s23 + $0x8] sm:$0xff]  }
 0x978   : > { %5204 = vmatprep.subr.bf16.mxu1 %v5292_v5 }
 0x979   : > { %5205 = vmatpush3.bf16.msra.mxu1 %v5292_v5 }
 0x97a   : > { %5206 = vmatprep.subr.bf16.mxu1 %v5293_v38 }
 0x97b   : > { %4334 = vadd.xlane.f32.xlu0 %v4333_v10 }
 0x97d   : > { %5207 = vmatpush3.bf16.msra.mxu1 %v5293_v38 }
 0x97e   : > { %5208 = vmatprep.subr.bf16.mxu1 %v5294_v33 }
 0x981   : > { %5209 = vmatpush3.bf16.msra.mxu1 %v5294_v33 }
 0x9fc   : > { %v4326_v57 = vpop.xlane.xlu0 %4325 }
 0x9fd   : > { %v4337_v63 = vmul.f32 0.03125, %v4326_v57  ;;  %v4974_v57 = vld [vmem:[%s712_s6] ss:$0 sm:$0xff] }
 0x9ff   : > { %v4341_v9 = vsub.f32 %v4318_v16, %v4337_v63 }
 0xa00   : > { %v4329_v35 = vpop.xlane.xlu1 %4328  ;;  %v4332_v24 = vpop.xlane.xlu0 %4331 }
 0xa01   : > { %v4338_v42 = vmul.f32 0.03125, %v4329_v35  ;;  %v4339_v44 = vmul.f32 0.03125, %v4332_v24  ;;  %v4345_v39 = vmul.f32 %v4341_v9, %v4341_v9 }
 0xa03   : > { %v4342_v48 = vsub.f32 %v4319_v59, %v4338_v42  ;;  %v4343_v43 = vsub.f32 %v4320_v56, %v4339_v44  ;;  %v4349_v4 = vsel %vm855_vm3, %v4345_v39, 0.0 }
 0xa04   : > { %4350 = vadd.xlane.f32.xlu1 %v4349_v4  ;;  %v4335_v62 = vpop.xlane.xlu0 %4334 }
 0xa05   : > { %v4340_v1 = vmul.f32 0.03125, %v4335_v62  ;;  %v4346_v25 = vmul.f32 %v4342_v48, %v4342_v48  ;;  %v4347_v18 = vmul.f32 %v4343_v43, %v4343_v43 }
 0xa07   : > { %v4344_v47 = vsub.f32 %v4321_v53, %v4340_v1  ;;  %v4352_v55 = vsel %vm855_vm3, %v4346_v25, 0.0  ;;  %v4355_v52 = vsel %vm855_vm3, %v4347_v18, 0.0  ;;  %v4979_v18 = vld [vmem:[%s720_s27] ss:$0 sm:$0xff] }
 0xa08   : > { %4353 = vadd.xlane.f32.xlu0 %v4352_v55  ;;  %4356 = vadd.xlane.f32.xlu1 %v4355_v52 }
 0xa09   : > { %v4348_v61 = vmul.f32 %v4344_v47, %v4344_v47 }
 0xa0b   : > { %v4358_v6 = vsel %vm855_vm3, %v4348_v61, 0.0 }
 0xa0c   : > { %4359 = vadd.xlane.f32.xlu0 %v4358_v6 }
 0xa8d   : > { %v4351_v2 = vpop.xlane.xlu1 %4350 }
 0xa8e   : > { %v4361_v21 = vmul.f32 0.03125, %v4351_v2 }
 0xa90   : > { %v4365_v22 = vadd.f32 1e-05, %v4361_v21 }
 0xa91   : > { %v4357_v45 = vpop.xlane.xlu1 %4356  ;;  %v4354_v3 = vpop.xlane.xlu0 %4353 }
 0xa92   : > { %5359 = vrsqrt.f32 %v4365_v22  ;;  %v4363_v17 = vmul.f32 0.03125, %v4357_v45  ;;  %v4362_v30 = vmul.f32 0.03125, %v4354_v3 }
 0xa94   : > { %v4367_v41 = vadd.f32 1e-05, %v4363_v17  ;;  %v4366_v19 = vadd.f32 1e-05, %v4362_v30 }
 0xa95   : > { %v4360_v58 = vpop.xlane.xlu0 %4359 }
 0xa96   : > { %5361 = vrsqrt.f32 %v4367_v41  ;;  %v4364_v27 = vmul.f32 0.03125, %v4360_v58 }
 0xa97   : > { %5363 = vrsqrt.f32 %v4366_v19 }
 0xa98   : > { %v4368_v7 = vadd.f32 1e-05, %v4364_v27 }
 0xa9a   : > { %5365 = vrsqrt.f32 %v4368_v7 }
 0xa9f   : > { %v5360_v11 = vpop.eup %5359 }
 0xaa0   : > { %v4373_v28 = vmul.f32 %v5360_v11, %v4341_v9 }
 0xaa2   : > { %v4383_v29 = vmul.f32 %v4972_v54, %v4373_v28 }
 0xaa3   : > { %v5362_v23 = vpop.eup %5361 }
 0xaa4   : > { %v5364_v60 = vpop.eup %5363  ;;  %v4375_v40 = vmul.f32 %v5362_v23, %v4343_v43  ;;  %v4393_v32 = vadd.f32 %v4973_v13, %v4383_v29 }
 0xaa5   : > { %v4374_v50 = vmul.f32 %v5364_v60, %v4342_v48 }
 0xaa6   : > { %v4385_v46 = vmul.f32 %v4972_v54, %v4375_v40 }
 0xaa7   : > { %v5366_v49 = vpop.eup %5365  ;;  %v4384_v34 = vmul.f32 %v4972_v54, %v4374_v50 }
 0xaa8   : > { %v4376_v16 = vmul.f32 %v5366_v49, %v4344_v47  ;;  %v4395_v56 = vadd.f32 %v4973_v13, %v4385_v46 }
 0xaa9   : > { %v4394_v0 = vadd.f32 %v4973_v13, %v4384_v34 }
 0xaaa   : > { %v4386_v14 = vmul.f32 %v4972_v54, %v4376_v16 }
 0xaab   : > { %v4401_v12 = vpack.c.bf16 %v4394_v0, %v4393_v32 }
 0xaac   : > { %v4396_v37 = vadd.f32 %v4973_v13, %v4386_v14 }
 0xaad   : > { %5190 = vmatprep.mubr.msk.bf16.mxu0 %vm855_vm3, %v4401_v12 }
 0xaae   : > { %v4402_v59 = vpack.c.bf16 %v4396_v37, %v4395_v56 }
 0xab0   : > { %5191 = vmatmul.mubr.msk.bf16.vlgmr.msra.gmra.mxu0 %vm855_vm3, %v4402_v59 }
 0xb70   : > { %v5192_v53 = vpop.f32.mrf.mxu0 }
 0xb71   : > { %v4471_v24 = vadd.f32 %v5192_v53, %v4974_v57 }
 0xb72   : > { %v4462_v10 = vpop.f32.mrf.mxu0 }
 0xb73   : > { %v4463_v9 = vadd.f32 %v4974_v57, %v4462_v10  ;;  %v4479_v4 = vmax.f32 %v4471_v24, 0.0  ;;  %v4988_v10 = vld [vmem:[%s723_s30] ss:$0 sm:$0xff]  ;;  %s6488_s30 = sld [smem:[#allocation12_spill]] (!%p4990_p6) }
 0xb74   : > { %v5193_v63 = vpop.f32.mrf.mxu0 }
 0xb75   : > { %v4474_v35 = vadd.f32 %v5193_v63, %v4974_v57  ;;  %v4477_v48 = vmax.f32 %v4463_v9, 0.0  ;;  %v4989_v63 = vld [vmem:[%s726_s1] ss:$0 sm:$0xff] }
 0xb76   : > { %v4465_v42 = vpop.f32.mrf.mxu0 }
 0xb77   : > { %v4466_v44 = vadd.f32 %v4974_v57, %v4465_v42  ;;  %v4480_v39 = vmax.f32 %v4474_v35, 0.0 }
 0xb79   : > { %v4478_v43 = vmax.f32 %v4466_v44, 0.0  ;;  %v4498_v1 = vpack.c.bf16 %v4480_v39, %v4479_v4 }
 0xb7b   : > { %v4497_v62 = vpack.c.bf16 %v4478_v43, %v4477_v48 }
 0xb7d   : > { %5210 = vmatprep.mubr.bf16.mxu1 %v4497_v62 }
 0xb7e   : > { %5211 = vmatmul.mubr.bf16.vlgmr.msra.gmra.mxu1 %v4498_v1 }
 0xc3e   : > { %v5212_v25 = vpop.f32.mrf.mxu1 }
 0xc3f   : > { %v4597_v55 = vadd.f32 %v5212_v25, %v4979_v18 }
 0xc40   : > { %v4588_v47 = vpop.f32.mrf.mxu1 }
 0xc41   : > { %v4589_v52 = vadd.f32 %v4979_v18, %v4588_v47  ;;  %v4605_v51 = vadd.f32 %v4597_v55, %v4395_v56 }
 0xc42   : > { %v5213_v61 = vpop.f32.mrf.mxu1 }
 0xc43   : > { %v4603_v6 = vadd.f32 %v4589_v52, %v4393_v32  ;;  %v4600_v8 = vadd.f32 %v5213_v61, %v4979_v18  ;;  %v4615_v2 = vsel %vm855_vm3, %v4605_v51, 0.0 }
 0xc44   : > { %v4591_v26 = vpop.f32.mrf.mxu1 }
 0xc45   : > { %v4592_v31 = vadd.f32 %v4979_v18, %v4591_v26  ;;  %v4609_v36 = vsel %vm855_vm3, %v4603_v6, 0.0  ;;  %v4606_v21 = vadd.f32 %v4600_v8, %v4396_v37 }
 0xc46   : > { %4610 = vadd.xlane.f32.xlu1 %v4609_v36 }
 0xc47   : > { %v4604_v15 = vadd.f32 %v4592_v31, %v4394_v0  ;;  %v4618_v22 = vsel %vm855_vm3, %v4606_v21, 0.0 }
 0xc49   : > { %v4612_v20 = vsel %vm855_vm3, %v4604_v15, 0.0 }
 0xc4a   : > { %4613 = vadd.xlane.f32.xlu0 %v4612_v20  ;;  %4616 = vadd.xlane.f32.xlu1 %v4615_v2 }
 0xc4e   : > { %4619 = vadd.xlane.f32.xlu0 %v4618_v22 }
 0xccf   : > { %v4611_v45 = vpop.xlane.xlu1 %4610 }
 0xcd0   : > { %v4621_v3 = vmul.f32 0.03125, %v4611_v45 }
 0xcd2   : > { %v4625_v17 = vsub.f32 %v4603_v6, %v4621_v3 }
 0xcd3   : > { %v4614_v30 = vpop.xlane.xlu0 %4613  ;;  %v4617_v41 = vpop.xlane.xlu1 %4616 }
 0xcd4   : > { %v4622_v19 = vmul.f32 0.03125, %v4614_v30  ;;  %v4623_v58 = vmul.f32 0.03125, %v4617_v41  ;;  %v4629_v27 = vmul.f32 %v4625_v17, %v4625_v17 }
 0xcd6   : > { %v4626_v7 = vsub.f32 %v4604_v15, %v4622_v19  ;;  %v4627_v11 = vsub.f32 %v4605_v51, %v4623_v58  ;;  %v4633_v28 = vsel %vm855_vm3, %v4629_v27, 0.0 }
 0xcd7   : > { %v4620_v54 = vpop.xlane.xlu0 %4619  ;;  %4634 = vadd.xlane.f32.xlu1 %v4633_v28 }
 0xcd8   : > { %v4624_v23 = vmul.f32 0.03125, %v4620_v54  ;;  %v4630_v60 = vmul.f32 %v4626_v7, %v4626_v7  ;;  %v4631_v40 = vmul.f32 %v4627_v11, %v4627_v11 }
 0xcda   : > { %v4628_v50 = vsub.f32 %v4606_v21, %v4624_v23  ;;  %v4636_v29 = vsel %vm855_vm3, %v4630_v60, 0.0  ;;  %v4639_v13 = vsel %vm855_vm3, %v4631_v40, 0.0 }
 0xcdb   : > { %4637 = vadd.xlane.f32.xlu0 %v4636_v29  ;;  %4640 = vadd.xlane.f32.xlu1 %v4639_v13 }
 0xcdc   : > { %v4632_v49 = vmul.f32 %v4628_v50, %v4628_v50 }
 0xcde   : > { %v4642_v34 = vsel %vm855_vm3, %v4632_v49, 0.0 }
 0xcdf   : > { %4643 = vadd.xlane.f32.xlu0 %v4642_v34 }
 0xd60   : > { %v4635_v16 = vpop.xlane.xlu1 %4634 }
 0xd61   : > { %v4645_v46 = vmul.f32 0.03125, %v4635_v16 }
 0xd63   : > { %v4649_v32 = vadd.f32 1e-05, %v4645_v46 }
 0xd64   : > { %v4638_v0 = vpop.xlane.xlu0 %4637  ;;  %v4641_v14 = vpop.xlane.xlu1 %4640 }
 0xd65   : > { %5367 = vrsqrt.f32 %v4649_v32  ;;  %v4646_v12 = vmul.f32 0.03125, %v4638_v0  ;;  %v4647_v56 = vmul.f32 0.03125, %v4641_v14 }
 0xd67   : > { %v4650_v37 = vadd.f32 1e-05, %v4646_v12  ;;  %v4651_v59 = vadd.f32 1e-05, %v4647_v56 }
 0xd68   : > { %v4644_v5 = vpop.xlane.xlu0 %4643 }
 0xd69   : > { %5369 = vrsqrt.f32 %v4650_v37  ;;  %v4648_v38 = vmul.f32 0.03125, %v4644_v5 }
 0xd6a   : > { %5371 = vrsqrt.f32 %v4651_v59 }
 0xd6b   : > { %v4652_v33 = vadd.f32 1e-05, %v4648_v38 }
 0xd6d   : > { %5373 = vrsqrt.f32 %v4652_v33 }
 0xd72   : > { %v5368_v53 = vpop.eup %5367 }
 0xd73   : > { %v4657_v57 = vmul.f32 %v5368_v53, %v4625_v17 }
 0xd75   : > { %v4667_v9 = vmul.f32 %v4988_v10, %v4657_v57 }
 0xd76   : > { %v5370_v35 = vpop.eup %5369 }
 0xd77   : > { %v5372_v24 = vpop.eup %5371  ;;  %v4677_v42 = vadd.f32 %v4989_v63, %v4667_v9  ;;  %v4658_v44 = vmul.f32 %v5370_v35, %v4626_v7 }
 0xd78   : > { %v4659_v39 = vmul.f32 %v5372_v24, %v4627_v11 }
 0xd79   : > { %4681 = vst.msk [vmem:[#allocation2] sm:$0xff] %vm855_vm3, %v4677_v42  ;;  %v4668_v48 = vmul.f32 %v4988_v10, %v4658_v44 }
 0xd7a   : > { %v5374_v43 = vpop.eup %5373  ;;  %v4669_v4 = vmul.f32 %v4988_v10, %v4659_v39 }
 0xd7b   : > { %v4678_v62 = vadd.f32 %v4989_v63, %v4668_v48  ;;  %v4660_v1 = vmul.f32 %v5374_v43, %v4628_v50 }
 0xd7c   : > { %v4679_v25 = vadd.f32 %v4989_v63, %v4669_v4 }
 0xd7d   : > { %4682 = vst.msk [vmem:[#allocation2 + $0x8] sm:$0xff] %vm855_vm3, %v4678_v62  ;;  %v4670_v18 = vmul.f32 %v4988_v10, %v4660_v1  ;;  %4688 = sbr.rel (%p4990_p6) target bundleno = 3462 (0xd86), region = 92 }
 0xd7e   : > { %4683 = vst.msk [vmem:[#allocation2 + $0x10] sm:$0xff] %vm855_vm3, %v4679_v25 }
 0xd7f   : > { %v4680_v47 = vadd.f32 %v4989_v63, %v4670_v18 }
 0xd81   : > { %4684 = vst.msk [vmem:[#allocation2 + $0x18] sm:$0xff] %vm855_vm3, %v4680_v47 }
 0xd82   : > { %v5003_v55 = vpack.c.bf16 %v4677_v42, %v4677_v42  ;;  %vm4705_vm8 = vcmask 257024   ;;  %v5004_v52 = vpack.c.bf16 %v4678_v62, %v4678_v62  ;;  %v5005_v61 = vpack.c.bf16 %v4679_v25, %v4679_v25 }
 0xd83   : > { %v5006_v6 = vpack.c.bf16 %v4680_v47, %v4680_v47 }
 0xd84   : > { %4706 = vst.msk [vmem:[%s6488_s30] sm:$0xf] %vm4705_vm8, %v5003_v55  ;;  %4707 = vst.msk [vmem:[%s6488_s30 + $0x4] sm:$0xf] %vm4705_vm8, %v5004_v52 }
 0xd85   : > { %4708 = vst.msk [vmem:[%s6488_s30 + $0x8] sm:$0xf] %vm4705_vm8, %v5005_v61  ;;  %4709 = vst.msk [vmem:[%s6488_s30 + $0xc] sm:$0xf] %vm4705_vm8, %v5006_v6 }
 0xd86 PF: > { %s6489_s20 = sld [smem:[#allocation4_spill]] }
 0xd87   : > { %s6490_s21 = sld [smem:[#allocation3_spill]] }
 0xd88   : > { %s6491_s22 = sld [smem:[#allocation5_spill]] }
 0xd8c   : > { %s26_s23 = sadd.s32 1, %s6489_s20  }
 0xd8d   : > { %p23_p7 = scmp.ge.s32.totalorder %s26_s23, 4  }
 0xd8f   :  { %25 = sbr.rel (!%p23_p7) target bundleno = 7 (0x7), region = 158 }

// kernel: _lambda_.7
= control target key start
LH: loop header
LB: loop body
LE: loop exit
PB: predicated region body
PF: predicated region fallthrough
CT: control target
= control target key end

     0   :  { %vm52_vm0 = vcmask 1043456   ;;  %v882_v2 = vmov 0.0   ;;  %vm48_vm1 = vcmask 64512   ;;  %vm155_vm2 = vcmask 1041408   ;;  %s1043_s0 = inlined_call_operand.vmem [shape: bf16[2,16,32], index: 0, kind: input, shape index: {}]   ;;  %s1044_s1 = inlined_call_operand.vmem [shape: bf16[2,8,32], index: 1, kind: input, shape index: {}]   ;;  %s1045_s2 = inlined_call_operand.vmem [shape: bf16[2,4,32], index: 2, kind: input, shape index: {}]   ;;  %s1046_s3 = inlined_call_operand.vmem [shape: bf16[16,8], index: 3, kind: input, shape index: {}]   ;;  %s1047_s4 = inlined_call_operand.vmem [shape: bf16[16,4], index: 4, kind: input, shape index: {}]   ;;  %s1048_s5 = inlined_call_operand.vmem [shape: bf16[96,32], index: 5, kind: input, shape index: {}]   ;;  %s1049_s6 = inlined_call_operand.vmem [shape: f32[1,32], index: 6, kind: input, shape index: {}]   ;;  %s1050_s7 = inlined_call_operand.vmem [shape: bf16[32,32], index: 7, kind: input, shape index: {}]   ;;  %s1051_s8 = inlined_call_operand.vmem [shape: f32[1,32], index: 8, kind: input, shape index: {}]   ;;  %s1052_s9 = inlined_call_operand.vmem [shape: bf16[32,8], index: 9, kind: input, shape index: {}]   ;;  %s1053_s10 = inlined_call_operand.vmem [shape: f32[1,8], index: 10, kind: input, shape index: {}]   ;;  %s1054_s11 = inlined_call_operand.hbm [shape: f32[2,1,8], index: 11, kind: output, shape index: {}]  }
   0x1   :  { %v42_v0 = vld [vmem:[%s1044_s1] sm:$0xf]  ;;  %v719_v1 = vld [vmem:[%s1044_s1 + $0x4] sm:$0xf]  ;;  %776 = vmatprep.subr.bf16.mxu0 %v882_v2  ;;  %782 = vmatprep.subr.bf16.mxu1 %v882_v2  ;;  %vm883_vm3 = vmmov 0   ;;  %vm151_vm4 = vcmask 31744  }
   0x2   :  { %v54_v3 = vsel %vm52_vm0, %v42_v0, 0  ;;  %v100_v4 = vsel %vm52_vm0, %v719_v1, 0  ;;  %v846_v5 = vld [vmem:[%s1046_s3] sm:$0xff]   ;;  %778 = vmatprep.mubr.msk.bf16.mxu0 %vm883_vm3, %v882_v2  ;;  %784 = vmatprep.mubr.msk.bf16.mxu1 %vm883_vm3, %v882_v2 }
   0x3   :  { %777 = vmatpush3.bf16.msra.mxu0 %v54_v3  ;;  %783 = vmatpush3.bf16.msra.mxu1 %v100_v4  ;;  %v145_v6 = vld [vmem:[%s1045_s2] sm:$0x3]  ;;  %v723_v8 = vld [vmem:[%s1045_s2 + $0x2] sm:$0x3] }
   0x4   :  { %v157_v7 = vsel %vm155_vm2, %v145_v6, 0  ;;  %788 = vmatprep.subr.bf16.mxu0 %v882_v2  ;;  %794 = vmatprep.subr.bf16.mxu1 %v882_v2  ;;  %v203_v9 = vsel %vm155_vm2, %v723_v8, 0  ;;  %v847_v10 = vld [vmem:[%s1047_s4] sm:$0xff]  }
   0x6   :  { %779 = vmatmul.mubr.msk.bf16.vlgmr.msra.gmra.mxu0 %vm48_vm1, %v846_v5  ;;  %785 = vmatmul.mubr.msk.bf16.vlgmr.msra.gmra.mxu1 %vm48_vm1, %v846_v5 }
   0x7   :  { %789 = vmatpush3.bf16.msra.mxu0 %v157_v7  ;;  %795 = vmatpush3.bf16.msra.mxu1 %v203_v9 }
   0x8   :  { %790 = vmatprep.mubr.msk.bf16.mxu0 %vm883_vm3, %v882_v2  ;;  %796 = vmatprep.mubr.msk.bf16.mxu1 %vm883_vm3, %v882_v2 }
   0x9   :  { %16 = vsyncpa [#allocation3], 0  ;;  %v848_v11 = vld [vmem:[%s1048_s5 + $0x18] sm:$0xff]   ;;  %v849_v12 = vld [vmem:[%s1048_s5 + $0x8] sm:$0xff]   ;;  %vm272_vm5 = vcmask 261120   ;;  %vm615_vm6 = vcmask 1041409  }
   0xa   :  { %800 = vmatprep.subr.bf16.mxu0 %v848_v11  ;;  %808 = vmatprep.subr.bf16.mxu1 %v849_v12  ;;  %v850_v13 = vld [vmem:[%s1048_s5 + $0x10] sm:$0xff]   ;;  %v851_v14 = vld [vmem:[%s1048_s5] sm:$0xff]   ;;  %v853_v16 = vld [vmem:[%s1043_s0 + $0x8] sm:$0xff]   ;;  %s885_s27 = smov [#allocation2]   ;;  %vm698_vm7 = vcmask 57344  }
   0xb   :  { %v852_v15 = vld [vmem:[%s1043_s0] sm:$0xff]   ;;  %v854_v17 = vld [vmem:[%s1048_s5 + $0x28] sm:$0xff]   ;;  %s706_s28 = sshll.u32 %s885_s27, 4  ;;  %s707_s28 = int_to_ptr.vmem [resolvable:$true] %s706_s28 }
   0xc   :  { %v855_v28 = vld [vmem:[%s1048_s5 + $0x20] sm:$0xff]   ;;  %v856_v39 = vld [vmem:[%s1050_s7 + $0x8] sm:$0xff]   ;;  %s860_s29 = scalar_lea.vmem %s707_s28, 32  ;;  %p865_p1 = scmp.lt.s32.totalorder %s707_s28, %s707_s28 }
   0xd   :  { %v857_v40 = vld [vmem:[%s1050_s7] sm:$0xff]   ;;  %v858_v5 = vld [vmem:[%s1052_s9 + $0x8] sm:$0xff]   ;;  %p861_p0 = scmp.ne.s32.totalorder %s707_s28, %s860_s29  ;;  %p866_p2 = scmp.lt.s32.totalorder %s860_s29, %s860_s29 }
   0xe   :  { %791 = vmatmul.mubr.msk.bf16.vlgmr.msra.gmra.mxu0 %vm151_vm4, %v847_v10  ;;  %797 = vmatmul.mubr.msk.bf16.vlgmr.msra.gmra.mxu1 %vm151_vm4, %v847_v10  ;;  %v739_v60 = vld [vmem:[%s1049_s6] ss:$0 sm:$0xff] }
   0xf   :  { %801 = vmatpush3.bf16.msra.mxu0 %v848_v11  ;;  %809 = vmatpush3.bf16.msra.mxu1 %v849_v12  ;;  %v859_v6 = vld [vmem:[%s1052_s9] sm:$0xff]   ;;  %p867_p3 = por %p866_p2, %p865_p1 }
  0x10   :  { %802 = vmatprep.subr.bf16.mxu0 %v850_v13  ;;  %810 = vmatprep.subr.bf16.mxu1 %v851_v14  ;;  %v740_v7 = vld [vmem:[%s1051_s8] ss:$0 sm:$0xff] }
  0x11   :  { %812 = vmatprep.mubr.msk.bf16.mxu1 %vm272_vm5, %v852_v15  ;;  %p868_p4 = pnand %p867_p3, %p861_p0 }
  0x13   :  { %803 = vmatpush3.bf16.msra.mxu0 %v850_v13  ;;  %811 = vmatpush3.bf16.msra.mxu1 %v851_v14 }
  0x14   :  { %816 = vmatprep.subr.bf16.mxu0 %v854_v17  ;;  %824 = vmatprep.subr.bf16.mxu1 %v856_v39 }
  0x16   :  { %813 = vmatmul.mubr.msk.bf16.vlgmr.msra.gmra.mxu1 %vm272_vm5, %v853_v16 }
  0x17   :  { %825 = vmatpush3.bf16.msra.mxu1 %v856_v39 }
  0x18   :  { %826 = vmatprep.subr.bf16.mxu1 %v857_v40 }
  0x1b   :  { %827 = vmatpush3.bf16.msra.mxu1 %v857_v40 }
  0xc6   :  { %v90_v18 = vpop.f32.mrf.mxu0  ;;  %v136_v19 = vpop.f32.mrf.mxu1 }
  0xc8   :  { %v780_v20 = vpop.f32.mrf.mxu0  ;;  %v786_v21 = vpop.f32.mrf.mxu1 }
  0xca   :  { %v93_v22 = vpop.f32.mrf.mxu0  ;;  %v139_v23 = vpop.f32.mrf.mxu1 }
  0xcb   :  { %v258_v24 = vpack.c.bf16 %v93_v22, %v90_v18  ;;  %v259_v25 = vpack.c.bf16 %v139_v23, %v136_v19 }
  0xcc   :  { %v781_v26 = vpop.f32.mrf.mxu0  ;;  %v787_v27 = vpop.f32.mrf.mxu1 }
  0xcd   :  { %804 = vmatprep.mubr.msk.bf16.mxu0 %vm272_vm5, %v258_v24 }
  0xce   :  { %v193_v29 = vpop.f32.mrf.mxu0  ;;  %v239_v30 = vpop.f32.mrf.mxu1  ;;  %805 = vmatmul.mubr.msk.bf16.vlgmr.msra.gmra.mxu0 %vm272_vm5, %v259_v25 }
  0xcf   :  { %817 = vmatpush3.bf16.msra.mxu0 %v854_v17 }
  0xd0   :  { %v792_v31 = vpop.f32.mrf.mxu0  ;;  %v798_v32 = vpop.f32.mrf.mxu1  ;;  %818 = vmatprep.subr.bf16.mxu0 %v855_v28 }
  0xd2   :  { %v196_v33 = vpop.f32.mrf.mxu0  ;;  %v242_v34 = vpop.f32.mrf.mxu1 }
  0xd3   :  { %v409_v35 = vpack.c.bf16 %v196_v33, %v193_v29  ;;  %v410_v36 = vpack.c.bf16 %v242_v34, %v239_v30  ;;  %819 = vmatpush3.bf16.msra.mxu0 %v855_v28 }
  0xd4   :  { %v793_v37 = vpop.f32.mrf.mxu0  ;;  %v799_v38 = vpop.f32.mrf.mxu1  ;;  %832 = vmatprep.subr.bf16.mxu0 %v882_v2 }
  0xd5   :  { %820 = vmatprep.mubr.msk.bf16.mxu0 %vm272_vm5, %v409_v35 }
  0xd6   :  { %821 = vmatmul.mubr.msk.bf16.vlgmr.msra.gmra.mxu0 %vm272_vm5, %v410_v36  ;;  %v814_v41 = vpop.f32.mrf.mxu1 }
  0xd7   :  { %836 = vmatprep.mubr.msk.bf16.mxu0 %vm883_vm3, %v882_v2  ;;  %833 = vmatpush3.bf16.msra.mxu0 %v858_v5 }
  0xd8   :  { %v390_v44 = vpop.f32.mrf.mxu1  ;;  %834 = vmatprep.subr.bf16.mxu0 %v882_v2 }
  0xda   :  { %v815_v46 = vpop.f32.mrf.mxu1 }
  0xdb   :  { %835 = vmatpush3.bf16.msra.mxu0 %v859_v6 }
  0xdc   :  { %v393_v49 = vpop.f32.mrf.mxu1 }
 0x18e   :  { %v806_v42 = vpop.f32.mrf.mxu0 }
 0x18f   :  { %v399_v53 = vadd.f32 %v814_v41, %v806_v42 }
 0x190   :  { %v313_v43 = vpop.f32.mrf.mxu0 }
 0x191   :  { %v391_v51 = vadd.f32 %v390_v44, %v313_v43 }
 0x192   :  { %v807_v45 = vpop.f32.mrf.mxu0 }
 0x193   :  { %v402_v52 = vadd.f32 %v815_v46, %v807_v45  ;;  %v884_v45 = vmov 1966171168  }
 0x194   :  { %v316_v47 = vpop.f32.mrf.mxu0  ;;  %v675_v46 = vunpack.c.l.s4 %v884_v45 }
 0x195   :  { %v394_v55 = vadd.f32 %v393_v49, %v316_v47  ;;  %v677_v47 = vlaneseq }
 0x196   :  { %v822_v48 = vpop.f32.mrf.mxu0 }
 0x197   :  { %v480_v58 = vadd.f32 %v822_v48, %v399_v53  ;;  %v676_v48 = vunpack.c.0.s8 %v675_v46  ;;  %v678_v49 = vshrl.u32 %v677_v47, 7 }
 0x198   :  { %v463_v50 = vpop.f32.mrf.mxu0 }
 0x199   :  { %v478_v56 = vadd.f32 %v463_v50, %v391_v51  ;;  %v491_v1 = vadd.f32 %v739_v60, %v480_v58  ;;  %v745_v50 = vld [vmem:[%s1053_s10] ss:$0 sm:$0xff]  ;;  %v679_v51 = vsub.s32 %v676_v48, %v678_v49 }
 0x19a   :  { %v823_v54 = vpop.f32.mrf.mxu0 }
 0x19b   :  { %v481_v57 = vadd.f32 %v823_v54, %v402_v52  ;;  %v489_v63 = vadd.f32 %v739_v60, %v478_v56 }
 0x19c   :  { %v466_v59 = vpop.f32.mrf.mxu0 }
 0x19d   :  { %v479_v61 = vadd.f32 %v466_v59, %v394_v55  ;;  %v492_v62 = vadd.f32 %v739_v60, %v481_v57 }
 0x19f   :  { %v490_v0 = vadd.f32 %v739_v60, %v479_v61  ;;  %v498_v4 = vpack.c.bf16 %v492_v62, %v491_v1 }
 0x1a1   :  { %v497_v3 = vpack.c.bf16 %v490_v0, %v489_v63 }
 0x1a3   :  { %828 = vmatprep.mubr.msk.bf16.mxu1 %vm272_vm5, %v497_v3 }
 0x1a4   :  { %829 = vmatmul.mubr.msk.bf16.vlgmr.msra.gmra.mxu1 %vm272_vm5, %v498_v4 }
 0x264   :  { %v830_v8 = vpop.f32.mrf.mxu1 }
 0x265   :  { %v567_v9 = vadd.f32 %v830_v8, %v740_v7 }
 0x266   :  { %v558_v10 = vpop.f32.mrf.mxu1 }
 0x267   :  { %v559_v11 = vadd.f32 %v740_v7, %v558_v10  ;;  %v575_v13 = vmax.f32 %v567_v9, 0.0 }
 0x268   :  { %v831_v12 = vpop.f32.mrf.mxu1 }
 0x269   :  { %v570_v14 = vadd.f32 %v831_v12, %v740_v7  ;;  %v573_v16 = vmax.f32 %v559_v11, 0.0  ;;  %v586_v18 = vsel %vm272_vm5, %v575_v13, 0.0 }
 0x26a   :  { %v561_v15 = vpop.f32.mrf.mxu1 }
 0x26b   :  { %v576_v17 = vmax.f32 %v570_v14, 0.0  ;;  %v562_v2 = vadd.f32 %v740_v7, %v561_v15  ;;  %v577_v22 = vsel %vm272_vm5, %v573_v16, 0.0 }
 0x26d   :  { %v587_v19 = vsel %vm272_vm5, %v576_v17, 0.0  ;;  %v574_v20 = vmax.f32 %v562_v2, 0.0 }
 0x26e   :  { %v588_v21 = vadd.f32 %v587_v19, %v586_v18 }
 0x26f   :  { %v578_v23 = vsel %vm272_vm5, %v574_v20, 0.0 }
 0x270   :  { %v589_v24 = vrot.slane %v588_v21, 4  ;;  %v579_v25 = vadd.f32 %v578_v23, %v577_v22 }
 0x272   :  { %v590_v26 = vadd.f32 %v589_v24, %v588_v21  ;;  %v580_v27 = vrot.slane %v579_v25, 4 }
 0x274   :  { %v591_v28 = vrot.slane %v590_v26, 2  ;;  %v581_v29 = vadd.f32 %v580_v27, %v579_v25 }
 0x276   :  { %v592_v30 = vadd.f32 %v591_v28, %v590_v26  ;;  %v582_v31 = vrot.slane %v581_v29, 2 }
 0x278   :  { %v593_v32 = vrot.slane %v592_v30, 1  ;;  %v583_v33 = vadd.f32 %v582_v31, %v581_v29 }
 0x27a   :  { %v594_v34 = vadd.f32 %v593_v32, %v592_v30  ;;  %v584_v35 = vrot.slane %v583_v33, 1 }
 0x27c   :  { %v597_v36 = vmul.f32 0.0625, %v594_v34  ;;  %v585_v37 = vadd.f32 %v584_v35, %v583_v33 }
 0x27e   :  { %v603_v38 = vpack.c.bf16 %v597_v36, %v597_v36  ;;  %v596_v39 = vmul.f32 0.0625, %v585_v37 }
 0x280   :  { %v602_v40 = vpack.c.bf16 %v596_v39, %v596_v39  ;;  %v614_v41 = vunpack.c.l.b16 %v603_v38 }
 0x282   :  { %v613_v42 = vunpack.c.l.b16 %v602_v40 }
 0x284   :  { %v616_v43 = vsel %vm615_vm6, %v614_v41, %v613_v42 }
 0x285   :  { %v617_v44 = vpack.c.b16 %v616_v43, %v616_v43 }
 0x287   :  { %837 = vmatmul.mubr.msk.bf16.vlgmr.msra.gmra.mxu0 %vm272_vm5, %v617_v44 }
 0x347   :  { %v667_v52 = vpop.f32.mrf.mxu0 }
 0x348   :  { %v668_v53 = vadd.f32 %v745_v50, %v667_v52 }
 0x349   :  { %v838_v54 = vpop.f32.mrf.mxu0 }
 0x34a   :  { %v680_v55 = vrot.slane %v668_v53, %v679_v51 }
 0x34b   :  { %v670_v56 = vpop.f32.mrf.mxu0 }
 0x34c   :  { %v681_v57 = vcombine.high %v680_v55, %v680_v55  ;;  %v688_v58 = vrot.slane %v680_v55, %v679_v51 }
 0x34d   :  { %v839_v59 = vpop.f32.mrf.mxu0 }
 0x34e   :  { %v695_v60 = vrot.slane %v681_v57, %v679_v51  ;;  %699 = vst.msk [vmem:[#allocation2] sm:$0x1] %vm698_vm7, %v688_v58 }
 0x350   :  { %700 = vst.msk [vmem:[#allocation2 + $0x1] sm:$0x1] %vm698_vm7, %v695_v60 }
 0x351   :  { %871 = shalt.err (!%p868_p4)
}
 0x352   :  { %s886_s10 = smov 16   ;;  %s887_s30 = smov 1  }
 0x353   :  { %712 = dma.vmem_to_hbm [thread:$0]  %s707_s28, 32, %s1054_s11, [#allocation3], %s886_s10, %s886_s10, %s887_s30  }
 0x354   :  { %880 = dma.done.wait [#allocation3], 32  }
 0x355   :  { %881 = vsyncadd [#allocation3], 4294967264 }
 0x356   :  { %716 = vsyncpa [#allocation3], 1 }

// kernel: _lambda_.6
= control target key start
LH: loop header
LB: loop body
LE: loop exit
PB: predicated region body
PF: predicated region fallthrough
CT: control target
= control target key end

     0   :  { %s3516_s21 = smov 0   ;;  %s3518_s22 = smov 0   ;;  %s4003_s0 = inlined_call_operand.vmem [shape: f32[2,4,4], index: 0, kind: input, shape index: {}]   ;;  %s4004_s1 = inlined_call_operand.vmem [shape: bf16[4,32], index: 1, kind: input, shape index: {}]   ;;  %s4005_s2 = inlined_call_operand.vmem [shape: bf16[4,32], index: 2, kind: input, shape index: {}]   ;;  %s4006_s3 = inlined_call_operand.vmem [shape: f32[1,32], index: 3, kind: input, shape index: {}]   ;;  %s4007_s4 = inlined_call_operand.vmem [shape: bf16[2,32,96], index: 4, kind: input, shape index: {}]   ;;  %s4008_s5 = inlined_call_operand.vmem [shape: f32[2,1,96], index: 5, kind: input, shape index: {}]   ;;  %s4009_s6 = inlined_call_operand.vmem [shape: bf16[2,32,32], index: 6, kind: input, shape index: {}]   ;;  %s4010_s7 = inlined_call_operand.vmem [shape: f32[2,1,32], index: 7, kind: input, shape index: {}]   ;;  %s4011_s8 = inlined_call_operand.vmem [shape: f32[2,1,32], index: 8, kind: input, shape index: {}]   ;;  %s4012_s9 = inlined_call_operand.vmem [shape: f32[2,1,32], index: 9, kind: input, shape index: {}]   ;;  %s4013_s10 = inlined_call_operand.vmem [shape: bf16[2,32,128], index: 10, kind: input, shape index: {}]   ;;  %s4014_s11 = inlined_call_operand.vmem [shape: f32[2,1,128], index: 11, kind: input, shape index: {}]   ;;  %s4015_s12 = inlined_call_operand.vmem [shape: bf16[2,128,32], index: 12, kind: input, shape index: {}]   ;;  %s4016_s13 = inlined_call_operand.vmem [shape: f32[2,1,32], index: 13, kind: input, shape index: {}]   ;;  %s4017_s14 = inlined_call_operand.vmem [shape: f32[2,1,32], index: 14, kind: input, shape index: {}]   ;;  %s4018_s15 = inlined_call_operand.vmem [shape: f32[2,1,32], index: 15, kind: input, shape index: {}]   ;;  %s4019_s16 = inlined_call_operand.vmem [shape: bf16[2,4,32], index: 16, kind: output, shape index: {}]  }
   0x1   :  { %4024 = sst [smem:[#allocation7_spill]] %s4003_s0  ;;  %s3520_s23 = smov 0  }
   0x2   :  { %4025 = sst [smem:[#allocation8_spill]] %s4004_s1 }
   0x3   :  { %4026 = sst [smem:[#allocation9_spill]] %s4006_s3 }
   0x4   :  { %4027 = sst [smem:[#allocation10_spill]] %s4007_s4 }
   0x5   :  { %4028 = sst [smem:[#allocation11_spill]] %s4009_s6 }
   0x6   :  { %4029 = sst [smem:[#allocation12_spill]] %s4019_s16 }
   0x7 LB: > { %4030 = sst [smem:[#allocation3_spill]] %s3409_s22  ;;  %s35_s24 = sadd.s32 1, %s3409_s22  ;;  %s3413_s23 = sphi %s3520_s23, %s26_s23   ;;  %s3409_s22 = sphi %s3518_s22, %s4047_s22   ;;  %s3405_s21 = sphi %s3516_s21, %s4046_s21  }
   0x8   : > { %4031 = sst [smem:[#allocation4_spill]] %s3413_s23  ;;  %p3019_p0 = scmp.ge.s32.totalorder %s3413_s23, 1 }
   0x9   : > { %p36_p1 = scmp.ge.s32.totalorder %s35_s24, 2  ;;  %p579_p2 = scmp.lt.s32.totalorder %s3413_s23, 3 }
   0xb   : > { %s4049_s24 = smov (%p36_p1, %s35_s24), 0  ;;  %p580_p3 = pnand %p3019_p0, %p579_p2 }
   0xc   : > { %4032 = sst [smem:[#allocation5_spill]] %s4049_s24 }
   0xd   : > { %583 = sbr.rel (%p580_p3) target bundleno = 3381 (0xd35), region = 84 }
  0x12   : > { %p679_p4 = scmp.lt.s32.totalorder %s3405_s21, 1  ;;  %s4033_s4 = sld [smem:[#allocation10_spill]] }
  0x13   : > { %s4034_s6 = sld [smem:[#allocation11_spill]]  ;;  %p3028_p5 = scmp.ne.s32.totalorder %s3405_s21, 0 }
  0x14   : > { %s3538_s25 = scalar_select %p679_p4, %s3405_s21, 1 }
  0x15   : > { %s4036_s24 = sld [smem:[#allocation7_spill]] (!%p3028_p5) }
  0x16   : > { %s3085_s26 = sshll.u32 %s3538_s25, 4  ;;  %s716_s27 = scalar_lea.vmem %s4016_s13, %s3538_s25 }
  0x17   : > { %s719_s30 = scalar_lea.vmem %s4017_s14, %s3538_s25  ;;  %s722_s1 = scalar_lea.vmem %s4018_s15, %s3538_s25 }
  0x18   : > { %s3548_s17 = scalar_lea.vmem %s4033_s4, %s3085_s26  ;;  %s3570_s4 = scalar_lea.vmem %s4013_s10, %s3085_s26 }
  0x19   : > { %s3553_s20 = scalar_lea.vmem %s4034_s6, %s3085_s26  ;;  %s708_s6 = scalar_lea.vmem %s4014_s11, %s3538_s25 }
  0x1a   : > { %4035 = sst [smem:[#allocation6_spill]] %s3553_s20  ;;  %s3088_s20 = sshll.u32 %s3538_s25, 6 }
  0x1b   : > { %s3580_s23 = scalar_lea.vmem %s4015_s12, %s3088_s20  ;;  %733 = sbr.rel (%p3028_p5) target bundleno = 237 (0xed), region = 88 }
  0x1c   : > { %s4037_s16 = sld [smem:[#allocation8_spill]] (!%p3028_p5) }
  0x1d   : > { %s4038_s0 = sld [smem:[#allocation9_spill]] (!%p3028_p5) }
  0x20   : > { %v736_v0 = vld [vmem:[%s4005_s2] sm:$0x3]  ;;  %vm753_vm0 = vcmask 1041408   ;;  %v3415_v2 = vmov 0.0   ;;  %vm3416_vm1 = vmmov 0   ;;  %vm749_vm2 = vcmask 31744  }
  0x21   : > { %v3327_v1 = vld [vmem:[%s4036_s24] sm:$0xff]   ;;  %3141 = vmatprep.subr.bf16.mxu0 %v3415_v2  ;;  %v755_v3 = vsel %vm753_vm0, %v736_v0, 0  ;;  %3143 = vmatprep.mubr.msk.bf16.mxu0 %vm3416_vm1, %v3415_v2  ;;  %vm804_vm3 = vcmask 257024  }
  0x22   : > { %3142 = vmatpush3.bf16.msra.mxu0 %v755_v3  ;;  %v741_v4 = vpack.c.bf16 %v3327_v1, %v3327_v1  ;;  %v800_v5 = vld [vmem:[%s4037_s16] sm:$0x3] }
  0x23   : > { %v3029_v6 = vld [vmem:[%s4038_s0] ss:$0 sm:$0xff]  ;;  %v801_v7 = vunpack.c.l.bf16 %v800_v5 }
  0x25   : > { %3144 = vmatmul.mubr.msk.bf16.vlgmr.msra.gmra.mxu0 %vm749_vm2, %v741_v4 }
  0xe5   : > { %v791_v8 = vpop.f32.mrf.mxu0 }
  0xe6   : > { %v792_v9 = vadd.f32 %v3029_v6, %v791_v8 }
  0xe7   : > { %v3145_v10 = vpop.f32.mrf.mxu0 }
  0xe8   : > { %v798_v11 = vcombine.high %v792_v9, %v792_v9  ;;  %v802_v12 = vadd.f32 %v801_v7, %v792_v9 }
  0xe9   : > { %v794_v13 = vpop.f32.mrf.mxu0 }
  0xea   : > { %v803_v14 = vadd.f32 %v801_v7, %v798_v11  ;;  %805 = vst.msk [vmem:[#allocation2] sm:$0xf] %vm804_vm3, %v802_v12 }
  0xeb   : > { %v3146_v15 = vpop.f32.mrf.mxu0 }
  0xec   : > { %806 = vst.msk [vmem:[#allocation2 + $0x4] sm:$0xf] %vm804_vm3, %v803_v14 }
  0xed PF: > { %v3338_v16 = vld [vmem:[%s3548_s17 + $0x8] sm:$0xff]   ;;  %v3417_v17 = vmov 0.0   ;;  %v3339_v18 = vld [vmem:[%s3548_s17] sm:$0xff]   ;;  %vm3418_vm4 = vmmov 0   ;;  %vm837_vm5 = vcmask 261120   ;;  %s4039_s19 = scalar_lea.vmem %s4008_s5, %s3538_s25  ;;  %s3419_s20 = smov 104   ;;  %v895_v34 = vlaneseq }
  0xee   : > { %3147 = vmatprep.subr.bf16.mxu0 %v3417_v17  ;;  %3167 = vmatprep.subr.bf16.mxu1 %v3417_v17  ;;  %v3031_v23 = vld [vmem:[%s4039_s19] ss:$0 sm:$0xff]  ;;  %s3420_s22 = smov 120   ;;  %s3421_s24 = smov 96   ;;  %v3423_v32 = vmov 1983009808  }
  0xef   : > { %3148 = vmatpush3.bf16.msra.mxu0 %v3338_v16  ;;  %3151 = vmatprep.mubr.msk.bf16.mxu0 %vm3418_vm4, %v3417_v17  ;;  %s3422_s29 = smov 112   ;;  %v893_v33 = vunpack.c.l.s4 %v3423_v32  ;;  %v3644_v36 = vshrl.u32 %v895_v34, 7  ;;  %v3424_v37 = vmov 1934713408   ;;  %vm1131_vm6 = vcmask 64512   ;;  %s3425_s3 = smov 64  }
  0xf0   : > { %3149 = vmatprep.subr.bf16.mxu0 %v3417_v17  ;;  %3169 = vmatprep.mubr.msk.bf16.mxu1 %vm3418_vm4, %v3417_v17  ;;  %v910_v38 = vunpack.c.l.s4 %v3424_v37  ;;  %vm1320_vm7 = vcmask 27648   ;;  %vm1373_vm8 = vcmask 1041408   ;;  %vm1369_vm9 = vcmask 31744   ;;  %s4040_s16 = sld [smem:[#allocation6_spill]]  ;;  %s3426_s28 = smov 16  }
  0xf1   : > { %v807_v19 = vld [vmem:[#allocation2] sm:$0xf]  ;;  %v894_v35 = vunpack.c.0.s8 %v893_v33  ;;  %s3427_s26 = smov 8   ;;  %s3428_s0 = smov 24   ;;  %vm1636_vm10 = vcmask 130048   ;;  %vm1638_vm11 = vcmask 195584  }
  0xf2   : > { %v911_v43 = vunpack.c.0.s8 %v910_v38  ;;  %vm2394_vm12 = vcmask 1043456   ;;  %s4041_s19 = scalar_lea.vmem %s4010_s7, %s3538_s25  ;;  %vm2818_vm13 = vcmask 257024   ;;  %p3080_p6 = scmp.ne.s32.totalorder %s3405_s21, 1 }
  0xf3   : > { %v808_v20 = vld [vmem:[#allocation2 + $0x4] sm:$0xf]  ;;  %3150 = vmatpush3.bf16.msra.mxu0 %v3339_v18  ;;  %v3649_v40 = vsub.s32 %v894_v35, %v3644_v36 }
  0xf4   : > { %v815_v21 = vcombine.low %v807_v19, %v808_v20  ;;  %3155 = vmatprep.subr.bf16.mxu0 %v3417_v17  ;;  %v3656_v47 = vsub.s32 %v911_v43, %v3644_v36 }
  0xf6   : > { %v817_v22 = vpack.c.bf16 %v815_v21, %v815_v21 }
  0xf8   : > { %3152 = vmatmul.mubr.msk.bf16.vlgmr.msra.gmra.mxu0 %vm837_vm5, %v817_v22 }
  0xf9   : > { %3157 = vmatprep.mubr.msk.bf16.mxu0 %vm3418_vm4, %v3417_v17 }
 0x1b8   : > { %v875_v24 = vpop.f32.mrf.mxu0 }
 0x1b9   : > { %v3625_v25 = vadd.f32 %v3031_v23, %v875_v24 }
 0x1ba   : > { %v3153_v26 = vpop.f32.mrf.mxu0 }
 0x1bb   : > { %888 = vrot.lane.b32.xlu1 %v3625_v25, %s3419_s20  ;;  %882 = vrot.lane.b32.xlu0 %v3625_v25, %s3420_s22  ;;  %s4042_s22 = scalar_lea.vmem %s4011_s8, %s3538_s25 }
 0x1bc   : > { %v878_v27 = vpop.f32.mrf.mxu0 }
 0x1be   : > { %v3154_v28 = vpop.f32.mrf.mxu0 }
 0x1bf   : > { %963 = vrot.lane.b32.xlu1 %v3625_v25, %s3421_s24  ;;  %885 = vrot.lane.b32.xlu0 %v3625_v25, %s3422_s29 }
 0x22d   : > { %v3632_v29 = vpop.permute.xlu0 %882  ;;  %v3636_v30 = vpop.permute.xlu1 %888 }
 0x22e   : > { %965 = vrot.lane.b32.xlu0 %v3632_v29, %s3421_s24  ;;  %v899_v41 = vcombine.low %v3632_v29, %v3636_v30 }
 0x230   : > { %v906_v46 = vrot.slane %v899_v41, %v3649_v40 }
 0x231   : > { %v3638_v31 = vpop.permute.xlu0 %885  ;;  %v964_v42 = vpop.permute.xlu1 %963 }
 0x232   : > { %969 = vrot.lane.b32.xlu0 %v3636_v30, %s3421_s24  ;;  %967 = vrot.lane.b32.xlu1 %v3638_v31, %s3421_s24  ;;  %v891_v39 = vcombine.low %v3625_v25, %v3638_v31 }
 0x234   : > { %v898_v45 = vrot.slane %v891_v39, %v3649_v40 }
 0x236   : > { %v907_v50 = vcombine.low %v898_v45, %v906_v46  ;;  %v908_v51 = vcombine.high %v898_v45, %v906_v46 }
 0x238   : > { %v915_v56 = vrot.slane %v907_v50, %v3656_v47  ;;  %v922_v57 = vrot.slane %v908_v51, %v3656_v47 }
 0x23a   : > { %v925_v62 = vcombine.low %v915_v56, %v922_v57  ;;  %v3035_v63 = vcombine.high %v915_v56, %v922_v57 }
 0x23c   : > { %v932_v4 = vrot.slane %v925_v62, %v3649_v40  ;;  %v940_v5 = vrot.slane %v3035_v63, %v3649_v40  ;;  %v3709_v62 = vrot.slane %v3632_v29, 4  ;;  %v3712_v63 = vrot.slane %v3625_v25, 4 }
 0x23e   : > { %v941_v12 = vcombine.low %v932_v4, %v940_v5  ;;  %v942_v13 = vcombine.high %v932_v4, %v940_v5 }
 0x240   : > { %v949_v18 = vrot.slane %v941_v12, %v3656_v47  ;;  %v956_v19 = vrot.slane %v942_v13, %v3656_v47 }
 0x242   : > { %v959_v21 = vpack.c.bf16 %v949_v18, %v949_v18  ;;  %v961_v22 = vpack.c.bf16 %v956_v19, %v956_v19  ;;  %v957_v26 = vcombine.high %v949_v18, %v3417_v17  ;;  %v958_v33 = vcombine.high %v956_v19, %v3417_v17 }
 0x244   : > { %v960_v28 = vpack.c.bf16 %v957_v26, %v957_v26  ;;  %v962_v34 = vpack.c.bf16 %v958_v33, %v958_v33 }
 0x2a0   : > { %v966_v44 = vpop.permute.xlu0 %965 }
 0x2a4   : > { %v968_v48 = vpop.permute.xlu1 %967  ;;  %v970_v49 = vpop.permute.xlu0 %969 }
 0x2a5   : > { %v975_v52 = vcombine.low %v964_v42, %v968_v48  ;;  %v983_v53 = vcombine.low %v966_v44, %v970_v49 }
 0x2a7   : > { %v982_v54 = vrot.slane %v975_v52, %v3649_v40  ;;  %v990_v55 = vrot.slane %v983_v53, %v3649_v40 }
 0x2a9   : > { %v991_v58 = vcombine.low %v982_v54, %v990_v55  ;;  %v992_v59 = vcombine.high %v982_v54, %v990_v55 }
 0x2ab   : > { %v999_v60 = vrot.slane %v991_v58, %v3656_v47  ;;  %v1006_v61 = vrot.slane %v992_v59, %v3656_v47 }
 0x2ad   : > { %v1009_v0 = vcombine.low %v999_v60, %v1006_v61  ;;  %v3036_v1 = vcombine.high %v999_v60, %v1006_v61 }
 0x2af   : > { %v1016_v2 = vrot.slane %v1009_v0, %v3649_v40  ;;  %v1024_v3 = vrot.slane %v3036_v1, %v3649_v40 }
 0x2b1   : > { %v1025_v6 = vcombine.low %v1016_v2, %v1024_v3  ;;  %v1026_v7 = vcombine.high %v1016_v2, %v1024_v3 }
 0x2b3   : > { %v1033_v8 = vrot.slane %v1025_v6, %v3656_v47  ;;  %v1040_v9 = vrot.slane %v1026_v7, %v3656_v47 }
 0x2b5   : > { %v1043_v10 = vpack.c.bf16 %v1033_v8, %v1033_v8  ;;  %v1045_v11 = vpack.c.bf16 %v1040_v9, %v1040_v9  ;;  %v1041_v16 = vcombine.high %v1033_v8, %v3417_v17  ;;  %v1042_v24 = vcombine.high %v1040_v9, %v3417_v17 }
 0x2b7   : > { %v1136_v14 = vsel %vm1131_vm6, %v1043_v10, 0  ;;  %v1228_v15 = vsel %vm1131_vm6, %v1045_v11, 0  ;;  %v1044_v20 = vpack.c.bf16 %v1041_v16, %v1041_v16  ;;  %v1046_v27 = vpack.c.bf16 %v1042_v24, %v1042_v24 }
 0x2b8   : > { %3156 = vmatpush3.bf16.xpose.msra.mxu0 %v1136_v14  ;;  %3168 = vmatpush3.bf16.xpose.msra.mxu1 %v1228_v15 }
 0x2b9   : > { %3161 = vmatprep.subr.bf16.mxu0 %v3417_v17  ;;  %3179 = vmatprep.subr.bf16.mxu1 %v3417_v17  ;;  %v1182_v23 = vsel %vm1131_vm6, %v1044_v20, 0  ;;  %v1274_v32 = vsel %vm1131_vm6, %v1046_v27, 0 }
 0x2bf   : > { %3158 = vmatmul.mubr.msk.bf16.vlgmr.msra.gmra.mxu0 %vm1131_vm6, %v959_v21  ;;  %3170 = vmatmul.mubr.msk.bf16.vlgmr.msra.gmra.mxu1 %vm1131_vm6, %v961_v22 }
 0x2c0   : > { %3162 = vmatpush3.bf16.xpose.msra.mxu0 %v1182_v23  ;;  %3163 = vmatprep.mubr.msk.bf16.mxu0 %vm3418_vm4, %v3417_v17 }
 0x2c1   : > { %3173 = vmatprep.subr.bf16.mxu0 %v3417_v17  ;;  %3181 = vmatprep.mubr.msk.bf16.mxu1 %vm3418_vm4, %v3417_v17 }
 0x2c7   : > { %3164 = vmatmul.mubr.msk.bf16.vlgmr.msra.gmra.mxu0 %vm1131_vm6, %v960_v28 }
 0x2c8   : > { %3174 = vmatpush3.bf16.xpose.msra.mxu0 %v1274_v32  ;;  %3175 = vmatprep.mubr.msk.bf16.mxu0 %vm3418_vm4, %v3417_v17 }
 0x2c9   : > { %3185 = vmatprep.subr.bf16.mxu0 %v3417_v17 }
 0x2cf   : > { %3176 = vmatmul.mubr.msk.bf16.vlgmr.msra.gmra.mxu0 %vm1131_vm6, %v962_v34 }
 0x2d0   : > { %3187 = vmatprep.mubr.msk.bf16.mxu0 %vm3418_vm4, %v3417_v17 }
 0x37f   : > { %v1172_v35 = vpop.f32.mrf.mxu0  ;;  %v1264_v37 = vpop.f32.mrf.mxu1 }
 0x380   : > { %v1316_v38 = vmul.f32 0.35355338, %v1172_v35  ;;  %v1318_v51 = vmul.f32 0.35355338, %v1264_v37 }
 0x381   : > { %v3159_v39 = vpop.f32.mrf.mxu0  ;;  %v3171_v41 = vpop.f32.mrf.mxu1 }
 0x382   : > { %v1321_v42 = vsel %vm1320_vm7, %v1316_v38, -inf  ;;  %v1327_v55 = vsel %vm1320_vm7, %v1318_v51, -inf }
 0x383   : > { %v1267_v43 = vpop.f32.mrf.mxu1  ;;  %1322 = vmax.xlane.f32.xlu1 %v1321_v42  ;;  %v1175_v44 = vpop.f32.mrf.mxu0 }
 0x385   : > { %v3160_v45 = vpop.f32.mrf.mxu0  ;;  %v3172_v46 = vpop.f32.mrf.mxu1 }
 0x387   : > { %v1218_v48 = vpop.f32.mrf.mxu0 }
 0x388   : > { %v1317_v49 = vmul.f32 0.35355338, %v1218_v48 }
 0x389   : > { %v3165_v50 = vpop.f32.mrf.mxu0 }
 0x38a   : > { %v1324_v52 = vsel %vm1320_vm7, %v1317_v49, -inf  ;;  %v3744_v50 = vrot.slane %v3638_v31, 4 }
 0x38b   : > { %1325 = vmax.xlane.f32.xlu0 %v1324_v52  ;;  %v1221_v53 = vpop.f32.mrf.mxu0 }
 0x38d   : > { %v3166_v54 = vpop.f32.mrf.mxu0 }
 0x38f   : > { %1328 = vmax.xlane.f32.xlu0 %v1327_v55  ;;  %v1310_v56 = vpop.f32.mrf.mxu0 }
 0x390   : > { %v1319_v57 = vmul.f32 0.35355338, %v1310_v56  ;;  %v1648_v56 = vcombine.low %v3712_v63, %v3744_v50 }
 0x391   : > { %v3177_v58 = vpop.f32.mrf.mxu0 }
 0x392   : > { %v1330_v59 = vsel %vm1320_vm7, %v1319_v57, -inf }
 0x393   : > { %1331 = vmax.xlane.f32.xlu1 %v1330_v59  ;;  %v1313_v60 = vpop.f32.mrf.mxu0 }
 0x394   : > { %v1655_v60 = vrot.slane %v1648_v56, %v3649_v40 }
 0x395   : > { %v3178_v61 = vpop.f32.mrf.mxu0 }
 0x3a4   : > { %1049 = vrot.lane.b32.xlu1 %v3632_v29, %s3425_s3 }
 0x3a5   : > { %1047 = vrot.lane.b32.xlu0 %v3625_v25, %s3425_s3 }
 0x3a8   : > { %1051 = vrot.lane.b32.xlu1 %v3638_v31, %s3425_s3 }
 0x3a9   : > { %1053 = vrot.lane.b32.xlu0 %v3636_v30, %s3425_s3 }
 0x3ac   : > { %1722 = vrot.lane.b32.xlu1 %v3709_v62, %s3421_s24 }
 0x3ad   : > { %1720 = vrot.lane.b32.xlu0 %v3712_v63, %s3421_s24 }
 0x40c   : > { %v1323_v0 = vpop.xlane.xlu1 %1322 }
 0x40d   : > { %v1333_v1 = vsub.f32 %v1316_v38, %v1323_v0 }
 0x40f   : > { %v1337_v2 = vmul.f32 1.442695, %v1333_v1 }
 0x411   : > { %3353 = vpow2.f32 %v1337_v2 }
 0x414   : > { %v1326_v3 = vpop.xlane.xlu0 %1325 }
 0x415   : > { %v1334_v4 = vsub.f32 %v1317_v49, %v1326_v3 }
 0x417   : > { %v1339_v7 = vmul.f32 1.442695, %v1334_v4 }
 0x418   : > { %v1329_v5 = vpop.xlane.xlu0 %1328 }
 0x419   : > { %v1335_v6 = vsub.f32 %v1318_v51, %v1329_v5  ;;  %v3749_v51 = vrot.slane %v3636_v30, 4 }
 0x41b   : > { %v1341_v29 = vmul.f32 1.442695, %v1335_v6  ;;  %v1656_v58 = vcombine.low %v3709_v62, %v3749_v51 }
 0x41c   : > { %v1048_v8 = vpop.permute.xlu0 %1047  ;;  %v1332_v9 = vpop.xlane.xlu1 %1331 }
 0x41d   : > { %3355 = vpow2.f32 %v1341_v29  ;;  %v1336_v25 = vsub.f32 %v1319_v57, %v1332_v9  ;;  %v1663_v2 = vrot.slane %v1656_v58, %v3649_v40 }
 0x41e   : > { %v3354_v10 = vpop.eup %3353  ;;  %3357 = vpow2.f32 %v1339_v7 }
 0x41f   : > { %v1343_v11 = vmul.f32 1.442695, %v1336_v25  ;;  %v1345_v12 = vsel %vm1320_vm7, %v3354_v10, 0.0  ;;  %v1664_v4 = vcombine.low %v1655_v60, %v1663_v2  ;;  %v1665_v5 = vcombine.high %v1655_v60, %v1663_v2 }
 0x420   : > { %1346 = vadd.xlane.f32.xlu0 %v1345_v12  ;;  %v1054_v13 = vpop.permute.xlu0 %1053  ;;  %v1050_v14 = vpop.permute.xlu1 %1049 }
 0x421   : > { %3359 = vpow2.f32 %v1343_v11  ;;  %v1067_v15 = vcombine.low %v1050_v14, %v1054_v13  ;;  %v1679_v11 = vrot.slane %v1665_v5, %v3656_v47 }
 0x423   : > { %v1074_v19 = vrot.slane %v1067_v15, %v3649_v40 }
 0x424   : > { %v1052_v16 = vpop.permute.xlu1 %1051  ;;  %v1721_v52 = vpop.permute.xlu0 %1720 }
 0x425   : > { %v1059_v18 = vcombine.low %v1048_v8, %v1052_v16 }
 0x427   : > { %v1066_v20 = vrot.slane %v1059_v18, %v3649_v40 }
 0x428   : > { %v1723_v54 = vpop.permute.xlu1 %1722 }
 0x429   : > { %v1075_v21 = vcombine.low %v1066_v20, %v1074_v19  ;;  %v1076_v22 = vcombine.high %v1066_v20, %v1074_v19 }
 0x42a   : > { %v3721_v23 = vpop.eup %3355 }
 0x42b   : > { %v1083_v24 = vrot.slane %v1075_v21, %v3656_v47  ;;  %v1090_v26 = vrot.slane %v1076_v22, %v3656_v47  ;;  %v1351_v27 = vsel %vm1320_vm7, %v3721_v23, 0.0  ;;  %v3727_v28 = vpop.eup %3357 }
 0x42c   : > { %1352 = vadd.xlane.f32.xlu1 %v1351_v27  ;;  %v1348_v38 = vsel %vm1320_vm7, %v3727_v28, 0.0 }
 0x42d   : > { %v1093_v32 = vcombine.low %v1083_v24, %v1090_v26  ;;  %v3037_v33 = vcombine.high %v1083_v24, %v1090_v26 }
 0x42e   : > { %v3729_v34 = vpop.eup %3359 }
 0x42f   : > { %v1100_v35 = vrot.slane %v1093_v32, %v3649_v40  ;;  %v1108_v37 = vrot.slane %v3037_v33, %v3649_v40  ;;  %v1354_v39 = vsel %vm1320_vm7, %v3729_v34, 0.0 }
 0x430   : > { %1349 = vadd.xlane.f32.xlu1 %v1348_v38  ;;  %1355 = vadd.xlane.f32.xlu0 %v1354_v39 }
 0x431   : > { %v1109_v41 = vcombine.low %v1100_v35, %v1108_v37  ;;  %v1110_v42 = vcombine.high %v1100_v35, %v1108_v37 }
 0x433   : > { %v1117_v43 = vrot.slane %v1109_v41, %v3656_v47  ;;  %v1124_v55 = vrot.slane %v1110_v42, %v3656_v47 }
 0x435   : > { %v1127_v44 = vpack.c.bf16 %v1117_v43, %v1117_v43  ;;  %v1125_v45 = vcombine.high %v1117_v43, %v3417_v17  ;;  %v1129_v59 = vpack.c.bf16 %v1124_v55, %v1124_v55  ;;  %v1126_v20 = vcombine.high %v1124_v55, %v3417_v17 }
 0x437   : > { %v1375_v46 = vsel %vm1373_vm8, %v1127_v44, 0  ;;  %v1128_v48 = vpack.c.bf16 %v1125_v45, %v1125_v45  ;;  %v1467_v3 = vsel %vm1373_vm8, %v1129_v59, 0  ;;  %v1130_v37 = vpack.c.bf16 %v1126_v20, %v1126_v20 }
 0x438   : > { %3180 = vmatpush3.bf16.msra.mxu1 %v1375_v46 }
 0x439   : > { %v1421_v49 = vsel %vm1373_vm8, %v1128_v48, 0  ;;  %3191 = vmatprep.subr.bf16.mxu1 %v3417_v17  ;;  %v1513_v45 = vsel %vm1373_vm8, %v1130_v37, 0 }
 0x43a   : > { %3186 = vmatpush3.bf16.msra.mxu0 %v1421_v49 }
 0x43b   : > { %3197 = vmatprep.subr.bf16.mxu0 %v3417_v17 }
 0x441   : > { %1724 = vrot.lane.b32.xlu1 %v3744_v50, %s3421_s24 }
 0x446   : > { %1726 = vrot.lane.b32.xlu0 %v3749_v51, %s3421_s24 }
 0x4a9   : > { %v1347_v53 = vpop.xlane.xlu0 %1346 }
 0x4aa   : > { %3361 = vrcp.f32 %v1347_v53 }
 0x4b5   : > { %v1353_v31 = vpop.xlane.xlu1 %1352 }
 0x4b6   : > { %3363 = vrcp.f32 %v1353_v31 }
 0x4b7   : > { %v3362_v57 = vpop.eup %3361 }
 0x4b8   : > { %v1361_v30 = vmul.f32 %v3362_v57, %v3354_v10  ;;  %v1672_v10 = vrot.slane %v1664_v4, %v3656_v47 }
 0x4b9   : > { %v1356_v61 = vpop.xlane.xlu0 %1355  ;;  %v1350_v0 = vpop.xlane.xlu1 %1349 }
 0x4ba   : > { %v1365_v1 = vpack.c.bf16 %v1361_v30, %v1361_v30  ;;  %3365 = vrcp.f32 %v1350_v0  ;;  %v1682_v19 = vcombine.low %v1672_v10, %v1679_v11  ;;  %v3047_v21 = vcombine.high %v1672_v10, %v1679_v11 }
 0x4bb   : > { %3367 = vrcp.f32 %v1356_v61 }
 0x4bc   : > { %3182 = vmatmul.mubr.msk.bf16.vlgmr.msra.gmra.mxu1 %vm1369_vm9, %v1365_v1  ;;  %v1689_v38 = vrot.slane %v1682_v19, %v3649_v40  ;;  %v1697_v39 = vrot.slane %v3047_v21, %v3649_v40 }
 0x4bd   : > { %3192 = vmatpush3.bf16.msra.mxu1 %v1467_v3  ;;  %v1727_v6 = vpop.permute.xlu0 %1726  ;;  %v1725_v7 = vpop.permute.xlu1 %1724  ;;  %3193 = vmatprep.mubr.msk.bf16.mxu1 %vm3418_vm4, %v3417_v17 }
 0x4be   : > { %v1740_v29 = vcombine.low %v1723_v54, %v1727_v6  ;;  %v1732_v8 = vcombine.low %v1721_v52, %v1725_v7  ;;  %3203 = vmatprep.subr.bf16.mxu1 %v3417_v17  ;;  %v1698_v48 = vcombine.low %v1689_v38, %v1697_v39  ;;  %v1699_v30 = vcombine.high %v1689_v38, %v1697_v39 }
 0x4c0   : > { %v1747_v9 = vrot.slane %v1740_v29, %v3649_v40  ;;  %v1739_v25 = vrot.slane %v1732_v8, %v3649_v40  ;;  %v1706_v55 = vrot.slane %v1698_v48, %v3656_v47  ;;  %v1713_v0 = vrot.slane %v1699_v30, %v3656_v47 }
 0x4c2   : > { %v1748_v12 = vcombine.low %v1739_v25, %v1747_v9  ;;  %v1749_v13 = vcombine.high %v1739_v25, %v1747_v9  ;;  %v1714_v59 = vcombine.high %v1706_v55, %v3417_v17  ;;  %v1718_v3 = vpack.c.bf16 %v1713_v0, %v1713_v0 }
 0x4c3   : > { %v3364_v14 = vpop.eup %3363  ;;  %v1715_v4 = vcombine.high %v1713_v0, %v3417_v17 }
 0x4c4   : > { %v1756_v15 = vrot.slane %v1748_v12, %v3656_v47  ;;  %v1763_v16 = vrot.slane %v1749_v13, %v3656_v47  ;;  %v1363_v18 = vmul.f32 %v3364_v14, %v3721_v23  ;;  %v1717_v1 = vpack.c.bf16 %v1714_v59, %v1714_v59 }
 0x4c5   : > { %v1719_v5 = vpack.c.bf16 %v1715_v4, %v1715_v4 }
 0x4c6   : > { %v1766_v22 = vcombine.low %v1756_v15, %v1763_v16  ;;  %v3048_v24 = vcombine.high %v1756_v15, %v1763_v16  ;;  %v1367_v26 = vpack.c.bf16 %v1363_v18, %v1363_v18 }
 0x4c7   : > { %v3366_v27 = vpop.eup %3365 }
 0x4c8   : > { %v1773_v32 = vrot.slane %v1766_v22, %v3649_v40  ;;  %v1781_v33 = vrot.slane %v3048_v24, %v3649_v40  ;;  %3194 = vmatmul.mubr.msk.bf16.vlgmr.msra.gmra.mxu1 %vm1369_vm9, %v1367_v26  ;;  %v1362_v35 = vmul.f32 %v3366_v27, %v3727_v28  ;;  %v3368_v42 = vpop.eup %3367 }
 0x4c9   : > { %3205 = vmatprep.mubr.msk.bf16.mxu1 %vm3418_vm4, %v3417_v17  ;;  %v1364_v49 = vmul.f32 %v3368_v42, %v3729_v34  ;;  %v1716_v34 = vpack.c.bf16 %v1706_v55, %v1706_v55 }
 0x4ca   : > { %v1782_v23 = vcombine.low %v1773_v32, %v1781_v33  ;;  %v1366_v41 = vpack.c.bf16 %v1362_v35, %v1362_v35  ;;  %v1783_v44 = vcombine.high %v1773_v32, %v1781_v33 }
 0x4cb   : > { %v1368_v56 = vpack.c.bf16 %v1364_v49, %v1364_v49 }
 0x4cc   : > { %v1790_v43 = vrot.slane %v1782_v23, %v3656_v47  ;;  %3188 = vmatmul.mubr.msk.bf16.vlgmr.msra.gmra.mxu0 %vm1369_vm9, %v1366_v41  ;;  %v1797_v54 = vrot.slane %v1783_v44, %v3656_v47 }
 0x4cd   : > { %3198 = vmatpush3.bf16.msra.mxu0 %v1513_v45  ;;  %3199 = vmatprep.mubr.msk.bf16.mxu0 %vm3418_vm4, %v3417_v17 }
 0x4ce   : > { %v1800_v28 = vpack.c.bf16 %v1790_v43, %v1790_v43  ;;  %v1798_v46 = vcombine.high %v1790_v43, %v3417_v17  ;;  %3209 = vmatprep.subr.bf16.mxu0 %v3417_v17  ;;  %v1802_v57 = vpack.c.bf16 %v1797_v54, %v1797_v54  ;;  %v1799_v58 = vcombine.high %v1797_v54, %v3417_v17 }
 0x4d0   : > { %v1892_v52 = vsel %vm1131_vm6, %v1800_v28, 0  ;;  %v1801_v53 = vpack.c.bf16 %v1798_v46, %v1798_v46  ;;  %v1984_v60 = vsel %vm1131_vm6, %v1802_v57, 0  ;;  %v1803_v61 = vpack.c.bf16 %v1799_v58, %v1799_v58 }
 0x4d1   : > { %3204 = vmatpush3.bf16.xpose.msra.mxu1 %v1892_v52 }
 0x4d2   : > { %3215 = vmatprep.subr.bf16.mxu1 %v3417_v17  ;;  %v1938_v31 = vsel %vm1131_vm6, %v1801_v53, 0  ;;  %v2030_v2 = vsel %vm1131_vm6, %v1803_v61, 0 }
 0x4d4   : > { %3200 = vmatmul.mubr.msk.bf16.vlgmr.msra.gmra.mxu0 %vm1369_vm9, %v1368_v56 }
 0x4d5   : > { %3210 = vmatpush3.bf16.xpose.msra.mxu0 %v1938_v31  ;;  %3211 = vmatprep.mubr.msk.bf16.mxu0 %vm3418_vm4, %v3417_v17 }
 0x4d6   : > { %3221 = vmatprep.subr.bf16.mxu0 %v3417_v17 }
 0x4d8   : > { %3206 = vmatmul.mubr.msk.bf16.vlgmr.msra.gmra.mxu1 %vm1131_vm6, %v1716_v34 }
 0x4d9   : > { %3216 = vmatpush3.bf16.xpose.msra.mxu1 %v1984_v60  ;;  %3217 = vmatprep.mubr.msk.bf16.mxu1 %vm3418_vm4, %v3417_v17 }
 0x4da   : > { %3227 = vmatprep.subr.bf16.mxu1 %v3417_v17 }
 0x4dc   : > { %3212 = vmatmul.mubr.msk.bf16.vlgmr.msra.gmra.mxu0 %vm1131_vm6, %v1717_v1 }
 0x4dd   : > { %3222 = vmatpush3.bf16.xpose.msra.mxu0 %v2030_v2  ;;  %3223 = vmatprep.mubr.msk.bf16.mxu0 %vm3418_vm4, %v3417_v17 }
 0x4de   : > { %3233 = vmatprep.subr.bf16.mxu0 %v3417_v17 }
 0x4e0   : > { %3218 = vmatmul.mubr.msk.bf16.vlgmr.msra.gmra.mxu1 %vm1131_vm6, %v1718_v3 }
 0x4e1   : > { %3229 = vmatprep.mubr.msk.bf16.mxu1 %vm3418_vm4, %v3417_v17 }
 0x4e4   : > { %3224 = vmatmul.mubr.msk.bf16.vlgmr.msra.gmra.mxu0 %vm1131_vm6, %v1719_v5 }
 0x4e5   : > { %3235 = vmatprep.mubr.msk.bf16.mxu0 %vm3418_vm4, %v3417_v17 }
 0x57c   : > { %v1411_v6 = vpop.f32.mrf.mxu1 }
 0x57e   : > { %v3183_v7 = vpop.f32.mrf.mxu1 }
 0x580   : > { %v1414_v29 = vpop.f32.mrf.mxu1 }
 0x582   : > { %v3184_v8 = vpop.f32.mrf.mxu1 }
 0x588   : > { %v1503_v9 = vpop.f32.mrf.mxu1 }
 0x589   : > { %v1555_v25 = vcombine.low %v1411_v6, %v1503_v9 }
 0x58a   : > { %v3195_v10 = vpop.f32.mrf.mxu1 }
 0x58b   : > { %v1562_v21 = vrot.slane %v1555_v25, %v3649_v40 }
 0x58c   : > { %v1506_v11 = vpop.f32.mrf.mxu1  ;;  %v1457_v12 = vpop.f32.mrf.mxu0 }
 0x58e   : > { %v3196_v13 = vpop.f32.mrf.mxu1  ;;  %v3189_v14 = vpop.f32.mrf.mxu0 }
 0x590   : > { %v1460_v15 = vpop.f32.mrf.mxu0 }
 0x592   : > { %v3190_v16 = vpop.f32.mrf.mxu0 }
 0x594   : > { %v1549_v18 = vpop.f32.mrf.mxu0 }
 0x595   : > { %v1563_v19 = vcombine.low %v1457_v12, %v1549_v18 }
 0x596   : > { %v3201_v20 = vpop.f32.mrf.mxu0 }
 0x597   : > { %v1570_v22 = vrot.slane %v1563_v19, %v3649_v40 }
 0x598   : > { %v1928_v24 = vpop.f32.mrf.mxu1  ;;  %v1552_v26 = vpop.f32.mrf.mxu0 }
 0x599   : > { %v2072_v27 = vmul.f32 0.35355338, %v1928_v24  ;;  %v1571_v32 = vcombine.low %v1562_v21, %v1570_v22  ;;  %v1572_v33 = vcombine.high %v1562_v21, %v1570_v22 }
 0x59a   : > { %v3207_v35 = vpop.f32.mrf.mxu1  ;;  %v3202_v37 = vpop.f32.mrf.mxu0 }
 0x59b   : > { %v2076_v23 = vsel %vm1320_vm7, %v2072_v27, -inf  ;;  %v1579_v38 = vrot.slane %v1571_v32, %v3656_v47  ;;  %v1586_v39 = vrot.slane %v1572_v33, %v3656_v47 }
 0x59c   : > { %2077 = vmax.xlane.f32.xlu1 %v2076_v23  ;;  %v1931_v41 = vpop.f32.mrf.mxu1  ;;  %v1974_v42 = vpop.f32.mrf.mxu0 }
 0x59d   : > { %v1589_v43 = vcombine.low %v1579_v38, %v1586_v39  ;;  %v3046_v44 = vcombine.high %v1579_v38, %v1586_v39  ;;  %v2073_v45 = vmul.f32 0.35355338, %v1974_v42 }
 0x59e   : > { %v3208_v28 = vpop.f32.mrf.mxu1  ;;  %v3213_v46 = vpop.f32.mrf.mxu0 }
 0x59f   : > { %v2079_v49 = vsel %vm1320_vm7, %v2073_v45, -inf  ;;  %v3825_v52 = vrot.slane %v1589_v43, %v3649_v40  ;;  %v3828_v53 = vrot.slane %v3046_v44, %v3649_v40 }
 0x5a0   : > { %v2020_v48 = vpop.f32.mrf.mxu1  ;;  %2080 = vmax.xlane.f32.xlu0 %v2079_v49  ;;  %v1977_v55 = vpop.f32.mrf.mxu0 }
 0x5a1   : > { %v2074_v54 = vmul.f32 0.35355338, %v2020_v48  ;;  %v1606_v31 = vcombine.high %v3825_v52, %v3828_v53  ;;  %v1605_v57 = vcombine.low %v3825_v52, %v3828_v53 }
 0x5a2   : > { %v3219_v56 = vpop.f32.mrf.mxu1  ;;  %v3214_v58 = vpop.f32.mrf.mxu0 }
 0x5a3   : > { %v2082_v34 = vsel %vm1320_vm7, %v2074_v54, -inf }
 0x5a4   : > { %v2023_v30 = vpop.f32.mrf.mxu1  ;;  %2083 = vmax.xlane.f32.xlu0 %v2082_v34  ;;  %v2066_v59 = vpop.f32.mrf.mxu0 }
 0x5a5   : > { %v2075_v60 = vmul.f32 0.35355338, %v2066_v59 }
 0x5a6   : > { %v3220_v61 = vpop.f32.mrf.mxu1  ;;  %v3225_v0 = vpop.f32.mrf.mxu0 }
 0x5a7   : > { %v2085_v1 = vsel %vm1320_vm7, %v2075_v60, -inf }
 0x5a8   : > { %2086 = vmax.xlane.f32.xlu1 %v2085_v1  ;;  %v2069_v2 = vpop.f32.mrf.mxu0 }
 0x5aa   : > { %v3226_v3 = vpop.f32.mrf.mxu0 }
 0x5b9   : > { %1806 = vrot.lane.b32.xlu1 %v3709_v62, %s3425_s3 }
 0x5ba   : > { %1804 = vrot.lane.b32.xlu0 %v3712_v63, %s3425_s3 }
 0x625   : > { %v2078_v4 = vpop.xlane.xlu1 %2077 }
 0x626   : > { %v2088_v5 = vsub.f32 %v2072_v27, %v2078_v4 }
 0x628   : > { %v2092_v6 = vmul.f32 1.442695, %v2088_v5 }
 0x629   : > { %v2081_v7 = vpop.xlane.xlu0 %2080 }
 0x62a   : > { %3369 = vpow2.f32 %v2092_v6  ;;  %v2089_v29 = vsub.f32 %v2073_v45, %v2081_v7 }
 0x62c   : > { %v2094_v8 = vmul.f32 1.442695, %v2089_v29 }
 0x62d   : > { %v2084_v12 = vpop.xlane.xlu0 %2083 }
 0x62e   : > { %3371 = vpow2.f32 %v2094_v8  ;;  %v2090_v14 = vsub.f32 %v2074_v54, %v2084_v12 }
 0x630   : > { %v2096_v15 = vmul.f32 1.442695, %v2090_v14 }
 0x631   : > { %v2087_v62 = vpop.xlane.xlu1 %2086 }
 0x632   : > { %v2091_v63 = vsub.f32 %v2075_v60, %v2087_v62 }
 0x634   : > { %v2098_v13 = vmul.f32 1.442695, %v2091_v63 }
 0x635   : > { %v1807_v21 = vpop.permute.xlu1 %1806 }
 0x636   : > { %3373 = vpow2.f32 %v2098_v13 }
 0x637   : > { %v3370_v9 = vpop.eup %3369  ;;  %3375 = vpow2.f32 %v2096_v15 }
 0x638   : > { %v2100_v25 = vsel %vm1320_vm7, %v3370_v9, 0.0 }
 0x639   : > { %2101 = vadd.xlane.f32.xlu0 %v2100_v25 }
 0x63b   : > { %v3372_v10 = vpop.eup %3371 }
 0x63c   : > { %v2103_v11 = vsel %vm1320_vm7, %v3372_v10, 0.0 }
 0x63d   : > { %2104 = vadd.xlane.f32.xlu1 %v2103_v11 }
 0x643   : > { %v3846_v16 = vpop.eup %3373 }
 0x644   : > { %v2109_v18 = vsel %vm1320_vm7, %v3846_v16, 0.0  ;;  %v3850_v19 = vpop.eup %3375 }
 0x64e   : > { %1808 = vrot.lane.b32.xlu1 %v3744_v50, %s3425_s3  ;;  %v2106_v50 = vsel %vm1320_vm7, %v3850_v19, 0.0 }
 0x64f   : > { %1810 = vrot.lane.b32.xlu0 %v3749_v51, %s3425_s3  ;;  %v1805_v51 = vpop.permute.xlu0 %1804  ;;  %s4043_s3 = scalar_lea.vmem %s4012_s9, %s3538_s25 }
 0x66e   : > { %2110 = vadd.xlane.f32.xlu0 %v2109_v18 }
 0x672   : > { %2107 = vadd.xlane.f32.xlu1 %v2106_v50 }
 0x6c2   : > { %v2102_v20 = vpop.xlane.xlu0 %2101 }
 0x6c3   : > { %3377 = vrcp.f32 %v2102_v20 }
 0x6c6   : > { %v1811_v22 = vpop.permute.xlu0 %1810  ;;  %v2105_v24 = vpop.xlane.xlu1 %2104 }
 0x6c7   : > { %v1824_v26 = vcombine.low %v1807_v21, %v1811_v22  ;;  %3379 = vrcp.f32 %v2105_v24 }
 0x6c9   : > { %v1831_v33 = vrot.slane %v1824_v26, %v3649_v40 }
 0x6ca   : > { %v1809_v27 = vpop.permute.xlu1 %1808 }
 0x6cb   : > { %v1816_v32 = vcombine.low %v1805_v51, %v1809_v27 }
 0x6cd   : > { %v1823_v35 = vrot.slane %v1816_v32, %v3649_v40 }
 0x6cf   : > { %v1832_v37 = vcombine.low %v1823_v35, %v1831_v33  ;;  %v1833_v23 = vcombine.high %v1823_v35, %v1831_v33 }
 0x6d0   : > { %v3378_v46 = vpop.eup %3377 }
 0x6d1   : > { %v1840_v38 = vrot.slane %v1832_v37, %v3656_v47  ;;  %v1847_v39 = vrot.slane %v1833_v23, %v3656_v47  ;;  %v2116_v58 = vmul.f32 %v3378_v46, %v3370_v9  ;;  %v1613_v46 = vrot.slane %v1605_v57, %v3656_v47 }
 0x6d3   : > { %v1850_v41 = vcombine.low %v1840_v38, %v1847_v39  ;;  %v3049_v42 = vcombine.high %v1840_v38, %v1847_v39  ;;  %v2120_v1 = vpack.c.bf16 %v2116_v58, %v2116_v58  ;;  %v1621_v58 = vcombine.high %v1613_v46, %v3417_v17 }
 0x6d4   : > { %v3380_v54 = vpop.eup %3379 }
 0x6d5   : > { %v1857_v43 = vrot.slane %v1850_v41, %v3649_v40  ;;  %v1865_v44 = vrot.slane %v3049_v42, %v3649_v40  ;;  %v2117_v61 = vmul.f32 %v3380_v54, %v3372_v10  ;;  %v1620_v54 = vrot.slane %v1606_v31, %v3656_v47 }
 0x6d7   : > { %v1866_v45 = vcombine.low %v1857_v43, %v1865_v44  ;;  %v1867_v28 = vcombine.high %v1857_v43, %v1865_v44  ;;  %v2121_v4 = vpack.c.bf16 %v2117_v61, %v2117_v61  ;;  %v3341_v43 = vld [vmem:[%s4040_s16 + $0x8] sm:$0xff]   ;;  %v1622_v53 = vcombine.high %v1620_v54, %v3417_v17 }
 0x6d9   : > { %v1874_v48 = vrot.slane %v1866_v45, %v3656_v47  ;;  %v1881_v49 = vrot.slane %v1867_v28, %v3656_v47 }
 0x6db   : > { %v1884_v55 = vpack.c.bf16 %v1874_v48, %v1874_v48  ;;  %v1882_v56 = vcombine.high %v1874_v48, %v3417_v17  ;;  %v1883_v34 = vcombine.high %v1881_v49, %v3417_v17  ;;  %v1886_v60 = vpack.c.bf16 %v1881_v49, %v1881_v49  ;;  %v3342_v49 = vld [vmem:[%s4040_s16] sm:$0xff]  }
 0x6dd   : > { %v2128_v30 = vsel %vm1373_vm8, %v1884_v55, 0  ;;  %v1885_v59 = vpack.c.bf16 %v1882_v56, %v1882_v56  ;;  %v1887_v2 = vpack.c.bf16 %v1883_v34, %v1883_v34  ;;  %v2220_v3 = vsel %vm1373_vm8, %v1886_v60, 0 }
 0x6de   : > { %3228 = vmatpush3.bf16.msra.mxu1 %v2128_v30 }
 0x6df   : > { %v2174_v0 = vsel %vm1373_vm8, %v1885_v59, 0  ;;  %3239 = vmatprep.subr.bf16.mxu1 %v3417_v17  ;;  %v2266_v5 = vsel %vm1373_vm8, %v1887_v2, 0 }
 0x6e0   : > { %3234 = vmatpush3.bf16.msra.mxu0 %v2174_v0 }
 0x6e1   : > { %3230 = vmatmul.mubr.msk.bf16.vlgmr.msra.gmra.mxu1 %vm1369_vm9, %v2120_v1  ;;  %3245 = vmatprep.subr.bf16.mxu0 %v3417_v17 }
 0x6e2   : > { %3240 = vmatpush3.bf16.msra.mxu1 %v2220_v3  ;;  %3241 = vmatprep.mubr.msk.bf16.mxu1 %vm3418_vm4, %v3417_v17 }
 0x6e3   : > { %3236 = vmatmul.mubr.msk.bf16.vlgmr.msra.gmra.mxu0 %vm1369_vm9, %v2121_v4  ;;  %3251 = vmatprep.subr.bf16.mxu1 %v3417_v17 }
 0x6e4   : > { %3246 = vmatpush3.bf16.msra.mxu0 %v2266_v5  ;;  %3247 = vmatprep.mubr.msk.bf16.mxu0 %vm3418_vm4, %v3417_v17 }
 0x6e5   : > { %3259 = vmatprep.subr.bf16.mxu0 %v3417_v17 }
 0x6f7   : > { %v2111_v6 = vpop.xlane.xlu0 %2110 }
 0x6f8   : > { %3381 = vrcp.f32 %v2111_v6 }
 0x6fb   : > { %v2108_v7 = vpop.xlane.xlu1 %2107 }
 0x6fc   : > { %3383 = vrcp.f32 %v2108_v7 }
 0x705   : > { %v3382_v29 = vpop.eup %3381 }
 0x706   : > { %v2119_v8 = vmul.f32 %v3382_v29, %v3846_v16 }
 0x708   : > { %v2123_v9 = vpack.c.bf16 %v2119_v8, %v2119_v8 }
 0x709   : > { %v3384_v25 = vpop.eup %3383 }
 0x70a   : > { %3248 = vmatmul.mubr.msk.bf16.vlgmr.msra.gmra.mxu0 %vm1369_vm9, %v2123_v9  ;;  %v2118_v10 = vmul.f32 %v3384_v25, %v3850_v19  ;;  %v3059_v25 = vld [vmem:[%s4041_s19] ss:$0 sm:$0xff] }
 0x70b   : > { %3263 = vmatprep.mubr.msk.bf16.mxu0 %vm3418_vm4, %v3417_v17 }
 0x70c   : > { %v2122_v11 = vpack.c.bf16 %v2118_v10, %v2118_v10 }
 0x70e   : > { %3242 = vmatmul.mubr.msk.bf16.vlgmr.msra.gmra.mxu1 %vm1369_vm9, %v2122_v11 }
 0x70f   : > { %3255 = vmatprep.mubr.msk.bf16.mxu1 %vm3418_vm4, %v3417_v17  ;;  %3252 = vmatpush3.bf16.msra.mxu1 %v3341_v43 }
 0x710   : > { %3253 = vmatprep.subr.bf16.mxu1 %v3417_v17 }
 0x713   : > { %3254 = vmatpush3.bf16.msra.mxu1 %v3342_v49  ;;  %v3348_v49 = vld [vmem:[%s3580_s23 + $0x20] sm:$0xff]  }
 0x714   : > { %3267 = vmatprep.subr.bf16.mxu1 %v3417_v17 }
 0x7a1   : > { %v2164_v62 = vpop.f32.mrf.mxu1 }
 0x7a3   : > { %v3231_v63 = vpop.f32.mrf.mxu1  ;;  %v2210_v12 = vpop.f32.mrf.mxu0 }
 0x7a5   : > { %v2167_v13 = vpop.f32.mrf.mxu1  ;;  %v3237_v14 = vpop.f32.mrf.mxu0 }
 0x7a6   : > { %v3389_v13 = vld [vmem:[#allocation2] sm:$0xf] }
 0x7a7   : > { %v3232_v15 = vpop.f32.mrf.mxu1  ;;  %v2213_v16 = vpop.f32.mrf.mxu0 }
 0x7a8   : > { %v3390_v15 = vld [vmem:[#allocation2 + $0x4] sm:$0xf] }
 0x7a9   : > { %v3238_v18 = vpop.f32.mrf.mxu0 }
 0x7ca   : > { %v2302_v50 = vpop.f32.mrf.mxu0 }
 0x7cb   : > { %v2316_v19 = vcombine.low %v2210_v12, %v2302_v50 }
 0x7cc   : > { %v3249_v51 = vpop.f32.mrf.mxu0 }
 0x7cd   : > { %v2323_v27 = vrot.slane %v2316_v19, %v3649_v40  ;;  %v3429_v19 = vmov 839922192  }
 0x7ce   : > { %v2305_v20 = vpop.f32.mrf.mxu0  ;;  %v2256_v21 = vpop.f32.mrf.mxu1 }
 0x7cf   : > { %v2308_v22 = vcombine.low %v2164_v62, %v2256_v21  ;;  %v2481_v20 = vunpack.c.l.s4 %v3429_v19  ;;  %v3430_v21 = vmov 1985246804  }
 0x7d0   : > { %v3250_v24 = vpop.f32.mrf.mxu0  ;;  %v3243_v26 = vpop.f32.mrf.mxu1 }
 0x7d1   : > { %v2315_v32 = vrot.slane %v2308_v22, %v3649_v40  ;;  %v2488_v22 = vunpack.c.l.s4 %v3430_v21  ;;  %v2482_v24 = vunpack.c.0.s8 %v2481_v20 }
 0x7d2   : > { %v2259_v33 = vpop.f32.mrf.mxu1 }
 0x7d3   : > { %v2324_v35 = vcombine.low %v2315_v32, %v2323_v27  ;;  %v2325_v37 = vcombine.high %v2315_v32, %v2323_v27  ;;  %v2489_v26 = vunpack.c.0.s8 %v2488_v22  ;;  %v3922_v27 = vsub.s32 %v2482_v24, %v3644_v36 }
 0x7d4   : > { %v3244_v23 = vpop.f32.mrf.mxu1 }
 0x7d5   : > { %v2332_v38 = vrot.slane %v2324_v35, %v3656_v47  ;;  %v2339_v39 = vrot.slane %v2325_v37, %v3656_v47  ;;  %v3925_v32 = vsub.s32 %v2489_v26, %v3644_v36  ;;  %v3343_v36 = vld [vmem:[%s3570_s4 + $0x8] sm:$0xff]  }
 0x7d6   : > { %3260 = vmatpush3.bf16.msra.mxu0 %v3343_v36  ;;  %v3079_v36 = vld [vmem:[%s722_s1] ss:$0 sm:$0xff] }
 0x7d7   : > { %v2342_v41 = vcombine.low %v2332_v38, %v2339_v39  ;;  %v3058_v42 = vcombine.high %v2332_v38, %v2339_v39  ;;  %3261 = vmatprep.subr.bf16.mxu0 %v3417_v17 }
 0x7d9   : > { %v2349_v44 = vrot.slane %v2342_v41, %v3649_v40  ;;  %v2357_v45 = vrot.slane %v3058_v42, %v3649_v40 }
 0x7db   : > { %v2359_v28 = vcombine.high %v2349_v44, %v2357_v45  ;;  %v2358_v48 = vcombine.low %v2349_v44, %v2357_v45  ;;  %v3344_v45 = vld [vmem:[%s3570_s4] sm:$0xff]  }
 0x7dc   : > { %3262 = vmatpush3.bf16.msra.mxu0 %v3344_v45 }
 0x7dd   : > { %v2373_v55 = vrot.slane %v2359_v28, %v3656_v47  ;;  %v2366_v40 = vrot.slane %v2358_v48, %v3656_v47  ;;  %v3345_v28 = vld [vmem:[%s3580_s23 + $0x38] sm:$0xff]   ;;  %v3347_v48 = vld [vmem:[%s3580_s23 + $0x28] sm:$0xff]  }
 0x7df   : > { %v3328_v56 = vpack.i.bf16 %v1620_v54, %v2373_v55  ;;  %v2374_v34 = vcombine.high %v2366_v40, %v3417_v17  ;;  %v2375_v52 = vcombine.high %v2373_v55, %v3417_v17  ;;  %v3349_v54 = vld [vmem:[%s3580_s23 + $0x18] sm:$0xff]   ;;  %v3350_v55 = vld [vmem:[%s3580_s23 + $0x10] sm:$0xff]  }
 0x7e1   : > { %3329 = vrot.lane.b32.xlu1 %v3328_v56, %s3426_s28  ;;  %v3333_v57 = vpack.i.bf16 %v1621_v58, %v2374_v34  ;;  %v3063_v34 = vld [vmem:[%s4042_s22] ss:$0 sm:$0xff] }
 0x7e3   : > { %3334 = vrot.lane.b32.xlu0 %v3333_v57, %s3427_s26 }
 0x7e5   : > { %2385 = vrot.lane.b32.xlu1 %v2375_v52, %s3428_s0  ;;  %v3064_v52 = vld [vmem:[%s4043_s3] ss:$0 sm:$0xff] }
 0x7e7   : > { %1632 = vrot.lane.b32.xlu0 %v1622_v53, %s3428_s0 }
 0x853   : > { %v3330_v47 = vpop.permute.xlu1 %3329 }
 0x854   : > { %v3332_v60 = vunpack.i.h.bf16 %v3330_v47  ;;  %v3331_v61 = vunpack.i.l.bf16 %v3330_v47 }
 0x855   : > { %v3335_v31 = vpop.permute.xlu0 %3334 }
 0x856   : > { %v3337_v30 = vunpack.i.h.bf16 %v3335_v31  ;;  %v3336_v59 = vunpack.i.l.bf16 %v3335_v31  ;;  %v2535_v31 = vcombine.high %v3063_v34, %v3063_v34 }
 0x857   : > { %v2386_v2 = vpop.permute.xlu1 %2385 }
 0x858   : > { %v2388_v0 = vsel %vm1131_vm6, %v2366_v40, %v3336_v59  ;;  %v1635_v1 = vsel %vm1131_vm6, %v1613_v46, %v3337_v30  ;;  %v3346_v46 = vld [vmem:[%s3580_s23 + $0x30] sm:$0xff]  }
 0x859   : > { %v2389_v3 = vsel %vm1636_vm10, %v2388_v0, %v3331_v61  ;;  %v1633_v4 = vpop.permute.xlu0 %1632  ;;  %v1637_v5 = vsel %vm1636_vm10, %v1635_v1, %v3332_v60  ;;  %v2545_v60 = vcombine.high %v3064_v52, %v3064_v52 }
 0x85a   : > { %v2390_v6 = vsel %vm1638_vm11, %v2389_v3, %v2386_v2  ;;  %v1639_v29 = vsel %vm1638_vm11, %v1637_v5, %v1633_v4  ;;  %v3351_v5 = vld [vmem:[%s3580_s23 + $0x8] sm:$0xff]  }
 0x85b   : > { %v2392_v7 = vrot.slane %v2390_v6, 4  ;;  %v3352_v6 = vld [vmem:[%s3580_s23] sm:$0xff]  }
 0x85d   : > { %v2395_v8 = vsel %vm2394_vm12, %v1639_v29, %v2392_v7  ;;  %v3065_v7 = vld [vmem:[%s708_s6] ss:$0 sm:$0xff] }
 0x85e   : > { %v2400_v9 = vpack.c.bf16 %v2395_v8, %v2395_v8 }
 0x860   : > { %3256 = vmatmul.mubr.msk.bf16.vlgmr.msra.gmra.mxu1 %vm837_vm5, %v2400_v9 }
 0x861   : > { %3283 = vmatprep.mubr.msk.bf16.mxu1 %vm3418_vm4, %v3417_v17  ;;  %3268 = vmatpush3.bf16.msra.mxu1 %v3345_v28 }
 0x862   : > { %3269 = vmatprep.subr.bf16.mxu1 %v3417_v17 }
 0x865   : > { %3270 = vmatpush3.bf16.msra.mxu1 %v3346_v46 }
 0x866   : > { %3271 = vmatprep.subr.bf16.mxu1 %v3417_v17 }
 0x869   : > { %3272 = vmatpush3.bf16.msra.mxu1 %v3347_v48  ;;  %v2814_v48 = vcombine.high %v3079_v36, %v3079_v36 }
 0x86a   : > { %3273 = vmatprep.subr.bf16.mxu1 %v3417_v17 }
 0x86d   : > { %3274 = vmatpush3.bf16.msra.mxu1 %v3348_v49 }
 0x86e   : > { %3275 = vmatprep.subr.bf16.mxu1 %v3417_v17 }
 0x871   : > { %3276 = vmatpush3.bf16.msra.mxu1 %v3349_v54 }
 0x872   : > { %3277 = vmatprep.subr.bf16.mxu1 %v3417_v17 }
 0x875   : > { %3278 = vmatpush3.bf16.msra.mxu1 %v3350_v55 }
 0x876   : > { %3279 = vmatprep.subr.bf16.mxu1 %v3417_v17 }
 0x879   : > { %3280 = vmatpush3.bf16.msra.mxu1 %v3351_v5 }
 0x87a   : > { %3281 = vmatprep.subr.bf16.mxu1 %v3417_v17  ;;  %v3069_v17 = vld [vmem:[%s716_s27] ss:$0 sm:$0xff] }
 0x87d   : > { %3282 = vmatpush3.bf16.msra.mxu1 %v3352_v6 }
 0x920   : > { %v2457_v10 = vpop.f32.mrf.mxu1 }
 0x921   : > { %v2458_v11 = vadd.f32 %v3059_v25, %v2457_v10 }
 0x922   : > { %v3257_v62 = vpop.f32.mrf.mxu1 }
 0x923   : > { %v2464_v63 = vcombine.high %v2458_v11, %v2458_v11  ;;  %v2466_v14 = vadd.f32 %v3389_v13, %v2458_v11 }
 0x924   : > { %v2460_v12 = vpop.f32.mrf.mxu1 }
 0x925   : > { %v2467_v16 = vadd.f32 %v3390_v15, %v2464_v63 }
 0x926   : > { %v3258_v18 = vpop.f32.mrf.mxu1 }
 0x927   : > { %v2472_v50 = vcombine.low %v2466_v14, %v2467_v16 }
 0x929   : > { %v2474_v51 = vsel %vm837_vm5, %v2472_v50, 0.0 }
 0x92a   : > { %2475 = vadd.xlane.f32.xlu1 %v2474_v51 }
 0x9b3   : > { %v2476_v33 = vpop.xlane.xlu1 %2475 }
 0x9b4   : > { %v2478_v35 = vmul.f32 0.03125, %v2476_v33 }
 0x9b6   : > { %v2486_v37 = vrot.slane %v2478_v35, %v3922_v27  ;;  %v2493_v23 = vrot.slane %v2478_v35, %v3925_v32 }
 0x9b8   : > { %v2496_v38 = vsub.f32 %v2466_v14, %v2486_v37  ;;  %v2497_v39 = vsub.f32 %v2467_v16, %v2493_v23 }
 0x9ba   : > { %v2498_v41 = vmul.f32 %v2496_v38, %v2496_v38  ;;  %v2499_v42 = vmul.f32 %v2497_v39, %v2497_v39 }
 0x9bc   : > { %v2502_v43 = vcombine.low %v2498_v41, %v2499_v42 }
 0x9be   : > { %v2504_v44 = vsel %vm837_vm5, %v2502_v43, 0.0  ;;  %v3078_v43 = vld [vmem:[%s719_s30] ss:$0 sm:$0xff]  ;;  %s4044_s30 = sld [smem:[#allocation12_spill]] (!%p3080_p6) }
 0x9bf   : > { %2505 = vadd.xlane.f32.xlu0 %v2504_v44  ;;  %v2804_v45 = vcombine.high %v3078_v43, %v3078_v43 }
 0xa48   : > { %v2506_v40 = vpop.xlane.xlu0 %2505 }
 0xa49   : > { %v2507_v56 = vmul.f32 0.03125, %v2506_v40 }
 0xa4b   : > { %v2508_v58 = vadd.f32 1e-05, %v2507_v56 }
 0xa4d   : > { %3385 = vrsqrt.f32 %v2508_v58 }
 0xa5a   : > { %v3386_v57 = vpop.eup %3385 }
 0xa5b   : > { %v2517_v53 = vrot.slane %v3386_v57, %v3922_v27  ;;  %v2524_v47 = vrot.slane %v3386_v57, %v3925_v32 }
 0xa5d   : > { %v2527_v30 = vmul.f32 %v2517_v53, %v2496_v38  ;;  %v2528_v59 = vmul.f32 %v2524_v47, %v2497_v39 }
 0xa5f   : > { %v2537_v61 = vmul.f32 %v3063_v34, %v2527_v30  ;;  %v2538_v0 = vmul.f32 %v2535_v31, %v2528_v59 }
 0xa61   : > { %v2547_v1 = vadd.f32 %v3064_v52, %v2537_v61  ;;  %v2548_v2 = vadd.f32 %v2545_v60, %v2538_v0 }
 0xa63   : > { %v2555_v3 = vcombine.low %v2547_v1, %v2548_v2 }
 0xa65   : > { %v2557_v4 = vpack.c.bf16 %v2555_v3, %v2555_v3 }
 0xa67   : > { %3264 = vmatmul.mubr.msk.bf16.vlgmr.msra.gmra.mxu0 %vm837_vm5, %v2557_v4 }
 0xb27   : > { %v2614_v29 = vpop.f32.mrf.mxu0 }
 0xb28   : > { %v2615_v8 = vadd.f32 %v3065_v7, %v2614_v29 }
 0xb29   : > { %v3265_v9 = vpop.f32.mrf.mxu0 }
 0xb2a   : > { %v2620_v25 = vmax.f32 %v2615_v8, 0.0 }
 0xb2b   : > { %v2617_v10 = vpop.f32.mrf.mxu0 }
 0xb2c   : > { %v2637_v11 = vpack.c.bf16 %v2620_v25, %v2620_v25 }
 0xb2d   : > { %v3266_v62 = vpop.f32.mrf.mxu0 }
 0xb2e   : > { %3284 = vmatmul.mubr.bf16.vlgmr.msra.gmra.mxu1 %v2637_v11 }
 0xbee   : > { %v2727_v63 = vpop.f32.mrf.mxu1 }
 0xbef   : > { %v2728_v12 = vadd.f32 %v3069_v17, %v2727_v63 }
 0xbf0   : > { %v3285_v13 = vpop.f32.mrf.mxu1 }
 0xbf1   : > { %v2734_v14 = vcombine.high %v2728_v12, %v2728_v12  ;;  %v2736_v16 = vadd.f32 %v2728_v12, %v2547_v1 }
 0xbf2   : > { %v2730_v15 = vpop.f32.mrf.mxu1 }
 0xbf3   : > { %v2737_v18 = vadd.f32 %v2734_v14, %v2548_v2 }
 0xbf4   : > { %v3286_v50 = vpop.f32.mrf.mxu1 }
 0xbf5   : > { %v2742_v51 = vcombine.low %v2736_v16, %v2737_v18 }
 0xbf7   : > { %v2744_v19 = vsel %vm837_vm5, %v2742_v51, 0.0 }
 0xbf8   : > { %2745 = vadd.xlane.f32.xlu0 %v2744_v19 }
 0xc81   : > { %v2746_v20 = vpop.xlane.xlu0 %2745 }
 0xc82   : > { %v2747_v21 = vmul.f32 0.03125, %v2746_v20 }
 0xc84   : > { %v2755_v22 = vrot.slane %v2747_v21, %v3922_v27  ;;  %v2762_v24 = vrot.slane %v2747_v21, %v3925_v32 }
 0xc86   : > { %v2765_v26 = vsub.f32 %v2736_v16, %v2755_v22  ;;  %v2766_v33 = vsub.f32 %v2737_v18, %v2762_v24 }
 0xc88   : > { %v2767_v35 = vmul.f32 %v2765_v26, %v2765_v26  ;;  %v2768_v37 = vmul.f32 %v2766_v33, %v2766_v33 }
 0xc8a   : > { %v2771_v23 = vcombine.low %v2767_v35, %v2768_v37 }
 0xc8c   : > { %v2773_v38 = vsel %vm837_vm5, %v2771_v23, 0.0 }
 0xc8d   : > { %2774 = vadd.xlane.f32.xlu1 %v2773_v38 }
 0xd16   : > { %v2775_v39 = vpop.xlane.xlu1 %2774 }
 0xd17   : > { %v2776_v41 = vmul.f32 0.03125, %v2775_v39 }
 0xd19   : > { %v2777_v42 = vadd.f32 1e-05, %v2776_v41 }
 0xd1b   : > { %3387 = vrsqrt.f32 %v2777_v42 }
 0xd28   : > { %v3388_v44 = vpop.eup %3387 }
 0xd29   : > { %v2786_v28 = vrot.slane %v3388_v44, %v3922_v27  ;;  %v2793_v46 = vrot.slane %v3388_v44, %v3925_v32 }
 0xd2b   : > { %v2796_v49 = vmul.f32 %v2786_v28, %v2765_v26  ;;  %v2797_v54 = vmul.f32 %v2793_v46, %v2766_v33 }
 0xd2d   : > { %v2806_v55 = vmul.f32 %v3078_v43, %v2796_v49  ;;  %v2807_v40 = vmul.f32 %v2804_v45, %v2797_v54  ;;  %2824 = sbr.rel (%p3080_p6) target bundleno = 3381 (0xd35), region = 92 }
 0xd2f   : > { %v2816_v56 = vadd.f32 %v3079_v36, %v2806_v55  ;;  %v2817_v58 = vadd.f32 %v2814_v48, %v2807_v40 }
 0xd31   : > { %2819 = vst.msk [vmem:[#allocation2] sm:$0xf] %vm2818_vm13, %v2816_v56  ;;  %2820 = vst.msk [vmem:[#allocation2 + $0x4] sm:$0xf] %vm2818_vm13, %v2817_v58 }
 0xd32   : > { %v2825_v34 = vpack.c.bf16 %v2816_v56, %v2816_v56  ;;  %vm2827_vm14 = vcmask 254976   ;;  %v2826_v57 = vpack.c.bf16 %v2817_v58, %v2817_v58 }
 0xd34   : > { %2828 = vst.msk [vmem:[%s4044_s30] sm:$0x3] %vm2827_vm14, %v2825_v34  ;;  %2829 = vst.msk [vmem:[%s4044_s30 + $0x2] sm:$0x3] %vm2827_vm14, %v2826_v57 }
 0xd35 PF: > { %s4045_s4 = sld [smem:[#allocation4_spill]] }
 0xd36   : > { %s4046_s21 = sld [smem:[#allocation3_spill]] }
 0xd37   : > { %s4047_s22 = sld [smem:[#allocation5_spill]] }
 0xd3b   : > { %s26_s23 = sadd.s32 1, %s4045_s4  }
 0xd3c   : > { %p23_p7 = scmp.ge.s32.totalorder %s26_s23, 4  }
 0xd3e   :  { %25 = sbr.rel (!%p23_p7) target bundleno = 7 (0x7), region = 158 }

</bundles_post_ra>
